<compile_context>
chip_gen: v5e
topology: v5e:2x2
jax: 0.10.0
libtpu: 0.0.40
codegen_flags: <defaults>
</compile_context>

<pallas_src>
import functools
import math

import jax
import jax.numpy as jnp
from jax.experimental import pallas as pl
from jax.experimental.pallas import tpu as pltpu

LN_EPS = 1e-5  # torch.nn.LayerNorm default


# ----------------------------------------------------------------------------
# helpers
# ----------------------------------------------------------------------------
def _cdiv(a, b):
    return (a + b - 1) // b


def _round_up(x, m):
    return _cdiv(x, m) * m


def _pad_rows(x, mp):
    m = x.shape[0]
    if mp == m:
        return x
    return jnp.pad(x, ((0, mp - m), (0, 0)))


def _pick_tile(M, cap):
    """Balanced M tiles: padding never approaches a full tile."""
    n_tiles = _cdiv(M, cap)
    tile = _round_up(_cdiv(M, n_tiles), 8)
    return tile, tile * _cdiv(M, tile)


@functools.lru_cache(maxsize=None)
def _hw_budget():
    """(vmem_limit_bytes, m_tile_cap) tuned per TPU generation."""
    try:
        vmem_cap = int(getattr(pltpu.get_tpu_info(), "vmem_capacity_bytes", 0))
    except Exception:
        vmem_cap = 0
    if vmem_cap > 0:
        limit = min(int(0.65 * vmem_cap), 96 * 1024 * 1024)   # ~83 MiB v5e/v6e, ~41 MiB v7x
        cap = 1024 if vmem_cap >= 100 * 1024 * 1024 else 512
        # NOTE: on v5e (single vector-store slot) the fused proj+MLP kernel may
        # prefer tile 256 if store/spill bound; 512-1024 measured fine on v6e.
        return limit, cap
    return 32 * 1024 * 1024, 512   # unknown hardware: conservative


def _cparams(n_axes=1):
    vmem, _ = _hw_budget()
    return pltpu.CompilerParams(
        dimension_semantics=("parallel",) * n_axes,
        vmem_limit_bytes=vmem,
    )


def _padded_dim_head(heads, dim_head):
    """Smallest dh' >= dim_head such that heads*dh' is a multiple of 128."""
    step = 128 // math.gcd(heads, 128)
    return _round_up(dim_head, step)


def _layernorm(x, g, b):
    # single-pass statistics E[x], E[x^2] (fp32, normalized activations)
    mean = jnp.mean(x, axis=-1, keepdims=True)
    mean2 = jnp.mean(x * x, axis=-1, keepdims=True)
    var = jnp.maximum(mean2 - mean * mean, 0.0)
    return (x - mean) * jax.lax.rsqrt(var + LN_EPS) * g + b


def _ln_matmul(x, g, b, w_bf16, wb):
    y = _layernorm(x.astype(jnp.float32), g, b).astype(jnp.bfloat16)
    return jnp.dot(y, w_bf16, preferred_element_type=jnp.float32) + wb


# ----------------------------------------------------------------------------
# Kernel 1: fused LayerNorm + Linear  (to_q)   -- emits bf16
# ----------------------------------------------------------------------------
def _ln_linear_kernel(x_ref, g_ref, b_ref, w_ref, wb_ref, o_ref):
    o_ref[...] = _ln_matmul(x_ref[...], g_ref[...], b_ref[...],
                            w_ref[...], wb_ref[...]).astype(o_ref.dtype)


def ln_linear(x, gamma, beta, w, wb, *, out_dtype=jnp.bfloat16):
    M, D = x.shape
    Dout = w.shape[1]
    _, tile_cap = _hw_budget()
    tile_m, Mp = _pick_tile(M, tile_cap)
    xp = _pad_rows(x, Mp)
    row = lambda i: (i, 0)
    fix = lambda i: (0, 0)
    out = pl.pallas_call(
        _ln_linear_kernel,
        out_shape=jax.ShapeDtypeStruct((Mp, Dout), out_dtype),
        grid_spec=pltpu.PrefetchScalarGridSpec(
            num_scalar_prefetch=0,
            grid=(Mp // tile_m,),
            in_specs=[
                pl.BlockSpec((tile_m, D), row),
                pl.BlockSpec((1, D), fix),
                pl.BlockSpec((1, D), fix),
                pl.BlockSpec((D, Dout), fix),
                pl.BlockSpec((1, Dout), fix),
            ],
            out_specs=pl.BlockSpec((tile_m, Dout), row),
        ),
        compiler_params=_cparams(1),
    )(xp, gamma, beta, w, wb)
    return out[:M]


# ----------------------------------------------------------------------------
# Kernel 1b: dual LayerNorm + Linear  (to_k, to_v share one pallas_call)
# ----------------------------------------------------------------------------
def _ln_linear_dual_kernel(xk_ref, xv_ref,
                           gk_ref, bk_ref, wk_ref, wbk_ref,
                           gv_ref, bv_ref, wv_ref, wbv_ref,
                           ok_ref, ov_ref):
    ok_ref[...] = _ln_matmul(xk_ref[...], gk_ref[...], bk_ref[...],
                             wk_ref[...], wbk_ref[...]).astype(ok_ref.dtype)
    ov_ref[...] = _ln_matmul(xv_ref[...], gv_ref[...], bv_ref[...],
                             wv_ref[...], wbv_ref[...]).astype(ov_ref.dtype)


def ln_linear_dual(xk, xv, pk, pv, *, out_dtype=jnp.bfloat16):
    gk, bk, wk, wbk = pk
    gv, bv, wv, wbv = pv
    M, D = xk.shape
    Dout = wk.shape[1]
    _, tile_cap = _hw_budget()
    tile_m, Mp = _pick_tile(M, tile_cap)
    xkp, xvp = _pad_rows(xk, Mp), _pad_rows(xv, Mp)
    row = lambda i: (i, 0)
    fix = lambda i: (0, 0)
    outk, outv = pl.pallas_call(
        _ln_linear_dual_kernel,
        out_shape=(jax.ShapeDtypeStruct((Mp, Dout), out_dtype),
                   jax.ShapeDtypeStruct((Mp, Dout), out_dtype)),
        grid_spec=pltpu.PrefetchScalarGridSpec(
            num_scalar_prefetch=0,
            grid=(Mp // tile_m,),
            in_specs=[
                pl.BlockSpec((tile_m, D), row),
                pl.BlockSpec((tile_m, D), row),
                pl.BlockSpec((1, D), fix), pl.BlockSpec((1, D), fix),
                pl.BlockSpec((D, Dout), fix), pl.BlockSpec((1, Dout), fix),
                pl.BlockSpec((1, D), fix), pl.BlockSpec((1, D), fix),
                pl.BlockSpec((D, Dout), fix), pl.BlockSpec((1, Dout), fix),
            ],
            out_specs=(pl.BlockSpec((tile_m, Dout), row),
                       pl.BlockSpec((tile_m, Dout), row)),
        ),
        compiler_params=_cparams(1),
    )(xkp, xvp, gk, bk, wk, wbk, gv, bv, wv, wbv)
    return outk[:M], outv[:M]


# ----------------------------------------------------------------------------
# Kernel 2: cross attention core.
#   grid = (batch, Q tiles).  Per head: flash-style running softmax over the
#   flattened (camera, key) axis -- identical math to torch's softmax over the
#   (n K) flattened logits -- and direct per-head lane-slice writes of the
#   (tq, heads*dh) output block (no concat, no (n,Q,K) materialization).
#   Scale is already folded into the to_q weights.
# ----------------------------------------------------------------------------
def _cross_attn_kernel(q_ref, k_ref, v_ref, o_ref, *, heads, dim_head, n_cams):
    q = q_ref[0]   # (n, tq, mdh) bf16 (pre-scaled)
    k = k_ref[0]   # (n, K,  mdh) bf16
    v = v_ref[0]   # (n, K,  mdh) bf16

    for m in range(heads):                       # static tiny loop
        lo, hi = m * dim_head, (m + 1) * dim_head
        qm, km, vm = q[:, :, lo:hi], k[:, :, lo:hi], v[:, :, lo:hi]

        # camera 0 initializes the running softmax state
        s = jnp.einsum('qd,kd->qk', qm[0], km[0],
                       preferred_element_type=jnp.float32)        # (tq, K)
        m_i = jnp.max(s, axis=-1, keepdims=True)
        p = jnp.exp(s - m_i)
        l_i = jnp.sum(p, axis=-1, keepdims=True)
        acc = jnp.einsum('qk,kd->qd', p.astype(jnp.bfloat16), vm[0],
                         preferred_element_type=jnp.float32)      # (tq, dh)

        for c in range(1, n_cams):               # online softmax over cameras
            s = jnp.einsum('qd,kd->qk', qm[c], km[c],
                           preferred_element_type=jnp.float32)
            m_new = jnp.maximum(m_i, jnp.max(s, axis=-1, keepdims=True))
            alpha = jnp.exp(m_i - m_new)
            p = jnp.exp(s - m_new)
            l_i = alpha * l_i + jnp.sum(p, axis=-1, keepdims=True)
            acc = alpha * acc + jnp.einsum('qk,kd->qd', p.astype(jnp.bfloat16),
                                           vm[c],
                                           preferred_element_type=jnp.float32)
            m_i = m_new

        o_ref[0, :, lo:hi] = (acc * pl.reciprocal(l_i, approx=True)
                              ).astype(o_ref.dtype)


def cross_attention_core(qp, kp, vp, *, heads, dim_head):
    b, n, Q, mdh = qp.shape
    K = kp.shape[2]
    _, tile_cap = _hw_budget()
    tq, Qp = _pick_tile(Q, min(tile_cap, 512))
    if Qp != Q:
        qp = jnp.pad(qp, ((0, 0), (0, 0), (0, Qp - Q), (0, 0)))
    out = pl.pallas_call(
        functools.partial(_cross_attn_kernel, heads=heads,
                          dim_head=dim_head, n_cams=n),
        out_shape=jax.ShapeDtypeStruct((b, Qp, mdh), jnp.bfloat16),
        grid_spec=pltpu.PrefetchScalarGridSpec(
            num_scalar_prefetch=0,
            grid=(b, Qp // tq),
            in_specs=[
                pl.BlockSpec((1, n, tq, mdh), lambda i, j: (i, 0, j, 0)),
                pl.BlockSpec((1, n, K, mdh), lambda i, j: (i, 0, 0, 0)),  # q-tile invariant
                pl.BlockSpec((1, n, K, mdh), lambda i, j: (i, 0, 0, 0)),
            ],
            out_specs=pl.BlockSpec((1, tq, mdh), lambda i, j: (i, j, 0)),
        ),
        compiler_params=_cparams(2),
    )(qp, kp, vp)
    return out[:, :Q]


# ----------------------------------------------------------------------------
# Kernel 3: proj + skip + prenorm + MLP (fc1 -> GELU -> fc2) + residual + postnorm
# ----------------------------------------------------------------------------
def _proj_mlp_postnorm_kernel(a_ref, skip_ref, wp_ref, bp_ref, g1_ref, b1_ref,
                              w1_ref, wb1_ref, w2_ref, wb2_ref, g2_ref, b2_ref,
                              o_ref):
    a = a_ref[...].astype(jnp.bfloat16)
    z = (jnp.dot(a, wp_ref[...], preferred_element_type=jnp.float32)
         + bp_ref[...] + skip_ref[...].astype(jnp.float32))
    zn = _layernorm(z, g1_ref[...], b1_ref[...])
    h = (jnp.dot(zn.astype(jnp.bfloat16), w1_ref[...],
                 preferred_element_type=jnp.float32) + wb1_ref[...])
    # TODO(synk): tanh-approx GELU in-kernel; torch nn.GELU default is exact erf
    # (max abs deviation ~1e-3) -- erf has no guaranteed Mosaic lowering.
    g = 0.5 * h * (1.0 + jnp.tanh(0.7978845608028654 * (h + 0.044715 * h * h * h)))
    z2 = zn + (jnp.dot(g.astype(jnp.bfloat16), w2_ref[...],
                       preferred_element_type=jnp.float32) + wb2_ref[...])
    o_ref[...] = _layernorm(z2, g2_ref[...], b2_ref[...]).astype(o_ref.dtype)


def proj_mlp_postnorm(a, skip, wp, bp, g1, b1, w1, wb1, w2, wb2, g2, b2,
                      *, out_dtype=jnp.float32):
    M, mdh = a.shape
    d = wp.shape[1]
    hidden = w1.shape[1]
    _, tile_cap = _hw_budget()
    tile_m, Mp = _pick_tile(M, tile_cap)
    ap, sp = _pad_rows(a, Mp), _pad_rows(skip, Mp)
    row = lambda i: (i, 0)
    fix = lambda i: (0, 0)
    out = pl.pallas_call(
        _proj_mlp_postnorm_kernel,
        out_shape=jax.ShapeDtypeStruct((Mp, d), out_dtype),
        grid_spec=pltpu.PrefetchScalarGridSpec(
            num_scalar_prefetch=0,
            grid=(Mp // tile_m,),
            in_specs=[
                pl.BlockSpec((tile_m, mdh), row),
                pl.BlockSpec((tile_m, d), row),
                pl.BlockSpec((mdh, d), fix), pl.BlockSpec((1, d), fix),
                pl.BlockSpec((1, d), fix), pl.BlockSpec((1, d), fix),
                pl.BlockSpec((d, hidden), fix), pl.BlockSpec((1, hidden), fix),
                pl.BlockSpec((hidden, d), fix), pl.BlockSpec((1, d), fix),
                pl.BlockSpec((1, d), fix), pl.BlockSpec((1, d), fix),
            ],
            out_specs=pl.BlockSpec((tile_m, d), row),
        ),
        compiler_params=_cparams(1),
    )(ap, sp, wp, bp, g1, b1, w1, wb1, w2, wb2, g2, b2)
    return out[:M]


# ----------------------------------------------------------------------------
# Parameters (fp32, torch-equivalent layout) + one-time preparation
# ----------------------------------------------------------------------------
def init_params(key, dim, heads, dim_head, qkv_bias=True):
    mdh = heads * dim_head
    hidden = 2 * dim
    ks = jax.random.split(key, 22)

    def lin(kw, kb, din, dout, use_bias=True):
        w = 0.02 * jax.random.normal(kw, (din, dout), jnp.float32)  # (in, out)
        b = (0.02 * jax.random.normal(kb, (dout,), jnp.float32)
             if use_bias else jnp.zeros((dout,), jnp.float32))
        return w, b

    def ln(kg, kb, d):
        g = 1.0 + 0.05 * jax.random.normal(kg, (d,), jnp.float32)
        b = 0.05 * jax.random.normal(kb, (d,), jnp.float32)
        return g, b

    p = {}
    for name, i in (("to_q", 0), ("to_k", 4), ("to_v", 8)):
        g, b = ln(ks[i], ks[i + 1], dim)
        w, wb = lin(ks[i + 2], ks[i + 3], dim, mdh, use_bias=qkv_bias)
        p[name] = (g, b, w, wb)
    p["proj"] = lin(ks[12], ks[13], mdh, dim)
    p["prenorm"] = ln(ks[14], ks[15], dim)
    p["fc1"] = lin(ks[16], ks[17], dim, hidden)
    p["fc2"] = lin(ks[18], ks[19], hidden, dim)
    p["postnorm"] = ln(ks[20], ks[21], dim)
    return p


def prepare_params(params, *, heads, dim_head):
    """One-time param prep: fold softmax scale into to_q, zero-pad dim_head so
    heads*dh is a multiple of 128 (exact math), pre-cast matmul weights to
    bf16, pre-reshape vectors to (1, D)."""
    scale = dim_head ** (-0.5)
    dh_pad = _padded_dim_head(heads, dim_head)
    mdh_pad = heads * dh_pad
    pad = dh_pad - dim_head

    def pad_qkv(w, wb):
        d = w.shape[0]
        w = jnp.pad(w.reshape(d, heads, dim_head),
                    ((0, 0), (0, 0), (0, pad))).reshape(d, mdh_pad)
        wb = jnp.pad(wb.reshape(heads, dim_head),
                     ((0, 0), (0, pad))).reshape(1, mdh_pad)
        return w, wb

    out = {}
    for name in ("to_q", "to_k", "to_v"):
        g, b, w, wb = params[name]
        w, wb = pad_qkv(w, wb)
        if name == "to_q":
            w, wb = w * scale, wb * scale        # fold attention scale
        out[name] = (g.reshape(1, -1).astype(jnp.float32),
                     b.reshape(1, -1).astype(jnp.float32),
                     w.astype(jnp.bfloat16),
                     wb.astype(jnp.float32))

    wp, bp = params["proj"]
    d_out = wp.shape[1]
    wp = jnp.pad(wp.reshape(heads, dim_head, d_out),
                 ((0, 0), (0, pad), (0, 0))).reshape(mdh_pad, d_out)
    out["proj"] = (wp.astype(jnp.bfloat16), bp.reshape(1, -1).astype(jnp.float32))

    for name in ("fc1", "fc2"):
        w, wb = params[name]
        out[name] = (w.astype(jnp.bfloat16), wb.reshape(1, -1).astype(jnp.float32))
    for name in ("prenorm", "postnorm"):
        g, b = params[name]
        out[name] = (g.reshape(1, -1).astype(jnp.float32),
                     b.reshape(1, -1).astype(jnp.float32))
    return out


# ----------------------------------------------------------------------------
# Forward pass (mirrors CrossAttention.forward)
# ----------------------------------------------------------------------------
def cross_attention_forward(params, q, k, v, skip=None, *, heads, dim_head):
    b, n, d, H, W = q.shape
    _, _, _, h, w = k.shape
    Q, K = H * W, h * w
    dh = _padded_dim_head(heads, dim_head)
    mdh = heads * dh

    # b n d H W -> (b n H W) d   (channel-last rows for the LN+Linear kernels)
    q2 = jnp.transpose(q, (0, 1, 3, 4, 2)).reshape(b * n * Q, d)
    k2 = jnp.transpose(k, (0, 1, 3, 4, 2)).reshape(b * n * K, d)
    v2 = jnp.transpose(v, (0, 1, 3, 4, 2)).reshape(b * n * K, d)

    qp = ln_linear(q2, *params["to_q"]).reshape(b, n, Q, mdh)        # bf16
    kp, vp = ln_linear_dual(k2, v2, params["to_k"], params["to_v"])  # bf16
    kp = kp.reshape(b, n, K, mdh)
    vp = vp.reshape(b, n, K, mdh)   # camera-major key order == torch (n h w)

    # output already lane-dense (b, Q, heads*dim_head) bf16
    a = cross_attention_core(qp, kp, vp, heads=heads, dim_head=dh)

    if skip is not None:
        skip2 = jnp.transpose(skip, (0, 2, 3, 1)).reshape(b * Q, d)
    else:
        skip2 = jnp.zeros((b * Q, d), jnp.float32)

    z = proj_mlp_postnorm(a.reshape(b * Q, mdh), skip2,
                          *params["proj"], *params["prenorm"],
                          *params["fc1"], *params["fc2"], *params["postnorm"],
                          out_dtype=q.dtype)

    # b (H W) d -> b d H W
    return z.reshape(b, Q, d).transpose(0, 2, 1).reshape(b, d, H, W)


if __name__ == "__main__":
    b, n, dim = 2, 2, 32
    heads, dim_head = 2, 32
    H = W = 8
    h = w = 4

    key = jax.random.PRNGKey(0)
    kq, kk, kv, ksk, kp = jax.random.split(key, 5)
    q = jax.random.normal(kq, (b, n, dim, H, W), jnp.float32)
    k = jax.random.normal(kk, (b, n, dim, h, w), jnp.float32)
    v = jax.random.normal(kv, (b, n, dim, h, w), jnp.float32)
    skip = jax.random.normal(ksk, (b, dim, H, W), jnp.float32)

    raw_params = init_params(kp, dim, heads, dim_head, qkv_bias=True)
    params = prepare_params(raw_params, heads=heads, dim_head=dim_head)

    fwd = jax.jit(functools.partial(cross_attention_forward,
                                    heads=heads, dim_head=dim_head))
    out = fwd(params, q, k, v, skip)
    jax.block_until_ready(out)
    assert out.shape == (b, dim, H, W), out.shape
    assert bool(jnp.all(jnp.isfinite(out)))
    print("KERNEL_OK")
</pallas_src>

<mosaic_0001>
module attributes {stable_mosaic.version = 11 : i64} {
  func.func @_ln_linear_dual_kernel(%arg0: i32, %arg1: memref<64x32xf32, #tpu.memory_space<vmem>>, %arg2: memref<64x32xf32, #tpu.memory_space<vmem>>, %arg3: memref<1x32xf32, #tpu.memory_space<vmem>>, %arg4: memref<1x32xf32, #tpu.memory_space<vmem>>, %arg5: memref<32x128xbf16, #tpu.memory_space<vmem>>, %arg6: memref<1x128xf32, #tpu.memory_space<vmem>>, %arg7: memref<1x32xf32, #tpu.memory_space<vmem>>, %arg8: memref<1x32xf32, #tpu.memory_space<vmem>>, %arg9: memref<32x128xbf16, #tpu.memory_space<vmem>>, %arg10: memref<1x128xf32, #tpu.memory_space<vmem>>, %arg11: memref<64x128xbf16, #tpu.memory_space<vmem>>, %arg12: memref<64x128xbf16, #tpu.memory_space<vmem>>) attributes {dimension_semantics = [#tpu.dimension_semantics<parallel>], iteration_bounds = array<i64: 1>, scalar_prefetch = 0 : i64, scratch_operands = 0 : i64, tpu.core_type = #tpu.core_type<tc>, window_params = [{transform_indices = @transform_0, window_bounds = array<i64: 64, 32>}, {transform_indices = @transform_1, window_bounds = array<i64: 64, 32>}, {pipeline_mode = #tpu.pipeline_mode<synchronous>, transform_indices = @transform_2, window_bounds = array<i64: 1, 32>}, {pipeline_mode = #tpu.pipeline_mode<synchronous>, transform_indices = @transform_3, window_bounds = array<i64: 1, 32>}, {pipeline_mode = #tpu.pipeline_mode<synchronous>, transform_indices = @transform_4, window_bounds = array<i64: 32, 128>}, {pipeline_mode = #tpu.pipeline_mode<synchronous>, transform_indices = @transform_5, window_bounds = array<i64: 1, 128>}, {pipeline_mode = #tpu.pipeline_mode<synchronous>, transform_indices = @transform_6, window_bounds = array<i64: 1, 32>}, {pipeline_mode = #tpu.pipeline_mode<synchronous>, transform_indices = @transform_7, window_bounds = array<i64: 1, 32>}, {pipeline_mode = #tpu.pipeline_mode<synchronous>, transform_indices = @transform_8, window_bounds = array<i64: 32, 128>}, {pipeline_mode = #tpu.pipeline_mode<synchronous>, transform_indices = @transform_9, window_bounds = array<i64: 1, 128>}, {transform_indices = @transform_10, window_bounds = array<i64: 64, 128>}, {transform_indices = @transform_11, window_bounds = array<i64: 64, 128>}]} {
    %c0 = arith.constant 0 : index
    %c0_0 = arith.constant 0 : index
    %0 = vector.load %arg1[%c0, %c0_0] : memref<64x32xf32, #tpu.memory_space<vmem>>, vector<64x32xf32>
    %c0_1 = arith.constant 0 : index
    %c0_2 = arith.constant 0 : index
    %1 = vector.load %arg3[%c0_1, %c0_2] : memref<1x32xf32, #tpu.memory_space<vmem>>, vector<1x32xf32>
    %c0_3 = arith.constant 0 : index
    %c0_4 = arith.constant 0 : index
    %2 = vector.load %arg4[%c0_3, %c0_4] : memref<1x32xf32, #tpu.memory_space<vmem>>, vector<1x32xf32>
    %c0_5 = arith.constant 0 : index
    %c0_6 = arith.constant 0 : index
    %3 = vector.load %arg5[%c0_5, %c0_6] : memref<32x128xbf16, #tpu.memory_space<vmem>>, vector<32x128xbf16>
    %c0_7 = arith.constant 0 : index
    %c0_8 = arith.constant 0 : index
    %4 = vector.load %arg6[%c0_7, %c0_8] : memref<1x128xf32, #tpu.memory_space<vmem>>, vector<1x128xf32>
    %cst = arith.constant dense<0.000000e+00> : vector<64xf32>
    %5 = vector.multi_reduction <add>, %0, %cst [1] : vector<64x32xf32> to vector<64xf32>
    %6 = vector.shape_cast %5 : vector<64xf32> to vector<64x1xf32>
    %cst_9 = arith.constant 3.200000e+01 : f32
    %7 = vector.broadcast %cst_9 : f32 to vector<64x1xf32>
    %8 = arith.divf %6, %7 : vector<64x1xf32>
    %9 = arith.mulf %0, %0 : vector<64x32xf32>
    %cst_10 = arith.constant dense<0.000000e+00> : vector<64xf32>
    %10 = vector.multi_reduction <add>, %9, %cst_10 [1] : vector<64x32xf32> to vector<64xf32>
    %11 = vector.shape_cast %10 : vector<64xf32> to vector<64x1xf32>
    %cst_11 = arith.constant 3.200000e+01 : f32
    %12 = vector.broadcast %cst_11 : f32 to vector<64x1xf32>
    %13 = arith.divf %11, %12 : vector<64x1xf32>
    %14 = arith.mulf %8, %8 : vector<64x1xf32>
    %15 = arith.subf %13, %14 : vector<64x1xf32>
    %cst_12 = arith.constant 0.000000e+00 : f32
    %16 = vector.broadcast %cst_12 : f32 to vector<64x1xf32>
    %17 = arith.maximumf %15, %16 : vector<64x1xf32>
    %18 = vector.broadcast %8 : vector<64x1xf32> to vector<64x32xf32>
    %19 = arith.subf %0, %18 : vector<64x32xf32>
    %cst_13 = arith.constant 9.99999974E-6 : f32
    %20 = vector.broadcast %cst_13 : f32 to vector<64x1xf32>
    %21 = arith.addf %17, %20 : vector<64x1xf32>
    %22 = math.rsqrt %21 : vector<64x1xf32>
    %23 = vector.broadcast %22 : vector<64x1xf32> to vector<64x32xf32>
    %24 = arith.mulf %19, %23 : vector<64x32xf32>
    %25 = vector.broadcast %1 : vector<1x32xf32> to vector<64x32xf32>
    %26 = arith.mulf %24, %25 : vector<64x32xf32>
    %27 = vector.broadcast %2 : vector<1x32xf32> to vector<64x32xf32>
    %28 = arith.addf %26, %27 : vector<64x32xf32>
    %29 = arith.truncf %28 : vector<64x32xf32> to vector<64x32xbf16>
    %cst_14 = arith.constant dense<0.000000e+00> : vector<64x128xf32>
    %30 = tpu.matmul %29, %3, %cst_14 {dimension_numbers = #tpu.dot_dimension_numbers<[1], [0], [0], [1], [0, 0, 1, 1], [], []>} : vector<64x32xbf16>, vector<32x128xbf16>, vector<64x128xf32> -> vector<64x128xf32>
    %31 = vector.broadcast %4 : vector<1x128xf32> to vector<64x128xf32>
    %32 = arith.addf %30, %31 : vector<64x128xf32>
    %33 = arith.truncf %32 : vector<64x128xf32> to vector<64x128xbf16>
    %c0_15 = arith.constant 0 : index
    %c0_16 = arith.constant 0 : index
    %34 = vector.load %arg11[%c0_15, %c0_16] : memref<64x128xbf16, #tpu.memory_space<vmem>>, vector<64x128xbf16>
    tpu.vector_store %arg11[%c0_15, %c0_16], %33 {strides = array<i32>} : memref<64x128xbf16, #tpu.memory_space<vmem>>, vector<64x128xbf16>,
    %c0_17 = arith.constant 0 : index
    %c0_18 = arith.constant 0 : index
    %35 = vector.load %arg2[%c0_17, %c0_18] : memref<64x32xf32, #tpu.memory_space<vmem>>, vector<64x32xf32>
    %c0_19 = arith.constant 0 : index
    %c0_20 = arith.constant 0 : index
    %36 = vector.load %arg7[%c0_19, %c0_20] : memref<1x32xf32, #tpu.memory_space<vmem>>, vector<1x32xf32>
    %c0_21 = arith.constant 0 : index
    %c0_22 = arith.constant 0 : index
    %37 = vector.load %arg8[%c0_21, %c0_22] : memref<1x32xf32, #tpu.memory_space<vmem>>, vector<1x32xf32>
    %c0_23 = arith.constant 0 : index
    %c0_24 = arith.constant 0 : index
    %38 = vector.load %arg9[%c0_23, %c0_24] : memref<32x128xbf16, #tpu.memory_space<vmem>>, vector<32x128xbf16>
    %c0_25 = arith.constant 0 : index
    %c0_26 = arith.constant 0 : index
    %39 = vector.load %arg10[%c0_25, %c0_26] : memref<1x128xf32, #tpu.memory_space<vmem>>, vector<1x128xf32>
    %cst_27 = arith.constant dense<0.000000e+00> : vector<64xf32>
    %40 = vector.multi_reduction <add>, %35, %cst_27 [1] : vector<64x32xf32> to vector<64xf32>
    %41 = vector.shape_cast %40 : vector<64xf32> to vector<64x1xf32>
    %cst_28 = arith.constant 3.200000e+01 : f32
    %42 = vector.broadcast %cst_28 : f32 to vector<64x1xf32>
    %43 = arith.divf %41, %42 : vector<64x1xf32>
    %44 = arith.mulf %35, %35 : vector<64x32xf32>
    %cst_29 = arith.constant dense<0.000000e+00> : vector<64xf32>
    %45 = vector.multi_reduction <add>, %44, %cst_29 [1] : vector<64x32xf32> to vector<64xf32>
    %46 = vector.shape_cast %45 : vector<64xf32> to vector<64x1xf32>
    %cst_30 = arith.constant 3.200000e+01 : f32
    %47 = vector.broadcast %cst_30 : f32 to vector<64x1xf32>
    %48 = arith.divf %46, %47 : vector<64x1xf32>
    %49 = arith.mulf %43, %43 : vector<64x1xf32>
    %50 = arith.subf %48, %49 : vector<64x1xf32>
    %cst_31 = arith.constant 0.000000e+00 : f32
    %51 = vector.broadcast %cst_31 : f32 to vector<64x1xf32>
    %52 = arith.maximumf %50, %51 : vector<64x1xf32>
    %53 = vector.broadcast %43 : vector<64x1xf32> to vector<64x32xf32>
    %54 = arith.subf %35, %53 : vector<64x32xf32>
    %cst_32 = arith.constant 9.99999974E-6 : f32
    %55 = vector.broadcast %cst_32 : f32 to vector<64x1xf32>
    %56 = arith.addf %52, %55 : vector<64x1xf32>
    %57 = math.rsqrt %56 : vector<64x1xf32>
    %58 = vector.broadcast %57 : vector<64x1xf32> to vector<64x32xf32>
    %59 = arith.mulf %54, %58 : vector<64x32xf32>
    %60 = vector.broadcast %36 : vector<1x32xf32> to vector<64x32xf32>
    %61 = arith.mulf %59, %60 : vector<64x32xf32>
    %62 = vector.broadcast %37 : vector<1x32xf32> to vector<64x32xf32>
    %63 = arith.addf %61, %62 : vector<64x32xf32>
    %64 = arith.truncf %63 : vector<64x32xf32> to vector<64x32xbf16>
    %cst_33 = arith.constant dense<0.000000e+00> : vector<64x128xf32>
    %65 = tpu.matmul %64, %38, %cst_33 {dimension_numbers = #tpu.dot_dimension_numbers<[1], [0], [0], [1], [0, 0, 1, 1], [], []>} : vector<64x32xbf16>, vector<32x128xbf16>, vector<64x128xf32> -> vector<64x128xf32>
    %66 = vector.broadcast %39 : vector<1x128xf32> to vector<64x128xf32>
    %67 = arith.addf %65, %66 : vector<64x128xf32>
    %68 = arith.truncf %67 : vector<64x128xf32> to vector<64x128xbf16>
    %c0_34 = arith.constant 0 : index
    %c0_35 = arith.constant 0 : index
    %69 = vector.load %arg12[%c0_34, %c0_35] : memref<64x128xbf16, #tpu.memory_space<vmem>>, vector<64x128xbf16>
    tpu.vector_store %arg12[%c0_34, %c0_35], %68 {strides = array<i32>} : memref<64x128xbf16, #tpu.memory_space<vmem>>, vector<64x128xbf16>,
    return
  }
  func.func @transform_0(%arg0: i32) -> (i32, i32) {
    %c0_i32 = arith.constant 0 : i32
    %c0_i32_0 = arith.constant 0 : i32
    return %arg0, %c0_i32 : i32, i32
  }
  func.func @transform_1(%arg0: i32) -> (i32, i32) {
    %c0_i32 = arith.constant 0 : i32
    %c0_i32_0 = arith.constant 0 : i32
    return %arg0, %c0_i32 : i32, i32
  }
  func.func @transform_2(%arg0: i32) -> (i32, i32) {
    %c0_i32 = arith.constant 0 : i32
    %c0_i32_0 = arith.constant 0 : i32
    %c0_i32_1 = arith.constant 0 : i32
    return %c0_i32, %c0_i32_0 : i32, i32
  }
  func.func @transform_3(%arg0: i32) -> (i32, i32) {
    %c0_i32 = arith.constant 0 : i32
    %c0_i32_0 = arith.constant 0 : i32
    %c0_i32_1 = arith.constant 0 : i32
    return %c0_i32, %c0_i32_0 : i32, i32
  }
  func.func @transform_4(%arg0: i32) -> (i32, i32) {
    %c0_i32 = arith.constant 0 : i32
    %c0_i32_0 = arith.constant 0 : i32
    %c0_i32_1 = arith.constant 0 : i32
    return %c0_i32, %c0_i32_0 : i32, i32
  }
  func.func @transform_5(%arg0: i32) -> (i32, i32) {
    %c0_i32 = arith.constant 0 : i32
    %c0_i32_0 = arith.constant 0 : i32
    %c0_i32_1 = arith.constant 0 : i32
    return %c0_i32, %c0_i32_0 : i32, i32
  }
  func.func @transform_6(%arg0: i32) -> (i32, i32) {
    %c0_i32 = arith.constant 0 : i32
    %c0_i32_0 = arith.constant 0 : i32
    %c0_i32_1 = arith.constant 0 : i32
    return %c0_i32, %c0_i32_0 : i32, i32
  }
  func.func @transform_7(%arg0: i32) -> (i32, i32) {
    %c0_i32 = arith.constant 0 : i32
    %c0_i32_0 = arith.constant 0 : i32
    %c0_i32_1 = arith.constant 0 : i32
    return %c0_i32, %c0_i32_0 : i32, i32
  }
  func.func @transform_8(%arg0: i32) -> (i32, i32) {
    %c0_i32 = arith.constant 0 : i32
    %c0_i32_0 = arith.constant 0 : i32
    %c0_i32_1 = arith.constant 0 : i32
    return %c0_i32, %c0_i32_0 : i32, i32
  }
  func.func @transform_9(%arg0: i32) -> (i32, i32) {
    %c0_i32 = arith.constant 0 : i32
    %c0_i32_0 = arith.constant 0 : i32
    %c0_i32_1 = arith.constant 0 : i32
    return %c0_i32, %c0_i32_0 : i32, i32
  }
  func.func @transform_10(%arg0: i32) -> (i32, i32) {
    %c0_i32 = arith.constant 0 : i32
    %c0_i32_0 = arith.constant 0 : i32
    return %arg0, %c0_i32 : i32, i32
  }
  func.func @transform_11(%arg0: i32) -> (i32, i32) {
    %c0_i32 = arith.constant 0 : i32
    %c0_i32_0 = arith.constant 0 : i32
    return %arg0, %c0_i32 : i32, i32
  }
}

module attributes {stable_mosaic.version = 11 : i64} {
  func.func @_cross_attn_kernel(%arg0: i32, %arg1: i32, %arg2: memref<1x2x64x128xbf16, #tpu.memory_space<vmem>>, %arg3: memref<1x2x16x128xbf16, #tpu.memory_space<vmem>>, %arg4: memref<1x2x16x128xbf16, #tpu.memory_space<vmem>>, %arg5: memref<1x64x128xbf16, #tpu.memory_space<vmem>>) attributes {dimension_semantics = [#tpu.dimension_semantics<parallel>, #tpu.dimension_semantics<parallel>], iteration_bounds = array<i64: 2, 1>, scalar_prefetch = 0 : i64, scratch_operands = 0 : i64, tpu.core_type = #tpu.core_type<tc>, window_params = [{transform_indices = @transform_0, window_bounds = array<i64: 1, 2, 64, 128>}, {transform_indices = @transform_1, window_bounds = array<i64: 1, 2, 16, 128>}, {transform_indices = @transform_2, window_bounds = array<i64: 1, 2, 16, 128>}, {transform_indices = @transform_3, window_bounds = array<i64: 1, 64, 128>}]} {
    %c0 = arith.constant 0 : index
    %c0_0 = arith.constant 0 : index
    %c0_1 = arith.constant 0 : index
    %c0_2 = arith.constant 0 : index
    %0 = vector.load %arg2[%c0, %c0_0, %c0_1, %c0_2] : memref<1x2x64x128xbf16, #tpu.memory_space<vmem>>, vector<1x2x64x128xbf16>
    %1 = vector.shape_cast %0 : vector<1x2x64x128xbf16> to vector<2x64x128xbf16>
    %c0_3 = arith.constant 0 : index
    %c0_4 = arith.constant 0 : index
    %c0_5 = arith.constant 0 : index
    %c0_6 = arith.constant 0 : index
    %2 = vector.load %arg3[%c0_3, %c0_4, %c0_5, %c0_6] : memref<1x2x16x128xbf16, #tpu.memory_space<vmem>>, vector<1x2x16x128xbf16>
    %3 = vector.shape_cast %2 : vector<1x2x16x128xbf16> to vector<2x16x128xbf16>
    %c0_7 = arith.constant 0 : index
    %c0_8 = arith.constant 0 : index
    %c0_9 = arith.constant 0 : index
    %c0_10 = arith.constant 0 : index
    %4 = vector.load %arg4[%c0_7, %c0_8, %c0_9, %c0_10] : memref<1x2x16x128xbf16, #tpu.memory_space<vmem>>, vector<1x2x16x128xbf16>
    %5 = vector.shape_cast %4 : vector<1x2x16x128xbf16> to vector<2x16x128xbf16>
    %6 = vector.extract_strided_slice %1 {offsets = [0, 0, 0], sizes = [2, 64, 64], strides = [1, 1, 1]} : vector<2x64x128xbf16> to vector<2x64x64xbf16>
    %7 = vector.extract_strided_slice %3 {offsets = [0, 0, 0], sizes = [2, 16, 64], strides = [1, 1, 1]} : vector<2x16x128xbf16> to vector<2x16x64xbf16>
    %8 = vector.extract_strided_slice %5 {offsets = [0, 0, 0], sizes = [2, 16, 64], strides = [1, 1, 1]} : vector<2x16x128xbf16> to vector<2x16x64xbf16>
    %9 = vector.extract_strided_slice %6 {offsets = [0, 0, 0], sizes = [1, 64, 64], strides = [1, 1, 1]} : vector<2x64x64xbf16> to vector<1x64x64xbf16>
    %10 = vector.shape_cast %9 : vector<1x64x64xbf16> to vector<64x64xbf16>
    %11 = vector.extract_strided_slice %7 {offsets = [0, 0, 0], sizes = [1, 16, 64], strides = [1, 1, 1]} : vector<2x16x64xbf16> to vector<1x16x64xbf16>
    %12 = vector.shape_cast %11 : vector<1x16x64xbf16> to vector<16x64xbf16>
    "tpu.trace_start"() <{level = 10 : i32, message = "qd,kd->qk"}> : () -> ()
    %cst = arith.constant dense<0.000000e+00> : vector<64x16xf32>
    %13 = tpu.matmul %10, %12, %cst {dimension_numbers = #tpu.dot_dimension_numbers<[1], [1], [0], [0], [0, 0, 1, 0], [], []>} : vector<64x64xbf16>, vector<16x64xbf16>, vector<64x16xf32> -> vector<64x16xf32>
    "tpu.trace_stop"() : () -> ()
    %cst_11 = arith.constant dense<0xFF800000> : vector<64xf32>
    %14 = vector.multi_reduction <maximumf>, %13, %cst_11 [1] : vector<64x16xf32> to vector<64xf32>
    %15 = vector.shape_cast %14 : vector<64xf32> to vector<64x1xf32>
    %16 = vector.broadcast %15 : vector<64x1xf32> to vector<64x16xf32>
    %17 = arith.subf %13, %16 : vector<64x16xf32>
    %18 = math.exp %17 : vector<64x16xf32>
    %cst_12 = arith.constant dense<0.000000e+00> : vector<64xf32>
    %19 = vector.multi_reduction <add>, %18, %cst_12 [1] : vector<64x16xf32> to vector<64xf32>
    %20 = vector.shape_cast %19 : vector<64xf32> to vector<64x1xf32>
    %21 = arith.truncf %18 : vector<64x16xf32> to vector<64x16xbf16>
    %22 = vector.extract_strided_slice %8 {offsets = [0, 0, 0], sizes = [1, 16, 64], strides = [1, 1, 1]} : vector<2x16x64xbf16> to vector<1x16x64xbf16>
    %23 = vector.shape_cast %22 : vector<1x16x64xbf16> to vector<16x64xbf16>
    "tpu.trace_start"() <{level = 10 : i32, message = "qk,kd->qd"}> : () -> ()
    %cst_13 = arith.constant dense<0.000000e+00> : vector<64x64xf32>
    %24 = tpu.matmul %21, %23, %cst_13 {dimension_numbers = #tpu.dot_dimension_numbers<[1], [0], [0], [1], [0, 0, 1, 1], [], []>} : vector<64x16xbf16>, vector<16x64xbf16>, vector<64x64xf32> -> vector<64x64xf32>
    "tpu.trace_stop"() : () -> ()
    %25 = vector.extract_strided_slice %6 {offsets = [1, 0, 0], sizes = [1, 64, 64], strides = [1, 1, 1]} : vector<2x64x64xbf16> to vector<1x64x64xbf16>
    %26 = vector.shape_cast %25 : vector<1x64x64xbf16> to vector<64x64xbf16>
    %27 = vector.extract_strided_slice %7 {offsets = [1, 0, 0], sizes = [1, 16, 64], strides = [1, 1, 1]} : vector<2x16x64xbf16> to vector<1x16x64xbf16>
    %28 = vector.shape_cast %27 : vector<1x16x64xbf16> to vector<16x64xbf16>
    "tpu.trace_start"() <{level = 10 : i32, message = "qd,kd->qk"}> : () -> ()
    %cst_14 = arith.constant dense<0.000000e+00> : vector<64x16xf32>
    %29 = tpu.matmul %26, %28, %cst_14 {dimension_numbers = #tpu.dot_dimension_numbers<[1], [1], [0], [0], [0, 0, 1, 0], [], []>} : vector<64x64xbf16>, vector<16x64xbf16>, vector<64x16xf32> -> vector<64x16xf32>
    "tpu.trace_stop"() : () -> ()
    %cst_15 = arith.constant dense<0xFF800000> : vector<64xf32>
    %30 = vector.multi_reduction <maximumf>, %29, %cst_15 [1] : vector<64x16xf32> to vector<64xf32>
    %31 = vector.shape_cast %30 : vector<64xf32> to vector<64x1xf32>
    %32 = arith.maximumf %15, %31 : vector<64x1xf32>
    %33 = arith.subf %15, %32 : vector<64x1xf32>
    %34 = math.exp %33 : vector<64x1xf32>
    %35 = vector.broadcast %32 : vector<64x1xf32> to vector<64x16xf32>
    %36 = arith.subf %29, %35 : vector<64x16xf32>
    %37 = math.exp %36 : vector<64x16xf32>
    %38 = arith.mulf %34, %20 : vector<64x1xf32>
    %cst_16 = arith.constant dense<0.000000e+00> : vector<64xf32>
    %39 = vector.multi_reduction <add>, %37, %cst_16 [1] : vector<64x16xf32> to vector<64xf32>
    %40 = vector.shape_cast %39 : vector<64xf32> to vector<64x1xf32>
    %41 = arith.addf %38, %40 : vector<64x1xf32>
    %42 = vector.broadcast %34 : vector<64x1xf32> to vector<64x64xf32>
    %43 = arith.mulf %42, %24 : vector<64x64xf32>
    %44 = arith.truncf %37 : vector<64x16xf32> to vector<64x16xbf16>
    %45 = vector.extract_strided_slice %8 {offsets = [1, 0, 0], sizes = [1, 16, 64], strides = [1, 1, 1]} : vector<2x16x64xbf16> to vector<1x16x64xbf16>
    %46 = vector.shape_cast %45 : vector<1x16x64xbf16> to vector<16x64xbf16>
    "tpu.trace_start"() <{level = 10 : i32, message = "qk,kd->qd"}> : () -> ()
    %cst_17 = arith.constant dense<0.000000e+00> : vector<64x64xf32>
    %47 = tpu.matmul %44, %46, %cst_17 {dimension_numbers = #tpu.dot_dimension_numbers<[1], [0], [0], [1], [0, 0, 1, 1], [], []>} : vector<64x16xbf16>, vector<16x64xbf16>, vector<64x64xf32> -> vector<64x64xf32>
    "tpu.trace_stop"() : () -> ()
    %48 = arith.addf %43, %47 : vector<64x64xf32>
    %49 = tpu.reciprocal %41 {approx = true} : vector<64x1xf32> -> vector<64x1xf32>
    %50 = vector.broadcast %49 : vector<64x1xf32> to vector<64x64xf32>
    %51 = arith.mulf %48, %50 : vector<64x64xf32>
    %52 = arith.truncf %51 : vector<64x64xf32> to vector<64x64xbf16>
    %c0_18 = arith.constant 0 : index
    %c0_19 = arith.constant 0 : index
    %c0_20 = arith.constant 0 : index
    %53 = vector.load %arg5[%c0_18, %c0_19, %c0_20] : memref<1x64x128xbf16, #tpu.memory_space<vmem>>, vector<1x64x64xbf16>
    %54 = vector.shape_cast %53 : vector<1x64x64xbf16> to vector<64x64xbf16>
    %55 = vector.shape_cast %52 : vector<64x64xbf16> to vector<1x64x64xbf16>
    tpu.vector_store %arg5[%c0_18, %c0_19, %c0_20], %55 {strides = array<i32>} : memref<1x64x128xbf16, #tpu.memory_space<vmem>>, vector<1x64x64xbf16>,
    %56 = vector.extract_strided_slice %1 {offsets = [0, 0, 64], sizes = [2, 64, 64], strides = [1, 1, 1]} : vector<2x64x128xbf16> to vector<2x64x64xbf16>
    %57 = vector.extract_strided_slice %3 {offsets = [0, 0, 64], sizes = [2, 16, 64], strides = [1, 1, 1]} : vector<2x16x128xbf16> to vector<2x16x64xbf16>
    %58 = vector.extract_strided_slice %5 {offsets = [0, 0, 64], sizes = [2, 16, 64], strides = [1, 1, 1]} : vector<2x16x128xbf16> to vector<2x16x64xbf16>
    %59 = vector.extract_strided_slice %56 {offsets = [0, 0, 0], sizes = [1, 64, 64], strides = [1, 1, 1]} : vector<2x64x64xbf16> to vector<1x64x64xbf16>
    %60 = vector.shape_cast %59 : vector<1x64x64xbf16> to vector<64x64xbf16>
    %61 = vector.extract_strided_slice %57 {offsets = [0, 0, 0], sizes = [1, 16, 64], strides = [1, 1, 1]} : vector<2x16x64xbf16> to vector<1x16x64xbf16>
    %62 = vector.shape_cast %61 : vector<1x16x64xbf16> to vector<16x64xbf16>
    "tpu.trace_start"() <{level = 10 : i32, message = "qd,kd->qk"}> : () -> ()
    %cst_21 = arith.constant dense<0.000000e+00> : vector<64x16xf32>
    %63 = tpu.matmul %60, %62, %cst_21 {dimension_numbers = #tpu.dot_dimension_numbers<[1], [1], [0], [0], [0, 0, 1, 0], [], []>} : vector<64x64xbf16>, vector<16x64xbf16>, vector<64x16xf32> -> vector<64x16xf32>
    "tpu.trace_stop"() : () -> ()
    %cst_22 = arith.constant dense<0xFF800000> : vector<64xf32>
    %64 = vector.multi_reduction <maximumf>, %63, %cst_22 [1] : vector<64x16xf32> to vector<64xf32>
    %65 = vector.shape_cast %64 : vector<64xf32> to vector<64x1xf32>
    %66 = vector.broadcast %65 : vector<64x1xf32> to vector<64x16xf32>
    %67 = arith.subf %63, %66 : vector<64x16xf32>
    %68 = math.exp %67 : vector<64x16xf32>
    %cst_23 = arith.constant dense<0.000000e+00> : vector<64xf32>
    %69 = vector.multi_reduction <add>, %68, %cst_23 [1] : vector<64x16xf32> to vector<64xf32>
    %70 = vector.shape_cast %69 : vector<64xf32> to vector<64x1xf32>
    %71 = arith.truncf %68 : vector<64x16xf32> to vector<64x16xbf16>
    %72 = vector.extract_strided_slice %58 {offsets = [0, 0, 0], sizes = [1, 16, 64], strides = [1, 1, 1]} : vector<2x16x64xbf16> to vector<1x16x64xbf16>
    %73 = vector.shape_cast %72 : vector<1x16x64xbf16> to vector<16x64xbf16>
    "tpu.trace_start"() <{level = 10 : i32, message = "qk,kd->qd"}> : () -> ()
    %cst_24 = arith.constant dense<0.000000e+00> : vector<64x64xf32>
    %74 = tpu.matmul %71, %73, %cst_24 {dimension_numbers = #tpu.dot_dimension_numbers<[1], [0], [0], [1], [0, 0, 1, 1], [], []>} : vector<64x16xbf16>, vector<16x64xbf16>, vector<64x64xf32> -> vector<64x64xf32>
    "tpu.trace_stop"() : () -> ()
    %75 = vector.extract_strided_slice %56 {offsets = [1, 0, 0], sizes = [1, 64, 64], strides = [1, 1, 1]} : vector<2x64x64xbf16> to vector<1x64x64xbf16>
    %76 = vector.shape_cast %75 : vector<1x64x64xbf16> to vector<64x64xbf16>
    %77 = vector.extract_strided_slice %57 {offsets = [1, 0, 0], sizes = [1, 16, 64], strides = [1, 1, 1]} : vector<2x16x64xbf16> to vector<1x16x64xbf16>
    %78 = vector.shape_cast %77 : vector<1x16x64xbf16> to vector<16x64xbf16>
    "tpu.trace_start"() <{level = 10 : i32, message = "qd,kd->qk"}> : () -> ()
    %cst_25 = arith.constant dense<0.000000e+00> : vector<64x16xf32>
    %79 = tpu.matmul %76, %78, %cst_25 {dimension_numbers = #tpu.dot_dimension_numbers<[1], [1], [0], [0], [0, 0, 1, 0], [], []>} : vector<64x64xbf16>, vector<16x64xbf16>, vector<64x16xf32> -> vector<64x16xf32>
    "tpu.trace_stop"() : () -> ()
    %cst_26 = arith.constant dense<0xFF800000> : vector<64xf32>
    %80 = vector.multi_reduction <maximumf>, %79, %cst_26 [1] : vector<64x16xf32> to vector<64xf32>
    %81 = vector.shape_cast %80 : vector<64xf32> to vector<64x1xf32>
    %82 = arith.maximumf %65, %81 : vector<64x1xf32>
    %83 = arith.subf %65, %82 : vector<64x1xf32>
    %84 = math.exp %83 : vector<64x1xf32>
    %85 = vector.broadcast %82 : vector<64x1xf32> to vector<64x16xf32>
    %86 = arith.subf %79, %85 : vector<64x16xf32>
    %87 = math.exp %86 : vector<64x16xf32>
    %88 = arith.mulf %84, %70 : vector<64x1xf32>
    %cst_27 = arith.constant dense<0.000000e+00> : vector<64xf32>
    %89 = vector.multi_reduction <add>, %87, %cst_27 [1] : vector<64x16xf32> to vector<64xf32>
    %90 = vector.shape_cast %89 : vector<64xf32> to vector<64x1xf32>
    %91 = arith.addf %88, %90 : vector<64x1xf32>
    %92 = vector.broadcast %84 : vector<64x1xf32> to vector<64x64xf32>
    %93 = arith.mulf %92, %74 : vector<64x64xf32>
    %94 = arith.truncf %87 : vector<64x16xf32> to vector<64x16xbf16>
    %95 = vector.extract_strided_slice %58 {offsets = [1, 0, 0], sizes = [1, 16, 64], strides = [1, 1, 1]} : vector<2x16x64xbf16> to vector<1x16x64xbf16>
    %96 = vector.shape_cast %95 : vector<1x16x64xbf16> to vector<16x64xbf16>
    "tpu.trace_start"() <{level = 10 : i32, message = "qk,kd->qd"}> : () -> ()
    %cst_28 = arith.constant dense<0.000000e+00> : vector<64x64xf32>
    %97 = tpu.matmul %94, %96, %cst_28 {dimension_numbers = #tpu.dot_dimension_numbers<[1], [0], [0], [1], [0, 0, 1, 1], [], []>} : vector<64x16xbf16>, vector<16x64xbf16>, vector<64x64xf32> -> vector<64x64xf32>
    "tpu.trace_stop"() : () -> ()
    %98 = arith.addf %93, %97 : vector<64x64xf32>
    %99 = tpu.reciprocal %91 {approx = true} : vector<64x1xf32> -> vector<64x1xf32>
    %100 = vector.broadcast %99 : vector<64x1xf32> to vector<64x64xf32>
    %101 = arith.mulf %98, %100 : vector<64x64xf32>
    %102 = arith.truncf %101 : vector<64x64xf32> to vector<64x64xbf16>
    %c0_29 = arith.constant 0 : index
    %c0_30 = arith.constant 0 : index
    %c64 = arith.constant 64 : index
    %103 = vector.load %arg5[%c0_29, %c0_30, %c64] : memref<1x64x128xbf16, #tpu.memory_space<vmem>>, vector<1x64x64xbf16>
    %104 = vector.shape_cast %103 : vector<1x64x64xbf16> to vector<64x64xbf16>
    %105 = vector.shape_cast %102 : vector<64x64xbf16> to vector<1x64x64xbf16>
    tpu.vector_store %arg5[%c0_29, %c0_30, %c64], %105 {strides = array<i32>} : memref<1x64x128xbf16, #tpu.memory_space<vmem>>, vector<1x64x64xbf16>,
    return
  }
  func.func @transform_0(%arg0: i32, %arg1: i32) -> (i32, i32, i32, i32) {
    %c0_i32 = arith.constant 0 : i32
    %c0_i32_0 = arith.constant 0 : i32
    %c0_i32_1 = arith.constant 0 : i32
    return %arg0, %c0_i32, %arg1, %c0_i32_0 : i32, i32, i32, i32
  }
  func.func @transform_1(%arg0: i32, %arg1: i32) -> (i32, i32, i32, i32) {
    %c0_i32 = arith.constant 0 : i32
    %c0_i32_0 = arith.constant 0 : i32
    %c0_i32_1 = arith.constant 0 : i32
    %c0_i32_2 = arith.constant 0 : i32
    return %arg0, %c0_i32, %c0_i32_0, %c0_i32_1 : i32, i32, i32, i32
  }
  func.func @transform_2(%arg0: i32, %arg1: i32) -> (i32, i32, i32, i32) {
    %c0_i32 = arith.constant 0 : i32
    %c0_i32_0 = arith.constant 0 : i32
    %c0_i32_1 = arith.constant 0 : i32
    %c0_i32_2 = arith.constant 0 : i32
    return %arg0, %c0_i32, %c0_i32_0, %c0_i32_1 : i32, i32, i32, i32
  }
  func.func @transform_3(%arg0: i32, %arg1: i32) -> (i32, i32, i32) {
    %c0_i32 = arith.constant 0 : i32
    %c0_i32_0 = arith.constant 0 : i32
    return %arg0, %arg1, %c0_i32 : i32, i32, i32
  }
}

module attributes {stable_mosaic.version = 11 : i64} {
  func.func @_ln_linear_kernel(%arg0: i32, %arg1: memref<256x32xf32, #tpu.memory_space<vmem>>, %arg2: memref<1x32xf32, #tpu.memory_space<vmem>>, %arg3: memref<1x32xf32, #tpu.memory_space<vmem>>, %arg4: memref<32x128xbf16, #tpu.memory_space<vmem>>, %arg5: memref<1x128xf32, #tpu.memory_space<vmem>>, %arg6: memref<256x128xbf16, #tpu.memory_space<vmem>>) attributes {dimension_semantics = [#tpu.dimension_semantics<parallel>], iteration_bounds = array<i64: 1>, scalar_prefetch = 0 : i64, scratch_operands = 0 : i64, tpu.core_type = #tpu.core_type<tc>, window_params = [{transform_indices = @transform_0, window_bounds = array<i64: 256, 32>}, {pipeline_mode = #tpu.pipeline_mode<synchronous>, transform_indices = @transform_1, window_bounds = array<i64: 1, 32>}, {pipeline_mode = #tpu.pipeline_mode<synchronous>, transform_indices = @transform_2, window_bounds = array<i64: 1, 32>}, {pipeline_mode = #tpu.pipeline_mode<synchronous>, transform_indices = @transform_3, window_bounds = array<i64: 32, 128>}, {pipeline_mode = #tpu.pipeline_mode<synchronous>, transform_indices = @transform_4, window_bounds = array<i64: 1, 128>}, {transform_indices = @transform_5, window_bounds = array<i64: 256, 128>}]} {
    %c0 = arith.constant 0 : index
    %c0_0 = arith.constant 0 : index
    %0 = vector.load %arg1[%c0, %c0_0] : memref<256x32xf32, #tpu.memory_space<vmem>>, vector<256x32xf32>
    %c0_1 = arith.constant 0 : index
    %c0_2 = arith.constant 0 : index
    %1 = vector.load %arg2[%c0_1, %c0_2] : memref<1x32xf32, #tpu.memory_space<vmem>>, vector<1x32xf32>
    %c0_3 = arith.constant 0 : index
    %c0_4 = arith.constant 0 : index
    %2 = vector.load %arg3[%c0_3, %c0_4] : memref<1x32xf32, #tpu.memory_space<vmem>>, vector<1x32xf32>
    %c0_5 = arith.constant 0 : index
    %c0_6 = arith.constant 0 : index
    %3 = vector.load %arg4[%c0_5, %c0_6] : memref<32x128xbf16, #tpu.memory_space<vmem>>, vector<32x128xbf16>
    %c0_7 = arith.constant 0 : index
    %c0_8 = arith.constant 0 : index
    %4 = vector.load %arg5[%c0_7, %c0_8] : memref<1x128xf32, #tpu.memory_space<vmem>>, vector<1x128xf32>
    %cst = arith.constant dense<0.000000e+00> : vector<256xf32>
    %5 = vector.multi_reduction <add>, %0, %cst [1] : vector<256x32xf32> to vector<256xf32>
    %6 = vector.shape_cast %5 : vector<256xf32> to vector<256x1xf32>
    %cst_9 = arith.constant 3.200000e+01 : f32
    %7 = vector.broadcast %cst_9 : f32 to vector<256x1xf32>
    %8 = arith.divf %6, %7 : vector<256x1xf32>
    %9 = arith.mulf %0, %0 : vector<256x32xf32>
    %cst_10 = arith.constant dense<0.000000e+00> : vector<256xf32>
    %10 = vector.multi_reduction <add>, %9, %cst_10 [1] : vector<256x32xf32> to vector<256xf32>
    %11 = vector.shape_cast %10 : vector<256xf32> to vector<256x1xf32>
    %cst_11 = arith.constant 3.200000e+01 : f32
    %12 = vector.broadcast %cst_11 : f32 to vector<256x1xf32>
    %13 = arith.divf %11, %12 : vector<256x1xf32>
    %14 = arith.mulf %8, %8 : vector<256x1xf32>
    %15 = arith.subf %13, %14 : vector<256x1xf32>
    %cst_12 = arith.constant 0.000000e+00 : f32
    %16 = vector.broadcast %cst_12 : f32 to vector<256x1xf32>
    %17 = arith.maximumf %15, %16 : vector<256x1xf32>
    %18 = vector.broadcast %8 : vector<256x1xf32> to vector<256x32xf32>
    %19 = arith.subf %0, %18 : vector<256x32xf32>
    %cst_13 = arith.constant 9.99999974E-6 : f32
    %20 = vector.broadcast %cst_13 : f32 to vector<256x1xf32>
    %21 = arith.addf %17, %20 : vector<256x1xf32>
    %22 = math.rsqrt %21 : vector<256x1xf32>
    %23 = vector.broadcast %22 : vector<256x1xf32> to vector<256x32xf32>
    %24 = arith.mulf %19, %23 : vector<256x32xf32>
    %25 = vector.broadcast %1 : vector<1x32xf32> to vector<256x32xf32>
    %26 = arith.mulf %24, %25 : vector<256x32xf32>
    %27 = vector.broadcast %2 : vector<1x32xf32> to vector<256x32xf32>
    %28 = arith.addf %26, %27 : vector<256x32xf32>
    %29 = arith.truncf %28 : vector<256x32xf32> to vector<256x32xbf16>
    %cst_14 = arith.constant dense<0.000000e+00> : vector<256x128xf32>
    %30 = tpu.matmul %29, %3, %cst_14 {dimension_numbers = #tpu.dot_dimension_numbers<[1], [0], [0], [1], [0, 0, 1, 1], [], []>} : vector<256x32xbf16>, vector<32x128xbf16>, vector<256x128xf32> -> vector<256x128xf32>
    %31 = vector.broadcast %4 : vector<1x128xf32> to vector<256x128xf32>
    %32 = arith.addf %30, %31 : vector<256x128xf32>
    %33 = arith.truncf %32 : vector<256x128xf32> to vector<256x128xbf16>
    %c0_15 = arith.constant 0 : index
    %c0_16 = arith.constant 0 : index
    %34 = vector.load %arg6[%c0_15, %c0_16] : memref<256x128xbf16, #tpu.memory_space<vmem>>, vector<256x128xbf16>
    tpu.vector_store %arg6[%c0_15, %c0_16], %33 {strides = array<i32>} : memref<256x128xbf16, #tpu.memory_space<vmem>>, vector<256x128xbf16>,
    return
  }
  func.func @transform_0(%arg0: i32) -> (i32, i32) {
    %c0_i32 = arith.constant 0 : i32
    %c0_i32_0 = arith.constant 0 : i32
    return %arg0, %c0_i32 : i32, i32
  }
  func.func @transform_1(%arg0: i32) -> (i32, i32) {
    %c0_i32 = arith.constant 0 : i32
    %c0_i32_0 = arith.constant 0 : i32
    %c0_i32_1 = arith.constant 0 : i32
    return %c0_i32, %c0_i32_0 : i32, i32
  }
  func.func @transform_2(%arg0: i32) -> (i32, i32) {
    %c0_i32 = arith.constant 0 : i32
    %c0_i32_0 = arith.constant 0 : i32
    %c0_i32_1 = arith.constant 0 : i32
    return %c0_i32, %c0_i32_0 : i32, i32
  }
  func.func @transform_3(%arg0: i32) -> (i32, i32) {
    %c0_i32 = arith.constant 0 : i32
    %c0_i32_0 = arith.constant 0 : i32
    %c0_i32_1 = arith.constant 0 : i32
    return %c0_i32, %c0_i32_0 : i32, i32
  }
  func.func @transform_4(%arg0: i32) -> (i32, i32) {
    %c0_i32 = arith.constant 0 : i32
    %c0_i32_0 = arith.constant 0 : i32
    %c0_i32_1 = arith.constant 0 : i32
    return %c0_i32, %c0_i32_0 : i32, i32
  }
  func.func @transform_5(%arg0: i32) -> (i32, i32) {
    %c0_i32 = arith.constant 0 : i32
    %c0_i32_0 = arith.constant 0 : i32
    return %arg0, %c0_i32 : i32, i32
  }
}

module attributes {stable_mosaic.version = 11 : i64} {
  func.func @_proj_mlp_postnorm_kernel(%arg0: i32, %arg1: memref<128x128xbf16, #tpu.memory_space<vmem>>, %arg2: memref<128x32xf32, #tpu.memory_space<vmem>>, %arg3: memref<128x32xbf16, #tpu.memory_space<vmem>>, %arg4: memref<1x32xf32, #tpu.memory_space<vmem>>, %arg5: memref<1x32xf32, #tpu.memory_space<vmem>>, %arg6: memref<1x32xf32, #tpu.memory_space<vmem>>, %arg7: memref<32x64xbf16, #tpu.memory_space<vmem>>, %arg8: memref<1x64xf32, #tpu.memory_space<vmem>>, %arg9: memref<64x32xbf16, #tpu.memory_space<vmem>>, %arg10: memref<1x32xf32, #tpu.memory_space<vmem>>, %arg11: memref<1x32xf32, #tpu.memory_space<vmem>>, %arg12: memref<1x32xf32, #tpu.memory_space<vmem>>, %arg13: memref<128x32xf32, #tpu.memory_space<vmem>>) attributes {dimension_semantics = [#tpu.dimension_semantics<parallel>], iteration_bounds = array<i64: 1>, scalar_prefetch = 0 : i64, scratch_operands = 0 : i64, tpu.core_type = #tpu.core_type<tc>, window_params = [{transform_indices = @transform_0, window_bounds = array<i64: 128, 128>}, {transform_indices = @transform_1, window_bounds = array<i64: 128, 32>}, {pipeline_mode = #tpu.pipeline_mode<synchronous>, transform_indices = @transform_2, window_bounds = array<i64: 128, 32>}, {pipeline_mode = #tpu.pipeline_mode<synchronous>, transform_indices = @transform_3, window_bounds = array<i64: 1, 32>}, {pipeline_mode = #tpu.pipeline_mode<synchronous>, transform_indices = @transform_4, window_bounds = array<i64: 1, 32>}, {pipeline_mode = #tpu.pipeline_mode<synchronous>, transform_indices = @transform_5, window_bounds = array<i64: 1, 32>}, {pipeline_mode = #tpu.pipeline_mode<synchronous>, transform_indices = @transform_6, window_bounds = array<i64: 32, 64>}, {pipeline_mode = #tpu.pipeline_mode<synchronous>, transform_indices = @transform_7, window_bounds = array<i64: 1, 64>}, {pipeline_mode = #tpu.pipeline_mode<synchronous>, transform_indices = @transform_8, window_bounds = array<i64: 64, 32>}, {pipeline_mode = #tpu.pipeline_mode<synchronous>, transform_indices = @transform_9, window_bounds = array<i64: 1, 32>}, {pipeline_mode = #tpu.pipeline_mode<synchronous>, transform_indices = @transform_10, window_bounds = array<i64: 1, 32>}, {pipeline_mode = #tpu.pipeline_mode<synchronous>, transform_indices = @transform_11, window_bounds = array<i64: 1, 32>}, {transform_indices = @transform_12, window_bounds = array<i64: 128, 32>}]} {
    %c0 = arith.constant 0 : index
    %c0_0 = arith.constant 0 : index
    %0 = vector.load %arg1[%c0, %c0_0] : memref<128x128xbf16, #tpu.memory_space<vmem>>, vector<128x128xbf16>
    %c0_1 = arith.constant 0 : index
    %c0_2 = arith.constant 0 : index
    %1 = vector.load %arg3[%c0_1, %c0_2] : memref<128x32xbf16, #tpu.memory_space<vmem>>, vector<128x32xbf16>
    %cst = arith.constant dense<0.000000e+00> : vector<128x32xf32>
    %2 = tpu.matmul %0, %1, %cst {dimension_numbers = #tpu.dot_dimension_numbers<[1], [0], [0], [1], [0, 0, 1, 1], [], []>} : vector<128x128xbf16>, vector<128x32xbf16>, vector<128x32xf32> -> vector<128x32xf32>
    %c0_3 = arith.constant 0 : index
    %c0_4 = arith.constant 0 : index
    %3 = vector.load %arg4[%c0_3, %c0_4] : memref<1x32xf32, #tpu.memory_space<vmem>>, vector<1x32xf32>
    %4 = vector.broadcast %3 : vector<1x32xf32> to vector<128x32xf32>
    %5 = arith.addf %2, %4 : vector<128x32xf32>
    %c0_5 = arith.constant 0 : index
    %c0_6 = arith.constant 0 : index
    %6 = vector.load %arg2[%c0_5, %c0_6] : memref<128x32xf32, #tpu.memory_space<vmem>>, vector<128x32xf32>
    %7 = arith.addf %5, %6 : vector<128x32xf32>
    %c0_7 = arith.constant 0 : index
    %c0_8 = arith.constant 0 : index
    %8 = vector.load %arg5[%c0_7, %c0_8] : memref<1x32xf32, #tpu.memory_space<vmem>>, vector<1x32xf32>
    %c0_9 = arith.constant 0 : index
    %c0_10 = arith.constant 0 : index
    %9 = vector.load %arg6[%c0_9, %c0_10] : memref<1x32xf32, #tpu.memory_space<vmem>>, vector<1x32xf32>
    %cst_11 = arith.constant dense<0.000000e+00> : vector<128xf32>
    %10 = vector.multi_reduction <add>, %7, %cst_11 [1] : vector<128x32xf32> to vector<128xf32>
    %11 = vector.shape_cast %10 : vector<128xf32> to vector<128x1xf32>
    %cst_12 = arith.constant 3.200000e+01 : f32
    %12 = vector.broadcast %cst_12 : f32 to vector<128x1xf32>
    %13 = arith.divf %11, %12 : vector<128x1xf32>
    %14 = arith.mulf %7, %7 : vector<128x32xf32>
    %cst_13 = arith.constant dense<0.000000e+00> : vector<128xf32>
    %15 = vector.multi_reduction <add>, %14, %cst_13 [1] : vector<128x32xf32> to vector<128xf32>
    %16 = vector.shape_cast %15 : vector<128xf32> to vector<128x1xf32>
    %cst_14 = arith.constant 3.200000e+01 : f32
    %17 = vector.broadcast %cst_14 : f32 to vector<128x1xf32>
    %18 = arith.divf %16, %17 : vector<128x1xf32>
    %19 = arith.mulf %13, %13 : vector<128x1xf32>
    %20 = arith.subf %18, %19 : vector<128x1xf32>
    %cst_15 = arith.constant 0.000000e+00 : f32
    %21 = vector.broadcast %cst_15 : f32 to vector<128x1xf32>
    %22 = arith.maximumf %20, %21 : vector<128x1xf32>
    %23 = vector.broadcast %13 : vector<128x1xf32> to vector<128x32xf32>
    %24 = arith.subf %7, %23 : vector<128x32xf32>
    %cst_16 = arith.constant 9.99999974E-6 : f32
    %25 = vector.broadcast %cst_16 : f32 to vector<128x1xf32>
    %26 = arith.addf %22, %25 : vector<128x1xf32>
    %27 = math.rsqrt %26 : vector<128x1xf32>
    %28 = vector.broadcast %27 : vector<128x1xf32> to vector<128x32xf32>
    %29 = arith.mulf %24, %28 : vector<128x32xf32>
    %30 = vector.broadcast %8 : vector<1x32xf32> to vector<128x32xf32>
    %31 = arith.mulf %29, %30 : vector<128x32xf32>
    %32 = vector.broadcast %9 : vector<1x32xf32> to vector<128x32xf32>
    %33 = arith.addf %31, %32 : vector<128x32xf32>
    %34 = arith.truncf %33 : vector<128x32xf32> to vector<128x32xbf16>
    %c0_17 = arith.constant 0 : index
    %c0_18 = arith.constant 0 : index
    %35 = vector.load %arg7[%c0_17, %c0_18] : memref<32x64xbf16, #tpu.memory_space<vmem>>, vector<32x64xbf16>
    %cst_19 = arith.constant dense<0.000000e+00> : vector<128x64xf32>
    %36 = tpu.matmul %34, %35, %cst_19 {dimension_numbers = #tpu.dot_dimension_numbers<[1], [0], [0], [1], [0, 0, 1, 1], [], []>} : vector<128x32xbf16>, vector<32x64xbf16>, vector<128x64xf32> -> vector<128x64xf32>
    %c0_20 = arith.constant 0 : index
    %c0_21 = arith.constant 0 : index
    %37 = vector.load %arg8[%c0_20, %c0_21] : memref<1x64xf32, #tpu.memory_space<vmem>>, vector<1x64xf32>
    %38 = vector.broadcast %37 : vector<1x64xf32> to vector<128x64xf32>
    %39 = arith.addf %36, %38 : vector<128x64xf32>
    %cst_22 = arith.constant 5.000000e-01 : f32
    %40 = vector.broadcast %cst_22 : f32 to vector<128x64xf32>
    %41 = arith.mulf %40, %39 : vector<128x64xf32>
    %cst_23 = arith.constant 4.471500e-02 : f32
    %42 = vector.broadcast %cst_23 : f32 to vector<128x64xf32>
    %43 = arith.mulf %42, %39 : vector<128x64xf32>
    %44 = arith.mulf %43, %39 : vector<128x64xf32>
    %45 = arith.mulf %44, %39 : vector<128x64xf32>
    %46 = arith.addf %39, %45 : vector<128x64xf32>
    %cst_24 = arith.constant 0.797884583 : f32
    %47 = vector.broadcast %cst_24 : f32 to vector<128x64xf32>
    %48 = arith.mulf %47, %46 : vector<128x64xf32>
    %49 = math.tanh %48 : vector<128x64xf32>
    %cst_25 = arith.constant 1.000000e+00 : f32
    %50 = vector.broadcast %cst_25 : f32 to vector<128x64xf32>
    %51 = arith.addf %50, %49 : vector<128x64xf32>
    %52 = arith.mulf %41, %51 : vector<128x64xf32>
    %53 = arith.truncf %52 : vector<128x64xf32> to vector<128x64xbf16>
    %c0_26 = arith.constant 0 : index
    %c0_27 = arith.constant 0 : index
    %54 = vector.load %arg9[%c0_26, %c0_27] : memref<64x32xbf16, #tpu.memory_space<vmem>>, vector<64x32xbf16>
    %cst_28 = arith.constant dense<0.000000e+00> : vector<128x32xf32>
    %55 = tpu.matmul %53, %54, %cst_28 {dimension_numbers = #tpu.dot_dimension_numbers<[1], [0], [0], [1], [0, 0, 1, 1], [], []>} : vector<128x64xbf16>, vector<64x32xbf16>, vector<128x32xf32> -> vector<128x32xf32>
    %c0_29 = arith.constant 0 : index
    %c0_30 = arith.constant 0 : index
    %56 = vector.load %arg10[%c0_29, %c0_30] : memref<1x32xf32, #tpu.memory_space<vmem>>, vector<1x32xf32>
    %57 = vector.broadcast %56 : vector<1x32xf32> to vector<128x32xf32>
    %58 = arith.addf %55, %57 : vector<128x32xf32>
    %59 = arith.addf %33, %58 : vector<128x32xf32>
    %c0_31 = arith.constant 0 : index
    %c0_32 = arith.constant 0 : index
    %60 = vector.load %arg11[%c0_31, %c0_32] : memref<1x32xf32, #tpu.memory_space<vmem>>, vector<1x32xf32>
    %c0_33 = arith.constant 0 : index
    %c0_34 = arith.constant 0 : index
    %61 = vector.load %arg12[%c0_33, %c0_34] : memref<1x32xf32, #tpu.memory_space<vmem>>, vector<1x32xf32>
    %cst_35 = arith.constant dense<0.000000e+00> : vector<128xf32>
    %62 = vector.multi_reduction <add>, %59, %cst_35 [1] : vector<128x32xf32> to vector<128xf32>
    %63 = vector.shape_cast %62 : vector<128xf32> to vector<128x1xf32>
    %cst_36 = arith.constant 3.200000e+01 : f32
    %64 = vector.broadcast %cst_36 : f32 to vector<128x1xf32>
    %65 = arith.divf %63, %64 : vector<128x1xf32>
    %66 = arith.mulf %59, %59 : vector<128x32xf32>
    %cst_37 = arith.constant dense<0.000000e+00> : vector<128xf32>
    %67 = vector.multi_reduction <add>, %66, %cst_37 [1] : vector<128x32xf32> to vector<128xf32>
    %68 = vector.shape_cast %67 : vector<128xf32> to vector<128x1xf32>
    %cst_38 = arith.constant 3.200000e+01 : f32
    %69 = vector.broadcast %cst_38 : f32 to vector<128x1xf32>
    %70 = arith.divf %68, %69 : vector<128x1xf32>
    %71 = arith.mulf %65, %65 : vector<128x1xf32>
    %72 = arith.subf %70, %71 : vector<128x1xf32>
    %cst_39 = arith.constant 0.000000e+00 : f32
    %73 = vector.broadcast %cst_39 : f32 to vector<128x1xf32>
    %74 = arith.maximumf %72, %73 : vector<128x1xf32>
    %75 = vector.broadcast %65 : vector<128x1xf32> to vector<128x32xf32>
    %76 = arith.subf %59, %75 : vector<128x32xf32>
    %cst_40 = arith.constant 9.99999974E-6 : f32
    %77 = vector.broadcast %cst_40 : f32 to vector<128x1xf32>
    %78 = arith.addf %74, %77 : vector<128x1xf32>
    %79 = math.rsqrt %78 : vector<128x1xf32>
    %80 = vector.broadcast %79 : vector<128x1xf32> to vector<128x32xf32>
    %81 = arith.mulf %76, %80 : vector<128x32xf32>
    %82 = vector.broadcast %60 : vector<1x32xf32> to vector<128x32xf32>
    %83 = arith.mulf %81, %82 : vector<128x32xf32>
    %84 = vector.broadcast %61 : vector<1x32xf32> to vector<128x32xf32>
    %85 = arith.addf %83, %84 : vector<128x32xf32>
    %c0_41 = arith.constant 0 : index
    %c0_42 = arith.constant 0 : index
    %86 = vector.load %arg13[%c0_41, %c0_42] : memref<128x32xf32, #tpu.memory_space<vmem>>, vector<128x32xf32>
    tpu.vector_store %arg13[%c0_41, %c0_42], %85 {strides = array<i32>} : memref<128x32xf32, #tpu.memory_space<vmem>>, vector<128x32xf32>,
    return
  }
  func.func @transform_0(%arg0: i32) -> (i32, i32) {
    %c0_i32 = arith.constant 0 : i32
    %c0_i32_0 = arith.constant 0 : i32
    return %arg0, %c0_i32 : i32, i32
  }
  func.func @transform_1(%arg0: i32) -> (i32, i32) {
    %c0_i32 = arith.constant 0 : i32
    %c0_i32_0 = arith.constant 0 : i32
    return %arg0, %c0_i32 : i32, i32
  }
  func.func @transform_2(%arg0: i32) -> (i32, i32) {
    %c0_i32 = arith.constant 0 : i32
    %c0_i32_0 = arith.constant 0 : i32
    %c0_i32_1 = arith.constant 0 : i32
    return %c0_i32, %c0_i32_0 : i32, i32
  }
  func.func @transform_3(%arg0: i32) -> (i32, i32) {
    %c0_i32 = arith.constant 0 : i32
    %c0_i32_0 = arith.constant 0 : i32
    %c0_i32_1 = arith.constant 0 : i32
    return %c0_i32, %c0_i32_0 : i32, i32
  }
  func.func @transform_4(%arg0: i32) -> (i32, i32) {
    %c0_i32 = arith.constant 0 : i32
    %c0_i32_0 = arith.constant 0 : i32
    %c0_i32_1 = arith.constant 0 : i32
    return %c0_i32, %c0_i32_0 : i32, i32
  }
  func.func @transform_5(%arg0: i32) -> (i32, i32) {
    %c0_i32 = arith.constant 0 : i32
    %c0_i32_0 = arith.constant 0 : i32
    %c0_i32_1 = arith.constant 0 : i32
    return %c0_i32, %c0_i32_0 : i32, i32
  }
  func.func @transform_6(%arg0: i32) -> (i32, i32) {
    %c0_i32 = arith.constant 0 : i32
    %c0_i32_0 = arith.constant 0 : i32
    %c0_i32_1 = arith.constant 0 : i32
    return %c0_i32, %c0_i32_0 : i32, i32
  }
  func.func @transform_7(%arg0: i32) -> (i32, i32) {
    %c0_i32 = arith.constant 0 : i32
    %c0_i32_0 = arith.constant 0 : i32
    %c0_i32_1 = arith.constant 0 : i32
    return %c0_i32, %c0_i32_0 : i32, i32
  }
  func.func @transform_8(%arg0: i32) -> (i32, i32) {
    %c0_i32 = arith.constant 0 : i32
    %c0_i32_0 = arith.constant 0 : i32
    %c0_i32_1 = arith.constant 0 : i32
    return %c0_i32, %c0_i32_0 : i32, i32
  }
  func.func @transform_9(%arg0: i32) -> (i32, i32) {
    %c0_i32 = arith.constant 0 : i32
    %c0_i32_0 = arith.constant 0 : i32
    %c0_i32_1 = arith.constant 0 : i32
    return %c0_i32, %c0_i32_0 : i32, i32
  }
  func.func @transform_10(%arg0: i32) -> (i32, i32) {
    %c0_i32 = arith.constant 0 : i32
    %c0_i32_0 = arith.constant 0 : i32
    %c0_i32_1 = arith.constant 0 : i32
    return %c0_i32, %c0_i32_0 : i32, i32
  }
  func.func @transform_11(%arg0: i32) -> (i32, i32) {
    %c0_i32 = arith.constant 0 : i32
    %c0_i32_0 = arith.constant 0 : i32
    %c0_i32_1 = arith.constant 0 : i32
    return %c0_i32, %c0_i32_0 : i32, i32
  }
  func.func @transform_12(%arg0: i32) -> (i32, i32) {
    %c0_i32 = arith.constant 0 : i32
    %c0_i32_0 = arith.constant 0 : i32
    return %arg0, %c0_i32 : i32, i32
  }
}

</mosaic_0001>

<bundles_post_ra>
// kernel: cross_attention_forward.5
= control target key start
LH: loop header
LB: loop body
LE: loop exit
PB: predicated region body
PF: predicated region fallthrough
CT: control target
= control target key end

     0   :  { %17 = vsyncpa [#allocation3], 0  ;;  %s1565_s0 = inlined_call_operand.hbm [shape: f32[64,32], index: 0, kind: input, shape index: {}]   ;;  %s1566_s1 = inlined_call_operand.hbm [shape: f32[64,32], index: 1, kind: input, shape index: {}]   ;;  %s1567_s2 = inlined_call_operand.vmem [shape: f32[1,32], index: 2, kind: input, shape index: {}]   ;;  %s1568_s3 = inlined_call_operand.vmem [shape: f32[1,32], index: 3, kind: input, shape index: {}]   ;;  %s1569_s4 = inlined_call_operand.hbm [shape: bf16[32,128], index: 4, kind: input, shape index: {}]   ;;  %s1570_s5 = inlined_call_operand.vmem [shape: f32[1,128], index: 5, kind: input, shape index: {}]   ;;  %s1571_s6 = inlined_call_operand.vmem [shape: f32[1,32], index: 6, kind: input, shape index: {}]   ;;  %s1572_s7 = inlined_call_operand.vmem [shape: f32[1,32], index: 7, kind: input, shape index: {}]   ;;  %s1573_s8 = inlined_call_operand.hbm [shape: bf16[32,128], index: 8, kind: input, shape index: {}]   ;;  %s1574_s9 = inlined_call_operand.vmem [shape: f32[1,128], index: 9, kind: input, shape index: {}]   ;;  %s1575_s10 = inlined_call_operand.vmem [shape: bf16[64,128], index: 10, kind: output, shape index: {0}]   ;;  %s1576_s11 = inlined_call_operand.vmem [shape: bf16[64,128], index: 11, kind: output, shape index: {1}]  }
   0x1   :  { %18 = vsyncpa [#allocation5], 0 }
   0x2   :  { %19 = vsyncpa [#allocation8], 0  ;;  %s37_s19 = sshll.u32 %s1566_s1, 4  ;;  %s975_s20 = smov [#allocation4]   ;;  %s38_s19 = int_to_ptr.hbm [resolvable:$true] %s37_s19 }
   0x3   :  { %s39_s21 = sshll.u32 %s975_s20, 4  ;;  %s24_s24 = sshll.u32 %s1565_s0, 4  ;;  %s40_s21 = int_to_ptr.vmem [resolvable:$true] %s39_s21  ;;  %s25_s24 = int_to_ptr.hbm [resolvable:$true] %s24_s24 }
   0x4   :  { %s976_s25 = smov 128   ;;  %s977_s26 = smov 8  }
   0x5   :  { %45 = dma.hbm_to_vmem [thread:$0]  %s38_s19, 1024, %s40_s21, [#allocation5], %s976_s25, %s976_s25, %s977_s26  }
   0x6   :  { %s978_s27 = smov [#allocation2]   ;;  %s54_s12 = sshll.u32 %s1569_s4, 4  ;;  %s55_s12 = int_to_ptr.hbm [resolvable:$true] %s54_s12 }
   0x7   :  { %s26_s28 = sshll.u32 %s978_s27, 4  ;;  %s979_s1 = smov [#allocation6]   ;;  %s27_s28 = int_to_ptr.vmem [resolvable:$true] %s26_s28 }
   0x8   :  { %32 = dma.hbm_to_vmem [thread:$0]  %s25_s24, 1024, %s27_s28, [#allocation3], %s976_s25, %s976_s25, %s977_s26  }
   0x9   :  { %s56_s13 = sshll.u32 %s979_s1, 4  ;;  %s73_s0 = sshll.u32 %s1573_s8, 4  ;;  %s57_s13 = int_to_ptr.vmem [resolvable:$true] %s56_s13  ;;  %s74_s0 = int_to_ptr.hbm [resolvable:$true] %s73_s0 }
   0xa   :  { %s980_s16 = smov 64   ;;  %s981_s17 = smov 4  }
   0xb   :  { %62 = dma.hbm_to_vmem [thread:$0]  %s55_s12, 256, %s57_s13, [#allocation5], %s980_s16, %s980_s16, %s981_s17  }
   0xc   :  { %s982_s18 = smov [#allocation7]  }
   0xd   :  { %s75_s19 = sshll.u32 %s982_s18, 4  ;;  %s76_s19 = int_to_ptr.vmem [resolvable:$true] %s75_s19 }
   0xe   :  { %81 = dma.hbm_to_vmem [thread:$0]  %s74_s0, 256, %s76_s19, [#allocation8], %s980_s16, %s980_s16, %s981_s17  }
   0xf   :  { %969 = dma.done.wait [#allocation3], 1024  }
  0x10   :  { %970 = vsyncadd [#allocation3], 4294966272 }
  0x11   :  { %971 = dma.done.wait [#allocation5], 1280  }
  0x12   :  { %972 = vsyncadd [#allocation5], 4294966016 }
  0x13   :  { %973 = dma.done.wait [#allocation8], 256  }
  0x14   :  { %974 = vsyncadd [#allocation8], 4294967040  ;;  %vm116_vm0 = vcmask 261120   ;;  %v1056_v0 = vld [vmem:[#allocation4 + $0x20] sm:$0xff]  ;;  %v1066_v5 = vld [vmem:[#allocation2 + $0x28] sm:$0xff] }
  0x15   :  { %v1058_v1 = vld [vmem:[#allocation2 + $0x20] sm:$0xff]  ;;  %v449_v2 = vsel %vm116_vm0, %v1056_v0, 0.0  ;;  %v1069_v7 = vld [vmem:[#allocation4 + $0x28] sm:$0xff]  ;;  %v161_v8 = vmul.f32 %v1066_v5, %v1066_v5  ;;  %v132_v10 = vsel %vm116_vm0, %v1066_v5, 0.0  ;;  %v473_v13 = vmul.f32 %v1056_v0, %v1056_v0  ;;  %v1111_v31 = vld [vmem:[#allocation2 + $0x30] sm:$0xff] }
  0x16   :  { %v129_v3 = vsel %vm116_vm0, %v1058_v1, 0.0  ;;  %v160_v4 = vmul.f32 %v1058_v1, %v1058_v1  ;;  %450 = vadd.xlane.f32.xlu1 %v449_v2  ;;  %v452_v9 = vsel %vm116_vm0, %v1069_v7, 0.0  ;;  %v474_v12 = vmul.f32 %v1069_v7, %v1069_v7  ;;  %v1082_v14 = vld [vmem:[#allocation2] sm:$0xff]  ;;  %v1090_v19 = vld [vmem:[#allocation2 + $0x8] sm:$0xff]  ;;  %v1113_v32 = vld [vmem:[#allocation2 + $0x38] sm:$0xff] }
  0x17   :  { %130 = vadd.xlane.f32.xlu0 %v129_v3  ;;  %v179_v11 = vsel %vm116_vm0, %v161_v8, 0.0  ;;  %v489_v16 = vsel %vm116_vm0, %v473_v13, 0.0  ;;  %v117_v17 = vsel %vm116_vm0, %v1082_v14, 0.0  ;;  %v1088_v18 = vld [vmem:[#allocation4] sm:$0xff]  ;;  %v1092_v20 = vld [vmem:[#allocation4 + $0x8] sm:$0xff]  ;;  %v120_v22 = vsel %vm116_vm0, %v1090_v19, 0.0 }
  0x18   :  { %v176_v6 = vsel %vm116_vm0, %v160_v4, 0.0  ;;  %v492_v15 = vsel %vm116_vm0, %v474_v12, 0.0  ;;  %v437_v21 = vsel %vm116_vm0, %v1088_v18, 0.0  ;;  %v440_v23 = vsel %vm116_vm0, %v1092_v20, 0.0  ;;  %v1120_v36 = vld [vmem:[#allocation4 + $0x38] sm:$0xff]  ;;  %v1122_v37 = vld [vmem:[#allocation4 + $0x30] sm:$0xff] }
  0x19   :  { %177 = vadd.xlane.f32.xlu2 %v176_v6  ;;  %v157_v24 = vmul.f32 %v1090_v19, %v1090_v19  ;;  %v156_v25 = vmul.f32 %v1082_v14, %v1082_v14  ;;  %v469_v26 = vmul.f32 %v1088_v18, %v1088_v18  ;;  %v470_v30 = vmul.f32 %v1092_v20, %v1092_v20  ;;  %v1140_v48 = vld [vmem:[#allocation2 + $0x18] sm:$0xff]  ;;  %v1142_v49 = vld [vmem:[#allocation2 + $0x10] sm:$0xff] }
  0x1a   :  { %v135_v33 = vsel %vm116_vm0, %v1111_v31, 0.0  ;;  %v138_v35 = vsel %vm116_vm0, %v1113_v32, 0.0  ;;  %v162_v38 = vmul.f32 %v1111_v31, %v1111_v31  ;;  %v458_v39 = vsel %vm116_vm0, %v1120_v36, 0.0  ;;  %v1144_v50 = vld [vmem:[#allocation4 + $0x10] sm:$0xff]  ;;  %v1154_v55 = vld [vmem:[#allocation4 + $0x18] sm:$0xff] }
  0x1b   :  { %v167_v27 = vsel %vm116_vm0, %v157_v24, 0.0  ;;  %v164_v28 = vsel %vm116_vm0, %v156_v25, 0.0  ;;  %v477_v29 = vsel %vm116_vm0, %v469_v26, 0.0  ;;  %v480_v34 = vsel %vm116_vm0, %v470_v30, 0.0 }
  0x1c   :  { %v455_v40 = vsel %vm116_vm0, %v1122_v37, 0.0  ;;  %v182_v41 = vsel %vm116_vm0, %v162_v38, 0.0  ;;  %v475_v42 = vmul.f32 %v1122_v37, %v1122_v37  ;;  %v163_v43 = vmul.f32 %v1113_v32, %v1113_v32 }
  0x1d   :  { %v476_v44 = vmul.f32 %v1120_v36, %v1120_v36  ;;  %v126_v51 = vsel %vm116_vm0, %v1140_v48, 0.0  ;;  %v123_v52 = vsel %vm116_vm0, %v1142_v49, 0.0  ;;  %v443_v53 = vsel %vm116_vm0, %v1144_v50, 0.0 }
  0x1e   :  { %453 = vadd.xlane.f32.xlu1 %v452_v9  ;;  %v495_v45 = vsel %vm116_vm0, %v475_v42, 0.0  ;;  %v185_v46 = vsel %vm116_vm0, %v163_v43, 0.0  ;;  %v158_v54 = vmul.f32 %v1142_v49, %v1142_v49  ;;  %v159_v56 = vmul.f32 %v1140_v48, %v1140_v48  ;;  %v772_v43 = vld [vmem:[#allocation7] sm:$0xff] }
  0x1f   :  { %133 = vadd.xlane.f32.xlu0 %v132_v10  ;;  %v498_v47 = vsel %vm116_vm0, %v476_v44, 0.0  ;;  %v446_v58 = vsel %vm116_vm0, %v1154_v55, 0.0  ;;  %v472_v60 = vmul.f32 %v1154_v55, %v1154_v55  ;;  %v471_v61 = vmul.f32 %v1144_v50, %v1144_v50 }
  0x20   :  { %v170_v57 = vsel %vm116_vm0, %v158_v54, 0.0  ;;  %v173_v59 = vsel %vm116_vm0, %v159_v56, 0.0  ;;  %v983_v2 = vmov 32.0  }
  0x21   :  { %180 = vadd.xlane.f32.xlu2 %v179_v11  ;;  %v486_v62 = vsel %vm116_vm0, %v472_v60, 0.0  ;;  %v483_v63 = vsel %vm116_vm0, %v471_v61, 0.0  ;;  %839 = vrcp.f32 %v983_v2 }
  0x26   :  { %493 = vadd.xlane.f32.xlu1 %v492_v15 }
  0x27   :  { %490 = vadd.xlane.f32.xlu0 %v489_v16  ;;  %v840_v3 = vpop.eup %839 }
  0x28   :  { %v142_v4 = vmul.f32 32.0, %v840_v3  ;;  %vm146_vm1 = vweird.f32 %v840_v3 }
  0x29   :  { %118 = vadd.xlane.f32.xlu2 %v117_v17 }
  0x2a   :  { %v143_v6 = vsub.f32 1.0, %v142_v4 }
  0x2c   :  { %v144_v8 = vmul.f32 %v840_v3, %v143_v6 }
  0x2e   :  { %438 = vadd.xlane.f32.xlu1 %v437_v21  ;;  %v145_v9 = vadd.f32 %v840_v3, %v144_v8  ;;  %v771_v21 = vld [vmem:[#allocation6 + $0x8] sm:$0xff] }
  0x2f   :  { %121 = vadd.xlane.f32.xlu0 %v120_v22  ;;  %820 = vmatpush.bf16.msra.mxu2 %v771_v21 }
  0x30   :  { %v1168_v10 = vsel %vm146_vm1, %v840_v3, %v145_v9  ;;  %383 = vmatpush.bf16.msra.mxu0 %v771_v21 }
  0x31   :  { %441 = vadd.xlane.f32.xlu2 %v440_v23 }
  0x36   :  { %168 = vadd.xlane.f32.xlu1 %v167_v27 }
  0x37   :  { %165 = vadd.xlane.f32.xlu0 %v164_v28 }
  0x39   :  { %478 = vadd.xlane.f32.xlu2 %v477_v29  ;;  %v770_v29 = vld [vmem:[#allocation6] sm:$0xff] }
  0x3a   :  { %821 = vmatpush.bf16.msra.mxu2 %v770_v29  ;;  %384 = vmatpush.bf16.msra.mxu0 %v770_v29 }
  0x3e   :  { %136 = vadd.xlane.f32.xlu1 %v135_v33 }
  0x3f   :  { %481 = vadd.xlane.f32.xlu0 %v480_v34  ;;  %v773_v34 = vld [vmem:[#allocation7 + $0x8] sm:$0xff] }
  0x40   :  { %822 = vmatpush.bf16.msra.mxu3 %v773_v34  ;;  %696 = vmatpush.bf16.msra.mxu1 %v773_v34 }
  0x41   :  { %139 = vadd.xlane.f32.xlu2 %v138_v35 }
  0x44   :  { %823 = vmatpush.bf16.msra.mxu3 %v772_v43  ;;  %697 = vmatpush.bf16.msra.mxu1 %v772_v43 }
  0x46   :  { %459 = vadd.xlane.f32.xlu1 %v458_v39 }
  0x47   :  { %456 = vadd.xlane.f32.xlu0 %v455_v40 }
  0x49   :  { %183 = vadd.xlane.f32.xlu2 %v182_v41 }
  0x4e   :  { %496 = vadd.xlane.f32.xlu1 %v495_v45 }
  0x4f   :  { %186 = vadd.xlane.f32.xlu0 %v185_v46 }
  0x51   :  { %499 = vadd.xlane.f32.xlu2 %v498_v47 }
  0x56   :  { %127 = vadd.xlane.f32.xlu1 %v126_v51 }
  0x57   :  { %124 = vadd.xlane.f32.xlu0 %v123_v52 }
  0x59   :  { %444 = vadd.xlane.f32.xlu2 %v443_v53 }
  0x5e   :  { %171 = vadd.xlane.f32.xlu1 %v170_v57 }
  0x5f   :  { %447 = vadd.xlane.f32.xlu0 %v446_v58 }
  0x61   :  { %174 = vadd.xlane.f32.xlu2 %v173_v59 }
  0x66   :  { %487 = vadd.xlane.f32.xlu1 %v486_v62 }
  0x67   :  { %484 = vadd.xlane.f32.xlu0 %v483_v63 }
  0x89   :  { %v451_v11 = vpop.xlane.xlu1 %450 }
  0x8a   :  { %v131_v12 = vpop.xlane.xlu0 %130  ;;  %v1183_v35 = vmul.f32 %v451_v11, %v1168_v10 }
  0x8b   :  { %v1171_v13 = vmul.f32 %v1168_v10, %v131_v12 }
  0x8c   :  { %v178_v15 = vpop.xlane.xlu2 %177  ;;  %v513_v44 = vmul.f32 %v1183_v35, %v1183_v35 }
  0x8d   :  { %v200_v16 = vmul.f32 %v1171_v13, %v1171_v13  ;;  %v192_v17 = vmul.f32 %v178_v15, %v1168_v10 }
  0x8f   :  { %v208_v22 = vsub.f32 %v192_v17, %v200_v16 }
  0x91   :  { %v216_v23 = vmax.f32 %v208_v22, 0.0  ;;  %v454_v24 = vpop.xlane.xlu1 %453 }
  0x92   :  { %v134_v25 = vpop.xlane.xlu0 %133  ;;  %v1186_v38 = vmul.f32 %v454_v24, %v1168_v10 }
  0x93   :  { %v1177_v26 = vmul.f32 %v1168_v10, %v134_v25  ;;  %v232_v27 = vadd.f32 1e-05, %v216_v23  ;;  %v224_v23 = vsub.f32 %v1058_v1, %v1171_v13 }
  0x94   :  { %v181_v28 = vpop.xlane.xlu2 %180  ;;  %v514_v45 = vmul.f32 %v1186_v38, %v1186_v38 }
  0x95   :  { %v201_v30 = vmul.f32 %v1177_v26, %v1177_v26  ;;  %841 = vrsqrt.f32 %v232_v27  ;;  %v193_v33 = vmul.f32 %v181_v28, %v1168_v10  ;;  %vm282_vm3 = vweird.f32 %v232_v27 }
  0x97   :  { %v209_v39 = vsub.f32 %v193_v33, %v201_v30 }
  0x99   :  { %v217_v40 = vmax.f32 %v209_v39, 0.0  ;;  %v494_v41 = vpop.xlane.xlu1 %493 }
  0x9a   :  { %v491_v42 = vpop.xlane.xlu0 %490  ;;  %v506_v46 = vmul.f32 %v494_v41, %v1168_v10 }
  0x9b   :  { %v505_v47 = vmul.f32 %v491_v42, %v1168_v10  ;;  %v842_v51 = vpop.eup %841  ;;  %v233_v52 = vadd.f32 1e-05, %v217_v40 }
  0x9c   :  { %v119_v53 = vpop.xlane.xlu2 %118  ;;  %v277_v54 = vmul.f32 %v842_v51, %v232_v27  ;;  %v522_v56 = vsub.f32 %v506_v46, %v514_v45  ;;  %vm283_vm2 = vweird.f32 %v842_v51 }
  0x9d   :  { %v521_v57 = vsub.f32 %v505_v47, %v513_v44  ;;  %843 = vrsqrt.f32 %v233_v52  ;;  %v1201_v12 = vmul.f32 %v1168_v10, %v119_v53  ;;  %vm1206_vm4 = vmor %vm282_vm3, %vm283_vm2  ;;  %vm292_vm5 = vweird.f32 %v233_v52  ;;  %v1239_v53 = vld [vmem:[%s1567_s2] ss:$0 sm:$0xff] }
  0x9e   :  { %v278_v58 = vmul.f32 %v842_v51, %v277_v54  ;;  %v530_v59 = vmax.f32 %v522_v56, 0.0  ;;  %v225_v54 = vsub.f32 %v1066_v5, %v1177_v26  ;;  %v1254_v26 = vld [vmem:[%s1568_s3] ss:$0 sm:$0xff] }
  0x9f   :  { %v529_v60 = vmax.f32 %v521_v57, 0.0  ;;  %v196_v29 = vmul.f32 %v1201_v12, %v1201_v12 }
  0xa0   :  { %v279_v61 = vmul.f32 0.5, %v278_v58  ;;  %v1194_v62 = vadd.f32 1e-05, %v530_v59 }
  0xa1   :  { %v1196_v63 = vadd.f32 1e-05, %v529_v60  ;;  %v439_v2 = vpop.xlane.xlu1 %438 }
  0xa2   :  { %v122_v3 = vpop.xlane.xlu0 %121  ;;  %v280_v4 = vsub.f32 1.5, %v279_v61  ;;  %845 = vrsqrt.f32 %v1194_v62  ;;  %v1211_v21 = vmul.f32 %v439_v2, %v1168_v10  ;;  %vm605_vm12 = vweird.f32 %v1194_v62 }
  0xa3   :  { %v844_v6 = vpop.eup %843  ;;  %847 = vrsqrt.f32 %v1196_v63  ;;  %v1204_v16 = vmul.f32 %v1168_v10, %v122_v3  ;;  %vm595_vm8 = vweird.f32 %v1196_v63 }
  0xa4   :  { %v442_v8 = vpop.xlane.xlu2 %441  ;;  %v281_v9 = vmul.f32 %v842_v51, %v280_v4  ;;  %v287_v11 = vmul.f32 %v844_v6, %v233_v52  ;;  %vm293_vm6 = vweird.f32 %v844_v6  ;;  %v509_v41 = vmul.f32 %v1211_v21, %v1211_v21 }
  0xa5   :  { %v197_v13 = vmul.f32 %v1204_v16, %v1204_v16  ;;  %vm294_vm7 = vmor %vm292_vm5, %vm293_vm6  ;;  %v1246_v57 = vmul.f32 %v442_v8, %v1168_v10 }
  0xa6   :  { %v288_v15 = vmul.f32 %v844_v6, %v287_v11  ;;  %v285_v25 = vsel %vm1206_vm4, %v842_v51, %v281_v9 }
  0xa7   :  { %v320_v44 = vmul.f32 %v285_v25, %v224_v23  ;;  %v510_v25 = vmul.f32 %v1246_v57, %v1246_v57 }
  0xa8   :  { %v1213_v22 = vpop.eup %845  ;;  %v289_v24 = vmul.f32 0.5, %v288_v15 }
  0xa9   :  { %v1219_v27 = vpop.eup %847  ;;  %v600_v28 = vmul.f32 %v1213_v22, %v1194_v62  ;;  %v169_v30 = vpop.xlane.xlu1 %168  ;;  %v331_v5 = vmul.f32 %v1239_v53, %v320_v44  ;;  %vm606_vm10 = vweird.f32 %v1213_v22  ;;  %v538_v62 = vsub.f32 %v1069_v7, %v1186_v38 }
  0xaa   :  { %v166_v33 = vpop.xlane.xlu0 %165  ;;  %v290_v34 = vsub.f32 1.5, %v289_v24  ;;  %v590_v1 = vmul.f32 %v1219_v27, %v1196_v63  ;;  %v189_v39 = vmul.f32 %v169_v30, %v1168_v10  ;;  %vm596_vm9 = vweird.f32 %v1219_v27  ;;  %vm1280_vm13 = vmor %vm605_vm12, %vm606_vm10 }
  0xab   :  { %v601_v40 = vmul.f32 %v1213_v22, %v600_v28  ;;  %v188_v42 = vmul.f32 %v166_v33, %v1168_v10  ;;  %vm597_vm11 = vmor %vm595_vm8, %vm596_vm9 }
  0xac   :  { %v479_v43 = vpop.xlane.xlu2 %478  ;;  %v291_v45 = vmul.f32 %v844_v6, %v290_v34  ;;  %v591_v46 = vmul.f32 %v1219_v27, %v590_v1  ;;  %v205_v47 = vsub.f32 %v189_v39, %v197_v13  ;;  %v342_v34 = vadd.f32 %v1254_v26, %v331_v5 }
  0xad   :  { %v501_v51 = vmul.f32 %v479_v43, %v1168_v10  ;;  %v602_v56 = vmul.f32 0.5, %v601_v40  ;;  %v204_v58 = vsub.f32 %v188_v42, %v196_v29  ;;  %v537_v13 = vsub.f32 %v1056_v0, %v1183_v35  ;;  %v1290_v0 = vld [vmem:[%s1571_s6] ss:$0 sm:$0xff] }
  0xae   :  { %v592_v59 = vmul.f32 0.5, %v591_v46  ;;  %v213_v60 = vmax.f32 %v205_v47, 0.0  ;;  %v295_v2 = vsel %vm294_vm7, %v844_v6, %v291_v45 }
  0xaf   :  { %v517_v61 = vsub.f32 %v501_v51, %v509_v41  ;;  %v603_v3 = vsub.f32 1.5, %v602_v56  ;;  %v212_v4 = vmax.f32 %v204_v58, 0.0  ;;  %v321_v9 = vmul.f32 %v295_v2, %v225_v54  ;;  %v1320_v2 = vld [vmem:[%s1572_s7] ss:$0 sm:$0xff] }
  0xb0   :  { %v593_v11 = vsub.f32 1.5, %v592_v59  ;;  %v1248_v15 = vadd.f32 1e-05, %v213_v60  ;;  %v220_v56 = vsub.f32 %v1082_v14, %v1201_v12  ;;  %v221_v14 = vsub.f32 %v1090_v19, %v1204_v16 }
  0xb1   :  { %v525_v17 = vmax.f32 %v517_v61, 0.0  ;;  %v1258_v52 = vadd.f32 1e-05, %v212_v4  ;;  %v137_v6 = vpop.xlane.xlu1 %136  ;;  %v332_v23 = vmul.f32 %v1239_v53, %v321_v9  ;;  %v604_v29 = vmul.f32 %v1213_v22, %v603_v3 }
  0xb2   :  { %v482_v8 = vpop.xlane.xlu0 %481  ;;  %v594_v24 = vmul.f32 %v1219_v27, %v593_v11  ;;  %849 = vrsqrt.f32 %v1248_v15  ;;  %vm252_vm14 = vweird.f32 %v1248_v15 }
  0xb3   :  { %v1265_v28 = vadd.f32 1e-05, %v525_v17  ;;  %851 = vrsqrt.f32 %v1258_v52  ;;  %v502_v30 = vmul.f32 %v482_v8, %v1168_v10  ;;  %v343_v1 = vadd.f32 %v1254_v26, %v332_v23 }
  0xb4   :  { %v140_v33 = vpop.xlane.xlu2 %139  ;;  %v598_v40 = vsel %vm597_vm11, %v1219_v27, %v594_v24  ;;  %v608_v43 = vsel %vm1280_vm13, %v1213_v22, %v604_v29  ;;  %v1302_v22 = vmul.f32 %v1168_v10, %v137_v6  ;;  %vm242_vm15 = vweird.f32 %v1258_v52 }
  0xb5   :  { %853 = vrsqrt.f32 %v1265_v28  ;;  %v518_v39 = vsub.f32 %v502_v30, %v510_v25  ;;  %v348_v63 = vpack.c.bf16 %v343_v1, %v342_v34  ;;  %v633_v44 = vmul.f32 %v598_v40, %v537_v13 }
  0xb6   :  { %v634_v38 = vmul.f32 %v608_v43, %v538_v62  ;;  %v1327_v3 = vmul.f32 %v1168_v10, %v140_v33  ;;  %v202_v11 = vmul.f32 %v1302_v22, %v1302_v22  ;;  %vm555_vm6 = vweird.f32 %v1265_v28 }
  0xb7   :  { %v526_v42 = vmax.f32 %v518_v39, 0.0  ;;  %756 = vmatmul.msk.bf16.vlgmr.msra.gmra.mxu2 %vm116_vm0, %v348_v63  ;;  %v644_v61 = vmul.f32 %v1290_v0, %v633_v44 }
  0xb8   :  { %v1292_v35 = vpop.eup %849  ;;  %v645_v16 = vmul.f32 %v1290_v0, %v634_v38  ;;  %v203_v1 = vmul.f32 %v1327_v3, %v1327_v3 }
  0xb9   :  { %v1297_v27 = vpop.eup %851  ;;  %v247_v45 = vmul.f32 %v1292_v35, %v1248_v15  ;;  %v1304_v46 = vadd.f32 1e-05, %v526_v42  ;;  %v460_v47 = vpop.xlane.xlu1 %459  ;;  %v655_v24 = vadd.f32 %v1320_v2, %v644_v61  ;;  %vm253_vm2 = vweird.f32 %v1292_v35 }
  0xba   :  { %v457_v51 = vpop.xlane.xlu0 %456  ;;  %v237_v7 = vmul.f32 %v1297_v27, %v1258_v52  ;;  %v1333_v17 = vmul.f32 %v460_v47, %v1168_v10  ;;  %vm243_vm1 = vweird.f32 %v1297_v27  ;;  %v656_v30 = vadd.f32 %v1320_v2, %v645_v16  ;;  %vm254_vm4 = vmor %vm252_vm14, %vm253_vm2 }
  0xbb   :  { %v1306_v54 = vpop.eup %853  ;;  %v248_v58 = vmul.f32 %v1292_v35, %v247_v45  ;;  %855 = vrsqrt.f32 %v1304_v46  ;;  %v1336_v6 = vmul.f32 %v457_v51, %v1168_v10  ;;  %vm244_vm3 = vmor %vm242_vm15, %vm243_vm1  ;;  %vm565_vm9 = vweird.f32 %v1304_v46 }
  0xbc   :  { %v550_v59 = vmul.f32 %v1306_v54, %v1265_v28  ;;  %v184_v60 = vpop.xlane.xlu2 %183  ;;  %v238_v12 = vmul.f32 %v1297_v27, %v237_v7  ;;  %v516_v13 = vmul.f32 %v1333_v17, %v1333_v17  ;;  %v661_v62 = vpack.c.bf16 %v656_v30, %v655_v24 }
  0xbd   :  { %v249_v4 = vmul.f32 0.5, %v248_v58  ;;  %v194_v19 = vmul.f32 %v184_v60, %v1168_v10  ;;  %v515_v42 = vmul.f32 %v1336_v6, %v1336_v6  ;;  %vm556_vm5 = vweird.f32 %v1306_v54 }
  0xbe   :  { %v551_v9 = vmul.f32 %v1306_v54, %v550_v59  ;;  %v239_v5 = vmul.f32 0.5, %v238_v12  ;;  %768 = vmatmul.msk.bf16.vlgmr.msra.gmra.mxu3 %vm116_vm0, %v661_v62  ;;  %vm1387_vm8 = vmor %vm555_vm6, %vm556_vm5  ;;  %v227_v62 = vsub.f32 %v1113_v32, %v1327_v3 }
  0xbf   :  { %v250_v8 = vsub.f32 1.5, %v249_v4  ;;  %v210_v29 = vsub.f32 %v194_v19, %v202_v11 }
  0xc0   :  { %v552_v23 = vmul.f32 0.5, %v551_v9  ;;  %v240_v25 = vsub.f32 1.5, %v239_v5 }
  0xc1   :  { %v1344_v33 = vpop.eup %855  ;;  %v251_v34 = vmul.f32 %v1292_v35, %v250_v8  ;;  %v497_v39 = vpop.xlane.xlu1 %496  ;;  %v218_v43 = vmax.f32 %v210_v29, 0.0 }
  0xc2   :  { %v187_v40 = vpop.xlane.xlu0 %186  ;;  %v241_v41 = vmul.f32 %v1297_v27, %v240_v25  ;;  %v560_v63 = vmul.f32 %v1344_v33, %v1304_v46  ;;  %v553_v44 = vsub.f32 1.5, %v552_v23  ;;  %v507_v45 = vmul.f32 %v497_v39, %v1168_v10 }
  0xc3   :  { %v195_v47 = vmul.f32 %v187_v40, %v1168_v10  ;;  %v1366_v38 = vadd.f32 1e-05, %v218_v43  ;;  %v255_v61 = vsel %vm254_vm4, %v1292_v35, %v251_v34  ;;  %vm566_vm7 = vweird.f32 %v1344_v33 }
  0xc4   :  { %v500_v51 = vpop.xlane.xlu2 %499  ;;  %v561_v7 = vmul.f32 %v1344_v33, %v560_v63  ;;  %v245_v52 = vsel %vm244_vm3, %v1297_v27, %v241_v41  ;;  %v523_v59 = vsub.f32 %v507_v45, %v515_v42  ;;  %v317_v5 = vmul.f32 %v255_v61, %v221_v14  ;;  %vm567_vm10 = vmor %vm565_vm9, %vm566_vm7 }
  0xc5   :  { %v508_v58 = vmul.f32 %v500_v51, %v1168_v10  ;;  %v211_v60 = vsub.f32 %v195_v47, %v203_v1  ;;  %v316_v12 = vmul.f32 %v245_v52, %v220_v56  ;;  %857 = vrsqrt.f32 %v1366_v38 }
  0xc6   :  { %v562_v4 = vmul.f32 0.5, %v561_v7  ;;  %v531_v9 = vmax.f32 %v523_v59, 0.0  ;;  %v554_v16 = vmul.f32 %v1306_v54, %v553_v44  ;;  %v328_v25 = vmul.f32 %v1239_v53, %v317_v5 }
  0xc7   :  { %v524_v15 = vsub.f32 %v508_v58, %v516_v13  ;;  %v219_v11 = vmax.f32 %v211_v60, 0.0  ;;  %v327_v19 = vmul.f32 %v1239_v53, %v316_v12  ;;  %v533_v39 = vsub.f32 %v1088_v18, %v1211_v21 }
  0xc8   :  { %v563_v27 = vsub.f32 1.5, %v562_v4  ;;  %v1377_v23 = vadd.f32 1e-05, %v531_v9  ;;  %v339_v1 = vadd.f32 %v1254_v26, %v328_v25  ;;  %v558_v40 = vsel %vm1387_vm8, %v1306_v54, %v554_v16 }
  0xc9   :  { %v532_v8 = vmax.f32 %v524_v15, 0.0  ;;  %v1379_v35 = vadd.f32 1e-05, %v219_v11  ;;  %v128_v56 = vpop.xlane.xlu1 %127  ;;  %v338_v30 = vadd.f32 %v1254_v26, %v327_v19  ;;  %v534_v41 = vsub.f32 %v1092_v20, %v1246_v57 }
  0xca   :  { %v125_v24 = vpop.xlane.xlu0 %124  ;;  %v564_v14 = vmul.f32 %v1344_v33, %v563_v27  ;;  %859 = vrsqrt.f32 %v1377_v23  ;;  %v1408_v42 = vmul.f32 %v1168_v10, %v128_v56  ;;  %v629_v57 = vmul.f32 %v558_v40, %v533_v39 }
  0xcb   :  { %v1384_v29 = vadd.f32 1e-05, %v532_v8  ;;  %v1393_v13 = vpop.eup %857  ;;  %861 = vrsqrt.f32 %v1379_v35  ;;  %v1411_v18 = vmul.f32 %v1168_v10, %v125_v24  ;;  %v346_v46 = vpack.c.bf16 %v339_v1, %v338_v30 }
  0xcc   :  { %v445_v28 = vpop.xlane.xlu2 %444  ;;  %v297_v63 = vmul.f32 %v1393_v13, %v1366_v38  ;;  %v568_v54 = vsel %vm567_vm10, %v1344_v33, %v564_v14  ;;  %v226_v44 = vsub.f32 %v1111_v31, %v1302_v22  ;;  %v540_v45 = vsub.f32 %v1120_v36, %v1333_v17 }
  0xcd   :  { %863 = vrsqrt.f32 %v1384_v29  ;;  %v1414_v21 = vmul.f32 %v445_v28, %v1168_v10  ;;  %v630_v43 = vmul.f32 %v568_v54, %v534_v41  ;;  %754 = vmatmul.msk.bf16.vlgmr.msra.gmra.mxu0 %vm116_vm0, %v346_v46  ;;  %vm302_vm11 = vweird.f32 %v1366_v38 }
  0xce   :  { %v298_v20 = vmul.f32 %v1393_v13, %v297_v63  ;;  %vm303_vm12 = vweird.f32 %v1393_v13  ;;  %v199_v33 = vmul.f32 %v1408_v42, %v1408_v42  ;;  %vm615_vm13 = vweird.f32 %v1377_v23 }
  0xcf   :  { %v198_v52 = vmul.f32 %v1411_v18, %v1411_v18  ;;  %v511_v59 = vmul.f32 %v1414_v21, %v1414_v21  ;;  %vm312_vm14 = vweird.f32 %v1379_v35  ;;  %v640_v9 = vmul.f32 %v1290_v0, %v629_v57  ;;  %vm1457_vm2 = vmor %vm302_vm11, %vm303_vm12 }
  0xd0   :  { %v1425_v47 = vpop.eup %859  ;;  %v299_v51 = vmul.f32 0.5, %v298_v20  ;;  %v641_v11 = vmul.f32 %v1290_v0, %v630_v43  ;;  %vm625_vm6 = vweird.f32 %v1384_v29 }
  0xd1   :  { %v172_v7 = vpop.xlane.xlu1 %171  ;;  %v862_v22 = vpop.eup %861  ;;  %v610_v58 = vmul.f32 %v1425_v47, %v1377_v23  ;;  %vm616_vm15 = vweird.f32 %v1425_v47  ;;  %v651_v1 = vadd.f32 %v1320_v2, %v640_v9 }
  0xd2   :  { %v448_v31 = vpop.xlane.xlu0 %447  ;;  %v190_v60 = vmul.f32 %v172_v7, %v1168_v10  ;;  %v300_v12 = vsub.f32 1.5, %v299_v51  ;;  %v307_v4 = vmul.f32 %v862_v22, %v1379_v35  ;;  %vm313_vm1 = vweird.f32 %v862_v22  ;;  %vm1479_vm4 = vmor %vm615_vm13, %vm616_vm15 }
  0xd3   :  { %v1439_v61 = vpop.eup %863  ;;  %v611_v5 = vmul.f32 %v1425_v47, %v610_v58  ;;  %v1451_v56 = vmul.f32 %v448_v31, %v1168_v10  ;;  %v652_v39 = vadd.f32 %v1320_v2, %v641_v11  ;;  %vm314_vm5 = vmor %vm312_vm14, %vm313_vm1 }
  0xd4   :  { %v175_v15 = vpop.xlane.xlu2 %174  ;;  %v620_v19 = vmul.f32 %v1439_v61, %v1384_v29  ;;  %v206_v16 = vsub.f32 %v190_v60, %v198_v52  ;;  %v301_v27 = vmul.f32 %v1393_v13, %v300_v12  ;;  %v308_v8 = vmul.f32 %v862_v22, %v307_v4 }
  0xd5   :  { %v612_v25 = vmul.f32 0.5, %v611_v5  ;;  %v191_v34 = vmul.f32 %v175_v15, %v1168_v10  ;;  %vm626_vm3 = vweird.f32 %v1439_v61  ;;  %v512_v20 = vmul.f32 %v1451_v56, %v1451_v56 }
  0xd6   :  { %v621_v14 = vmul.f32 %v1439_v61, %v620_v19  ;;  %v214_v30 = vmax.f32 %v206_v16, 0.0  ;;  %v309_v28 = vmul.f32 0.5, %v308_v8  ;;  %v305_v40 = vsel %vm1457_vm2, %v1393_v13, %v301_v27  ;;  %vm627_vm7 = vmor %vm625_vm6, %vm626_vm3 }
  0xd7   :  { %v613_v38 = vsub.f32 1.5, %v612_v25  ;;  %v207_v46 = vsub.f32 %v191_v34, %v199_v33  ;;  %v659_v57 = vpack.c.bf16 %v652_v39, %v651_v1  ;;  %v322_v13 = vmul.f32 %v305_v40, %v226_v44 }
  0xd8   :  { %v622_v41 = vmul.f32 0.5, %v621_v14  ;;  %v1468_v63 = vadd.f32 1e-05, %v214_v30  ;;  %v310_v54 = vsub.f32 1.5, %v309_v28  ;;  %v539_v4 = vsub.f32 %v1122_v37, %v1336_v6 }
  0xd9   :  { %v488_v43 = vpop.xlane.xlu1 %487  ;;  %v614_v7 = vmul.f32 %v1425_v47, %v613_v38  ;;  %v215_v52 = vmax.f32 %v207_v46, 0.0  ;;  %766 = vmatmul.msk.bf16.vlgmr.msra.gmra.mxu1 %vm116_vm0, %v659_v57  ;;  %v333_v6 = vmul.f32 %v1239_v53, %v322_v13 }
  0xda   :  { %v485_v51 = vpop.xlane.xlu0 %484  ;;  %v623_v31 = vsub.f32 1.5, %v622_v41  ;;  %865 = vrsqrt.f32 %v1468_v63  ;;  %v311_v58 = vmul.f32 %v862_v22, %v310_v54  ;;  %v504_v60 = vmul.f32 %v488_v43, %v1168_v10 }
  0xdb   :  { %v503_v12 = vmul.f32 %v485_v51, %v1168_v10  ;;  %v618_v44 = vsel %vm1479_vm4, %v1425_v47, %v614_v7  ;;  %v231_v15 = vadd.f32 1e-05, %v215_v52  ;;  %v344_v27 = vadd.f32 %v1254_v26, %v333_v6 }
  0xdc   :  { %v624_v23 = vmul.f32 %v1439_v61, %v623_v31  ;;  %v520_v10 = vsub.f32 %v504_v60, %v512_v20  ;;  %v315_v11 = vsel %vm314_vm5, %v862_v22, %v311_v58  ;;  %v635_v29 = vmul.f32 %v618_v44, %v539_v4 }
  0xdd   :  { %v519_v9 = vsub.f32 %v503_v12, %v511_v59  ;;  %v323_v37 = vmul.f32 %v315_v11, %v227_v62  ;;  %867 = vrsqrt.f32 %v231_v15  ;;  %vm262_vm9 = vweird.f32 %v1468_v63 }
  0xde   :  { %v628_v35 = vsel %vm627_vm7, %v1439_v61, %v624_v23  ;;  %v528_v5 = vmax.f32 %v520_v10, 0.0  ;;  %v646_v22 = vmul.f32 %v1290_v0, %v635_v29  ;;  %v222_v54 = vsub.f32 %v1142_v49, %v1411_v18 }
  0xdf   :  { %v527_v19 = vmax.f32 %v519_v9, 0.0  ;;  %v334_v16 = vmul.f32 %v1239_v53, %v323_v37  ;;  %v636_v59 = vmul.f32 %v628_v35, %v540_v45  ;;  %vm272_vm12 = vweird.f32 %v231_v15 }
  0xe0   :  { %v866_v47 = vpop.eup %865  ;;  %v544_v3 = vadd.f32 1e-05, %v528_v5  ;;  %v657_v14 = vadd.f32 %v1320_v2, %v646_v22  ;;  %v536_v23 = vsub.f32 %v1154_v55, %v1451_v56 }
  0xe1   :  { %v257_v32 = vmul.f32 %v866_v47, %v1468_v63  ;;  %v543_v62 = vadd.f32 1e-05, %v527_v19  ;;  %v345_v61 = vadd.f32 %v1254_v26, %v334_v16  ;;  %v647_v8 = vmul.f32 %v1290_v0, %v636_v59 }
  0xe2   :  { %869 = vrsqrt.f32 %v544_v3  ;;  %vm263_vm8 = vweird.f32 %v866_v47  ;;  %v223_v63 = vsub.f32 %v1140_v48, %v1408_v42  ;;  %vm585_vm1 = vweird.f32 %v544_v3 }
  0xe3   :  { %v258_v24 = vmul.f32 %v866_v47, %v257_v32  ;;  %871 = vrsqrt.f32 %v543_v62  ;;  %v349_v25 = vpack.c.bf16 %v345_v61, %v344_v27  ;;  %v658_v36 = vadd.f32 %v1320_v2, %v647_v8  ;;  %v868_v17 = vpop.eup %867  ;;  %vm264_vm10 = vmor %vm262_vm9, %vm263_vm8 }
  0xe4   :  { %v267_v30 = vmul.f32 %v868_v17, %v231_v15  ;;  %vm273_vm11 = vweird.f32 %v868_v17  ;;  %vm575_vm3 = vweird.f32 %v543_v62  ;;  %v535_v42 = vsub.f32 %v1144_v50, %v1414_v21 }
  0xe5   :  { %v259_v45 = vmul.f32 0.5, %v258_v24  ;;  %757 = vmatmul.msk.bf16.gmra.mxu2 %vm116_vm0, %v349_v25  ;;  %v662_v34 = vpack.c.bf16 %v658_v36, %v657_v14  ;;  %vm274_vm13 = vmor %vm272_vm12, %vm273_vm11 }
  0xe6   :  { %v268_v1 = vmul.f32 %v868_v17, %v267_v30 }
  0xe7   :  { %v260_v28 = vsub.f32 1.5, %v259_v45  ;;  %769 = vmatmul.msk.bf16.gmra.mxu3 %vm116_vm0, %v662_v34 }
  0xe8   :  { %v870_v39 = vpop.eup %869  ;;  %v269_v41 = vmul.f32 0.5, %v268_v1 }
  0xe9   :  { %v261_v40 = vmul.f32 %v866_v47, %v260_v28  ;;  %v872_v38 = vpop.eup %871  ;;  %v580_v46 = vmul.f32 %v870_v39, %v544_v3  ;;  %vm586_vm14 = vweird.f32 %v870_v39 }
  0xea   :  { %v570_v20 = vmul.f32 %v872_v38, %v543_v62  ;;  %v270_v43 = vsub.f32 1.5, %v269_v41  ;;  %vm576_vm15 = vweird.f32 %v872_v38  ;;  %vm587_vm2 = vmor %vm585_vm1, %vm586_vm14 }
  0xeb   :  { %v265_v57 = vsel %vm264_vm10, %v866_v47, %v261_v40  ;;  %v581_v51 = vmul.f32 %v870_v39, %v580_v46  ;;  %vm577_vm4 = vmor %vm575_vm3, %vm576_vm15 }
  0xec   :  { %v571_v7 = vmul.f32 %v872_v38, %v570_v20  ;;  %v318_v31 = vmul.f32 %v265_v57, %v222_v54  ;;  %v271_v13 = vmul.f32 %v868_v17, %v270_v43 }
  0xed   :  { %v582_v33 = vmul.f32 0.5, %v581_v51 }
  0xee   :  { %v572_v58 = vmul.f32 0.5, %v571_v7  ;;  %v275_v60 = vsel %vm274_vm13, %v868_v17, %v271_v13  ;;  %v329_v18 = vmul.f32 %v1239_v53, %v318_v31 }
  0xef   :  { %v583_v52 = vsub.f32 1.5, %v582_v33  ;;  %v319_v49 = vmul.f32 %v275_v60, %v223_v63 }
  0xf0   :  { %v573_v12 = vsub.f32 1.5, %v572_v58  ;;  %v340_v10 = vadd.f32 %v1254_v26, %v329_v18 }
  0xf1   :  { %v584_v4 = vmul.f32 %v870_v39, %v583_v52  ;;  %v330_v48 = vmul.f32 %v1239_v53, %v319_v49 }
  0xf2   :  { %v574_v44 = vmul.f32 %v872_v38, %v573_v12 }
  0xf3   :  { %v588_v15 = vsel %vm587_vm2, %v870_v39, %v584_v4  ;;  %v341_v9 = vadd.f32 %v1254_v26, %v330_v48  ;;  %v837_v26 = vld [vmem:[%s1570_s5] ss:$0 sm:$0xff] }
  0xf4   :  { %v578_v11 = vsel %vm577_vm4, %v872_v38, %v574_v44  ;;  %v632_v37 = vmul.f32 %v588_v15, %v536_v23 }
  0xf5   :  { %v631_v6 = vmul.f32 %v578_v11, %v535_v42  ;;  %v347_v35 = vpack.c.bf16 %v341_v9, %v340_v10 }
  0xf6   :  { %v643_v55 = vmul.f32 %v1290_v0, %v632_v37 }
  0xf7   :  { %v642_v56 = vmul.f32 %v1290_v0, %v631_v6  ;;  %755 = vmatmul.msk.bf16.gmra.mxu0 %vm116_vm0, %v347_v35  ;;  %v838_v0 = vld [vmem:[%s1574_s9] ss:$0 sm:$0xff] }
  0xf8   :  { %v654_v53 = vadd.f32 %v1320_v2, %v643_v55 }
  0xf9   :  { %v653_v50 = vadd.f32 %v1320_v2, %v642_v56 }
  0xfb   :  { %v660_v21 = vpack.c.bf16 %v654_v53, %v653_v50 }
  0xfd   :  { %767 = vmatmul.msk.bf16.gmra.mxu1 %vm116_vm0, %v660_v21 }
 0x13a   :  { %v396_v29 = vpop.f32.mrf.mxu2 }
 0x13b   :  { %v397_v19 = vadd.f32 %v837_v26, %v396_v29 }
 0x141   :  { %v709_v59 = vpop.f32.mrf.mxu3 }
 0x142   :  { %v398_v5 = vpop.f32.mrf.mxu2  ;;  %v710_v32 = vadd.f32 %v838_v0, %v709_v59 }
 0x143   :  { %v399_v47 = vadd.f32 %v837_v26, %v398_v5 }
 0x145   :  { %v787_v16 = vpack.c.bf16 %v399_v47, %v397_v19 }
 0x147   :  { %815 = vst [vmem:[%s1575_s10 + $0x10] sm:$0xff] %v787_v16  }
 0x149   :  { %v711_v22 = vpop.f32.mrf.mxu3 }
 0x14a   :  { %v386_v2 = vpop.f32.mrf.mxu0  ;;  %v712_v3 = vadd.f32 %v838_v0, %v711_v22 }
 0x14b   :  { %v387_v61 = vadd.f32 %v837_v26, %v386_v2 }
 0x14c   :  { %v807_v62 = vpack.c.bf16 %v712_v3, %v710_v32 }
 0x14e   :  { %818 = vst [vmem:[%s1576_s11 + $0x10] sm:$0xff] %v807_v62  }
 0x152   :  { %v388_v27 = vpop.f32.mrf.mxu0 }
 0x153   :  { %v389_v8 = vadd.f32 %v837_v26, %v388_v27 }
 0x155   :  { %v777_v24 = vpack.c.bf16 %v389_v8, %v387_v61 }
 0x156   :  { %v699_v25 = vpop.f32.mrf.mxu1 }
 0x157   :  { %778 = vst [vmem:[%s1575_s10] sm:$0xff] %v777_v24   ;;  %v700_v36 = vadd.f32 %v838_v0, %v699_v25 }
 0x15e   :  { %v701_v14 = vpop.f32.mrf.mxu1 }
 0x15f   :  { %v702_v17 = vadd.f32 %v838_v0, %v701_v14 }
 0x161   :  { %v797_v45 = vpack.c.bf16 %v702_v17, %v700_v36 }
 0x163   :  { %798 = vst [vmem:[%s1576_s11] sm:$0xff] %v797_v45  }
 0x168   :  { %v401_v30 = vpop.f32.mrf.mxu2 }
 0x169   :  { %v402_v1 = vadd.f32 %v837_v26, %v401_v30 }
 0x16a   :  { %v714_v34 = vpop.f32.mrf.mxu3 }
 0x16b   :  { %v715_v38 = vadd.f32 %v838_v0, %v714_v34 }
 0x170   :  { %v403_v28 = vpop.f32.mrf.mxu2 }
 0x171   :  { %v404_v39 = vadd.f32 %v837_v26, %v403_v28 }
 0x172   :  { %v716_v40 = vpop.f32.mrf.mxu3 }
 0x173   :  { %v792_v41 = vpack.c.bf16 %v404_v39, %v402_v1  ;;  %v717_v46 = vadd.f32 %v838_v0, %v716_v40 }
 0x174   :  { %v391_v20 = vpop.f32.mrf.mxu0 }
 0x175   :  { %816 = vst [vmem:[%s1575_s10 + $0x18] sm:$0xff] %v792_v41   ;;  %v812_v54 = vpack.c.bf16 %v717_v46, %v715_v38  ;;  %v392_v51 = vadd.f32 %v837_v26, %v391_v20 }
 0x177   :  { %819 = vst [vmem:[%s1576_s11 + $0x18] sm:$0xff] %v812_v54  }
 0x17a   :  { %v704_v57 = vpop.f32.mrf.mxu1 }
 0x17b   :  { %v705_v33 = vadd.f32 %v838_v0, %v704_v57 }
 0x17c   :  { %v393_v43 = vpop.f32.mrf.mxu0 }
 0x17d   :  { %v394_v7 = vadd.f32 %v837_v26, %v393_v43 }
 0x17f   :  { %v782_v31 = vpack.c.bf16 %v394_v7, %v392_v51 }
 0x181   :  { %814 = vst [vmem:[%s1575_s10 + $0x8] sm:$0xff] %v782_v31  }
 0x182   :  { %v706_v13 = vpop.f32.mrf.mxu1 }
 0x183   :  { %v707_v63 = vadd.f32 %v838_v0, %v706_v13 }
 0x185   :  { %v802_v58 = vpack.c.bf16 %v707_v63, %v705_v33 }
 0x187   :  { %817 = vst [vmem:[%s1576_s11 + $0x8] sm:$0xff] %v802_v58  }
 0x188   :  { %743 = vsyncpa [#allocation3], 1 }
 0x189   :  { %744 = vsyncpa [#allocation5], 1 }
 0x18a   :  { %745 = vsyncpa [#allocation8], 1 }

// kernel: cross_attention_forward.4
= control target key start
LH: loop header
LB: loop body
LE: loop exit
PB: predicated region body
PF: predicated region fallthrough
CT: control target
= control target key end

     0   :  { %10 = vsyncpa [#allocation3], 0  ;;  %s2660_s0 = inlined_call_operand.hbm [shape: f32[256,32], index: 0, kind: input, shape index: {}]   ;;  %s2661_s1 = inlined_call_operand.vmem [shape: f32[1,32], index: 1, kind: input, shape index: {}]   ;;  %s2662_s2 = inlined_call_operand.vmem [shape: f32[1,32], index: 2, kind: input, shape index: {}]   ;;  %s2663_s3 = inlined_call_operand.hbm [shape: bf16[32,128], index: 3, kind: input, shape index: {}]   ;;  %s2664_s4 = inlined_call_operand.hbm [shape: f32[1,128], index: 4, kind: input, shape index: {}]   ;;  %s2665_s5 = inlined_call_operand.vmem [shape: bf16[256,128], index: 5, kind: output, shape index: {}]  }
   0x1   :  { %11 = vsyncpa [#allocation5], 0  ;;  %s33_s20 = sshll.u32 %s2663_s3, 4  ;;  %s1521_s21 = smov [#allocation4]   ;;  %s34_s20 = int_to_ptr.hbm [resolvable:$true] %s33_s20 }
   0x2   :  { %s35_s22 = sshll.u32 %s1521_s21, 4  ;;  %s16_s25 = sshll.u32 %s2660_s0, 4  ;;  %s36_s22 = int_to_ptr.vmem [resolvable:$true] %s35_s22  ;;  %s17_s25 = int_to_ptr.hbm [resolvable:$true] %s16_s25 }
   0x3   :  { %s1522_s26 = smov 64   ;;  %s1523_s27 = smov 4  }
   0x4   :  { %41 = dma.hbm_to_vmem [thread:$0]  %s34_s20, 256, %s36_s22, [#allocation5], %s1522_s26, %s1522_s26, %s1523_s27  }
   0x5   :  { %s1524_s28 = smov [#allocation2]   ;;  %s1525_s30 = smov 128  }
   0x6   :  { %s18_s29 = sshll.u32 %s1524_s28, 4  ;;  %s1526_s6 = smov 8   ;;  %s19_s29 = int_to_ptr.vmem [resolvable:$true] %s18_s29 }
   0x7   :  { %24 = dma.hbm_to_vmem [thread:$0]  %s17_s25, 4096, %s19_s29, [#allocation3], %s1525_s30, %s1525_s30, %s1526_s6  }
   0x8   :  { %s47_s8 = sshll.u32 %s2664_s4, 4  ;;  %s1527_s9 = smov [#allocation6]   ;;  %s48_s8 = int_to_ptr.hbm [resolvable:$true] %s47_s8 }
   0x9   :  { %s49_s10 = sshll.u32 %s1527_s9, 4  ;;  %s50_s10 = int_to_ptr.vmem [resolvable:$true] %s49_s10 }
   0xa   :  { %52 = dma.hbm_to_vmem [thread:$0]  %s48_s8, 16, %s50_s10, [#allocation5]  }
   0xb   :  { %1517 = dma.done.wait [#allocation3], 4096  }
   0xc   :  { %1518 = vsyncadd [#allocation3], 4294963200 }
   0xd   :  { %1519 = dma.done.wait [#allocation5], 272  }
   0xe   :  { %1520 = vsyncadd [#allocation5], 4294967024  ;;  %vm105_vm0 = vcmask 261120   ;;  %v1568_v0 = vld [vmem:[#allocation2 + $0xc0] sm:$0xff]  ;;  %v1578_v5 = vld [vmem:[#allocation2 + $0x88] sm:$0xff] }
   0xf   :  { %v1570_v1 = vld [vmem:[#allocation2 + $0x80] sm:$0xff]  ;;  %v178_v2 = vsel %vm105_vm0, %v1568_v0, 0.0  ;;  %v1581_v7 = vld [vmem:[#allocation2 + $0xc8] sm:$0xff]  ;;  %v258_v8 = vmul.f32 %v1578_v5, %v1578_v5  ;;  %v157_v10 = vsel %vm105_vm0, %v1578_v5, 0.0  ;;  %v265_v13 = vmul.f32 %v1568_v0, %v1568_v0  ;;  %v1623_v31 = vld [vmem:[#allocation2 + $0x90] sm:$0xff] }
  0x10   :  { %v154_v3 = vsel %vm105_vm0, %v1570_v1, 0.0  ;;  %v257_v4 = vmul.f32 %v1570_v1, %v1570_v1  ;;  %179 = vadd.xlane.f32.xlu1 %v178_v2  ;;  %v181_v9 = vsel %vm105_vm0, %v1581_v7, 0.0  ;;  %v266_v12 = vmul.f32 %v1581_v7, %v1581_v7  ;;  %v1594_v14 = vld [vmem:[#allocation2] sm:$0xff]  ;;  %v1602_v19 = vld [vmem:[#allocation2 + $0x8] sm:$0xff]  ;;  %v1625_v32 = vld [vmem:[#allocation2 + $0x98] sm:$0xff] }
  0x11   :  { %155 = vadd.xlane.f32.xlu0 %v154_v3  ;;  %v324_v11 = vsel %vm105_vm0, %v258_v8, 0.0  ;;  %v345_v16 = vsel %vm105_vm0, %v265_v13, 0.0  ;;  %v106_v17 = vsel %vm105_vm0, %v1594_v14, 0.0  ;;  %v1600_v18 = vld [vmem:[#allocation2 + $0x40] sm:$0xff]  ;;  %v1604_v20 = vld [vmem:[#allocation2 + $0x48] sm:$0xff]  ;;  %v109_v22 = vsel %vm105_vm0, %v1602_v19, 0.0 }
  0x12   :  { %v321_v6 = vsel %vm105_vm0, %v257_v4, 0.0  ;;  %v348_v15 = vsel %vm105_vm0, %v266_v12, 0.0  ;;  %v130_v21 = vsel %vm105_vm0, %v1600_v18, 0.0  ;;  %v133_v23 = vsel %vm105_vm0, %v1604_v20, 0.0  ;;  %v1632_v36 = vld [vmem:[#allocation2 + $0xd8] sm:$0xff]  ;;  %v1634_v37 = vld [vmem:[#allocation2 + $0xd0] sm:$0xff] }
  0x13   :  { %322 = vadd.xlane.f32.xlu2 %v321_v6  ;;  %v242_v24 = vmul.f32 %v1602_v19, %v1602_v19  ;;  %v241_v25 = vmul.f32 %v1594_v14, %v1594_v14  ;;  %v249_v26 = vmul.f32 %v1600_v18, %v1600_v18  ;;  %v250_v30 = vmul.f32 %v1604_v20, %v1604_v20  ;;  %v1652_v48 = vld [vmem:[#allocation2 + $0x18] sm:$0xff]  ;;  %v1654_v49 = vld [vmem:[#allocation2 + $0x10] sm:$0xff]  ;;  %v86_v62 = vld [vmem:[#allocation2 + $0xa0] sm:$0xff] }
  0x14   :  { %v160_v33 = vsel %vm105_vm0, %v1623_v31, 0.0  ;;  %v163_v35 = vsel %vm105_vm0, %v1625_v32, 0.0  ;;  %v259_v38 = vmul.f32 %v1623_v31, %v1623_v31  ;;  %v187_v39 = vsel %vm105_vm0, %v1632_v36, 0.0  ;;  %v76_v50 = vld [vmem:[#allocation2 + $0x50] sm:$0xff]  ;;  %v77_v55 = vld [vmem:[#allocation2 + $0x58] sm:$0xff]  ;;  %v94_v4 = vld [vmem:[#allocation2 + $0xe0] sm:$0xff] }
  0x15   :  { %v276_v27 = vsel %vm105_vm0, %v242_v24, 0.0  ;;  %v273_v28 = vsel %vm105_vm0, %v241_v25, 0.0  ;;  %v297_v29 = vsel %vm105_vm0, %v249_v26, 0.0  ;;  %v300_v34 = vsel %vm105_vm0, %v250_v30, 0.0  ;;  %v87_v6 = vld [vmem:[#allocation2 + $0xa8] sm:$0xff]  ;;  %v70_v26 = vld [vmem:[#allocation2 + $0x20] sm:$0xff] }
  0x16   :  { %v184_v40 = vsel %vm105_vm0, %v1634_v37, 0.0  ;;  %v327_v41 = vsel %vm105_vm0, %v259_v38, 0.0  ;;  %v267_v42 = vmul.f32 %v1634_v37, %v1634_v37  ;;  %v260_v43 = vmul.f32 %v1625_v32, %v1625_v32  ;;  %v95_v8 = vld [vmem:[#allocation2 + $0xe8] sm:$0xff]  ;;  %v78_v38 = vld [vmem:[#allocation2 + $0x60] sm:$0xff] }
  0x17   :  { %v268_v44 = vmul.f32 %v1632_v36, %v1632_v36  ;;  %v115_v51 = vsel %vm105_vm0, %v1652_v48, 0.0  ;;  %v112_v52 = vsel %vm105_vm0, %v1654_v49, 0.0  ;;  %v136_v53 = vsel %vm105_vm0, %v76_v50, 0.0 }
  0x18   :  { %182 = vadd.xlane.f32.xlu1 %v181_v9  ;;  %v351_v45 = vsel %vm105_vm0, %v267_v42, 0.0  ;;  %v330_v46 = vsel %vm105_vm0, %v260_v43, 0.0  ;;  %v243_v54 = vmul.f32 %v1654_v49, %v1654_v49  ;;  %v244_v56 = vmul.f32 %v1652_v48, %v1652_v48 }
  0x19   :  { %158 = vadd.xlane.f32.xlu0 %v157_v10  ;;  %v354_v47 = vsel %vm105_vm0, %v268_v44, 0.0  ;;  %v139_v58 = vsel %vm105_vm0, %v77_v55, 0.0  ;;  %v252_v60 = vmul.f32 %v77_v55, %v77_v55  ;;  %v251_v61 = vmul.f32 %v76_v50, %v76_v50 }
  0x1a   :  { %v279_v57 = vsel %vm105_vm0, %v243_v54, 0.0  ;;  %v282_v59 = vsel %vm105_vm0, %v244_v56, 0.0  ;;  %v166_v3 = vsel %vm105_vm0, %v86_v62, 0.0  ;;  %v190_v9 = vsel %vm105_vm0, %v94_v4, 0.0 }
  0x1b   :  { %325 = vadd.xlane.f32.xlu2 %v324_v11  ;;  %v306_v63 = vsel %vm105_vm0, %v252_v60, 0.0  ;;  %v303_v2 = vsel %vm105_vm0, %v251_v61, 0.0  ;;  %v169_v10 = vsel %vm105_vm0, %v87_v6, 0.0  ;;  %v193_v11 = vsel %vm105_vm0, %v95_v8, 0.0  ;;  %v89_v61 = vld [vmem:[#allocation2 + $0xb8] sm:$0xff] }
  0x1c   :  { %v1528_v12 = vmov 32.0   ;;  %v262_v13 = vmul.f32 %v87_v6, %v87_v6  ;;  %v270_v24 = vmul.f32 %v95_v8, %v95_v8  ;;  %v96_v6 = vld [vmem:[#allocation2 + $0xf0] sm:$0xff] }
  0x1d   :  { %1359 = vrcp.f32 %v1528_v12  ;;  %v1245_v12 = vld [vmem:[#allocation4] sm:$0xff] }
  0x20   :  { %349 = vadd.xlane.f32.xlu1 %v348_v15  ;;  %v261_v15 = vmul.f32 %v86_v62, %v86_v62  ;;  %v88_v62 = vld [vmem:[#allocation2 + $0xb0] sm:$0xff] }
  0x21   :  { %346 = vadd.xlane.f32.xlu0 %v345_v16  ;;  %v269_v16 = vmul.f32 %v94_v4, %v94_v4 }
  0x23   :  { %107 = vadd.xlane.f32.xlu2 %v106_v17  ;;  %v336_v17 = vsel %vm105_vm0, %v262_v13, 0.0 }
  0x28   :  { %131 = vadd.xlane.f32.xlu1 %v130_v21  ;;  %v333_v21 = vsel %vm105_vm0, %v261_v15, 0.0 }
  0x29   :  { %110 = vadd.xlane.f32.xlu0 %v109_v22  ;;  %v1360_v22 = vpop.eup %1359 }
  0x2a   :  { %v203_v25 = vmul.f32 32.0, %v1360_v22  ;;  %vm207_vm1 = vweird.f32 %v1360_v22 }
  0x2b   :  { %134 = vadd.xlane.f32.xlu2 %v133_v23  ;;  %v357_v23 = vsel %vm105_vm0, %v269_v16, 0.0 }
  0x2c   :  { %v204_v30 = vsub.f32 1.0, %v203_v25  ;;  %v97_v25 = vld [vmem:[#allocation2 + $0xf8] sm:$0xff] }
  0x30   :  { %277 = vadd.xlane.f32.xlu1 %v276_v27  ;;  %v71_v27 = vld [vmem:[#allocation2 + $0x28] sm:$0xff] }
  0x31   :  { %274 = vadd.xlane.f32.xlu0 %v273_v28  ;;  %v118_v28 = vsel %vm105_vm0, %v70_v26, 0.0 }
  0x33   :  { %298 = vadd.xlane.f32.xlu2 %v297_v29  ;;  %v360_v29 = vsel %vm105_vm0, %v270_v24, 0.0 }
  0x38   :  { %161 = vadd.xlane.f32.xlu1 %v160_v33  ;;  %v121_v33 = vsel %vm105_vm0, %v71_v27, 0.0 }
  0x39   :  { %301 = vadd.xlane.f32.xlu0 %v300_v34  ;;  %v205_v34 = vmul.f32 %v1360_v22, %v204_v30 }
  0x3b   :  { %164 = vadd.xlane.f32.xlu2 %v163_v35  ;;  %v79_v35 = vld [vmem:[#allocation2 + $0x68] sm:$0xff]  ;;  %v206_v42 = vadd.f32 %v1360_v22, %v205_v34 }
  0x3d   :  { %v1683_v44 = vsel %vm207_vm1, %v1360_v22, %v206_v42 }
  0x40   :  { %188 = vadd.xlane.f32.xlu1 %v187_v39  ;;  %v245_v39 = vmul.f32 %v70_v26, %v70_v26 }
  0x41   :  { %185 = vadd.xlane.f32.xlu0 %v184_v40  ;;  %v145_v40 = vsel %vm105_vm0, %v79_v35, 0.0 }
  0x42   :  { %v285_v43 = vsel %vm105_vm0, %v245_v39, 0.0 }
  0x43   :  { %328 = vadd.xlane.f32.xlu2 %v327_v41  ;;  %v142_v41 = vsel %vm105_vm0, %v78_v38, 0.0 }
  0x48   :  { %352 = vadd.xlane.f32.xlu1 %v351_v45  ;;  %v253_v45 = vmul.f32 %v78_v38, %v78_v38 }
  0x49   :  { %331 = vadd.xlane.f32.xlu0 %v330_v46  ;;  %v246_v46 = vmul.f32 %v71_v27, %v71_v27 }
  0x4a   :  { %v309_v54 = vsel %vm105_vm0, %v253_v45, 0.0 }
  0x4b   :  { %355 = vadd.xlane.f32.xlu2 %v354_v47  ;;  %v288_v55 = vsel %vm105_vm0, %v246_v46, 0.0 }
  0x50   :  { %116 = vadd.xlane.f32.xlu1 %v115_v51  ;;  %v254_v51 = vmul.f32 %v79_v35, %v79_v35 }
  0x51   :  { %113 = vadd.xlane.f32.xlu0 %v112_v52 }
  0x53   :  { %137 = vadd.xlane.f32.xlu2 %v136_v53 }
  0x58   :  { %280 = vadd.xlane.f32.xlu1 %v279_v57 }
  0x59   :  { %140 = vadd.xlane.f32.xlu0 %v139_v58  ;;  %v312_v58 = vsel %vm105_vm0, %v254_v51, 0.0 }
  0x5b   :  { %283 = vadd.xlane.f32.xlu2 %v282_v59  ;;  %v1246_v59 = vld [vmem:[#allocation4 + $0x8] sm:$0xff] }
  0x5c   :  { %1343 = vmatpush.bf16.msra.mxu2 %v1246_v59  ;;  %1344 = vmatpush.bf16.msra.mxu3 %v1246_v59 }
  0x5d   :  { %1068 = vmatpush.bf16.msra.mxu0 %v1246_v59  ;;  %1342 = vmatpush.bf16.msra.mxu1 %v1246_v59 }
  0x60   :  { %307 = vadd.xlane.f32.xlu1 %v306_v63  ;;  %1346 = vmatpush.bf16.msra.mxu2 %v1245_v12 }
  0x61   :  { %304 = vadd.xlane.f32.xlu0 %v303_v2  ;;  %1347 = vmatpush.bf16.msra.mxu3 %v1245_v12 }
  0x62   :  { %1069 = vmatpush.bf16.msra.mxu0 %v1245_v12  ;;  %1345 = vmatpush.bf16.msra.mxu1 %v1245_v12  ;;  %v1743_v12 = vld [vmem:[#allocation2 + $0x78] sm:$0xff] }
  0x63   :  { %167 = vadd.xlane.f32.xlu2 %v166_v3 }
  0x68   :  { %191 = vadd.xlane.f32.xlu1 %v190_v9 }
  0x69   :  { %170 = vadd.xlane.f32.xlu0 %v169_v10  ;;  %v175_v10 = vsel %vm105_vm0, %v89_v61, 0.0 }
  0x6b   :  { %194 = vadd.xlane.f32.xlu2 %v193_v11  ;;  %v172_v11 = vsel %vm105_vm0, %v88_v62, 0.0 }
  0x70   :  { %337 = vadd.xlane.f32.xlu1 %v336_v17  ;;  %v196_v17 = vsel %vm105_vm0, %v96_v6, 0.0 }
  0x71   :  { %334 = vadd.xlane.f32.xlu0 %v333_v21 }
  0x73   :  { %358 = vadd.xlane.f32.xlu2 %v357_v23  ;;  %v263_v23 = vmul.f32 %v88_v62, %v88_v62 }
  0x78   :  { %119 = vadd.xlane.f32.xlu1 %v118_v28 }
  0x79   :  { %361 = vadd.xlane.f32.xlu0 %v360_v29  ;;  %v264_v29 = vmul.f32 %v89_v61, %v89_v61  ;;  %v72_v61 = vld [vmem:[#allocation2 + $0x30] sm:$0xff] }
  0x7b   :  { %122 = vadd.xlane.f32.xlu2 %v121_v33  ;;  %v342_v46 = vsel %vm105_vm0, %v264_v29, 0.0 }
  0x80   :  { %146 = vadd.xlane.f32.xlu1 %v145_v40  ;;  %v339_v40 = vsel %vm105_vm0, %v263_v23, 0.0 }
  0x81   :  { %143 = vadd.xlane.f32.xlu0 %v142_v41  ;;  %v199_v41 = vsel %vm105_vm0, %v97_v25, 0.0 }
  0x83   :  { %286 = vadd.xlane.f32.xlu2 %v285_v43  ;;  %v180_v47 = vpop.xlane.xlu1 %179 }
  0x84   :  { %v156_v50 = vpop.xlane.xlu0 %155  ;;  %v1710_v21 = vmul.f32 %v1683_v44, %v180_v47 }
  0x85   :  { %v1686_v52 = vmul.f32 %v1683_v44, %v156_v50 }
  0x86   :  { %v323_v53 = vpop.xlane.xlu2 %322  ;;  %v425_v30 = vmul.f32 %v1710_v21, %v1710_v21 }
  0x87   :  { %v417_v56 = vmul.f32 %v1686_v52, %v1686_v52  ;;  %v385_v57 = vmul.f32 %v323_v53, %v1683_v44  ;;  %v272_v53 = vmul.f32 %v97_v25, %v97_v25 }
  0x88   :  { %310 = vadd.xlane.f32.xlu1 %v309_v54  ;;  %v271_v54 = vmul.f32 %v96_v6, %v96_v6  ;;  %v80_v6 = vld [vmem:[#allocation2 + $0x70] sm:$0xff] }
  0x89   :  { %289 = vadd.xlane.f32.xlu0 %v288_v55  ;;  %v449_v60 = vsub.f32 %v385_v57, %v417_v56  ;;  %v148_v25 = vsel %vm105_vm0, %v80_v6, 0.0 }
  0x8b   :  { %313 = vadd.xlane.f32.xlu2 %v312_v58  ;;  %v481_v63 = vmax.f32 %v449_v60, 0.0  ;;  %v183_v2 = vpop.xlane.xlu1 %182 }
  0x8c   :  { %v159_v3 = vpop.xlane.xlu0 %158  ;;  %v1702_v13 = vmul.f32 %v1683_v44, %v183_v2  ;;  %v366_v2 = vsel %vm105_vm0, %v272_v53, 0.0 }
  0x8d   :  { %v1695_v4 = vmul.f32 %v1683_v44, %v159_v3  ;;  %v1697_v8 = vadd.f32 1e-05, %v481_v63  ;;  %v363_v3 = vsel %vm105_vm0, %v271_v54, 0.0 }
  0x8e   :  { %v326_v9 = vpop.xlane.xlu2 %325  ;;  %v426_v24 = vmul.f32 %v1702_v13, %v1702_v13 }
  0x8f   :  { %v418_v15 = vmul.f32 %v1695_v4, %v1695_v4  ;;  %1361 = vrsqrt.f32 %v1697_v8  ;;  %v386_v16 = vmul.f32 %v326_v9, %v1683_v44  ;;  %v73_v9 = vld [vmem:[#allocation2 + $0x38] sm:$0xff]  ;;  %vm727_vm3 = vweird.f32 %v1697_v8 }
  0x90   :  { %176 = vadd.xlane.f32.xlu1 %v175_v10 }
  0x91   :  { %173 = vadd.xlane.f32.xlu0 %v172_v11  ;;  %v450_v22 = vsub.f32 %v386_v16, %v418_v15  ;;  %v248_v15 = vmul.f32 %v73_v9, %v73_v9  ;;  %v513_v16 = vsub.f32 %v1570_v1, %v1686_v52  ;;  %v514_v1 = vsub.f32 %v1578_v5, %v1695_v4 }
  0x92   :  { %v247_v5 = vmul.f32 %v72_v61, %v72_v61 }
  0x93   :  { %197 = vadd.xlane.f32.xlu2 %v196_v17  ;;  %v482_v26 = vmax.f32 %v450_v22, 0.0  ;;  %v350_v27 = vpop.xlane.xlu1 %349  ;;  %v124_v22 = vsel %vm105_vm0, %v72_v61, 0.0 }
  0x94   :  { %v347_v28 = vpop.xlane.xlu0 %346  ;;  %v394_v33 = vmul.f32 %v350_v27, %v1683_v44  ;;  %v151_v27 = vsel %vm105_vm0, %v1743_v12, 0.0 }
  0x95   :  { %v393_v34 = vmul.f32 %v347_v28, %v1683_v44  ;;  %v1718_v35 = vpop.eup %1361  ;;  %v1720_v38 = vadd.f32 1e-05, %v482_v26 }
  0x96   :  { %v108_v39 = vpop.xlane.xlu2 %107  ;;  %v722_v42 = vmul.f32 %v1718_v35, %v1697_v8  ;;  %v458_v43 = vsub.f32 %v394_v33, %v426_v24  ;;  %vm728_vm2 = vweird.f32 %v1718_v35  ;;  %v127_v8 = vsel %vm105_vm0, %v73_v9, 0.0 }
  0x97   :  { %v457_v45 = vsub.f32 %v393_v34, %v425_v30  ;;  %1363 = vrsqrt.f32 %v1720_v38  ;;  %vm1757_vm4 = vmor %vm727_vm3, %vm728_vm2  ;;  %v1764_v52 = vmul.f32 %v1683_v44, %v108_v39  ;;  %v1775_v33 = vsel %vm105_vm0, %v248_v15, 0.0 }
  0x98   :  { %v723_v47 = vmul.f32 %v1718_v35, %v722_v42  ;;  %v490_v50 = vmax.f32 %v458_v43, 0.0  ;;  %340 = vadd.xlane.f32.xlu1 %v339_v40  ;;  %vm737_vm5 = vweird.f32 %v1720_v38  ;;  %v291_v9 = vsel %vm105_vm0, %v247_v5, 0.0  ;;  %v1817_v5 = vld [vmem:[%s2662_s2] ss:$0 sm:$0xff] }
  0x99   :  { %v489_v51 = vmax.f32 %v457_v45, 0.0  ;;  %200 = vadd.xlane.f32.xlu0 %v199_v41 }
  0x9a   :  { %v724_v55 = vmul.f32 0.5, %v723_v47  ;;  %v1729_v56 = vadd.f32 1e-05, %v490_v50  ;;  %v401_v47 = vmul.f32 %v1764_v52, %v1764_v52 }
  0x9b   :  { %v1731_v57 = vadd.f32 1e-05, %v489_v51  ;;  %343 = vadd.xlane.f32.xlu2 %v342_v46  ;;  %v132_v58 = vpop.xlane.xlu1 %131 }
  0x9c   :  { %v111_v59 = vpop.xlane.xlu0 %110  ;;  %v725_v60 = vsub.f32 1.5, %v724_v55  ;;  %1365 = vrsqrt.f32 %v1729_v56  ;;  %v1748_v17 = vmul.f32 %v1683_v44, %v132_v58  ;;  %vm817_vm12 = vweird.f32 %v1729_v56 }
  0x9d   :  { %v1734_v62 = vpop.eup %1363  ;;  %1367 = vrsqrt.f32 %v1731_v57  ;;  %v1754_v24 = vmul.f32 %v1683_v44, %v111_v59  ;;  %vm807_vm8 = vweird.f32 %v1731_v57 }
  0x9e   :  { %v135_v63 = vpop.xlane.xlu2 %134  ;;  %v726_v10 = vmul.f32 %v1718_v35, %v725_v60  ;;  %v732_v11 = vmul.f32 %v1734_v62, %v1720_v38  ;;  %vm738_vm6 = vweird.f32 %v1734_v62  ;;  %v409_v39 = vmul.f32 %v1748_v17, %v1748_v17  ;;  %v1800_v60 = vld [vmem:[%s2661_s1] ss:$0 sm:$0xff] }
  0x9f   :  { %v402_v43 = vmul.f32 %v1754_v24, %v1754_v24  ;;  %vm739_vm7 = vmor %vm737_vm5, %vm738_vm6 }
  0xa0   :  { %v733_v23 = vmul.f32 %v1734_v62, %v732_v11  ;;  %367 = vadd.xlane.f32.xlu1 %v366_v2  ;;  %v730_v30 = vsel %vm1757_vm4, %v1718_v35, %v726_v10  ;;  %v1807_v2 = vmul.f32 %v1683_v44, %v135_v63 }
  0xa1   :  { %364 = vadd.xlane.f32.xlu0 %v363_v3  ;;  %v897_v53 = vmul.f32 %v730_v30, %v513_v16 }
  0xa2   :  { %v1769_v28 = vpop.eup %1365  ;;  %v734_v29 = vmul.f32 0.5, %v733_v23 }
  0xa3   :  { %125 = vadd.xlane.f32.xlu2 %v124_v22  ;;  %v1777_v4 = vpop.eup %1367  ;;  %v812_v34 = vmul.f32 %v1769_v28, %v1729_v56  ;;  %v278_v40 = vpop.xlane.xlu1 %277  ;;  %v932_v63 = vmul.f32 %v1800_v60, %v897_v53  ;;  %vm818_vm10 = vweird.f32 %v1769_v28 }
  0xa4   :  { %v275_v41 = vpop.xlane.xlu0 %274  ;;  %v735_v42 = vsub.f32 1.5, %v734_v29  ;;  %v802_v35 = vmul.f32 %v1777_v4, %v1731_v57  ;;  %v370_v45 = vmul.f32 %v278_v40, %v1683_v44  ;;  %v255_v29 = vmul.f32 %v80_v6, %v80_v6  ;;  %vm1846_vm13 = vmor %vm817_vm12, %vm818_vm10 }
  0xa5   :  { %v813_v46 = vmul.f32 %v1769_v28, %v812_v34  ;;  %v369_v50 = vmul.f32 %v275_v41, %v1683_v44  ;;  %vm808_vm9 = vweird.f32 %v1777_v4  ;;  %v256_v57 = vmul.f32 %v1743_v12, %v1743_v12 }
  0xa6   :  { %v299_v51 = vpop.xlane.xlu2 %298  ;;  %v736_v54 = vmul.f32 %v1734_v62, %v735_v42  ;;  %v803_v55 = vmul.f32 %v1777_v4, %v802_v35  ;;  %v434_v58 = vsub.f32 %v370_v45, %v402_v43  ;;  %v521_v35 = vsub.f32 %v1568_v0, %v1710_v21  ;;  %vm809_vm11 = vmor %vm807_vm8, %vm808_vm9 }
  0xa7   :  { %v377_v59 = vmul.f32 %v299_v51, %v1683_v44  ;;  %v814_v61 = vmul.f32 0.5, %v813_v46  ;;  %v433_v3 = vsub.f32 %v369_v50, %v401_v47  ;;  %v967_v43 = vadd.f32 %v1817_v5, %v932_v63 }
  0xa8   :  { %v804_v10 = vmul.f32 0.5, %v803_v55  ;;  %v466_v11 = vmax.f32 %v434_v58, 0.0  ;;  %149 = vadd.xlane.f32.xlu1 %v148_v25  ;;  %v740_v16 = vsel %vm739_vm7, %v1734_v62, %v736_v54  ;;  %v315_v47 = vsel %vm105_vm0, %v255_v29, 0.0 }
  0xa9   :  { %v441_v15 = vsub.f32 %v377_v59, %v409_v39  ;;  %128 = vadd.xlane.f32.xlu0 %v127_v8  ;;  %v815_v22 = vsub.f32 1.5, %v814_v61  ;;  %v465_v23 = vmax.f32 %v433_v3, 0.0  ;;  %v898_v26 = vmul.f32 %v740_v16, %v514_v1 }
  0xaa   :  { %v805_v38 = vsub.f32 1.5, %v804_v10  ;;  %v1811_v30 = vadd.f32 1e-05, %v466_v11 }
  0xab   :  { %v473_v34 = vmax.f32 %v441_v15, 0.0  ;;  %152 = vadd.xlane.f32.xlu2 %v151_v27  ;;  %v1821_v62 = vadd.f32 1e-05, %v465_v23  ;;  %v162_v25 = vpop.xlane.xlu1 %161  ;;  %v933_v1 = vmul.f32 %v1800_v60, %v898_v26  ;;  %v410_v27 = vmul.f32 %v1807_v2, %v1807_v2 }
  0xac   :  { %v302_v6 = vpop.xlane.xlu0 %301  ;;  %v806_v8 = vmul.f32 %v1777_v4, %v805_v38  ;;  %1369 = vrsqrt.f32 %v1811_v30  ;;  %v816_v40 = vmul.f32 %v1769_v28, %v815_v22  ;;  %v1861_v55 = vmul.f32 %v1683_v44, %v162_v25 }
  0xad   :  { %v1828_v39 = vadd.f32 1e-05, %v473_v34  ;;  %1371 = vrsqrt.f32 %v1821_v62  ;;  %v378_v41 = vmul.f32 %v302_v6, %v1683_v44  ;;  %v968_v45 = vadd.f32 %v1817_v5, %v933_v1 }
  0xae   :  { %v165_v42 = vpop.xlane.xlu2 %164  ;;  %v810_v50 = vsel %vm809_vm11, %v1777_v4, %v806_v8  ;;  %v820_v56 = vsel %vm1846_vm13, %v1769_v28, %v816_v40  ;;  %v522_v4 = vsub.f32 %v1581_v7, %v1702_v13  ;;  %v497_v7 = vsub.f32 %v1594_v14, %v1764_v52 }
  0xaf   :  { %1373 = vrsqrt.f32 %v1828_v39  ;;  %v442_v46 = vsub.f32 %v378_v41, %v410_v27  ;;  %v991_v21 = vpack.c.bf16 %v968_v45, %v967_v43  ;;  %v905_v53 = vmul.f32 %v810_v50, %v521_v35 }
  0xb0   :  { %295 = vadd.xlane.f32.xlu1 %v1775_v33  ;;  %v906_v3 = vmul.f32 %v820_v56, %v522_v4  ;;  %v498_v22 = vsub.f32 %v1602_v19, %v1754_v24  ;;  %vm577_vm14 = vweird.f32 %v1811_v30  ;;  %v419_v52 = vmul.f32 %v1861_v55, %v1861_v55 }
  0xb1   :  { %292 = vadd.xlane.f32.xlu0 %v291_v9  ;;  %v474_v51 = vmax.f32 %v442_v46, 0.0  ;;  %1237 = vmatmul.msk.bf16.vlgmr.msra.gmra.mxu2 %vm105_vm0, %v991_v21  ;;  %v318_v9 = vsel %vm105_vm0, %v256_v57, 0.0  ;;  %v940_v16 = vmul.f32 %v1800_v60, %v905_v53  ;;  %v1890_v29 = vmul.f32 %v1683_v44, %v165_v42 }
  0xb2   :  { %v1856_v54 = vpop.eup %1369  ;;  %v941_v24 = vmul.f32 %v1800_v60, %v906_v3  ;;  %vm567_vm15 = vweird.f32 %v1821_v62  ;;  %vm647_vm6 = vweird.f32 %v1828_v39 }
  0xb3   :  { %316 = vadd.xlane.f32.xlu2 %v315_v47  ;;  %v1864_v33 = vpop.eup %1371  ;;  %v572_v12 = vmul.f32 %v1856_v54, %v1811_v30  ;;  %v1868_v58 = vadd.f32 1e-05, %v474_v51  ;;  %v189_v28 = vpop.xlane.xlu1 %188  ;;  %v975_v1 = vadd.f32 %v1817_v5, %v940_v16  ;;  %vm578_vm2 = vweird.f32 %v1856_v54 }
  0xb4   :  { %v186_v59 = vpop.xlane.xlu0 %185  ;;  %v562_v13 = vmul.f32 %v1864_v33, %v1821_v62  ;;  %v1893_v38 = vmul.f32 %v1683_v44, %v189_v28  ;;  %vm568_vm1 = vweird.f32 %v1864_v33  ;;  %v976_v40 = vadd.f32 %v1817_v5, %v941_v24  ;;  %vm579_vm4 = vmor %vm577_vm14, %vm578_vm2 }
  0xb5   :  { %v1870_v61 = vpop.eup %1373  ;;  %v573_v10 = vmul.f32 %v1856_v54, %v572_v12  ;;  %1375 = vrsqrt.f32 %v1868_v58  ;;  %v1896_v63 = vmul.f32 %v1683_v44, %v186_v59  ;;  %v420_v35 = vmul.f32 %v1890_v29, %v1890_v29  ;;  %vm569_vm3 = vmor %vm567_vm15, %vm568_vm1 }
  0xb6   :  { %v642_v11 = vmul.f32 %v1870_v61, %v1828_v39  ;;  %v329_v15 = vpop.xlane.xlu2 %328  ;;  %v563_v14 = vmul.f32 %v1864_v33, %v562_v13  ;;  %v428_v43 = vmul.f32 %v1893_v38, %v1893_v38  ;;  %v995_v51 = vpack.c.bf16 %v976_v40, %v975_v1 }
  0xb7   :  { %v574_v23 = vmul.f32 0.5, %v573_v10  ;;  %v387_v19 = vmul.f32 %v329_v15, %v1683_v44  ;;  %v427_v0 = vmul.f32 %v1896_v63, %v1896_v63  ;;  %vm648_vm5 = vweird.f32 %v1870_v61 }
  0xb8   :  { %v643_v26 = vmul.f32 %v1870_v61, %v642_v11  ;;  %v564_v34 = vmul.f32 0.5, %v563_v14  ;;  %1241 = vmatmul.msk.bf16.vlgmr.msra.gmra.mxu3 %vm105_vm0, %v995_v51  ;;  %vm1947_vm8 = vmor %vm647_vm6, %vm648_vm5  ;;  %v505_v40 = vsub.f32 %v1600_v18, %v1748_v17  ;;  %vm657_vm9 = vweird.f32 %v1868_v58 }
  0xb9   :  { %319 = vadd.xlane.f32.xlu0 %v318_v9  ;;  %v575_v25 = vsub.f32 1.5, %v574_v23  ;;  %v451_v27 = vsub.f32 %v387_v19, %v419_v52 }
  0xba   :  { %v644_v6 = vmul.f32 0.5, %v643_v26  ;;  %v565_v8 = vsub.f32 1.5, %v564_v34 }
  0xbb   :  { %v1904_v41 = vpop.eup %1375  ;;  %v576_v42 = vmul.f32 %v1856_v54, %v575_v25  ;;  %v353_v45 = vpop.xlane.xlu1 %352  ;;  %v483_v21 = vmax.f32 %v451_v27, 0.0 }
  0xbc   :  { %v332_v46 = vpop.xlane.xlu0 %331  ;;  %v566_v47 = vmul.f32 %v1864_v33, %v565_v8  ;;  %v652_v50 = vmul.f32 %v1904_v41, %v1868_v58  ;;  %v645_v57 = vsub.f32 1.5, %v644_v6  ;;  %v395_v56 = vmul.f32 %v353_v45, %v1683_v44 }
  0xbd   :  { %v388_v53 = vmul.f32 %v332_v46, %v1683_v44  ;;  %v1926_v28 = vadd.f32 1e-05, %v483_v21  ;;  %v580_v9 = vsel %vm579_vm4, %v1856_v54, %v576_v42  ;;  %vm658_vm7 = vweird.f32 %v1904_v41 }
  0xbe   :  { %v356_v4 = vpop.xlane.xlu2 %355  ;;  %v653_v12 = vmul.f32 %v1904_v41, %v652_v50  ;;  %v570_v62 = vsel %vm569_vm3, %v1864_v33, %v566_v47  ;;  %v459_v13 = vsub.f32 %v395_v56, %v427_v0  ;;  %v882_v14 = vmul.f32 %v580_v9, %v498_v22  ;;  %vm659_vm10 = vmor %vm657_vm9, %vm658_vm7 }
  0xbf   :  { %v396_v59 = vmul.f32 %v356_v4, %v1683_v44  ;;  %v452_v3 = vsub.f32 %v388_v53, %v420_v35  ;;  %v881_v10 = vmul.f32 %v570_v62, %v497_v7  ;;  %1377 = vrsqrt.f32 %v1926_v28 }
  0xc0   :  { %v654_v11 = vmul.f32 0.5, %v653_v12  ;;  %v491_v15 = vmax.f32 %v459_v13, 0.0  ;;  %v646_v23 = vmul.f32 %v1870_v61, %v645_v57  ;;  %v917_v24 = vmul.f32 %v1800_v60, %v882_v14 }
  0xc1   :  { %v460_v30 = vsub.f32 %v396_v59, %v428_v43  ;;  %v484_v16 = vmax.f32 %v452_v3, 0.0  ;;  %v916_v52 = vmul.f32 %v1800_v60, %v881_v10  ;;  %v506_v35 = vsub.f32 %v1604_v20, %v1807_v2 }
  0xc2   :  { %v655_v33 = vsub.f32 1.5, %v654_v11  ;;  %v1937_v34 = vadd.f32 1e-05, %v491_v15  ;;  %v952_v8 = vadd.f32 %v1817_v5, %v917_v24  ;;  %v650_v42 = vsel %vm1947_vm8, %v1870_v61, %v646_v23 }
  0xc3   :  { %v492_v26 = vmax.f32 %v460_v30, 0.0  ;;  %v1939_v54 = vadd.f32 1e-05, %v484_v16  ;;  %v117_v7 = vpop.xlane.xlu1 %116  ;;  %v951_v6 = vadd.f32 %v1817_v5, %v916_v52  ;;  %v889_v46 = vmul.f32 %v650_v42, %v505_v40 }
  0xc4   :  { %v114_v19 = vpop.xlane.xlu0 %113  ;;  %v656_v22 = vmul.f32 %v1904_v41, %v655_v33  ;;  %1379 = vrsqrt.f32 %v1937_v34  ;;  %v1968_v45 = vmul.f32 %v1683_v44, %v117_v7  ;;  %v515_v50 = vsub.f32 %v1623_v31, %v1861_v55 }
  0xc5   :  { %v1944_v25 = vadd.f32 1e-05, %v492_v26  ;;  %v1953_v27 = vpop.eup %1377  ;;  %1381 = vrsqrt.f32 %v1939_v54  ;;  %v1971_v18 = vmul.f32 %v1683_v44, %v114_v19  ;;  %v983_v17 = vpack.c.bf16 %v952_v8, %v951_v6 }
  0xc6   :  { %v138_v39 = vpop.xlane.xlu2 %137  ;;  %v742_v43 = vmul.f32 %v1953_v27, %v1926_v28  ;;  %v660_v58 = vsel %vm659_vm10, %v1904_v41, %v656_v22  ;;  %vm747_vm11 = vweird.f32 %v1926_v28  ;;  %v404_v41 = vmul.f32 %v1968_v45, %v1968_v45 }
  0xc7   :  { %1383 = vrsqrt.f32 %v1944_v25  ;;  %v890_v47 = vmul.f32 %v660_v58, %v506_v35  ;;  %v1976_v20 = vmul.f32 %v1683_v44, %v138_v39  ;;  %1229 = vmatmul.msk.bf16.vlgmr.msra.gmra.mxu0 %vm105_vm0, %v983_v17  ;;  %vm748_vm12 = vweird.f32 %v1953_v27 }
  0xc8   :  { %v743_v61 = vmul.f32 %v1953_v27, %v742_v43  ;;  %v403_v53 = vmul.f32 %v1971_v18, %v1971_v18  ;;  %vm757_vm13 = vweird.f32 %v1939_v54  ;;  %v924_v62 = vmul.f32 %v1800_v60, %v889_v46  ;;  %vm2012_vm15 = vmor %vm747_vm11, %vm748_vm12 }
  0xc9   :  { %v925_v13 = vmul.f32 %v1800_v60, %v890_v47  ;;  %v411_v10 = vmul.f32 %v1976_v20, %v1976_v20  ;;  %vm827_vm2 = vweird.f32 %v1937_v34  ;;  %vm837_vm6 = vweird.f32 %v1944_v25 }
  0xca   :  { %v1979_v2 = vpop.eup %1379  ;;  %v744_v0 = vmul.f32 0.5, %v743_v61  ;;  %v959_v19 = vadd.f32 %v1817_v5, %v924_v62  ;;  %v523_v62 = vsub.f32 %v1634_v37, %v1896_v63 }
  0xcb   :  { %v281_v21 = vpop.xlane.xlu1 %280  ;;  %v1382_v51 = vpop.eup %1381  ;;  %v822_v56 = vmul.f32 %v1979_v2, %v1937_v34  ;;  %vm828_vm14 = vweird.f32 %v1979_v2  ;;  %v960_v24 = vadd.f32 %v1817_v5, %v925_v13 }
  0xcc   :  { %v141_v57 = vpop.xlane.xlu0 %140  ;;  %v371_v4 = vmul.f32 %v281_v21, %v1683_v44  ;;  %v745_v55 = vsub.f32 1.5, %v744_v0  ;;  %v752_v12 = vmul.f32 %v1382_v51, %v1939_v54  ;;  %vm758_vm1 = vweird.f32 %v1382_v51  ;;  %vm2044_vm5 = vmor %vm827_vm2, %vm828_vm14 }
  0xcd   :  { %v1992_v31 = vpop.eup %1383  ;;  %v823_v3 = vmul.f32 %v1979_v2, %v822_v56  ;;  %v2006_v16 = vmul.f32 %v1683_v44, %v141_v57  ;;  %v987_v42 = vpack.c.bf16 %v960_v24, %v959_v19  ;;  %v516_v21 = vsub.f32 %v1625_v32, %v1890_v29  ;;  %vm759_vm3 = vmor %vm757_vm13, %vm758_vm1 }
  0xce   :  { %v284_v59 = vpop.xlane.xlu2 %283  ;;  %v832_v9 = vmul.f32 %v1992_v31, %v1944_v25  ;;  %v435_v11 = vsub.f32 %v371_v4, %v403_v53  ;;  %v746_v30 = vmul.f32 %v1953_v27, %v745_v55  ;;  %v753_v15 = vmul.f32 %v1382_v51, %v752_v12 }
  0xcf   :  { %v824_v52 = vmul.f32 0.5, %v823_v3  ;;  %v372_v26 = vmul.f32 %v284_v59, %v1683_v44  ;;  %v412_v40 = vmul.f32 %v2006_v16, %v2006_v16  ;;  %1233 = vmatmul.msk.bf16.vlgmr.msra.gmra.mxu1 %vm105_vm0, %v987_v42  ;;  %vm838_vm4 = vweird.f32 %v1992_v31 }
  0xd0   :  { %v833_v23 = vmul.f32 %v1992_v31, %v832_v9  ;;  %v467_v33 = vmax.f32 %v435_v11, 0.0  ;;  %v754_v7 = vmul.f32 0.5, %v753_v15  ;;  %v750_v22 = vsel %vm2012_vm15, %v1953_v27, %v746_v30  ;;  %vm2050_vm7 = vmor %vm837_vm6, %vm838_vm4 }
  0xd1   :  { %v825_v28 = vsub.f32 1.5, %v824_v52  ;;  %v436_v39 = vsub.f32 %v372_v26, %v404_v41  ;;  %v899_v61 = vmul.f32 %v750_v22, %v515_v50  ;;  %v524_v25 = vsub.f32 %v1632_v36, %v1893_v38 }
  0xd2   :  { %v834_v6 = vmul.f32 0.5, %v833_v23  ;;  %v2023_v1 = vadd.f32 1e-05, %v467_v33  ;;  %v755_v8 = vsub.f32 1.5, %v754_v7 }
  0xd3   :  { %v308_v35 = vpop.xlane.xlu1 %307  ;;  %v826_v17 = vmul.f32 %v1979_v2, %v825_v28  ;;  %v468_v46 = vmax.f32 %v436_v39, 0.0  ;;  %v934_v29 = vmul.f32 %v1800_v60, %v899_v61  ;;  %v500_v28 = vsub.f32 %v1652_v48, %v1968_v45 }
  0xd4   :  { %v305_v43 = vpop.xlane.xlu0 %304  ;;  %v835_v58 = vsub.f32 1.5, %v834_v6  ;;  %1385 = vrsqrt.f32 %v2023_v1  ;;  %v756_v27 = vmul.f32 %v1382_v51, %v755_v8  ;;  %v380_v47 = vmul.f32 %v308_v35, %v1683_v44 }
  0xd5   :  { %v379_v0 = vmul.f32 %v305_v43, %v1683_v44  ;;  %v2040_v57 = vadd.f32 1e-05, %v468_v46  ;;  %v499_v6 = vsub.f32 %v1654_v49, %v1971_v18  ;;  %vm587_vm9 = vweird.f32 %v2023_v1 }
  0xd6   :  { %v168_v41 = vpop.xlane.xlu2 %167  ;;  %v836_v50 = vmul.f32 %v1992_v31, %v835_v58  ;;  %v444_v56 = vsub.f32 %v380_v47, %v412_v40  ;;  %v760_v4 = vsel %vm759_vm3, %v1382_v51, %v756_v27  ;;  %v830_v51 = vsel %vm2044_vm5, %v1979_v2, %v826_v17 }
  0xd7   :  { %v443_v53 = vsub.f32 %v379_v0, %v411_v10  ;;  %v900_v32 = vmul.f32 %v760_v4, %v516_v21  ;;  %1387 = vrsqrt.f32 %v2040_v57  ;;  %v907_v38 = vmul.f32 %v830_v51, %v523_v62 }
  0xd8   :  { %v476_v54 = vmax.f32 %v444_v56, 0.0  ;;  %v840_v3 = vsel %vm2050_vm7, %v1992_v31, %v836_v50  ;;  %v969_v31 = vadd.f32 %v1817_v5, %v934_v29  ;;  %v2080_v23 = vmul.f32 %v1683_v44, %v168_v41 }
  0xd9   :  { %v475_v12 = vmax.f32 %v443_v53, 0.0  ;;  %v935_v13 = vmul.f32 %v1800_v60, %v900_v32  ;;  %v908_v15 = vmul.f32 %v840_v3, %v524_v25  ;;  %v942_v24 = vmul.f32 %v1800_v60, %v907_v38 }
  0xda   :  { %v2058_v59 = vpop.eup %1385  ;;  %v2070_v10 = vadd.f32 1e-05, %v476_v54  ;;  %v421_v48 = vmul.f32 %v2080_v23, %v2080_v23  ;;  %vm597_vm12 = vweird.f32 %v2040_v57 }
  0xdb   :  { %v582_v9 = vmul.f32 %v2058_v59, %v2023_v1  ;;  %v2072_v2 = vadd.f32 1e-05, %v475_v12  ;;  %v192_v11 = vpop.xlane.xlu1 %191  ;;  %v970_v36 = vadd.f32 %v1817_v5, %v935_v13  ;;  %v943_v22 = vmul.f32 %v1800_v60, %v908_v15 }
  0xdc   :  { %v171_v30 = vpop.xlane.xlu0 %170  ;;  %1389 = vrsqrt.f32 %v2070_v10  ;;  %v2083_v33 = vmul.f32 %v1683_v44, %v192_v11  ;;  %vm588_vm8 = vweird.f32 %v2058_v59  ;;  %v977_v40 = vadd.f32 %v1817_v5, %v942_v24 }
  0xdd   :  { %v583_v37 = vmul.f32 %v2058_v59, %v582_v9  ;;  %1391 = vrsqrt.f32 %v2072_v2  ;;  %v1388_v14 = vpop.eup %1387  ;;  %v992_v26 = vpack.c.bf16 %v970_v36, %v969_v31  ;;  %v2087_v19 = vmul.f32 %v1683_v44, %v171_v30  ;;  %vm2115_vm10 = vmor %vm587_vm9, %vm588_vm8 }
  0xde   :  { %v195_v63 = vpop.xlane.xlu2 %194  ;;  %v592_v7 = vmul.f32 %v1388_v14, %v2040_v57  ;;  %v978_v42 = vadd.f32 %v1817_v5, %v943_v22  ;;  %v429_v49 = vmul.f32 %v2083_v33, %v2083_v33  ;;  %vm598_vm11 = vweird.f32 %v1388_v14 }
  0xdf   :  { %v584_v52 = vmul.f32 0.5, %v583_v37  ;;  %1238 = vmatmul.msk.bf16.gmra.mxu2 %vm105_vm0, %v992_v26  ;;  %v422_v27 = vmul.f32 %v2087_v19, %v2087_v19  ;;  %v2132_v12 = vmul.f32 %v1683_v44, %v195_v63  ;;  %vm599_vm13 = vmor %vm597_vm12, %vm598_vm11  ;;  %vm667_vm1 = vweird.f32 %v2072_v2 }
  0xe0   :  { %v593_v8 = vmul.f32 %v1388_v14, %v592_v7  ;;  %v996_v46 = vpack.c.bf16 %v978_v42, %v977_v40  ;;  %vm677_vm2 = vweird.f32 %v2070_v10 }
  0xe1   :  { %v585_v39 = vsub.f32 1.5, %v584_v52  ;;  %v430_v63 = vmul.f32 %v2132_v12, %v2132_v12 }
  0xe2   :  { %v2099_v35 = vpop.eup %1389  ;;  %v594_v58 = vmul.f32 0.5, %v593_v8  ;;  %1242 = vmatmul.msk.bf16.gmra.mxu3 %vm105_vm0, %v996_v46 }
  0xe3   :  { %v586_v43 = vmul.f32 %v2058_v59, %v585_v39  ;;  %v338_v45 = vpop.xlane.xlu1 %337  ;;  %v2107_v17 = vpop.eup %1391  ;;  %v672_v61 = vmul.f32 %v2099_v35, %v2070_v10  ;;  %vm678_vm15 = vweird.f32 %v2099_v35 }
  0xe4   :  { %v335_v18 = vpop.xlane.xlu0 %334  ;;  %v662_v47 = vmul.f32 %v2107_v17, %v2072_v2  ;;  %v390_v0 = vmul.f32 %v338_v45, %v1683_v44  ;;  %v595_v50 = vsub.f32 1.5, %v594_v58  ;;  %vm668_vm14 = vweird.f32 %v2107_v17  ;;  %vm2159_vm4 = vmor %vm677_vm2, %vm678_vm15 }
  0xe5   :  { %v389_v41 = vmul.f32 %v335_v18, %v1683_v44  ;;  %v673_v56 = vmul.f32 %v2099_v35, %v672_v61  ;;  %v590_v4 = vsel %vm2115_vm10, %v2058_v59, %v586_v43  ;;  %vm2155_vm3 = vmor %vm667_vm1, %vm668_vm14  ;;  %v1425_v43 = vld [vmem:[#allocation2 + $0x50] sm:$0xff]  ;;  %v1426_v18 = vld [vmem:[#allocation2 + $0x58] sm:$0xff] }
  0xe6   :  { %v359_v21 = vpop.xlane.xlu2 %358  ;;  %v663_v55 = vmul.f32 %v2107_v17, %v662_v47  ;;  %v454_v32 = vsub.f32 %v390_v0, %v422_v27  ;;  %v596_v34 = vmul.f32 %v1388_v14, %v595_v50  ;;  %v883_v3 = vmul.f32 %v590_v4, %v499_v6  ;;  %v2186_v0 = vld [vmem:[#allocation2 + $0xa8] sm:$0xff] }
  0xe7   :  { %v397_v53 = vmul.f32 %v359_v21, %v1683_v44  ;;  %v453_v29 = vsub.f32 %v389_v41, %v421_v48  ;;  %v674_v54 = vmul.f32 0.5, %v673_v56  ;;  %v507_v10 = vsub.f32 %v1425_v43, %v1976_v20  ;;  %v2182_v20 = vld [vmem:[#allocation2 + $0xa0] sm:$0xff] }
  0xe8   :  { %v664_v25 = vmul.f32 0.5, %v663_v55  ;;  %v486_v62 = vmax.f32 %v454_v32, 0.0  ;;  %v600_v11 = vsel %vm599_vm13, %v1388_v14, %v596_v34  ;;  %v918_v7 = vmul.f32 %v1800_v60, %v883_v3 }
  0xe9   :  { %v461_v51 = vsub.f32 %v397_v53, %v429_v49  ;;  %v485_v13 = vmax.f32 %v453_v29, 0.0  ;;  %v675_v9 = vsub.f32 1.5, %v674_v54  ;;  %v884_v37 = vmul.f32 %v600_v11, %v500_v28 }
  0xea   :  { %v665_v57 = vsub.f32 1.5, %v664_v25  ;;  %v2135_v30 = vadd.f32 1e-05, %v486_v62  ;;  %v953_v40 = vadd.f32 %v1817_v5, %v918_v7  ;;  %v508_v58 = vsub.f32 %v1426_v18, %v2006_v16 }
  0xeb   :  { %v493_v59 = vmax.f32 %v461_v51, 0.0  ;;  %v2137_v36 = vadd.f32 1e-05, %v485_v13  ;;  %v120_v38 = vpop.xlane.xlu1 %119  ;;  %v676_v24 = vmul.f32 %v2099_v35, %v675_v9  ;;  %v919_v28 = vmul.f32 %v1800_v60, %v884_v37 }
  0xec   :  { %v362_v15 = vpop.xlane.xlu0 %361  ;;  %v666_v26 = vmul.f32 %v2107_v17, %v665_v57  ;;  %1393 = vrsqrt.f32 %v2135_v30  ;;  %v2170_v48 = vmul.f32 %v1683_v44, %v120_v38  ;;  %v517_v47 = vsub.f32 %v2182_v20, %v2080_v23 }
  0xed   :  { %v2141_v31 = vadd.f32 1e-05, %v493_v59  ;;  %v398_v52 = vmul.f32 %v362_v15, %v1683_v44  ;;  %1395 = vrsqrt.f32 %v2137_v36  ;;  %v954_v2 = vadd.f32 %v1817_v5, %v919_v28 }
  0xee   :  { %v123_v14 = vpop.xlane.xlu2 %122  ;;  %v670_v42 = vsel %vm2155_vm3, %v2107_v17, %v666_v26  ;;  %v680_v49 = vsel %vm2159_vm4, %v2099_v35, %v676_v24  ;;  %v518_v35 = vsub.f32 %v2186_v0, %v2087_v19  ;;  %vm777_vm5 = vweird.f32 %v2135_v30 }
  0xef   :  { %1397 = vrsqrt.f32 %v2141_v31  ;;  %v462_v22 = vsub.f32 %v398_v52, %v430_v63  ;;  %v984_v27 = vpack.c.bf16 %v954_v2, %v953_v40  ;;  %v891_v41 = vmul.f32 %v670_v42, %v507_v10 }
  0xf0   :  { %v2198_v56 = vmul.f32 %v1683_v44, %v123_v14  ;;  %v892_v53 = vmul.f32 %v680_v49, %v508_v58  ;;  %v405_v32 = vmul.f32 %v2170_v48, %v2170_v48  ;;  %vm767_vm6 = vweird.f32 %v2137_v36 }
  0xf1   :  { %v494_v8 = vmax.f32 %v462_v22, 0.0  ;;  %1230 = vmatmul.msk.bf16.gmra.mxu0 %vm105_vm0, %v984_v27  ;;  %v926_v13 = vmul.f32 %v1800_v60, %v891_v41  ;;  %vm847_vm12 = vweird.f32 %v2141_v31 }
  0xf2   :  { %v2175_v45 = vpop.eup %1393  ;;  %v406_v9 = vmul.f32 %v2198_v56, %v2198_v56  ;;  %v927_v59 = vmul.f32 %v1800_v60, %v892_v53 }
  0xf3   :  { %v2178_v61 = vadd.f32 1e-05, %v494_v8  ;;  %v147_v46 = vpop.xlane.xlu1 %146  ;;  %v2180_v1 = vpop.eup %1395  ;;  %v772_v16 = vmul.f32 %v2175_v45, %v2135_v30  ;;  %vm778_vm7 = vweird.f32 %v2175_v45  ;;  %v961_v15 = vadd.f32 %v1817_v5, %v926_v13 }
  0xf4   :  { %v144_v17 = vpop.xlane.xlu0 %143  ;;  %v762_v50 = vmul.f32 %v2180_v1, %v2137_v36  ;;  %v2210_v34 = vmul.f32 %v1683_v44, %v147_v46  ;;  %vm768_vm8 = vweird.f32 %v2180_v1  ;;  %v962_v26 = vadd.f32 %v1817_v5, %v927_v59  ;;  %vm2238_vm9 = vmor %vm777_vm5, %vm778_vm7 }
  0xf5   :  { %v2192_v21 = vpop.eup %1397  ;;  %1399 = vrsqrt.f32 %v2178_v61  ;;  %v773_v4 = vmul.f32 %v2175_v45, %v772_v16  ;;  %v2213_v54 = vmul.f32 %v1683_v44, %v144_v17  ;;  %vm769_vm10 = vmor %vm767_vm6, %vm768_vm8  ;;  %vm857_vm15 = vweird.f32 %v2178_v61 }
  0xf6   :  { %v287_v23 = vpop.xlane.xlu2 %286  ;;  %v842_v55 = vmul.f32 %v2192_v21, %v2141_v31  ;;  %v763_v29 = vmul.f32 %v2180_v1, %v762_v50  ;;  %v414_v52 = vmul.f32 %v2210_v34, %v2210_v34  ;;  %v988_v2 = vpack.c.bf16 %v962_v26, %v961_v15  ;;  %v1429_v31 = vld [vmem:[#allocation2 + $0xe0] sm:$0xff] }
  0xf7   :  { %v774_v51 = vmul.f32 0.5, %v773_v4  ;;  %v373_v62 = vmul.f32 %v287_v23, %v1683_v44  ;;  %v413_v6 = vmul.f32 %v2213_v54, %v2213_v54  ;;  %vm848_vm11 = vweird.f32 %v2192_v21 }
  0xf8   :  { %v843_v25 = vmul.f32 %v2192_v21, %v842_v55  ;;  %v764_v3 = vmul.f32 0.5, %v763_v29  ;;  %1234 = vmatmul.msk.bf16.gmra.mxu1 %vm105_vm0, %v988_v2  ;;  %vm2275_vm13 = vmor %vm847_vm12, %vm848_vm11 }
  0xf9   :  { %v775_v11 = vsub.f32 1.5, %v774_v51  ;;  %v437_v38 = vsub.f32 %v373_v62, %v405_v32  ;;  %v525_v62 = vsub.f32 %v1429_v31, %v2083_v33 }
  0xfa   :  { %v844_v57 = vmul.f32 0.5, %v843_v25  ;;  %v765_v63 = vsub.f32 1.5, %v764_v3 }
  0xfb   :  { %v2223_v37 = vpop.eup %1399  ;;  %v311_v14 = vpop.xlane.xlu1 %310  ;;  %v776_v24 = vmul.f32 %v2175_v45, %v775_v11  ;;  %v469_v40 = vmax.f32 %v437_v38, 0.0  ;;  %v1430_v38 = vld [vmem:[#allocation2 + $0xe8] sm:$0xff] }
  0xfc   :  { %v290_v7 = vpop.xlane.xlu0 %289  ;;  %v845_v22 = vsub.f32 1.5, %v844_v57  ;;  %v852_v28 = vmul.f32 %v2223_v37, %v2178_v61  ;;  %v766_v8 = vmul.f32 %v2180_v1, %v765_v63  ;;  %v381_v42 = vmul.f32 %v311_v14, %v1683_v44 }
  0xfd   :  { %v374_v10 = vmul.f32 %v290_v7, %v1683_v44  ;;  %v2252_v18 = vadd.f32 1e-05, %v469_v40  ;;  %v780_v36 = vsel %vm2238_vm9, %v2175_v45, %v776_v24  ;;  %vm858_vm14 = vweird.f32 %v2223_v37 }
  0xfe   :  { %v314_v43 = vpop.xlane.xlu2 %313  ;;  %v853_v30 = vmul.f32 %v2223_v37, %v852_v28  ;;  %v445_v58 = vsub.f32 %v381_v42, %v413_v6  ;;  %v770_v27 = vsel %vm769_vm10, %v2180_v1, %v766_v8  ;;  %v846_v41 = vmul.f32 %v2192_v21, %v845_v22  ;;  %vm2298_vm1 = vmor %vm857_vm15, %vm858_vm14 }
  0xff   :  { %v382_v49 = vmul.f32 %v314_v43, %v1683_v44  ;;  %v438_v17 = vsub.f32 %v374_v10, %v406_v9  ;;  %v901_v16 = vmul.f32 %v770_v27, %v517_v47  ;;  %1401 = vrsqrt.f32 %v2252_v18 }
 0x100   :  { %v854_v46 = vmul.f32 0.5, %v853_v30  ;;  %v477_v50 = vmax.f32 %v445_v58, 0.0  ;;  %v902_v23 = vmul.f32 %v780_v36, %v518_v35  ;;  %v850_v3 = vsel %vm2275_vm13, %v2192_v21, %v846_v41 }
 0x101   :  { %v446_v20 = vsub.f32 %v382_v49, %v414_v52  ;;  %v470_v4 = vmax.f32 %v438_v17, 0.0  ;;  %v936_v55 = vmul.f32 %v1800_v60, %v901_v16  ;;  %v526_v61 = vsub.f32 %v1430_v38, %v2132_v12  ;;  %v2309_v52 = vld [vmem:[#allocation2 + $0x20] sm:$0xff] }
 0x102   :  { %v855_v53 = vsub.f32 1.5, %v854_v46  ;;  %v2265_v32 = vadd.f32 1e-05, %v477_v50  ;;  %v937_v25 = vmul.f32 %v1800_v60, %v902_v23  ;;  %v909_v63 = vmul.f32 %v850_v3, %v525_v62 }
 0x103   :  { %v478_v1 = vmax.f32 %v446_v20, 0.0  ;;  %v177_v45 = vpop.xlane.xlu1 %176  ;;  %v2268_v47 = vadd.f32 1e-05, %v470_v4  ;;  %v971_v13 = vadd.f32 %v1817_v5, %v936_v55  ;;  %v501_v26 = vsub.f32 %v2309_v52, %v2170_v48 }
 0x104   :  { %v174_v29 = vpop.xlane.xlu0 %173  ;;  %v856_v0 = vmul.f32 %v2223_v37, %v855_v53  ;;  %1403 = vrsqrt.f32 %v2265_v32  ;;  %v2293_v59 = vmul.f32 %v1683_v44, %v177_v45  ;;  %v972_v21 = vadd.f32 %v1817_v5, %v937_v25 }
 0x105   :  { %v2270_v51 = vadd.f32 1e-05, %v478_v1  ;;  %1405 = vrsqrt.f32 %v2268_v47  ;;  %v2288_v9 = vpop.eup %1401  ;;  %v2296_v11 = vmul.f32 %v1683_v44, %v174_v29  ;;  %vm607_vm2 = vweird.f32 %v2252_v18 }
 0x106   :  { %v198_v35 = vpop.xlane.xlu2 %197  ;;  %v602_v57 = vmul.f32 %v2288_v9, %v2252_v18  ;;  %v860_v15 = vsel %vm2298_vm1, %v2223_v37, %v856_v0  ;;  %v993_v7 = vpack.c.bf16 %v972_v21, %v971_v13  ;;  %v424_v12 = vmul.f32 %v2293_v59, %v2293_v59 }
 0x107   :  { %1407 = vrsqrt.f32 %v2270_v51  ;;  %v423_v22 = vmul.f32 %v2296_v11, %v2296_v11  ;;  %v910_v6 = vmul.f32 %v860_v15, %v526_v61  ;;  %vm608_vm3 = vweird.f32 %v2288_v9 }
 0x108   :  { %v603_v14 = vmul.f32 %v2288_v9, %v602_v57  ;;  %1239 = vmatmul.msk.bf16.gmra.mxu2 %vm105_vm0, %v993_v7  ;;  %vm617_vm4 = vweird.f32 %v2268_v47  ;;  %v2334_v30 = vmul.f32 %v1683_v44, %v198_v35  ;;  %v944_v49 = vmul.f32 %v1800_v60, %v909_v63  ;;  %vm2357_vm8 = vmor %vm607_vm2, %vm608_vm3 }
 0x109   :  { %v945_v58 = vmul.f32 %v1800_v60, %v910_v6  ;;  %vm687_vm5 = vweird.f32 %v2265_v32  ;;  %vm697_vm12 = vweird.f32 %v2270_v51 }
 0x10a   :  { %v2314_v24 = vpop.eup %1403  ;;  %v604_v8 = vmul.f32 0.5, %v603_v14  ;;  %v979_v1 = vadd.f32 %v1817_v5, %v944_v49  ;;  %v431_v61 = vmul.f32 %v2334_v30, %v2334_v30 }
 0x10b   :  { %v341_v37 = vpop.xlane.xlu1 %340  ;;  %v2321_v39 = vpop.eup %1405  ;;  %v682_v40 = vmul.f32 %v2314_v24, %v2265_v32  ;;  %vm688_vm6 = vweird.f32 %v2314_v24  ;;  %v980_v55 = vadd.f32 %v1817_v5, %v945_v58 }
 0x10c   :  { %v201_v28 = vpop.xlane.xlu0 %200  ;;  %v391_v2 = vmul.f32 %v341_v37, %v1683_v44  ;;  %v612_v43 = vmul.f32 %v2321_v39, %v2268_v47  ;;  %v605_v27 = vsub.f32 1.5, %v604_v8  ;;  %vm618_vm7 = vweird.f32 %v2321_v39  ;;  %vm2393_vm11 = vmor %vm687_vm5, %vm688_vm6 }
 0x10d   :  { %v2328_v42 = vpop.eup %1407  ;;  %v683_v36 = vmul.f32 %v2314_v24, %v682_v40  ;;  %v2343_v17 = vmul.f32 %v1683_v44, %v201_v28  ;;  %v997_v62 = vpack.c.bf16 %v980_v55, %v979_v1  ;;  %vm2380_vm9 = vmor %vm617_vm4, %vm618_vm7  ;;  %v1433_v40 = vld [vmem:[#allocation2 + $0x60] sm:$0xff] }
 0x10e   :  { %v344_v10 = vpop.xlane.xlu2 %343  ;;  %v692_v46 = vmul.f32 %v2328_v42, %v2270_v51  ;;  %v613_v20 = vmul.f32 %v2321_v39, %v612_v43  ;;  %v455_v16 = vsub.f32 %v391_v2, %v423_v22  ;;  %v606_v60 = vmul.f32 %v2288_v9, %v605_v27  ;;  %v1432_v22 = vld [vmem:[#allocation2 + $0x28] sm:$0xff]  ;;  %v2428_v27 = vld [vmem:[%s2661_s1] ss:$0 sm:$0xff] }
 0x10f   :  { %v684_v41 = vmul.f32 0.5, %v683_v36  ;;  %v392_v23 = vmul.f32 %v344_v10, %v1683_v44  ;;  %v432_v19 = vmul.f32 %v2343_v17, %v2343_v17  ;;  %1243 = vmatmul.msk.bf16.gmra.mxu3 %vm105_vm0, %v997_v62  ;;  %vm698_vm10 = vweird.f32 %v2328_v42 }
 0x110   :  { %v693_v50 = vmul.f32 %v2328_v42, %v692_v46  ;;  %v614_v53 = vmul.f32 0.5, %v613_v20  ;;  %v487_v4 = vmax.f32 %v455_v16, 0.0  ;;  %v610_v18 = vsel %vm2357_vm8, %v2288_v9, %v606_v60  ;;  %vm2411_vm13 = vmor %vm697_vm12, %vm698_vm10  ;;  %v2432_v20 = vld [vmem:[#allocation2 + $0xb8] sm:$0xff] }
 0x111   :  { %v685_v29 = vsub.f32 1.5, %v684_v41  ;;  %v456_v0 = vsub.f32 %v392_v23, %v424_v12  ;;  %v502_v37 = vsub.f32 %v1432_v22, %v2198_v56  ;;  %v885_v8 = vmul.f32 %v610_v18, %v501_v26  ;;  %v1434_v26 = vld [vmem:[#allocation2 + $0x68] sm:$0xff]  ;;  %v1437_v41 = vld [vmem:[#allocation2 + $0xb0] sm:$0xff] }
 0x112   :  { %v694_v25 = vmul.f32 0.5, %v693_v50  ;;  %v615_v35 = vsub.f32 1.5, %v614_v53  ;;  %v2363_v31 = vadd.f32 1e-05, %v487_v4  ;;  %v509_v2 = vsub.f32 %v1433_v40, %v2213_v54  ;;  %v2443_v23 = vld [vmem:[#allocation2 + $0xf0] sm:$0xff] }
 0x113   :  { %v368_v13 = vpop.xlane.xlu1 %367  ;;  %v686_v3 = vmul.f32 %v2314_v24, %v685_v29  ;;  %v488_v57 = vmax.f32 %v456_v0, 0.0  ;;  %v510_v51 = vsub.f32 %v1434_v26, %v2210_v34  ;;  %v920_v36 = vmul.f32 %v2428_v27, %v885_v8 }
 0x114   :  { %v365_v5 = vpop.xlane.xlu0 %364  ;;  %v695_v33 = vsub.f32 1.5, %v694_v25  ;;  %v400_v21 = vmul.f32 %v368_v13, %v1683_v44  ;;  %v616_v38 = vmul.f32 %v2321_v39, %v615_v35  ;;  %1409 = vrsqrt.f32 %v2363_v31 }
 0x115   :  { %v399_v15 = vmul.f32 %v365_v5, %v1683_v44  ;;  %v2386_v7 = vadd.f32 1e-05, %v488_v57  ;;  %v690_v32 = vsel %vm2393_vm11, %v2314_v24, %v686_v3  ;;  %v519_v50 = vsub.f32 %v1437_v41, %v2296_v11  ;;  %v2460_v11 = vld [vmem:[%s2662_s2] ss:$0 sm:$0xff] }
 0x116   :  { %v126_v63 = vpop.xlane.xlu2 %125  ;;  %v696_v14 = vmul.f32 %v2328_v42, %v695_v33  ;;  %v464_v12 = vsub.f32 %v400_v21, %v432_v19  ;;  %v620_v6 = vsel %vm2380_vm9, %v2321_v39, %v616_v38  ;;  %v893_v46 = vmul.f32 %v690_v32, %v509_v2 }
 0x117   :  { %v463_v28 = vsub.f32 %v399_v15, %v431_v61  ;;  %1411 = vrsqrt.f32 %v2386_v7  ;;  %v886_v52 = vmul.f32 %v620_v6, %v502_v37  ;;  %v2440_v60 = vmul.f32 %v1683_v44, %v126_v63 }
 0x118   :  { %v496_v56 = vmax.f32 %v464_v12, 0.0  ;;  %v700_v24 = vsel %vm2411_vm13, %v2328_v42, %v696_v14  ;;  %v520_v42 = vsub.f32 %v2432_v20, %v2293_v59  ;;  %v527_v53 = vsub.f32 %v2443_v23, %v2334_v30 }
 0x119   :  { %v495_v48 = vmax.f32 %v463_v28, 0.0  ;;  %v921_v34 = vmul.f32 %v2428_v27, %v886_v52  ;;  %v894_v1 = vmul.f32 %v700_v24, %v510_v51  ;;  %vm787_vm14 = vweird.f32 %v2363_v31 }
 0x11a   :  { %v2416_v43 = vadd.f32 1e-05, %v496_v56  ;;  %v2421_v10 = vpop.eup %1409  ;;  %v955_v35 = vadd.f32 %v2460_v11, %v920_v36  ;;  %v928_v62 = vmul.f32 %v2428_v27, %v893_v46  ;;  %vm797_vm1 = vweird.f32 %v2386_v7 }
 0x11b   :  { %v2423_v54 = vadd.f32 1e-05, %v495_v48  ;;  %v150_v49 = vpop.xlane.xlu1 %149  ;;  %v782_v16 = vmul.f32 %v2421_v10, %v2363_v31  ;;  %v956_v19 = vadd.f32 %v2460_v11, %v921_v34  ;;  %vm788_vm15 = vweird.f32 %v2421_v10 }
 0x11c   :  { %v129_v58 = vpop.xlane.xlu0 %128  ;;  %1413 = vrsqrt.f32 %v2416_v43  ;;  %v2452_v29 = vmul.f32 %v1683_v44, %v150_v49  ;;  %v407_v5 = vmul.f32 %v2440_v60, %v2440_v60  ;;  %v929_v57 = vmul.f32 %v2428_v27, %v894_v1  ;;  %vm789_vm4 = vmor %vm787_vm14, %vm788_vm15 }
 0x11d   :  { %1415 = vrsqrt.f32 %v2423_v54  ;;  %v2448_v55 = vpop.eup %1411  ;;  %v783_v45 = vmul.f32 %v2421_v10, %v782_v16  ;;  %v2455_v25 = vmul.f32 %v1683_v44, %v129_v58  ;;  %v985_v33 = vpack.c.bf16 %v956_v19, %v955_v35  ;;  %v1440_v19 = vld [vmem:[#allocation2 + $0xf8] sm:$0xff] }
 0x11e   :  { %v153_v4 = vpop.xlane.xlu2 %152  ;;  %v792_v0 = vmul.f32 %v2448_v55, %v2386_v7  ;;  %vm798_vm2 = vweird.f32 %v2448_v55  ;;  %v415_v61 = vmul.f32 %v2452_v29, %v2452_v29  ;;  %v963_v12 = vadd.f32 %v2460_v11, %v928_v62 }
 0x11f   :  { %v784_v13 = vmul.f32 0.5, %v783_v45  ;;  %v2474_v3 = vmul.f32 %v1683_v44, %v153_v4  ;;  %v408_v15 = vmul.f32 %v2455_v25, %v2455_v25  ;;  %1231 = vmatmul.msk.bf16.gmra.mxu0 %vm105_vm0, %v985_v33  ;;  %v964_v22 = vadd.f32 %v2460_v11, %v929_v57  ;;  %vm799_vm5 = vmor %vm797_vm1, %vm798_vm2 }
 0x120   :  { %v793_v18 = vmul.f32 %v2448_v55, %v792_v0  ;;  %v528_v0 = vsub.f32 %v1440_v19, %v2343_v17  ;;  %vm877_vm7 = vweird.f32 %v2416_v43  ;;  %vm867_vm9 = vweird.f32 %v2423_v54 }
 0x121   :  { %v785_v38 = vsub.f32 1.5, %v784_v13  ;;  %v989_v40 = vpack.c.bf16 %v964_v22, %v963_v12  ;;  %v416_v17 = vmul.f32 %v2474_v3, %v2474_v3 }
 0x122   :  { %v2477_v21 = vpop.eup %1413  ;;  %v794_v9 = vmul.f32 0.5, %v793_v18 }
 0x123   :  { %v2484_v63 = vpop.eup %1415  ;;  %v872_v14 = vmul.f32 %v2477_v21, %v2416_v43  ;;  %v296_v37 = vpop.xlane.xlu1 %295  ;;  %v786_v28 = vmul.f32 %v2421_v10, %v785_v38  ;;  %vm878_vm3 = vweird.f32 %v2477_v21  ;;  %1235 = vmatmul.msk.bf16.gmra.mxu1 %vm105_vm0, %v989_v40 }
 0x124   :  { %v293_v47 = vpop.xlane.xlu0 %292  ;;  %v862_v6 = vmul.f32 %v2484_v63, %v2423_v54  ;;  %v376_v8 = vmul.f32 %v296_v37, %v1683_v44  ;;  %v795_v56 = vsub.f32 1.5, %v794_v9  ;;  %vm868_vm6 = vweird.f32 %v2484_v63  ;;  %vm2524_vm8 = vmor %vm877_vm7, %vm878_vm3 }
 0x125   :  { %v873_v32 = vmul.f32 %v2477_v21, %v872_v14  ;;  %v375_v2 = vmul.f32 %v293_v47, %v1683_v44  ;;  %v790_v51 = vsel %vm789_vm4, %v2421_v10, %v786_v28  ;;  %vm869_vm10 = vmor %vm867_vm9, %vm868_vm6 }
 0x126   :  { %v317_v39 = vpop.xlane.xlu2 %316  ;;  %v863_v48 = vmul.f32 %v2484_v63, %v862_v6  ;;  %v440_v52 = vsub.f32 %v376_v8, %v408_v15  ;;  %v796_v24 = vmul.f32 %v2448_v55, %v795_v56  ;;  %v903_v58 = vmul.f32 %v790_v51, %v519_v50 }
 0x127   :  { %v383_v26 = vmul.f32 %v317_v39, %v1683_v44  ;;  %v874_v49 = vmul.f32 0.5, %v873_v32  ;;  %v439_v31 = vsub.f32 %v375_v2, %v407_v5 }
 0x128   :  { %v864_v36 = vmul.f32 0.5, %v863_v48  ;;  %v472_v34 = vmax.f32 %v440_v52, 0.0  ;;  %v800_v10 = vsel %vm799_vm5, %v2448_v55, %v796_v24  ;;  %v938_v4 = vmul.f32 %v2428_v27, %v903_v58  ;;  %v2560_v52 = vld [vmem:[#allocation6] ss:$0 sm:$0xff] }
 0x129   :  { %v447_v46 = vsub.f32 %v383_v26, %v415_v61  ;;  %v875_v16 = vsub.f32 1.5, %v874_v49  ;;  %v471_v41 = vmax.f32 %v439_v31, 0.0  ;;  %v904_v7 = vmul.f32 %v800_v10, %v520_v42  ;;  %v1441_v26 = vld [vmem:[#allocation2 + $0x30] sm:$0xff]  ;;  %v1442_v31 = vld [vmem:[#allocation2 + $0x38] sm:$0xff] }
 0x12a   :  { %v865_v1 = vsub.f32 1.5, %v864_v36  ;;  %v2514_v45 = vadd.f32 1e-05, %v472_v34  ;;  %v973_v42 = vadd.f32 %v2460_v11, %v938_v4  ;;  %v503_v51 = vsub.f32 %v1441_v26, %v2440_v60 }
 0x12b   :  { %v479_v50 = vmax.f32 %v447_v46, 0.0  ;;  %v876_v35 = vmul.f32 %v2477_v21, %v875_v16  ;;  %v535_v62 = vadd.f32 1e-05, %v471_v41  ;;  %v939_v20 = vmul.f32 %v2428_v27, %v904_v7 }
 0x12c   :  { %v320_v13 = vpop.xlane.xlu0 %319  ;;  %v866_v5 = vmul.f32 %v2484_v63, %v865_v1  ;;  %1417 = vrsqrt.f32 %v2514_v45  ;;  %v504_v58 = vsub.f32 %v1442_v31, %v2455_v25  ;;  %vm637_vm13 = vweird.f32 %v2514_v45 }
 0x12d   :  { %v2531_v59 = vadd.f32 1e-05, %v479_v50  ;;  %1419 = vrsqrt.f32 %v535_v62  ;;  %v384_v43 = vmul.f32 %v320_v13, %v1683_v44  ;;  %v880_v18 = vsel %vm2524_vm8, %v2477_v21, %v876_v35  ;;  %v1443_v13 = vld [vmem:[#allocation2 + $0x70] sm:$0xff] }
 0x12e   :  { %v870_v54 = vsel %vm869_vm10, %v2484_v63, %v866_v5  ;;  %v974_v57 = vadd.f32 %v2460_v11, %v939_v20  ;;  %v912_v44 = vmul.f32 %v880_v18, %v528_v0  ;;  %vm627_vm15 = vweird.f32 %v535_v62  ;;  %v1444_v18 = vld [vmem:[#allocation2 + $0x78] sm:$0xff] }
 0x12f   :  { %1421 = vrsqrt.f32 %v2531_v59  ;;  %v448_v33 = vsub.f32 %v384_v43, %v416_v17  ;;  %v911_v38 = vmul.f32 %v870_v54, %v527_v53  ;;  %vm707_vm3 = vweird.f32 %v2531_v59 }
 0x130   :  { %v994_v15 = vpack.c.bf16 %v974_v57, %v973_v42  ;;  %v947_v14 = vmul.f32 %v2428_v27, %v912_v44  ;;  %v511_v55 = vsub.f32 %v1443_v13, %v2452_v29  ;;  %v512_v29 = vsub.f32 %v1444_v18, %v2474_v3 }
 0x131   :  { %v480_v61 = vmax.f32 %v448_v33, 0.0  ;;  %v946_v9 = vmul.f32 %v2428_v27, %v911_v38 }
 0x132   :  { %v1418_v12 = vpop.eup %1417  ;;  %1240 = vmatmul.msk.bf16.gmra.mxu2 %vm105_vm0, %v994_v15  ;;  %v982_v23 = vadd.f32 %v2460_v11, %v947_v14 }
 0x133   :  { %v1420_v63 = vpop.eup %1419  ;;  %v632_v22 = vmul.f32 %v1418_v12, %v2514_v45  ;;  %v2552_v37 = vadd.f32 1e-05, %v480_v61  ;;  %v981_v21 = vadd.f32 %v2460_v11, %v946_v9  ;;  %vm638_vm11 = vweird.f32 %v1418_v12 }
 0x134   :  { %v622_v30 = vmul.f32 %v1420_v63, %v535_v62  ;;  %v1111_v6 = vpop.f32.mrf.mxu2  ;;  %vm628_vm12 = vweird.f32 %v1420_v63  ;;  %vm639_vm14 = vmor %vm637_vm13, %vm638_vm11 }
 0x135   :  { %v1422_v47 = vpop.eup %1421  ;;  %v633_v53 = vmul.f32 %v1418_v12, %v632_v22  ;;  %1423 = vrsqrt.f32 %v2552_v37  ;;  %v998_v56 = vpack.c.bf16 %v982_v23, %v981_v21  ;;  %vm629_vm2 = vmor %vm627_vm15, %vm628_vm12  ;;  %v1112_v60 = vadd.f32 %v2560_v52, %v1111_v6 }
 0x136   :  { %v702_v28 = vmul.f32 %v1422_v47, %v2531_v59  ;;  %v623_v8 = vmul.f32 %v1420_v63, %v622_v30  ;;  %vm708_vm1 = vweird.f32 %v1422_v47  ;;  %vm717_vm6 = vweird.f32 %v2552_v37 }
 0x137   :  { %v634_v32 = vmul.f32 0.5, %v633_v53  ;;  %1244 = vmatmul.msk.bf16.gmra.mxu3 %vm105_vm0, %v998_v56  ;;  %vm709_vm4 = vmor %vm707_vm3, %vm708_vm1 }
 0x138   :  { %v703_v40 = vmul.f32 %v1422_v47, %v702_v28  ;;  %v624_v2 = vmul.f32 0.5, %v623_v8 }
 0x139   :  { %v635_v39 = vsub.f32 1.5, %v634_v32 }
 0x13a   :  { %v704_v48 = vmul.f32 0.5, %v703_v40  ;;  %v625_v24 = vsub.f32 1.5, %v624_v2 }
 0x13b   :  { %v1424_v49 = vpop.eup %1423  ;;  %v636_v36 = vmul.f32 %v1418_v12, %v635_v39  ;;  %v1131_v17 = vpop.f32.mrf.mxu3 }
 0x13c   :  { %v705_v34 = vsub.f32 1.5, %v704_v48  ;;  %v626_v46 = vmul.f32 %v1420_v63, %v625_v24  ;;  %v712_v16 = vmul.f32 %v1424_v49, %v2552_v37  ;;  %v1113_v10 = vpop.f32.mrf.mxu2  ;;  %vm718_vm5 = vweird.f32 %v1424_v49 }
 0x13d   :  { %v640_v4 = vsel %vm639_vm14, %v1418_v12, %v636_v36  ;;  %v1114_v25 = vadd.f32 %v2560_v52, %v1113_v10  ;;  %vm719_vm7 = vmor %vm717_vm6, %vm718_vm5  ;;  %v1132_v14 = vadd.f32 %v2560_v52, %v1131_v17 }
 0x13e   :  { %v706_v41 = vmul.f32 %v1422_v47, %v705_v34  ;;  %v713_v1 = vmul.f32 %v1424_v49, %v712_v16  ;;  %v630_v50 = vsel %vm629_vm2, %v1420_v63, %v626_v46  ;;  %v888_v45 = vmul.f32 %v640_v4, %v504_v58 }
 0x13f   :  { %v887_v7 = vmul.f32 %v630_v50, %v503_v51  ;;  %v1290_v0 = vpack.c.bf16 %v1114_v25, %v1112_v60 }
 0x140   :  { %v714_v19 = vmul.f32 0.5, %v713_v1  ;;  %v923_v35 = vmul.f32 %v2428_v27, %v888_v45  ;;  %v710_v62 = vsel %vm709_vm4, %v1422_v47, %v706_v41 }
 0x141   :  { %v922_v5 = vmul.f32 %v2428_v27, %v887_v7  ;;  %1334 = vst [vmem:[%s2665_s5 + $0x40] sm:$0xff] %v1290_v0   ;;  %v895_v42 = vmul.f32 %v710_v62, %v511_v55 }
 0x142   :  { %v715_v59 = vsub.f32 1.5, %v714_v19  ;;  %v958_v43 = vadd.f32 %v2460_v11, %v923_v35 }
 0x143   :  { %v957_v20 = vadd.f32 %v2460_v11, %v922_v5  ;;  %v930_v61 = vmul.f32 %v2428_v27, %v895_v42  ;;  %v1133_v9 = vpop.f32.mrf.mxu3 }
 0x144   :  { %v716_v54 = vmul.f32 %v1424_v49, %v715_v59  ;;  %v1071_v38 = vpop.f32.mrf.mxu0  ;;  %v1134_v12 = vadd.f32 %v2560_v52, %v1133_v9 }
 0x145   :  { %v986_v33 = vpack.c.bf16 %v958_v43, %v957_v20  ;;  %v965_v63 = vadd.f32 %v2460_v11, %v930_v61 }
 0x146   :  { %v720_v57 = vsel %vm719_vm7, %v1424_v49, %v716_v54  ;;  %v1310_v22 = vpack.c.bf16 %v1134_v12, %v1132_v14 }
 0x147   :  { %1232 = vmatmul.msk.bf16.gmra.mxu0 %vm105_vm0, %v986_v33  ;;  %v896_v44 = vmul.f32 %v720_v57, %v512_v29 }
 0x148   :  { %1338 = vst [vmem:[%s2665_s5 + $0x60] sm:$0xff] %v1310_v22  }
 0x149   :  { %v931_v15 = vmul.f32 %v2428_v27, %v896_v44  ;;  %v1072_v27 = vadd.f32 %v2560_v52, %v1071_v38 }
 0x14b   :  { %v966_v3 = vadd.f32 %v2460_v11, %v931_v15 }
 0x14c   :  { %v1073_v21 = vpop.f32.mrf.mxu0  ;;  %v1091_v23 = vpop.f32.mrf.mxu1 }
 0x14d   :  { %v990_v37 = vpack.c.bf16 %v966_v3, %v965_v63  ;;  %v1074_v47 = vadd.f32 %v2560_v52, %v1073_v21  ;;  %v1092_v53 = vadd.f32 %v2560_v52, %v1091_v23 }
 0x14f   :  { %1236 = vmatmul.msk.bf16.gmra.mxu1 %vm105_vm0, %v990_v37  ;;  %v1250_v30 = vpack.c.bf16 %v1074_v47, %v1072_v27 }
 0x151   :  { %1251 = vst [vmem:[%s2665_s5] sm:$0xff] %v1250_v30  }
 0x154   :  { %v1093_v11 = vpop.f32.mrf.mxu1 }
 0x155   :  { %v1094_v28 = vadd.f32 %v2560_v52, %v1093_v11 }
 0x157   :  { %v1270_v6 = vpack.c.bf16 %v1094_v28, %v1092_v53 }
 0x159   :  { %1330 = vst [vmem:[%s2665_s5 + $0x20] sm:$0xff] %v1270_v6  }
 0x162   :  { %v1116_v8 = vpop.f32.mrf.mxu2 }
 0x163   :  { %v1117_v40 = vadd.f32 %v2560_v52, %v1116_v8 }
 0x165   :  { %v1136_v56 = vpop.f32.mrf.mxu3 }
 0x166   :  { %v1137_v26 = vadd.f32 %v2560_v52, %v1136_v56 }
 0x16a   :  { %v1118_v32 = vpop.f32.mrf.mxu2 }
 0x16b   :  { %v1119_v2 = vadd.f32 %v2560_v52, %v1118_v32 }
 0x16d   :  { %v1295_v39 = vpack.c.bf16 %v1119_v2, %v1117_v40  ;;  %v1138_v48 = vpop.f32.mrf.mxu3 }
 0x16e   :  { %v1139_v51 = vadd.f32 %v2560_v52, %v1138_v48  ;;  %v1076_v24 = vpop.f32.mrf.mxu0 }
 0x16f   :  { %1335 = vst [vmem:[%s2665_s5 + $0x48] sm:$0xff] %v1295_v39   ;;  %v1077_v58 = vadd.f32 %v2560_v52, %v1076_v24 }
 0x170   :  { %v1315_v49 = vpack.c.bf16 %v1139_v51, %v1137_v26 }
 0x172   :  { %1339 = vst [vmem:[%s2665_s5 + $0x68] sm:$0xff] %v1315_v49  }
 0x175   :  { %v1096_v34 = vpop.f32.mrf.mxu1 }
 0x176   :  { %v1078_v31 = vpop.f32.mrf.mxu0  ;;  %v1097_v41 = vadd.f32 %v2560_v52, %v1096_v34 }
 0x177   :  { %v1079_v36 = vadd.f32 %v2560_v52, %v1078_v31 }
 0x179   :  { %v1255_v46 = vpack.c.bf16 %v1079_v36, %v1077_v58 }
 0x17b   :  { %1327 = vst [vmem:[%s2665_s5 + $0x8] sm:$0xff] %v1255_v46  }
 0x17d   :  { %v1098_v16 = vpop.f32.mrf.mxu1 }
 0x17e   :  { %v1099_v60 = vadd.f32 %v2560_v52, %v1098_v16 }
 0x180   :  { %v1275_v10 = vpack.c.bf16 %v1099_v60, %v1097_v41 }
 0x182   :  { %1331 = vst [vmem:[%s2665_s5 + $0x28] sm:$0xff] %v1275_v10  }
 0x18b   :  { %v1121_v4 = vpop.f32.mrf.mxu2 }
 0x18c   :  { %v1122_v25 = vadd.f32 %v2560_v52, %v1121_v4 }
 0x192   :  { %v1141_v45 = vpop.f32.mrf.mxu3 }
 0x193   :  { %v1123_v1 = vpop.f32.mrf.mxu2  ;;  %v1142_v35 = vadd.f32 %v2560_v52, %v1141_v45 }
 0x194   :  { %v1124_v50 = vadd.f32 %v2560_v52, %v1123_v1 }
 0x196   :  { %v1300_v7 = vpack.c.bf16 %v1124_v50, %v1122_v25 }
 0x198   :  { %1336 = vst [vmem:[%s2665_s5 + $0x50] sm:$0xff] %v1300_v7  }
 0x19a   :  { %v1143_v19 = vpop.f32.mrf.mxu3 }
 0x19b   :  { %v1144_v62 = vadd.f32 %v2560_v52, %v1143_v19 }
 0x19c   :  { %v1081_v0 = vpop.f32.mrf.mxu0 }
 0x19d   :  { %v1320_v13 = vpack.c.bf16 %v1144_v62, %v1142_v35  ;;  %v1082_v59 = vadd.f32 %v2560_v52, %v1081_v0 }
 0x19f   :  { %1340 = vst [vmem:[%s2665_s5 + $0x70] sm:$0xff] %v1320_v13  }
 0x1a0   :  { %v1101_v55 = vpop.f32.mrf.mxu1 }
 0x1a1   :  { %v1102_v42 = vadd.f32 %v2560_v52, %v1101_v55 }
 0x1a4   :  { %v1083_v5 = vpop.f32.mrf.mxu0 }
 0x1a5   :  { %v1084_v17 = vadd.f32 %v2560_v52, %v1083_v5 }
 0x1a7   :  { %v1260_v43 = vpack.c.bf16 %v1084_v17, %v1082_v59 }
 0x1a8   :  { %v1103_v20 = vpop.f32.mrf.mxu1 }
 0x1a9   :  { %1328 = vst [vmem:[%s2665_s5 + $0x10] sm:$0xff] %v1260_v43   ;;  %v1104_v54 = vadd.f32 %v2560_v52, %v1103_v20 }
 0x1ab   :  { %v1280_v18 = vpack.c.bf16 %v1104_v54, %v1102_v42 }
 0x1ad   :  { %1332 = vst [vmem:[%s2665_s5 + $0x30] sm:$0xff] %v1280_v18  }
 0x1b5   :  { %v1126_v29 = vpop.f32.mrf.mxu2 }
 0x1b6   :  { %v1127_v38 = vadd.f32 %v2560_v52, %v1126_v29 }
 0x1ba   :  { %v1146_v33 = vpop.f32.mrf.mxu3 }
 0x1bb   :  { %v1147_v9 = vadd.f32 %v2560_v52, %v1146_v33 }
 0x1bd   :  { %v1128_v57 = vpop.f32.mrf.mxu2 }
 0x1be   :  { %v1129_v44 = vadd.f32 %v2560_v52, %v1128_v57 }
 0x1c0   :  { %v1305_v61 = vpack.c.bf16 %v1129_v44, %v1127_v38 }
 0x1c2   :  { %1337 = vst [vmem:[%s2665_s5 + $0x58] sm:$0xff] %v1305_v61   ;;  %v1148_v15 = vpop.f32.mrf.mxu3 }
 0x1c3   :  { %v1149_v14 = vadd.f32 %v2560_v52, %v1148_v15 }
 0x1c4   :  { %v1086_v12 = vpop.f32.mrf.mxu0 }
 0x1c5   :  { %v1325_v63 = vpack.c.bf16 %v1149_v14, %v1147_v9  ;;  %v1087_v37 = vadd.f32 %v2560_v52, %v1086_v12 }
 0x1c7   :  { %1341 = vst [vmem:[%s2665_s5 + $0x78] sm:$0xff] %v1325_v63  }
 0x1cc   :  { %v1088_v3 = vpop.f32.mrf.mxu0  ;;  %v1106_v22 = vpop.f32.mrf.mxu1 }
 0x1cd   :  { %v1089_v21 = vadd.f32 %v2560_v52, %v1088_v3  ;;  %v1107_v30 = vadd.f32 %v2560_v52, %v1106_v22 }
 0x1cf   :  { %v1265_v27 = vpack.c.bf16 %v1089_v21, %v1087_v37 }
 0x1d1   :  { %1329 = vst [vmem:[%s2665_s5 + $0x18] sm:$0xff] %v1265_v27  }
 0x1d4   :  { %v1108_v47 = vpop.f32.mrf.mxu1 }
 0x1d5   :  { %v1109_v23 = vadd.f32 %v2560_v52, %v1108_v47 }
 0x1d7   :  { %v1285_v11 = vpack.c.bf16 %v1109_v23, %v1107_v30 }
 0x1d9   :  { %1333 = vst [vmem:[%s2665_s5 + $0x38] sm:$0xff] %v1285_v11  }
 0x1da   :  { %1219 = vsyncpa [#allocation3], 1 }
 0x1db   :  { %1220 = vsyncpa [#allocation5], 1 }

// kernel: cross_attention_forward.6
= control target key start
LH: loop header
LB: loop body
LE: loop exit
PB: predicated region body
PF: predicated region fallthrough
CT: control target
= control target key end

     0   :  { %s1655_s12 = smov 0   ;;  %s1657_s13 = smov 0   ;;  %s2294_s0 = inlined_call_operand.vmem [shape: bf16[2,2,64,128], index: 0, kind: input, shape index: {}]   ;;  %s2295_s1 = inlined_call_operand.vmem [shape: bf16[2,2,16,128], index: 1, kind: input, shape index: {}]   ;;  %s2296_s2 = inlined_call_operand.vmem [shape: bf16[2,2,16,128], index: 2, kind: input, shape index: {}]   ;;  %s2297_s3 = inlined_call_operand.vmem [shape: bf16[2,64,128], index: 3, kind: output, shape index: {}]  }
   0x1   :  { %s1659_s14 = smov 0  }
   0x2 LB: > { %s25_s15 = sadd.s32 1, %s1628_s13  ;;  %p1350_p0 = scmp.ge.s32.totalorder %s1632_s14, 1  ;;  %s1632_s14 = sphi %s1659_s14, %s13_s14   ;;  %s1628_s13 = sphi %s1657_s13, %s2303_s13   ;;  %s1624_s12 = sphi %s1655_s12, %s2302_s12  }
   0x3   : > { %p27_p1 = scmp.ge.s32.totalorder %s25_s15, 2  ;;  %p178_p2 = scmp.lt.s32.totalorder %s1632_s14, 3 }
   0x5   : > { %s2305_s15 = smov (%p27_p1, %s25_s15), 0  ;;  %p179_p3 = pnand %p1350_p0, %p178_p2 }
   0x6   : > { %p221_p4 = scmp.lt.s32.totalorder (!%p179_p3), %s1624_s12, 1  ;;  %s1634_s24 = smov (!%p179_p3), 64  }
   0x7   : > { %182 = sbr.rel (%p179_p3) target bundleno = 966 (0x3c6), region = 32 }
   0xc   : > { %s2307_s12 = smov (!%p221_p4, %s1624_s12), 1  ;;  %vm300_vm0 = vcmask 523264   ;;  %vm345_vm1 = vcmask 130048   ;;  %vm749_vm2 = vcmask 519168   ;;  %vm1226_vm3 = vcmask 1043968  }
   0xd   : > { %s1442_s16 = sshll.u32 %s2307_s12, 4  ;;  %s1441_s20 = sshll.u32 %s2307_s12, 6 }
   0xe   : > { %s234_s19 = scalar_lea.vmem %s2295_s1, %s1442_s16  ;;  %s228_s23 = scalar_lea.vmem %s2294_s0, %s1441_s20 }
   0xf   : > { %v1453_v0 = vld [vmem:[%s234_s19] sm:$0xff]  ;;  %v1446_v3 = vld [vmem:[%s228_s23 + $0x8] sm:$0xff]  ;;  %v1447_v7 = vld [vmem:[%s228_s23 + $0x10] sm:$0xff]  ;;  %s1739_s27 = scalar_lea.vmem %s2296_s2, %s1442_s16  ;;  %s1444_s28 = sshll.u32 %s2307_s12, 5 }
  0x10   : > { %v314_v1 = vsel %vm300_vm0, %v1453_v0, 0  ;;  %v1445_v2 = vld [vmem:[%s228_s23] sm:$0xff]  ;;  %v1454_v4 = vld [vmem:[%s234_s19 + $0x8] sm:$0xff]  ;;  %v1448_v9 = vld [vmem:[%s228_s23 + $0x18] sm:$0xff]  ;;  %s2182_s4 = scalar_lea.vmem %s2297_s3, %s1444_s28 }
  0x11   : > { %323 = vmatpush.bf16.xpose.msra.mxu0 %v314_v1  ;;  %v507_v5 = vsel %vm300_vm0, %v1454_v4, 0  ;;  %v1449_v6 = vld [vmem:[%s228_s23 + $0x20] sm:$0xff]  ;;  %v1450_v8 = vld [vmem:[%s228_s23 + $0x28] sm:$0xff]  ;;  %v1451_v10 = vld [vmem:[%s228_s23 + $0x30] sm:$0xff] }
  0x12   : > { %516 = vmatpush.bf16.xpose.msra.mxu2 %v507_v5  ;;  %v1452_v11 = vld [vmem:[%s228_s23 + $0x38] sm:$0xff]  ;;  %v1744_v32 = vld [vmem:[%s1739_s27] sm:$0xff] }
  0x13   : > { %447 = vmatpush.bf16.msra.mxu1 %v1744_v32 }
  0x18   : > { %1379 = vmatmul.msk.bf16.vlgmr.msra.gmra.mxu0 %vm300_vm0, %v1445_v2 }
  0x19   : > { %1411 = vmatmul.msk.bf16.vlgmr.msra.gmra.mxu2 %vm300_vm0, %v1449_v6 }
  0x28   : > { %1380 = vmatmul.msk.bf16.gmra.mxu0 %vm300_vm0, %v1446_v3 }
  0x29   : > { %1412 = vmatmul.msk.bf16.gmra.mxu2 %vm300_vm0, %v1450_v8 }
  0x38   : > { %1381 = vmatmul.msk.bf16.gmra.mxu0 %vm300_vm0, %v1447_v7 }
  0x39   : > { %1413 = vmatmul.msk.bf16.gmra.mxu2 %vm300_vm0, %v1451_v10 }
  0x48   : > { %1382 = vmatmul.msk.bf16.gmra.mxu0 %vm300_vm0, %v1448_v9 }
  0x49   : > { %1414 = vmatmul.msk.bf16.gmra.mxu2 %vm300_vm0, %v1452_v11 }
  0x95   : > { %v325_v12 = vpop.f32.mrf.mxu0 }
  0x96   : > { %v346_v13 = vsel %vm345_vm1, %v325_v12, -inf }
  0x97   : > { %347 = vmax.xlane.f32.xlu0 %v346_v13 }
  0x9c   : > { %v1720_v28 = vpop.f32.mrf.mxu2 }
  0x9d   : > { %v327_v14 = vpop.f32.mrf.mxu0  ;;  %v538_v39 = vsel %vm345_vm1, %v1720_v28, -inf }
  0x9e   : > { %v349_v15 = vsel %vm345_vm1, %v327_v14, -inf }
  0x9f   : > { %350 = vmax.xlane.f32.xlu0 %v349_v15 }
  0xa4   : > { %v1724_v29 = vpop.f32.mrf.mxu2 }
  0xa5   : > { %v330_v16 = vpop.f32.mrf.mxu0  ;;  %v541_v42 = vsel %vm345_vm1, %v1724_v29, -inf }
  0xa6   : > { %v352_v17 = vsel %vm345_vm1, %v330_v16, -inf }
  0xa7   : > { %353 = vmax.xlane.f32.xlu1 %v352_v17 }
  0xac   : > { %v1731_v30 = vpop.f32.mrf.mxu2 }
  0xad   : > { %v1698_v18 = vpop.f32.mrf.mxu0  ;;  %v544_v51 = vsel %vm345_vm1, %v1731_v30, -inf }
  0xae   : > { %v355_v19 = vsel %vm345_vm1, %v1698_v18, -inf }
  0xaf   : > { %356 = vmax.xlane.f32.xlu1 %v355_v19 }
  0xb4   : > { %v1741_v31 = vpop.f32.mrf.mxu2 }
  0xb5   : > { %v1702_v20 = vpop.f32.mrf.mxu0  ;;  %v547_v45 = vsel %vm345_vm1, %v1741_v31, -inf }
  0xb6   : > { %v358_v21 = vsel %vm345_vm1, %v1702_v20, -inf }
  0xb7   : > { %359 = vmax.xlane.f32.xlu2 %v358_v21 }
  0xbc   : > { %v1747_v33 = vpop.f32.mrf.mxu2 }
  0xbd   : > { %v1706_v22 = vpop.f32.mrf.mxu0  ;;  %v550_v48 = vsel %vm345_vm1, %v1747_v33, -inf }
  0xbe   : > { %v361_v23 = vsel %vm345_vm1, %v1706_v22, -inf }
  0xbf   : > { %362 = vmax.xlane.f32.xlu2 %v361_v23 }
  0xc4   : > { %v1752_v36 = vpop.f32.mrf.mxu2 }
  0xc5   : > { %v1710_v24 = vpop.f32.mrf.mxu0  ;;  %v553_v59 = vsel %vm345_vm1, %v1752_v36, -inf }
  0xc6   : > { %v364_v25 = vsel %vm345_vm1, %v1710_v24, -inf }
  0xc7   : > { %365 = vmax.xlane.f32.xlu0 %v364_v25 }
  0xcc   : > { %v1761_v43 = vpop.f32.mrf.mxu2 }
  0xcd   : > { %v1714_v26 = vpop.f32.mrf.mxu0  ;;  %v556_v54 = vsel %vm345_vm1, %v1761_v43, -inf }
  0xce   : > { %v367_v27 = vsel %vm345_vm1, %v1714_v26, -inf }
  0xcf   : > { %368 = vmax.xlane.f32.xlu1 %v367_v27 }
  0xd4   : > { %v1783_v55 = vpop.f32.mrf.mxu2 }
  0xd5   : > { %v559_v58 = vsel %vm345_vm1, %v1783_v55, -inf }
  0xd7   : > { %766 = vrot.lane.b32.xlu2 %v1453_v0, %s1634_s24 }
  0xdb   : > { %940 = vrot.lane.b32.xlu0 %v1454_v4, %s1634_s24 }
  0xdf   : > { %932 = vrot.lane.b32.xlu2 %v1449_v6, %s1634_s24 }
  0xe3   : > { %760 = vrot.lane.b32.xlu0 %v1446_v3, %s1634_s24 }
  0xe7   : > { %934 = vrot.lane.b32.xlu2 %v1450_v8, %s1634_s24 }
  0xe8   : > { %758 = vrot.lane.b32.xlu1 %v1445_v2, %s1634_s24 }
  0xeb   : > { %936 = vrot.lane.b32.xlu0 %v1451_v10, %s1634_s24 }
  0xef   : > { %764 = vrot.lane.b32.xlu2 %v1448_v9, %s1634_s24 }
  0xf0   : > { %762 = vrot.lane.b32.xlu1 %v1447_v7, %s1634_s24 }
  0xf8   : > { %938 = vrot.lane.b32.xlu1 %v1452_v11, %s1634_s24 }
 0x10a   : > { %v1749_v34 = vpop.xlane.xlu0 %347 }
 0x10b   : > { %v370_v35 = vsub.f32 %v325_v12, %v1749_v34 }
 0x10d   : > { %v378_v37 = vmul.f32 1.442695, %v370_v35 }
 0x10f   : > { %1482 = vpow2.f32 %v378_v37 }
 0x112   : > { %v1754_v38 = vpop.xlane.xlu0 %350 }
 0x113   : > { %v371_v40 = vsub.f32 %v327_v14, %v1754_v38 }
 0x115   : > { %v380_v41 = vmul.f32 1.442695, %v371_v40  ;;  %539 = vmax.xlane.f32.xlu0 %v538_v39  ;;  %v1767_v46 = vpop.eup %1482 }
 0x117   : > { %1484 = vpow2.f32 %v380_v41 }
 0x118   : > { %542 = vmax.xlane.f32.xlu2 %v541_v42 }
 0x11a   : > { %v1763_v44 = vpop.xlane.xlu1 %353 }
 0x11b   : > { %v372_v49 = vsub.f32 %v330_v16, %v1763_v44 }
 0x11d   : > { %v1769_v47 = vpop.eup %1484  ;;  %548 = vmax.xlane.f32.xlu0 %v547_v45  ;;  %v382_v52 = vmul.f32 1.442695, %v372_v49 }
 0x11e   : > { %v418_v50 = vpack.c.bf16 %v1769_v47, %v1767_v46 }
 0x11f   : > { %1486 = vpow2.f32 %v382_v52 }
 0x120   : > { %1387 = vmatmul.msk.bf16.vlgmr.msra.gmra.mxu1 %vm345_vm1, %v418_v50  ;;  %551 = vmax.xlane.f32.xlu2 %v550_v48 }
 0x122   : > { %v1779_v53 = vpop.xlane.xlu1 %356  ;;  %545 = vmax.xlane.f32.xlu1 %v544_v51 }
 0x123   : > { %v373_v56 = vsub.f32 %v1698_v18, %v1779_v53 }
 0x125   : > { %v384_v57 = vmul.f32 1.442695, %v373_v56  ;;  %557 = vmax.xlane.f32.xlu0 %v556_v54  ;;  %v1793_v61 = vpop.eup %1486 }
 0x127   : > { %1488 = vpow2.f32 %v384_v57 }
 0x128   : > { %560 = vmax.xlane.f32.xlu2 %v559_v58 }
 0x12a   : > { %v1791_v60 = vpop.xlane.xlu2 %359  ;;  %554 = vmax.xlane.f32.xlu1 %v553_v59 }
 0x12b   : > { %v374_v63 = vsub.f32 %v1702_v20, %v1791_v60 }
 0x12d   : > { %v1795_v62 = vpop.eup %1488  ;;  %v386_v1 = vmul.f32 1.442695, %v374_v63 }
 0x12e   : > { %v419_v0 = vpack.c.bf16 %v1795_v62, %v1793_v61 }
 0x12f   : > { %1490 = vpow2.f32 %v386_v1 }
 0x130   : > { %1388 = vmatmul.msk.bf16.gmra.mxu1 %vm345_vm1, %v419_v0 }
 0x132   : > { %v1802_v2 = vpop.xlane.xlu2 %362 }
 0x133   : > { %v375_v3 = vsub.f32 %v1706_v22, %v1802_v2 }
 0x135   : > { %v388_v4 = vmul.f32 1.442695, %v375_v3  ;;  %v1809_v8 = vpop.eup %1490 }
 0x137   : > { %1492 = vpow2.f32 %v388_v4 }
 0x13a   : > { %v767_v5 = vpop.permute.xlu2 %766  ;;  %v1806_v6 = vpop.xlane.xlu0 %365 }
 0x13b   : > { %v781_v7 = vsel %vm300_vm0, %v767_v5, 0  ;;  %v376_v10 = vsub.f32 %v1710_v24, %v1806_v6 }
 0x13c   : > { %790 = vmatpush.bf16.xpose.msrb.mxu1 %v781_v7 }
 0x13d   : > { %v1811_v9 = vpop.eup %1492  ;;  %v390_v12 = vmul.f32 1.442695, %v376_v10 }
 0x13e   : > { %v420_v11 = vpack.c.bf16 %v1811_v9, %v1809_v8 }
 0x13f   : > { %1494 = vpow2.f32 %v390_v12 }
 0x140   : > { %1389 = vmatmul.msk.bf16.gmra.mxu1 %vm345_vm1, %v420_v11 }
 0x142   : > { %v1818_v13 = vpop.xlane.xlu1 %368  ;;  %v933_v21 = vpop.permute.xlu2 %932 }
 0x143   : > { %v377_v14 = vsub.f32 %v1714_v26, %v1818_v13  ;;  %v1836_v26 = vld [vmem:[%s1739_s27 + $0x8] sm:$0xff] }
 0x144   : > { %695 = vmatpush.bf16.msra.mxu3 %v1836_v26 }
 0x145   : > { %v392_v15 = vmul.f32 1.442695, %v377_v14  ;;  %v1822_v16 = vpop.eup %1494 }
 0x147   : > { %1496 = vpow2.f32 %v392_v15 }
 0x14a   : > { %v935_v23 = vpop.permute.xlu2 %934 }
 0x14d   : > { %v1824_v17 = vpop.eup %1496  ;;  %v941_v18 = vpop.permute.xlu0 %940 }
 0x14e   : > { %v955_v19 = vsel %vm300_vm0, %v941_v18, 0  ;;  %v421_v20 = vpack.c.bf16 %v1824_v17, %v1822_v16 }
 0x14f   : > { %964 = vmatpush.bf16.xpose.msrb.mxu0 %v955_v19 }
 0x150   : > { %1390 = vmatmul.msk.bf16.gmra.mxu1 %vm345_vm1, %v421_v20 }
 0x152   : > { %v765_v35 = vpop.permute.xlu2 %764 }
 0x155   : > { %v761_v24 = vpop.permute.xlu0 %760 }
 0x156   : > { %1431 = vmatmul.msk.bf16.vlgmr.msrb.gmra.mxu0 %vm300_vm0, %v933_v21 }
 0x15a   : > { %v759_v22 = vpop.permute.xlu1 %758 }
 0x15d   : > { %v937_v25 = vpop.permute.xlu0 %936 }
 0x160   : > { %1423 = vmatmul.msk.bf16.vlgmr.msrb.gmra.mxu1 %vm300_vm0, %v759_v22 }
 0x162   : > { %v763_v27 = vpop.permute.xlu1 %762 }
 0x166   : > { %1432 = vmatmul.msk.bf16.gmra.mxu0 %vm300_vm0, %v935_v23 }
 0x16a   : > { %v939_v37 = vpop.permute.xlu1 %938 }
 0x170   : > { %1424 = vmatmul.msk.bf16.gmra.mxu1 %vm300_vm0, %v761_v24 }
 0x176   : > { %1433 = vmatmul.msk.bf16.gmra.mxu0 %vm300_vm0, %v937_v25 }
 0x180   : > { %1425 = vmatmul.msk.bf16.gmra.mxu1 %vm300_vm0, %v763_v27 }
 0x186   : > { %1434 = vmatmul.msk.bf16.gmra.mxu0 %vm300_vm0, %v939_v37 }
 0x188   : > { %v540_v39 = vpop.xlane.xlu0 %539 }
 0x189   : > { %v562_v40 = vmax.f32 %v1749_v34, %v540_v39 }
 0x18b   : > { %v594_v41 = vsub.f32 %v1720_v28, %v562_v40  ;;  %v543_v42 = vpop.xlane.xlu2 %542  ;;  %v570_v50 = vsub.f32 %v1749_v34, %v562_v40 }
 0x18c   : > { %v563_v45 = vmax.f32 %v1754_v38, %v543_v42 }
 0x18d   : > { %v602_v48 = vmul.f32 1.442695, %v594_v41  ;;  %v578_v52 = vmul.f32 1.442695, %v570_v50 }
 0x18e   : > { %v595_v49 = vsub.f32 %v1724_v29, %v563_v45  ;;  %v571_v28 = vsub.f32 %v1754_v38, %v563_v45 }
 0x18f   : > { %1498 = vpow2.f32 %v602_v48 }
 0x190   : > { %v604_v51 = vmul.f32 1.442695, %v595_v49  ;;  %1426 = vmatmul.msk.bf16.gmra.mxu1 %vm300_vm0, %v765_v35  ;;  %v549_v54 = vpop.xlane.xlu0 %548  ;;  %v580_v0 = vmul.f32 1.442695, %v571_v28 }
 0x191   : > { %v565_v58 = vmax.f32 %v1779_v53, %v549_v54 }
 0x192   : > { %1500 = vpow2.f32 %v604_v51 }
 0x193   : > { %1502 = vpow2.f32 %v578_v52  ;;  %v597_v1 = vsub.f32 %v1741_v31, %v565_v58  ;;  %v552_v12 = vpop.xlane.xlu2 %551  ;;  %v573_v20 = vsub.f32 %v1779_v53, %v565_v58 }
 0x194   : > { %1504 = vpow2.f32 %v580_v0  ;;  %v566_v21 = vmax.f32 %v1791_v60, %v552_v12 }
 0x195   : > { %v546_v56 = vpop.xlane.xlu1 %545  ;;  %v1850_v59 = vpop.eup %1498  ;;  %v608_v7 = vmul.f32 1.442695, %v597_v1  ;;  %v584_v24 = vmul.f32 1.442695, %v573_v20 }
 0x196   : > { %v564_v57 = vmax.f32 %v1763_v44, %v546_v56  ;;  %v598_v25 = vsub.f32 %v1747_v33, %v566_v21  ;;  %v574_v39 = vsub.f32 %v1791_v60, %v566_v21 }
 0x198   : > { %v1852_v29 = vpop.eup %1500  ;;  %v596_v34 = vsub.f32 %v1731_v30, %v564_v57  ;;  %v572_v10 = vsub.f32 %v1763_v44, %v564_v57  ;;  %v610_v40 = vmul.f32 1.442695, %v598_v25  ;;  %v586_v41 = vmul.f32 1.442695, %v574_v39  ;;  %v558_v42 = vpop.xlane.xlu0 %557 }
 0x199   : > { %v666_v63 = vpack.c.bf16 %v1852_v29, %v1850_v59  ;;  %v1859_v3 = vpop.eup %1502  ;;  %v568_v51 = vmax.f32 %v1806_v6, %v558_v42 }
 0x19a   : > { %v606_v4 = vmul.f32 1.442695, %v596_v34  ;;  %v582_v11 = vmul.f32 1.442695, %v572_v10  ;;  %v1865_v14 = vpop.eup %1504 }
 0x19b   : > { %1419 = vmatmul.msk.bf16.vlgmr.msra.gmra.mxu3 %vm345_vm1, %v666_v63  ;;  %v600_v57 = vsub.f32 %v1761_v43, %v568_v51 }
 0x19c   : > { %1506 = vpow2.f32 %v606_v4 }
 0x19d   : > { %v449_v38 = vpop.f32.mrf.mxu1  ;;  %v555_v30 = vpop.xlane.xlu1 %554  ;;  %1508 = vpow2.f32 %v608_v7  ;;  %v614_v1 = vmul.f32 1.442695, %v600_v57 }
 0x19e   : > { %v1862_v5 = vmul.f32 %v1859_v3, %v449_v38  ;;  %v567_v31 = vmax.f32 %v1802_v2, %v555_v30  ;;  %1510 = vpow2.f32 %v582_v11 }
 0x19f   : > { %1512 = vpow2.f32 %v584_v24 }
 0x1a0   : > { %v599_v22 = vsub.f32 %v1752_v36, %v567_v31  ;;  %v561_v36 = vpop.xlane.xlu2 %560  ;;  %v575_v60 = vsub.f32 %v1802_v2, %v567_v31  ;;  %v576_v2 = vsub.f32 %v1806_v6, %v568_v51 }
 0x1a1   : > { %v569_v33 = vmax.f32 %v1818_v13, %v561_v36 }
 0x1a2   : > { %v1871_v19 = vpop.eup %1506  ;;  %v612_v35 = vmul.f32 1.442695, %v599_v22  ;;  %v588_v28 = vmul.f32 1.442695, %v575_v60 }
 0x1a3   : > { %v1875_v44 = vpop.eup %1508  ;;  %v601_v54 = vsub.f32 %v1783_v55, %v569_v33  ;;  %v590_v55 = vmul.f32 1.442695, %v576_v2  ;;  %v577_v10 = vsub.f32 %v1818_v13, %v569_v33 }
 0x1a4   : > { %v667_v23 = vpack.c.bf16 %v1875_v44, %v1871_v19  ;;  %v1882_v27 = vpop.eup %1510  ;;  %1514 = vpow2.f32 %v612_v35 }
 0x1a5   : > { %v451_v15 = vpop.f32.mrf.mxu1  ;;  %1516 = vpow2.f32 %v610_v40  ;;  %v1888_v45 = vpop.eup %1512  ;;  %v616_v34 = vmul.f32 1.442695, %v601_v54  ;;  %v592_v11 = vmul.f32 1.442695, %v577_v10 }
 0x1a6   : > { %v1869_v18 = vmul.f32 %v1865_v14, %v451_v15  ;;  %1518 = vpow2.f32 %v586_v41 }
 0x1a7   : > { %1520 = vpow2.f32 %v588_v28 }
 0x1a8   : > { %1522 = vpow2.f32 %v616_v34 }
 0x1a9   : > { %1524 = vpow2.f32 %v614_v1 }
 0x1aa   : > { %v1894_v50 = vpop.eup %1514  ;;  %1526 = vpow2.f32 %v590_v55 }
 0x1ab   : > { %1420 = vmatmul.msk.bf16.gmra.mxu3 %vm345_vm1, %v667_v23  ;;  %v1898_v52 = vpop.eup %1516  ;;  %1528 = vpow2.f32 %v592_v11 }
 0x1ac   : > { %v668_v56 = vpack.c.bf16 %v1894_v50, %v1898_v52  ;;  %v1905_v58 = vpop.eup %1518 }
 0x1ad   : > { %v454_v37 = vpop.f32.mrf.mxu1  ;;  %v1911_v4 = vpop.eup %1520 }
 0x1ae   : > { %v1885_v53 = vmul.f32 %v1882_v27, %v454_v37  ;;  %v1916_v7 = vpop.eup %1522 }
 0x1af   : > { %v1919_v30 = vpop.eup %1524 }
 0x1b0   : > { %v669_v6 = vpack.c.bf16 %v1916_v7, %v1919_v30  ;;  %v1924_v12 = vpop.eup %1526 }
 0x1b1   : > { %v1933_v21 = vpop.eup %1528 }
 0x1b5   : > { %v456_v48 = vpop.f32.mrf.mxu1 }
 0x1b6   : > { %v1892_v49 = vmul.f32 %v1888_v45, %v456_v48 }
 0x1bb   : > { %1421 = vmatmul.msk.bf16.gmra.mxu3 %vm345_vm1, %v668_v56 }
 0x1bd   : > { %v459_v63 = vpop.f32.mrf.mxu1 }
 0x1be   : > { %v1908_v0 = vmul.f32 %v1905_v58, %v459_v63 }
 0x1c5   : > { %v461_v43 = vpop.f32.mrf.mxu1 }
 0x1c6   : > { %v1914_v38 = vmul.f32 %v1911_v4, %v461_v43 }
 0x1cb   : > { %1422 = vmatmul.msk.bf16.gmra.mxu3 %vm345_vm1, %v669_v6 }
 0x1cd   : > { %v464_v31 = vpop.f32.mrf.mxu1 }
 0x1ce   : > { %v1927_v15 = vmul.f32 %v1924_v12, %v464_v31 }
 0x1d3   : > { %v1929_v20 = vpop.f32.mrf.mxu0 }
 0x1d4   : > { %v986_v13 = vsel %vm345_vm1, %v1929_v20, -inf }
 0x1d5   : > { %987 = vmax.xlane.f32.xlu2 %v986_v13  ;;  %v466_v22 = vpop.f32.mrf.mxu1 }
 0x1d6   : > { %v1936_v23 = vmul.f32 %v1933_v21, %v466_v22  ;;  %v400_v22 = vsel %vm345_vm1, %v1793_v61, 0.0  ;;  %v403_v61 = vsel %vm345_vm1, %v1795_v62, 0.0  ;;  %v632_v62 = vsel %vm345_vm1, %v1871_v19, 0.0 }
 0x1d7   : > { %v635_v19 = vsel %vm345_vm1, %v1875_v44, 0.0 }
 0x1db   : > { %v1938_v24 = vpop.f32.mrf.mxu0 }
 0x1dc   : > { %v989_v25 = vsel %vm345_vm1, %v1938_v24, -inf }
 0x1dd   : > { %990 = vmax.xlane.f32.xlu1 %v989_v25  ;;  %v1942_v35 = vpop.f32.mrf.mxu1 }
 0x1de   : > { %v812_v39 = vsel %vm345_vm1, %v1942_v35, -inf }
 0x1e3   : > { %v1944_v37 = vpop.f32.mrf.mxu0 }
 0x1e4   : > { %v992_v13 = vsel %vm345_vm1, %v1944_v37, -inf }
 0x1e5   : > { %813 = vmax.xlane.f32.xlu1 %v812_v39  ;;  %v1948_v40 = vpop.f32.mrf.mxu1 }
 0x1e6   : > { %v815_v36 = vsel %vm345_vm1, %v1948_v40, -inf }
 0x1e7   : > { %816 = vmax.xlane.f32.xlu0 %v815_v36  ;;  %v394_v36 = vsel %vm345_vm1, %v1767_v46, 0.0 }
 0x1eb   : > { %v1952_v41 = vpop.f32.mrf.mxu0 }
 0x1ec   : > { %v995_v42 = vsel %vm345_vm1, %v1952_v41, -inf }
 0x1ed   : > { %1118 = vrot.lane.b32.xlu2 %v1836_v26, %s1634_s24  ;;  %996 = vmax.xlane.f32.xlu1 %v995_v42  ;;  %v1958_v33 = vpop.f32.mrf.mxu1  ;;  %v409_v42 = vsel %vm345_vm1, %v1811_v9, 0.0  ;;  %v412_v9 = vsel %vm345_vm1, %v1822_v16, 0.0  ;;  %v641_v16 = vsel %vm345_vm1, %v1894_v50, 0.0 }
 0x1ee   : > { %v818_v48 = vsel %vm345_vm1, %v1958_v33, -inf }
 0x1f3   : > { %v1966_v54 = vpop.f32.mrf.mxu0 }
 0x1f4   : > { %v998_v26 = vsel %vm345_vm1, %v1966_v54, -inf }
 0x1f5   : > { %819 = vmax.xlane.f32.xlu1 %v818_v48  ;;  %v1962_v51 = vpop.f32.mrf.mxu1 }
 0x1f6   : > { %v821_v60 = vsel %vm345_vm1, %v1962_v51, -inf }
 0x1fb   : > { %888 = vrot.lane.b32.xlu0 %v1744_v32, %s1634_s24  ;;  %v1974_v57 = vpop.f32.mrf.mxu0 }
 0x1fc   : > { %v1001_v28 = vsel %vm345_vm1, %v1974_v57, -inf }
 0x1fd   : > { %822 = vmax.xlane.f32.xlu1 %v821_v60  ;;  %v1970_v56 = vpop.f32.mrf.mxu1  ;;  %v397_v60 = vsel %vm345_vm1, %v1769_v47, 0.0 }
 0x1fe   : > { %v824_v2 = vsel %vm345_vm1, %v1970_v56, -inf }
 0x203   : > { %v1980_v63 = vpop.f32.mrf.mxu0 }
 0x204   : > { %v1004_v39 = vsel %vm345_vm1, %v1980_v63, -inf }
 0x205   : > { %999 = vmax.xlane.f32.xlu1 %v998_v26  ;;  %v1978_v34 = vpop.f32.mrf.mxu1  ;;  %v626_v26 = vsel %vm345_vm1, %v1850_v59, 0.0  ;;  %v629_v59 = vsel %vm345_vm1, %v1852_v29, 0.0 }
 0x206   : > { %v827_v32 = vsel %vm345_vm1, %v1978_v34, -inf }
 0x20b   : > { %v1988_v55 = vpop.f32.mrf.mxu0 }
 0x20c   : > { %v1007_v10 = vsel %vm345_vm1, %v1988_v55, -inf }
 0x20d   : > { %1002 = vmax.xlane.f32.xlu1 %v1001_v28  ;;  %v1986_v1 = vpop.f32.mrf.mxu1  ;;  %v406_v28 = vsel %vm345_vm1, %v1809_v8, 0.0 }
 0x20e   : > { %v830_v43 = vsel %vm345_vm1, %v1986_v1, -inf }
 0x215   : > { %828 = vmax.xlane.f32.xlu1 %v827_v32  ;;  %v1996_v11 = vpop.f32.mrf.mxu1  ;;  %v415_v32 = vsel %vm345_vm1, %v1824_v17, 0.0 }
 0x216   : > { %825 = vmax.xlane.f32.xlu2 %v824_v2  ;;  %v833_v31 = vsel %vm345_vm1, %v1996_v11, -inf }
 0x21d   : > { %831 = vmax.xlane.f32.xlu1 %v830_v43  ;;  %v638_v43 = vsel %vm345_vm1, %v1898_v52, 0.0 }
 0x21e   : > { %1008 = vmax.xlane.f32.xlu2 %v1007_v10  ;;  %v1994_v6 = vpop.f32.mrf.mxu3 }
 0x225   : > { %993 = vmax.xlane.f32.xlu0 %v992_v13  ;;  %834 = vmax.xlane.f32.xlu1 %v833_v31 }
 0x226   : > { %401 = vadd.xlane.f32.xlu2 %v400_v22  ;;  %v2004_v25 = vpop.f32.mrf.mxu3 }
 0x22d   : > { %395 = vadd.xlane.f32.xlu1 %v394_v36  ;;  %1005 = vmax.xlane.f32.xlu0 %v1004_v39 }
 0x22e   : > { %410 = vadd.xlane.f32.xlu2 %v409_v42  ;;  %v2012_v48 = vpop.f32.mrf.mxu3 }
 0x235   : > { %404 = vadd.xlane.f32.xlu1 %v403_v61  ;;  %398 = vadd.xlane.f32.xlu0 %v397_v60 }
 0x236   : > { %627 = vadd.xlane.f32.xlu2 %v626_v26  ;;  %v2020_v46 = vpop.f32.mrf.mxu3 }
 0x23d   : > { %413 = vadd.xlane.f32.xlu1 %v412_v9  ;;  %407 = vadd.xlane.f32.xlu0 %v406_v28 }
 0x23e   : > { %633 = vadd.xlane.f32.xlu2 %v632_v62  ;;  %v2028_v47 = vpop.f32.mrf.mxu3 }
 0x245   : > { %630 = vadd.xlane.f32.xlu1 %v629_v59  ;;  %416 = vadd.xlane.f32.xlu0 %v415_v32 }
 0x246   : > { %642 = vadd.xlane.f32.xlu2 %v641_v16  ;;  %v2036_v8 = vpop.f32.mrf.mxu3 }
 0x248   : > { %v988_v2 = vpop.xlane.xlu2 %987 }
 0x24d   : > { %636 = vadd.xlane.f32.xlu1 %v635_v19  ;;  %639 = vadd.xlane.f32.xlu0 %v638_v43 }
 0x24e   : > { %v712_v29 = vpop.f32.mrf.mxu3 }
 0x24f   : > { %v2043_v17 = vadd.f32 %v712_v29, %v1927_v15 }
 0x250   : > { %v991_v10 = vpop.xlane.xlu1 %990  ;;  %v1119_v31 = vpop.permute.xlu2 %1118 }
 0x251   : > { %1140 = vmatpush.bf16.msrb.mxu2 %v1119_v31 }
 0x258   : > { %v2045_v50 = vpop.xlane.xlu1 %813 }
 0x259   : > { %v836_v13 = vsub.f32 %v1942_v35, %v2045_v50  ;;  %v2050_v22 = vmax.f32 %v2045_v50, %v988_v2 }
 0x25a   : > { %v2052_v44 = vpop.xlane.xlu0 %816 }
 0x25b   : > { %v844_v52 = vmul.f32 1.442695, %v836_v13  ;;  %v1018_v39 = vsub.f32 %v2045_v50, %v2050_v22  ;;  %v1042_v15 = vsub.f32 %v1929_v20, %v2050_v22  ;;  %v837_v36 = vsub.f32 %v1948_v40, %v2052_v44 }
 0x25c   : > { %v2061_v42 = vmax.f32 %v2052_v44, %v991_v10 }
 0x25d   : > { %1530 = vpow2.f32 %v844_v52  ;;  %v1050_v35 = vmul.f32 1.442695, %v1042_v15  ;;  %v846_v61 = vmul.f32 1.442695, %v837_v36 }
 0x25e   : > { %v1019_v60 = vsub.f32 %v2052_v44, %v2061_v42  ;;  %v1043_v26 = vsub.f32 %v1938_v24, %v2061_v42 }
 0x25f   : > { %1532 = vpow2.f32 %v1050_v35 }
 0x260   : > { %v1052_v9 = vmul.f32 1.442695, %v1043_v26  ;;  %v997_v28 = vpop.xlane.xlu1 %996  ;;  %1534 = vpow2.f32 %v846_v61 }
 0x262   : > { %1536 = vpow2.f32 %v1052_v9 }
 0x263   : > { %v1531_v20 = vpop.eup %1530 }
 0x264   : > { %v860_v40 = vsel %vm345_vm1, %v1531_v20, 0.0 }
 0x265   : > { %861 = vadd.xlane.f32.xlu0 %v860_v40  ;;  %v1533_v62 = vpop.eup %1532 }
 0x266   : > { %v1535_v59 = vpop.eup %1534  ;;  %v1074_v32 = vsel %vm345_vm1, %v1533_v62, 0.0 }
 0x267   : > { %v863_v16 = vsel %vm345_vm1, %v1535_v59, 0.0  ;;  %1075 = vadd.xlane.f32.xlu1 %v1074_v32  ;;  %v884_v13 = vpack.c.bf16 %v1535_v59, %v1531_v20 }
 0x268   : > { %v2070_v2 = vpop.xlane.xlu1 %819  ;;  %v1537_v19 = vpop.eup %1536  ;;  %864 = vadd.xlane.f32.xlu2 %v863_v16 }
 0x269   : > { %v838_v24 = vsub.f32 %v1958_v33, %v2070_v2  ;;  %v1114_v43 = vpack.c.bf16 %v1537_v19, %v1533_v62  ;;  %v1077_v10 = vsel %vm345_vm1, %v1537_v19, 0.0 }
 0x26b   : > { %v848_v29 = vmul.f32 1.442695, %v838_v24  ;;  %1435 = vmatmul.msk.bf16.vlgmr.msrb.gmra.mxu2 %vm345_vm1, %v1114_v43 }
 0x26d   : > { %1538 = vpow2.f32 %v848_v29  ;;  %v889_v31 = vpop.permute.xlu0 %888  ;;  %1078 = vadd.xlane.f32.xlu0 %v1077_v10 }
 0x26e   : > { %910 = vmatpush.bf16.msrb.mxu3 %v889_v31 }
 0x270   : > { %v2076_v52 = vpop.xlane.xlu1 %822 }
 0x271   : > { %v839_v15 = vsub.f32 %v1962_v51, %v2076_v52  ;;  %v2081_v36 = vmax.f32 %v2076_v52, %v997_v28  ;;  %1427 = vmatmul.msk.bf16.vlgmr.msrb.gmra.mxu3 %vm345_vm1, %v884_v13 }
 0x273   : > { %v1539_v33 = vpop.eup %1538  ;;  %v850_v35 = vmul.f32 1.442695, %v839_v15  ;;  %v1021_v61 = vsub.f32 %v2076_v52, %v2081_v36  ;;  %v1045_v26 = vsub.f32 %v1952_v41, %v2081_v36 }
 0x274   : > { %v866_v9 = vsel %vm345_vm1, %v1539_v33, 0.0 }
 0x275   : > { %1540 = vpow2.f32 %v850_v35  ;;  %v1056_v20 = vmul.f32 1.442695, %v1045_v26  ;;  %867 = vadd.xlane.f32.xlu1 %v866_v9 }
 0x277   : > { %1542 = vpow2.f32 %v1056_v20 }
 0x278   : > { %v1000_v51 = vpop.xlane.xlu1 %999 }
 0x27b   : > { %v1541_v40 = vpop.eup %1540 }
 0x27c   : > { %v869_v28 = vsel %vm345_vm1, %v1541_v40, 0.0  ;;  %v885_v32 = vpack.c.bf16 %v1541_v40, %v1539_v33 }
 0x27d   : > { %870 = vadd.xlane.f32.xlu0 %v869_v28  ;;  %v2090_v62 = vpop.eup %1542 }
 0x27e   : > { %v1083_v59 = vsel %vm345_vm1, %v2090_v62, 0.0 }
 0x27f   : > { %1084 = vadd.xlane.f32.xlu1 %v1083_v59 }
 0x280   : > { %v1003_v16 = vpop.xlane.xlu1 %1002 }
 0x281   : > { %1428 = vmatmul.msk.bf16.gmra.mxu3 %vm345_vm1, %v885_v32 }
 0x288   : > { %v2095_v41 = vpop.xlane.xlu1 %828 }
 0x289   : > { %v841_v19 = vsub.f32 %v1978_v34, %v2095_v41  ;;  %v2100_v24 = vmax.f32 %v2095_v41, %v1003_v16  ;;  %v2102_v43 = vpop.xlane.xlu2 %825 }
 0x28a   : > { %v840_v29 = vsub.f32 %v1970_v56, %v2102_v43  ;;  %v2107_v10 = vmax.f32 %v2102_v43, %v1000_v51 }
 0x28b   : > { %v854_v31 = vmul.f32 1.442695, %v841_v19 }
 0x28c   : > { %v852_v15 = vmul.f32 1.442695, %v840_v29  ;;  %v1046_v34 = vsub.f32 %v1966_v54, %v2107_v10 }
 0x28d   : > { %1544 = vpow2.f32 %v854_v31 }
 0x28e   : > { %1546 = vpow2.f32 %v852_v15  ;;  %v1058_v35 = vmul.f32 1.442695, %v1046_v34 }
 0x290   : > { %v2115_v26 = vpop.xlane.xlu1 %831  ;;  %1548 = vpow2.f32 %v1058_v35 }
 0x291   : > { %v842_v56 = vsub.f32 %v1986_v1, %v2115_v26  ;;  %v1009_v9 = vpop.xlane.xlu2 %1008 }
 0x293   : > { %v1545_v20 = vpop.eup %1544  ;;  %v856_v40 = vmul.f32 1.442695, %v842_v56 }
 0x294   : > { %v1547_v51 = vpop.eup %1546  ;;  %v875_v28 = vsel %vm345_vm1, %v1545_v20, 0.0 }
 0x295   : > { %876 = vadd.xlane.f32.xlu1 %v875_v28  ;;  %v886_v59 = vpack.c.bf16 %v1545_v20, %v1547_v51  ;;  %1550 = vpow2.f32 %v856_v40 }
 0x296   : > { %v2121_v54 = vpop.eup %1548 }
 0x297   : > { %1429 = vmatmul.msk.bf16.gmra.mxu3 %vm345_vm1, %v886_v59  ;;  %v1086_v1 = vsel %vm345_vm1, %v2121_v54, 0.0 }
 0x298   : > { %v994_v32 = vpop.xlane.xlu0 %993  ;;  %v2123_v16 = vpop.xlane.xlu1 %834  ;;  %1087 = vadd.xlane.f32.xlu0 %v1086_v1 }
 0x299   : > { %v2126_v19 = vmax.f32 %v2070_v2, %v994_v32  ;;  %v843_v29 = vsub.f32 %v1996_v11, %v2123_v16  ;;  %v2133_v31 = vmax.f32 %v2123_v16, %v1009_v9  ;;  %v402_v15 = vpop.xlane.xlu2 %401 }
 0x29b   : > { %v1020_v34 = vsub.f32 %v2070_v2, %v2126_v19  ;;  %v1044_v35 = vsub.f32 %v1944_v37, %v2126_v19  ;;  %v858_v56 = vmul.f32 1.442695, %v843_v29  ;;  %v1551_v28 = vpop.eup %1550  ;;  %v1049_v11 = vsub.f32 %v1988_v55, %v2133_v31 }
 0x29c   : > { %v878_v1 = vsel %vm345_vm1, %v1551_v28, 0.0 }
 0x29d   : > { %v1054_v40 = vmul.f32 1.442695, %v1044_v35  ;;  %1552 = vpow2.f32 %v858_v56  ;;  %v1064_v29 = vmul.f32 1.442695, %v1049_v11 }
 0x29f   : > { %1554 = vpow2.f32 %v1054_v40 }
 0x2a0   : > { %v1006_v9 = vpop.xlane.xlu0 %1005  ;;  %v396_v59 = vpop.xlane.xlu1 %395  ;;  %879 = vadd.xlane.f32.xlu0 %v878_v1  ;;  %1556 = vpow2.f32 %v1064_v29 }
 0x2a1   : > { %v2144_v32 = vmax.f32 %v2115_v26, %v1006_v9  ;;  %v411_v13 = vpop.xlane.xlu2 %410  ;;  %v1047_v9 = vsub.f32 %v1974_v57, %v2100_v24  ;;  %v618_v1 = vmul.f32 %v1859_v3, %v396_v59  ;;  %v872_v3 = vsel %vm345_vm1, %v1547_v51, 0.0 }
 0x2a3   : > { %v2147_v37 = vpop.eup %1552  ;;  %v1048_v56 = vsub.f32 %v1980_v63, %v2144_v32  ;;  %v1060_v29 = vmul.f32 1.442695, %v1047_v9 }
 0x2a4   : > { %v887_v55 = vpack.c.bf16 %v2147_v37, %v1551_v28  ;;  %v647_v28 = vsel %vm345_vm1, %v1916_v7, 0.0 }
 0x2a5   : > { %v1062_v40 = vmul.f32 1.442695, %v1048_v56  ;;  %v1555_v20 = vpop.eup %1554 }
 0x2a6   : > { %v1080_v33 = vsel %vm345_vm1, %v1555_v20, 0.0  ;;  %v1115_v11 = vpack.c.bf16 %v2090_v62, %v1555_v20  ;;  %v620_v20 = vmul.f32 %v1882_v27, %v402_v15  ;;  %v644_v15 = vsel %vm345_vm1, %v1919_v30, 0.0 }
 0x2a7   : > { %1430 = vmatmul.msk.bf16.gmra.mxu3 %vm345_vm1, %v887_v55  ;;  %1558 = vpow2.f32 %v1062_v40  ;;  %1081 = vadd.xlane.f32.xlu2 %v1080_v33  ;;  %v2163_v55 = vpop.eup %1556  ;;  %v717_v40 = vadd.f32 %v1994_v6, %v1862_v5 }
 0x2a8   : > { %v399_v35 = vpop.xlane.xlu0 %398  ;;  %v405_v63 = vpop.xlane.xlu1 %404  ;;  %1436 = vmatmul.msk.bf16.gmra.mxu2 %vm345_vm1, %v1115_v11  ;;  %648 = vadd.xlane.f32.xlu0 %v647_v28  ;;  %v1095_v9 = vsel %vm345_vm1, %v2163_v55, 0.0 }
 0x2a9   : > { %v628_v57 = vpop.xlane.xlu2 %627  ;;  %v619_v6 = vmul.f32 %v1865_v14, %v399_v35 }
 0x2aa   : > { %v650_v56 = vadd.f32 %v628_v57, %v618_v1 }
 0x2ac   : > { %1560 = vrcp.f32 %v650_v56  ;;  %v623_v56 = vmul.f32 %v1911_v4, %v411_v13  ;;  %v621_v13 = vmul.f32 %v1888_v45, %v405_v63 }
 0x2ad   : > { %v2165_v62 = vpop.eup %1558  ;;  %1562 = vpow2.f32 %v1060_v29 }
 0x2ae   : > { %v1092_v33 = vsel %vm345_vm1, %v2165_v62, 0.0 }
 0x2af   : > { %873 = vadd.xlane.f32.xlu2 %v872_v3  ;;  %1093 = vadd.xlane.f32.xlu1 %v1092_v33 }
 0x2b0   : > { %v408_v7 = vpop.xlane.xlu0 %407  ;;  %v414_v59 = vpop.xlane.xlu1 %413  ;;  %1096 = vadd.xlane.f32.xlu0 %v1095_v9 }
 0x2b1   : > { %v2177_v11 = vmul.f32 %v1924_v12, %v414_v59  ;;  %v634_v51 = vpop.xlane.xlu2 %633  ;;  %v622_v9 = vmul.f32 %v1905_v58, %v408_v7 }
 0x2b2   : > { %v1561_v1 = vpop.eup %1560  ;;  %v652_v28 = vadd.f32 %v634_v51, %v620_v20  ;;  %v719_v20 = vadd.f32 %v2012_v48, %v1885_v53  ;;  %v881_v53 = vsel %vm345_vm1, %v2147_v37, 0.0 }
 0x2b3   : > { %v733_v57 = vmul.f32 %v1561_v1, %v717_v40  ;;  %v1563_v27 = vpop.eup %1562 }
 0x2b4   : > { %1564 = vrcp.f32 %v652_v28  ;;  %v1089_v12 = vsel %vm345_vm1, %v1563_v27, 0.0  ;;  %v1116_v29 = vpack.c.bf16 %v1563_v27, %v2121_v54  ;;  %v722_v28 = vadd.f32 %v2036_v8, %v1914_v38 }
 0x2b5   : > { %v741_v5 = vpack.c.bf16 %v733_v57, %v733_v57  ;;  %v721_v38 = vadd.f32 %v2028_v47, %v1908_v0  ;;  %v720_v8 = vadd.f32 %v2020_v46, %v1892_v49  ;;  %v1028_v49 = vmul.f32 1.442695, %v1019_v60 }
 0x2b7   : > { %750 = vst.msk [vmem:[%s2182_s4] sm:$0xf] %vm749_vm2, %v741_v5  ;;  %1090 = vadd.xlane.f32.xlu2 %v1089_v12  ;;  %645 = vadd.xlane.f32.xlu1 %v644_v15 }
 0x2b8   : > { %v417_v3 = vpop.xlane.xlu0 %416  ;;  %v631_v33 = vpop.xlane.xlu1 %630  ;;  %1437 = vmatmul.msk.bf16.gmra.mxu2 %vm345_vm1, %v1116_v29 }
 0x2b9   : > { %v2195_v14 = vmul.f32 %v1933_v21, %v417_v3  ;;  %v651_v30 = vadd.f32 %v631_v33, %v619_v6  ;;  %v643_v35 = vpop.xlane.xlu2 %642  ;;  %v718_v21 = vadd.f32 %v2004_v25, %v1869_v18  ;;  %v1117_v18 = vpack.c.bf16 %v2163_v55, %v2165_v62 }
 0x2ba   : > { %v1565_v54 = vpop.eup %1564  ;;  %v655_v59 = vadd.f32 %v643_v35, %v623_v56  ;;  %v1026_v55 = vmul.f32 1.442695, %v1018_v39  ;;  %v714_v56 = vpop.f32.mrf.mxu3 }
 0x2bb   : > { %v735_v40 = vmul.f32 %v1565_v54, %v719_v20  ;;  %1566 = vrcp.f32 %v651_v30  ;;  %v724_v19 = vadd.f32 %v714_v56, %v1936_v23 }
 0x2bc   : > { %1568 = vrcp.f32 %v655_v59 }
 0x2bd   : > { %v743_v4 = vpack.c.bf16 %v735_v40, %v735_v40 }
 0x2bf   : > { %752 = vst.msk [vmem:[%s2182_s4 + $0x8] sm:$0xf] %vm749_vm2, %v743_v4  ;;  %882 = vadd.xlane.f32.xlu2 %v881_v53 }
 0x2c0   : > { %v640_v48 = vpop.xlane.xlu0 %639  ;;  %v637_v51 = vpop.xlane.xlu1 %636 }
 0x2c1   : > { %v1567_v1 = vpop.eup %1566  ;;  %v654_v45 = vadd.f32 %v640_v48, %v622_v9  ;;  %v653_v63 = vadd.f32 %v637_v51, %v621_v13 }
 0x2c2   : > { %v1569_v58 = vpop.eup %1568  ;;  %v734_v7 = vmul.f32 %v1567_v1, %v718_v21 }
 0x2c3   : > { %v738_v57 = vmul.f32 %v1569_v58, %v722_v28  ;;  %1570 = vrcp.f32 %v654_v45  ;;  %v1030_v58 = vmul.f32 1.442695, %v1020_v34  ;;  %v2298_v34 = vsub.f32 %v2102_v43, %v2107_v10 }
 0x2c4   : > { %v742_v37 = vpack.c.bf16 %v734_v7, %v734_v7  ;;  %1572 = vrcp.f32 %v653_v63 }
 0x2c5   : > { %v746_v27 = vpack.c.bf16 %v738_v57, %v738_v57  ;;  %1574 = vpow2.f32 %v1026_v55  ;;  %v1032_v57 = vmul.f32 1.442695, %v1021_v61  ;;  %v1034_v52 = vmul.f32 1.442695, %v2298_v34 }
 0x2c6   : > { %751 = vst.msk [vmem:[%s2182_s4 + $0x4] sm:$0xf] %vm749_vm2, %v742_v37  ;;  %1576 = vpow2.f32 %v1028_v49 }
 0x2c7   : > { %755 = vst.msk [vmem:[%s2182_s4 + $0x14] sm:$0xf] %vm749_vm2, %v746_v27 }
 0x2c8   : > { %1438 = vmatmul.msk.bf16.gmra.mxu2 %vm345_vm1, %v1117_v18 }
 0x2c9   : > { %v1571_v25 = vpop.eup %1570 }
 0x2ca   : > { %v1573_v5 = vpop.eup %1572  ;;  %v737_v6 = vmul.f32 %v1571_v25, %v721_v38 }
 0x2cb   : > { %v736_v12 = vmul.f32 %v1573_v5, %v720_v8  ;;  %v1575_v47 = vpop.eup %1574 }
 0x2cc   : > { %v745_v15 = vpack.c.bf16 %v737_v6, %v737_v6  ;;  %v1577_v20 = vpop.eup %1576 }
 0x2cd   : > { %v744_v29 = vpack.c.bf16 %v736_v12, %v736_v12 }
 0x2ce   : > { %754 = vst.msk [vmem:[%s2182_s4 + $0x10] sm:$0xf] %vm749_vm2, %v745_v15 }
 0x2cf   : > { %753 = vst.msk [vmem:[%s2182_s4 + $0xc] sm:$0xf] %vm749_vm2, %v744_v29 }
 0x2d8   : > { %v862_v0 = vpop.xlane.xlu0 %861 }
 0x2d9   : > { %v1066_v46 = vmul.f32 %v1575_v47, %v862_v0 }
 0x2da   : > { %v1076_v62 = vpop.xlane.xlu1 %1075 }
 0x2db   : > { %v1098_v3 = vadd.f32 %v1076_v62, %v1066_v46  ;;  %v865_v33 = vpop.xlane.xlu2 %864  ;;  %v2299_v62 = vsub.f32 %v2095_v41, %v2100_v24  ;;  %v2300_v41 = vsub.f32 %v2115_v26, %v2144_v32  ;;  %v2301_v26 = vsub.f32 %v2123_v16, %v2133_v31 }
 0x2dc   : > { %v1067_v35 = vmul.f32 %v1577_v20, %v865_v33 }
 0x2dd   : > { %1578 = vrcp.f32 %v1098_v3  ;;  %v1036_v56 = vmul.f32 1.442695, %v2299_v62  ;;  %v1038_v24 = vmul.f32 1.442695, %v2300_v41  ;;  %v1040_v32 = vmul.f32 1.442695, %v2301_v26 }
 0x2e0   : > { %v1079_v30 = vpop.xlane.xlu0 %1078 }
 0x2e1   : > { %v1099_v39 = vadd.f32 %v1079_v30, %v1067_v35 }
 0x2e3   : > { %v1579_v40 = vpop.eup %1578  ;;  %1580 = vrcp.f32 %v1099_v39 }
 0x2e4   : > { %1582 = vpow2.f32 %v1030_v58 }
 0x2e8   : > { %v868_v1 = vpop.xlane.xlu1 %867 }
 0x2e9   : > { %v1581_v53 = vpop.eup %1580 }
 0x2ea   : > { %v1583_v38 = vpop.eup %1582 }
 0x2eb   : > { %v1068_v8 = vmul.f32 %v1583_v38, %v868_v1 }
 0x2ee   : > { %v1142_v54 = vpop.f32.mrf.mxu2 }
 0x2f0   : > { %v871_v51 = vpop.xlane.xlu0 %870 }
 0x2f2   : > { %v1085_v45 = vpop.xlane.xlu1 %1084 }
 0x2f4   : > { %v912_v50 = vpop.f32.mrf.mxu3 }
 0x2f5   : > { %v1106_v22 = vmul.f32 %v1575_v47, %v912_v50 }
 0x2f6   : > { %v1144_v13 = vpop.f32.mrf.mxu2 }
 0x2f7   : > { %v1162_v59 = vadd.f32 %v1142_v54, %v1106_v22 }
 0x2f9   : > { %v1178_v4 = vmul.f32 %v1579_v40, %v1162_v59 }
 0x2fb   : > { %v1186_v44 = vpack.c.bf16 %v1178_v4, %v1178_v4 }
 0x2fc   : > { %v914_v42 = vpop.f32.mrf.mxu3 }
 0x2fd   : > { %v1107_v60 = vmul.f32 %v1577_v20, %v914_v42  ;;  %1202 = vrot.lane.b32.xlu2 %v1186_v44, %s1634_s24 }
 0x2ff   : > { %v1163_v9 = vadd.f32 %v1144_v13, %v1107_v60 }
 0x301   : > { %v1179_v21 = vmul.f32 %v1581_v53, %v1163_v9 }
 0x303   : > { %v1187_v48 = vpack.c.bf16 %v1179_v21, %v1179_v21 }
 0x304   : > { %v917_v18 = vpop.f32.mrf.mxu3 }
 0x305   : > { %1204 = vrot.lane.b32.xlu1 %v1187_v48, %s1634_s24  ;;  %v1108_v29 = vmul.f32 %v1583_v38, %v917_v18 }
 0x308   : > { %v877_v7 = vpop.xlane.xlu1 %876 }
 0x30b   : > { %v1088_v28 = vpop.xlane.xlu0 %1087 }
 0x30c   : > { %v919_v15 = vpop.f32.mrf.mxu3 }
 0x313   : > { %v2231_v63 = vpop.xlane.xlu0 %879 }
 0x31a   : > { %v1082_v25 = vpop.xlane.xlu2 %1081  ;;  %v922_v30 = vpop.f32.mrf.mxu3 }
 0x31b   : > { %v649_v37 = vpop.xlane.xlu0 %648  ;;  %v1100_v2 = vadd.f32 %v1082_v25, %v1068_v8 }
 0x31c   : > { %v657_v27 = vadd.f32 %v649_v37, %v2195_v14 }
 0x31e   : > { %1584 = vrcp.f32 %v657_v27 }
 0x31f   : > { %1586 = vpow2.f32 %v1032_v57 }
 0x320   : > { %1588 = vrcp.f32 %v1100_v2 }
 0x321   : > { %1590 = vpow2.f32 %v1034_v52 }
 0x322   : > { %v2240_v5 = vpop.xlane.xlu1 %1093  ;;  %v874_v49 = vpop.xlane.xlu2 %873 }
 0x323   : > { %v924_v53 = vpop.f32.mrf.mxu3 }
 0x324   : > { %v1585_v36 = vpop.eup %1584 }
 0x325   : > { %v1587_v61 = vpop.eup %1586  ;;  %v740_v6 = vmul.f32 %v1585_v36, %v724_v19  ;;  %v1097_v19 = vpop.xlane.xlu0 %1096 }
 0x326   : > { %v1069_v14 = vmul.f32 %v1587_v61, %v871_v51  ;;  %v1589_v43 = vpop.eup %1588  ;;  %v1109_v35 = vmul.f32 %v1587_v61, %v919_v15 }
 0x327   : > { %v748_v12 = vpack.c.bf16 %v740_v6, %v740_v6  ;;  %v1591_v10 = vpop.eup %1590 }
 0x328   : > { %v1101_v0 = vadd.f32 %v1085_v45, %v1069_v14  ;;  %v1070_v33 = vmul.f32 %v1591_v10, %v874_v49  ;;  %v1110_v9 = vmul.f32 %v1591_v10, %v922_v30 }
 0x329   : > { %757 = vst.msk [vmem:[%s2182_s4 + $0x1c] sm:$0xf] %vm749_vm2, %v748_v12 }
 0x32a   : > { %v646_v55 = vpop.xlane.xlu1 %645  ;;  %v1091_v42 = vpop.xlane.xlu2 %1090 }
 0x32b   : > { %v656_v47 = vadd.f32 %v646_v55, %v2177_v11  ;;  %v1147_v23 = vpop.f32.mrf.mxu2  ;;  %v1102_v11 = vadd.f32 %v1088_v28, %v1070_v33  ;;  %v927_v16 = vpop.f32.mrf.mxu3 }
 0x32c   : > { %v1164_v46 = vadd.f32 %v1147_v23, %v1108_v29 }
 0x32d   : > { %1592 = vrcp.f32 %v656_v47 }
 0x32e   : > { %v1180_v3 = vmul.f32 %v1589_v43, %v1164_v46  ;;  %1594 = vrcp.f32 %v1101_v0 }
 0x32f   : > { %1596 = vpow2.f32 %v1036_v56 }
 0x330   : > { %v1188_v20 = vpack.c.bf16 %v1180_v3, %v1180_v3  ;;  %1598 = vrcp.f32 %v1102_v11 }
 0x331   : > { %1600 = vpow2.f32 %v1038_v24 }
 0x332   : > { %1206 = vrot.lane.b32.xlu0 %v1188_v20, %s1634_s24  ;;  %v883_v27 = vpop.xlane.xlu2 %882 }
 0x333   : > { %v1149_v54 = vpop.f32.mrf.mxu2  ;;  %v1593_v50 = vpop.eup %1592 }
 0x334   : > { %v1165_v22 = vadd.f32 %v1149_v54, %v1109_v35  ;;  %v1595_v39 = vpop.eup %1594  ;;  %v739_v59 = vmul.f32 %v1593_v50, %v2043_v17  ;;  %v929_v6 = vpop.f32.mrf.mxu3 }
 0x335   : > { %v1597_v44 = vpop.eup %1596 }
 0x336   : > { %v1181_v40 = vmul.f32 %v1595_v39, %v1165_v22  ;;  %v747_v4 = vpack.c.bf16 %v739_v59, %v739_v59  ;;  %v1071_v13 = vmul.f32 %v1597_v44, %v877_v7  ;;  %v1599_v51 = vpop.eup %1598  ;;  %v1111_v7 = vmul.f32 %v1597_v44, %v924_v53 }
 0x337   : > { %v1601_v28 = vpop.eup %1600 }
 0x338   : > { %v1189_v60 = vpack.c.bf16 %v1181_v40, %v1181_v40  ;;  %756 = vst.msk [vmem:[%s2182_s4 + $0x18] sm:$0xf] %vm749_vm2, %v747_v4  ;;  %v1103_v21 = vadd.f32 %v1091_v42, %v1071_v13  ;;  %v1072_v58 = vmul.f32 %v1601_v28, %v2231_v63  ;;  %v1112_v34 = vmul.f32 %v1601_v28, %v927_v16 }
 0x33a   : > { %1208 = vrot.lane.b32.xlu0 %v1189_v60, %s1634_s24  ;;  %1602 = vrcp.f32 %v1103_v21  ;;  %v1104_v57 = vadd.f32 %v2240_v5, %v1072_v58 }
 0x33b   : > { %v1152_v17 = vpop.f32.mrf.mxu2  ;;  %1604 = vpow2.f32 %v1040_v32 }
 0x33c   : > { %v1166_v48 = vadd.f32 %v1152_v17, %v1110_v9  ;;  %1606 = vrcp.f32 %v1104_v57 }
 0x33e   : > { %v1182_v1 = vmul.f32 %v1599_v51, %v1166_v48 }
 0x340   : > { %v1190_v45 = vpack.c.bf16 %v1182_v1, %v1182_v1  ;;  %v1603_v38 = vpop.eup %1602 }
 0x341   : > { %v1605_v31 = vpop.eup %1604 }
 0x342   : > { %1210 = vrot.lane.b32.xlu2 %v1190_v45, %s1634_s24  ;;  %v1073_v8 = vmul.f32 %v1605_v31, %v883_v27  ;;  %v1607_v61 = vpop.eup %1606  ;;  %v1113_v12 = vmul.f32 %v1605_v31, %v929_v6 }
 0x343   : > { %v1154_v37 = vpop.f32.mrf.mxu2 }
 0x344   : > { %v1167_v18 = vadd.f32 %v1154_v37, %v1111_v7  ;;  %v1105_v63 = vadd.f32 %v1097_v19, %v1073_v8 }
 0x346   : > { %v1183_v25 = vmul.f32 %v1603_v38, %v1167_v18  ;;  %1608 = vrcp.f32 %v1105_v63 }
 0x348   : > { %v1191_v2 = vpack.c.bf16 %v1183_v25, %v1183_v25 }
 0x34a   : > { %1212 = vrot.lane.b32.xlu1 %v1191_v2, %s1634_s24 }
 0x34b   : > { %v1157_v52 = vpop.f32.mrf.mxu2 }
 0x34c   : > { %v1168_v36 = vadd.f32 %v1157_v52, %v1112_v34  ;;  %v1609_v55 = vpop.eup %1608 }
 0x34e   : > { %v1184_v5 = vmul.f32 %v1607_v61, %v1168_v36 }
 0x350   : > { %v1192_v14 = vpack.c.bf16 %v1184_v5, %v1184_v5 }
 0x352   : > { %1214 = vrot.lane.b32.xlu0 %v1192_v14, %s1634_s24 }
 0x353   : > { %v1159_v15 = vpop.f32.mrf.mxu2 }
 0x354   : > { %v1169_v29 = vadd.f32 %v1159_v15, %v1113_v12 }
 0x356   : > { %v1185_v0 = vmul.f32 %v1609_v55, %v1169_v29 }
 0x357   : > { %v1203_v47 = vpop.permute.xlu2 %1202 }
 0x358   : > { %1227 = vst.msk [vmem:[%s2182_s4] sm:$0xf] %vm1226_vm3, %v1203_v47  ;;  %v1193_v23 = vpack.c.bf16 %v1185_v0, %v1185_v0 }
 0x35a   : > { %1216 = vrot.lane.b32.xlu2 %v1193_v23, %s1634_s24 }
 0x377   : > { %v1205_v49 = vpop.permute.xlu1 %1204 }
 0x378   : > { %1228 = vst.msk [vmem:[%s2182_s4 + $0x4] sm:$0xf] %vm1226_vm3, %v1205_v49 }
 0x39c   : > { %v1211_v46 = vpop.permute.xlu2 %1210 }
 0x39d   : > { %1231 = vst.msk [vmem:[%s2182_s4 + $0x10] sm:$0xf] %vm1226_vm3, %v1211_v46 }
 0x3a4   : > { %v1207_v43 = vpop.permute.xlu0 %1206 }
 0x3a5   : > { %1229 = vst.msk [vmem:[%s2182_s4 + $0x8] sm:$0xf] %vm1226_vm3, %v1207_v43 }
 0x3ac   : > { %v1209_v10 = vpop.permute.xlu0 %1208 }
 0x3ad   : > { %1230 = vst.msk [vmem:[%s2182_s4 + $0xc] sm:$0xf] %vm1226_vm3, %v1209_v10 }
 0x3b4   : > { %v1217_v62 = vpop.permute.xlu2 %1216 }
 0x3b5   : > { %1234 = vst.msk [vmem:[%s2182_s4 + $0x1c] sm:$0xf] %vm1226_vm3, %v1217_v62 }
 0x3bc   : > { %v1213_v56 = vpop.permute.xlu1 %1212 }
 0x3bd   : > { %1232 = vst.msk [vmem:[%s2182_s4 + $0x14] sm:$0xf] %vm1226_vm3, %v1213_v56 }
 0x3c4   : > { %v1215_v3 = vpop.permute.xlu0 %1214 }
 0x3c5   : > { %1233 = vst.msk [vmem:[%s2182_s4 + $0x18] sm:$0xf] %vm1226_vm3, %v1215_v3 }
 0x3c6 PF: > { %s13_s14 = sadd.s32 1, %s1632_s14   ;;  %s2302_s12 = smov %s1628_s13 }
 0x3c7   : > { %p10_p5 = scmp.ge.s32.totalorder %s13_s14, 4   ;;  %s2303_s13 = smov %s2305_s15 }
 0x3c9   :  { %12 = sbr.rel (!%p10_p5) target bundleno = 2 (0x2), region = 68 }

// kernel: cross_attention_forward.7
= control target key start
LH: loop header
LB: loop body
LE: loop exit
PB: predicated region body
PF: predicated region fallthrough
CT: control target
= control target key end

     0   :  { %17 = vsyncpa [#allocation3], 0  ;;  %s2870_s0 = inlined_call_operand.vmem [shape: bf16[128,128], index: 0, kind: input, shape index: {}]   ;;  %s2871_s1 = inlined_call_operand.hbm [shape: f32[128,32], index: 1, kind: input, shape index: {}]   ;;  %s2872_s2 = inlined_call_operand.vmem [shape: bf16[128,32], index: 2, kind: input, shape index: {}]   ;;  %s2873_s3 = inlined_call_operand.vmem [shape: f32[1,32], index: 3, kind: input, shape index: {}]   ;;  %s2874_s4 = inlined_call_operand.vmem [shape: f32[1,32], index: 4, kind: input, shape index: {}]   ;;  %s2875_s5 = inlined_call_operand.vmem [shape: f32[1,32], index: 5, kind: input, shape index: {}]   ;;  %s2876_s6 = inlined_call_operand.vmem [shape: bf16[32,64], index: 6, kind: input, shape index: {}]   ;;  %s2877_s7 = inlined_call_operand.vmem [shape: f32[1,64], index: 7, kind: input, shape index: {}]   ;;  %s2878_s8 = inlined_call_operand.vmem [shape: bf16[64,32], index: 8, kind: input, shape index: {}]   ;;  %s2879_s9 = inlined_call_operand.vmem [shape: f32[1,32], index: 9, kind: input, shape index: {}]   ;;  %s2880_s10 = inlined_call_operand.vmem [shape: f32[1,32], index: 10, kind: input, shape index: {}]   ;;  %s2881_s11 = inlined_call_operand.vmem [shape: f32[1,32], index: 11, kind: input, shape index: {}]   ;;  %s2882_s12 = inlined_call_operand.hbm [shape: f32[128,32], index: 12, kind: output, shape index: {}]  }
   0x1   :  { %18 = vsyncpa [#allocation4], 0  ;;  %s25_s23 = sshll.u32 %s2871_s1, 4  ;;  %s1876_s24 = smov [#allocation2]   ;;  %s26_s23 = int_to_ptr.hbm [resolvable:$true] %s25_s23 }
   0x2   :  { %s27_s25 = sshll.u32 %s1876_s24, 4  ;;  %s1877_s26 = smov 128   ;;  %s28_s25 = int_to_ptr.vmem [resolvable:$true] %s27_s25 }
   0x3   :  { %s1878_s27 = smov 8  }
   0x4   :  { %33 = dma.hbm_to_vmem [thread:$0]  %s26_s23, 2048, %s28_s25, [#allocation3], %s1877_s26, %s1877_s26, %s1878_s27  }
   0x5   :  { %1872 = dma.done.wait [#allocation3], 2048  }
   0x6   :  { %1873 = vsyncadd [#allocation3], 4294965248  ;;  %v1693_v0 = vld [vmem:[%s2872_s2 + $0x38] sm:$0xff]  ;;  %v1692_v1 = vld [vmem:[%s2872_s2 + $0x30] sm:$0xff]  ;;  %vm274_vm0 = vcmask 261120  }
   0x7   :  { %191 = vmatpush.bf16.msra.mxu0 %v1693_v0  ;;  %1700 = vmatpush.bf16.msra.mxu3 %v1693_v0  ;;  %v1691_v2 = vld [vmem:[%s2872_s2 + $0x28] sm:$0xff]  ;;  %v1690_v3 = vld [vmem:[%s2872_s2 + $0x20] sm:$0xff]  ;;  %v1689_v4 = vld [vmem:[%s2872_s2 + $0x18] sm:$0xff] }
   0x8   :  { %v1688_v5 = vld [vmem:[%s2872_s2 + $0x10] sm:$0xff]  ;;  %v1687_v6 = vld [vmem:[%s2872_s2 + $0x8] sm:$0xff]  ;;  %v1686_v7 = vld [vmem:[%s2872_s2] sm:$0xff] }
   0x9   :  { %v1678_v8 = vld [vmem:[%s2870_s0] sm:$0xff]  ;;  %v1679_v9 = vld [vmem:[%s2870_s0 + $0x8] sm:$0xff]  ;;  %v1684_v10 = vld [vmem:[%s2870_s0 + $0x30] sm:$0xff] }
   0xa   :  { %v1680_v11 = vld [vmem:[%s2870_s0 + $0x10] sm:$0xff]  ;;  %v1685_v12 = vld [vmem:[%s2870_s0 + $0x38] sm:$0xff]  ;;  %v1682_v14 = vld [vmem:[%s2870_s0 + $0x20] sm:$0xff] }
   0xb   :  { %192 = vmatpush.bf16.msra.mxu0 %v1692_v1  ;;  %1701 = vmatpush.bf16.msra.mxu3 %v1692_v1  ;;  %v1681_v13 = vld [vmem:[%s2870_s0 + $0x18] sm:$0xff]  ;;  %v1683_v15 = vld [vmem:[%s2870_s0 + $0x28] sm:$0xff]  ;;  %v2003_v16 = vld [vmem:[%s2873_s3] ss:$0 sm:$0xff]  ;;  %s1561_s0 = sshll.u32 %s2882_s12, 4  ;;  %s1562_s0 = int_to_ptr.hbm [resolvable:$true] %s1561_s0 }
   0xc   :  { %v240_v18 = vld [vmem:[#allocation2] sm:$0xff]  ;;  %v241_v25 = vld [vmem:[#allocation2 + $0x8] sm:$0xff]  ;;  %v242_v32 = vld [vmem:[#allocation2 + $0x10] sm:$0xff] }
   0xd   :  { %v243_v39 = vld [vmem:[#allocation2 + $0x18] sm:$0xff]  ;;  %v244_v46 = vld [vmem:[#allocation2 + $0x20] sm:$0xff]  ;;  %v245_v53 = vld [vmem:[#allocation2 + $0x28] sm:$0xff] }
   0xe   :  { %v246_v60 = vld [vmem:[#allocation2 + $0x30] sm:$0xff] }
   0xf   :  { %193 = vmatpush.bf16.msra.mxu0 %v1691_v2  ;;  %1702 = vmatpush.bf16.msra.mxu3 %v1691_v2 }
  0x13   :  { %194 = vmatpush.bf16.msra.mxu0 %v1690_v3  ;;  %1703 = vmatpush.bf16.msra.mxu3 %v1690_v3 }
  0x17   :  { %195 = vmatpush.bf16.msra.mxu0 %v1689_v4  ;;  %1704 = vmatpush.bf16.msra.mxu3 %v1689_v4  ;;  %v247_v4 = vld [vmem:[#allocation2 + $0x38] sm:$0xff] }
  0x1b   :  { %196 = vmatpush.bf16.msra.mxu0 %v1688_v5  ;;  %1705 = vmatpush.bf16.msra.mxu3 %v1688_v5 }
  0x1f   :  { %197 = vmatpush.bf16.msra.mxu0 %v1687_v6  ;;  %1706 = vmatpush.bf16.msra.mxu3 %v1687_v6 }
  0x23   :  { %198 = vmatpush.bf16.msra.mxu0 %v1686_v7  ;;  %1707 = vmatpush.bf16.msra.mxu3 %v1686_v7 }
  0x26   :  { %199 = vmatmul.bf16.vlgmr.msra.gmra.mxu0 %v1678_v8  ;;  %229 = vmatmul.bf16.vlgmr.msra.gmra.mxu3 %v1684_v10 }
  0x36   :  { %204 = vmatmul.bf16.gmra.mxu0 %v1679_v9  ;;  %234 = vmatmul.bf16.gmra.mxu3 %v1685_v12  ;;  %v248_v12 = vld [vmem:[#allocation2 + $0x40] sm:$0xff] }
  0x46   :  { %209 = vmatmul.bf16.gmra.mxu0 %v1680_v11 }
  0x56   :  { %214 = vmatmul.bf16.gmra.mxu0 %v1681_v13 }
  0x66   :  { %219 = vmatmul.bf16.gmra.mxu0 %v1682_v14 }
  0x76   :  { %224 = vmatmul.bf16.gmra.mxu0 %v1683_v15 }
  0xa3   :  { %v200_v17 = vpop.f32.mrf.mxu0 }
  0xa4   :  { %v201_v19 = vadd.f32 %v2003_v16, %v200_v17 }
  0xa6   :  { %v2006_v20 = vadd.f32 %v240_v18, %v201_v19 }
  0xa8   :  { %v275_v21 = vsel %vm274_vm0, %v2006_v20, 0.0  ;;  %v346_v22 = vmul.f32 %v2006_v20, %v2006_v20 }
  0xa9   :  { %276 = vadd.xlane.f32.xlu0 %v275_v21  ;;  %v230_v63 = vpop.f32.mrf.mxu3  ;;  %v249_v21 = vld [vmem:[#allocation2 + $0x48] sm:$0xff] }
  0xaa   :  { %v362_v23 = vsel %vm274_vm0, %v346_v22, 0.0 }
  0xab   :  { %v202_v24 = vpop.f32.mrf.mxu0  ;;  %363 = vadd.xlane.f32.xlu1 %v362_v23 }
  0xac   :  { %v203_v26 = vadd.f32 %v2003_v16, %v202_v24 }
  0xae   :  { %v2014_v27 = vadd.f32 %v241_v25, %v203_v26 }
  0xb0   :  { %v278_v28 = vsel %vm274_vm0, %v2014_v27, 0.0  ;;  %v347_v29 = vmul.f32 %v2014_v27, %v2014_v27 }
  0xb1   :  { %279 = vadd.xlane.f32.xlu0 %v278_v28  ;;  %v232_v9 = vpop.f32.mrf.mxu3 }
  0xb2   :  { %v365_v30 = vsel %vm274_vm0, %v347_v29, 0.0 }
  0xb3   :  { %v205_v31 = vpop.f32.mrf.mxu0  ;;  %366 = vadd.xlane.f32.xlu1 %v365_v30  ;;  %v250_v30 = vld [vmem:[#allocation2 + $0x50] sm:$0xff] }
  0xb4   :  { %v206_v33 = vadd.f32 %v2003_v16, %v205_v31 }
  0xb6   :  { %v2022_v34 = vadd.f32 %v242_v32, %v206_v33 }
  0xb8   :  { %v281_v35 = vsel %vm274_vm0, %v2022_v34, 0.0  ;;  %v348_v36 = vmul.f32 %v2022_v34, %v2022_v34 }
  0xb9   :  { %282 = vadd.xlane.f32.xlu2 %v281_v35  ;;  %v235_v22 = vpop.f32.mrf.mxu3 }
  0xba   :  { %v368_v37 = vsel %vm274_vm0, %v348_v36, 0.0 }
  0xbb   :  { %v207_v38 = vpop.f32.mrf.mxu0  ;;  %369 = vadd.xlane.f32.xlu0 %v368_v37 }
  0xbc   :  { %v208_v40 = vadd.f32 %v2003_v16, %v207_v38  ;;  %v255_v38 = vld [vmem:[#allocation2 + $0x78] sm:$0xff] }
  0xbe   :  { %v2030_v41 = vadd.f32 %v243_v39, %v208_v40 }
  0xc0   :  { %v284_v42 = vsel %vm274_vm0, %v2030_v41, 0.0  ;;  %v349_v43 = vmul.f32 %v2030_v41, %v2030_v41 }
  0xc1   :  { %285 = vadd.xlane.f32.xlu2 %v284_v42  ;;  %v237_v32 = vpop.f32.mrf.mxu3  ;;  %v251_v42 = vld [vmem:[#allocation2 + $0x58] sm:$0xff] }
  0xc2   :  { %v371_v44 = vsel %vm274_vm0, %v349_v43, 0.0  ;;  %v238_v37 = vadd.f32 %v2003_v16, %v237_v32  ;;  %v1694_v32 = vld [vmem:[%s2876_s6] sm:$0xff] }
  0xc3   :  { %v210_v45 = vpop.f32.mrf.mxu0  ;;  %372 = vadd.xlane.f32.xlu1 %v371_v44 }
  0xc4   :  { %v211_v47 = vadd.f32 %v2003_v16, %v210_v45  ;;  %v2095_v44 = vadd.f32 %v255_v38, %v238_v37  ;;  %v236_v45 = vadd.f32 %v2003_v16, %v235_v22 }
  0xc6   :  { %v2038_v48 = vadd.f32 %v244_v46, %v211_v47  ;;  %v254_v47 = vld [vmem:[#allocation2 + $0x70] sm:$0xff] }
  0xc8   :  { %v287_v49 = vsel %vm274_vm0, %v2038_v48, 0.0  ;;  %v350_v50 = vmul.f32 %v2038_v48, %v2038_v48 }
  0xc9   :  { %288 = vadd.xlane.f32.xlu2 %v287_v49 }
  0xca   :  { %v374_v51 = vsel %vm274_vm0, %v350_v50, 0.0 }
  0xcb   :  { %v212_v52 = vpop.f32.mrf.mxu0  ;;  %375 = vadd.xlane.f32.xlu1 %v374_v51  ;;  %v320_v51 = vsel %vm274_vm0, %v2095_v44, 0.0 }
  0xcc   :  { %v213_v54 = vadd.f32 %v2003_v16, %v212_v52  ;;  %v1879_v52 = vmov 32.0  }
  0xcd   :  { %1726 = vrcp.f32 %v1879_v52 }
  0xce   :  { %v2046_v55 = vadd.f32 %v245_v53, %v213_v54  ;;  %v231_v53 = vadd.f32 %v2003_v16, %v230_v63  ;;  %v2107_v54 = vadd.f32 %v254_v47, %v236_v45 }
  0xd0   :  { %v290_v56 = vsel %vm274_vm0, %v2046_v55, 0.0  ;;  %v351_v57 = vmul.f32 %v2046_v55, %v2046_v55 }
  0xd1   :  { %291 = vadd.xlane.f32.xlu0 %v290_v56 }
  0xd2   :  { %v377_v58 = vsel %vm274_vm0, %v351_v57, 0.0  ;;  %v252_v57 = vld [vmem:[#allocation2 + $0x60] sm:$0xff] }
  0xd3   :  { %v215_v59 = vpop.f32.mrf.mxu0  ;;  %378 = vadd.xlane.f32.xlu2 %v377_v58  ;;  %v2110_v58 = vadd.f32 %v252_v57, %v231_v53 }
  0xd4   :  { %v216_v61 = vadd.f32 %v2003_v16, %v215_v59  ;;  %v233_v59 = vadd.f32 %v2003_v16, %v232_v9 }
  0xd6   :  { %v2054_v62 = vadd.f32 %v246_v60, %v216_v61  ;;  %v360_v60 = vmul.f32 %v2107_v54, %v2107_v54  ;;  %v1727_v61 = vpop.eup %1726 }
  0xd7   :  { %vm328_vm1 = vweird.f32 %v1727_v61 }
  0xd8   :  { %v293_v0 = vsel %vm274_vm0, %v2054_v62, 0.0  ;;  %v352_v1 = vmul.f32 %v2054_v62, %v2054_v62 }
  0xd9   :  { %294 = vadd.xlane.f32.xlu0 %v293_v0  ;;  %v253_v0 = vld [vmem:[#allocation2 + $0x68] sm:$0xff] }
  0xda   :  { %v380_v2 = vsel %vm274_vm0, %v352_v1, 0.0  ;;  %v317_v1 = vsel %vm274_vm0, %v2107_v54, 0.0  ;;  %v2117_v63 = vadd.f32 %v253_v0, %v233_v59 }
  0xdb   :  { %v217_v3 = vpop.f32.mrf.mxu0  ;;  %381 = vadd.xlane.f32.xlu2 %v380_v2  ;;  %v404_v2 = vsel %vm274_vm0, %v360_v60, 0.0 }
  0xdc   :  { %v218_v5 = vadd.f32 %v2003_v16, %v217_v3  ;;  %v311_v3 = vsel %vm274_vm0, %v2110_v58, 0.0  ;;  %v314_v9 = vsel %vm274_vm0, %v2117_v63, 0.0 }
  0xde   :  { %v2062_v6 = vadd.f32 %v247_v4, %v218_v5  ;;  %v324_v4 = vmul.f32 32.0, %v1727_v61  ;;  %v359_v5 = vmul.f32 %v2117_v63, %v2117_v63 }
  0xe0   :  { %v296_v7 = vsel %vm274_vm0, %v2062_v6, 0.0  ;;  %v353_v8 = vmul.f32 %v2062_v6, %v2062_v6 }
  0xe1   :  { %297 = vadd.xlane.f32.xlu1 %v296_v7  ;;  %v325_v7 = vsub.f32 1.0, %v324_v4 }
  0xe2   :  { %v383_v10 = vsel %vm274_vm0, %v353_v8, 0.0 }
  0xe3   :  { %v220_v11 = vpop.f32.mrf.mxu0  ;;  %384 = vadd.xlane.f32.xlu0 %v383_v10  ;;  %v401_v10 = vsel %vm274_vm0, %v359_v5, 0.0 }
  0xe4   :  { %v221_v13 = vadd.f32 %v2003_v16, %v220_v11  ;;  %v326_v11 = vmul.f32 %v1727_v61, %v325_v7 }
  0xe6   :  { %v2070_v14 = vadd.f32 %v248_v12, %v221_v13  ;;  %v358_v12 = vmul.f32 %v2110_v58, %v2110_v58  ;;  %v327_v13 = vadd.f32 %v1727_v61, %v326_v11 }
  0xe8   :  { %v299_v15 = vsel %vm274_vm0, %v2070_v14, 0.0  ;;  %v354_v17 = vmul.f32 %v2070_v14, %v2070_v14 }
  0xe9   :  { %300 = vadd.xlane.f32.xlu1 %v299_v15  ;;  %v398_v15 = vsel %vm274_vm0, %v358_v12, 0.0 }
  0xea   :  { %v386_v18 = vsel %vm274_vm0, %v354_v17, 0.0  ;;  %v2133_v17 = vsel %vm328_vm1, %v1727_v61, %v327_v13 }
  0xeb   :  { %v222_v19 = vpop.f32.mrf.mxu0  ;;  %387 = vadd.xlane.f32.xlu0 %v386_v18 }
  0xec   :  { %v223_v23 = vadd.f32 %v2003_v16, %v222_v19 }
  0xee   :  { %v2078_v24 = vadd.f32 %v249_v21, %v223_v23 }
  0xf0   :  { %v302_v25 = vsel %vm274_vm0, %v2078_v24, 0.0  ;;  %v355_v26 = vmul.f32 %v2078_v24, %v2078_v24 }
  0xf1   :  { %303 = vadd.xlane.f32.xlu2 %v302_v25 }
  0xf2   :  { %v389_v28 = vsel %vm274_vm0, %v355_v26, 0.0  ;;  %v1695_v26 = vld [vmem:[%s2876_s6 + $0x8] sm:$0xff] }
  0xf3   :  { %v225_v29 = vpop.f32.mrf.mxu0  ;;  %390 = vadd.xlane.f32.xlu1 %v389_v28  ;;  %778 = vmatpush.bf16.msra.mxu1 %v1695_v26 }
  0xf4   :  { %v226_v31 = vadd.f32 %v2003_v16, %v225_v29  ;;  %1708 = vmatpush.bf16.msrb.mxu3 %v1695_v26 }
  0xf6   :  { %v2086_v33 = vadd.f32 %v250_v30, %v226_v31 }
  0xf7   :  { %779 = vmatpush.bf16.msra.mxu1 %v1694_v32 }
  0xf8   :  { %v305_v35 = vsel %vm274_vm0, %v2086_v33, 0.0  ;;  %v356_v36 = vmul.f32 %v2086_v33, %v2086_v33  ;;  %1709 = vmatpush.bf16.msrb.mxu3 %v1694_v32 }
  0xf9   :  { %306 = vadd.xlane.f32.xlu2 %v305_v35 }
  0xfa   :  { %v392_v39 = vsel %vm274_vm0, %v356_v36, 0.0 }
  0xfb   :  { %v227_v40 = vpop.f32.mrf.mxu0  ;;  %393 = vadd.xlane.f32.xlu1 %v392_v39 }
  0xfc   :  { %v228_v43 = vadd.f32 %v2003_v16, %v227_v40  ;;  %v361_v16 = vmul.f32 %v2095_v44, %v2095_v44 }
  0xfe   :  { %v2098_v46 = vadd.f32 %v251_v42, %v228_v43  ;;  %v407_v8 = vsel %vm274_vm0, %v361_v16, 0.0 }
 0x100   :  { %v308_v49 = vsel %vm274_vm0, %v2098_v46, 0.0  ;;  %v357_v50 = vmul.f32 %v2098_v46, %v2098_v46 }
 0x101   :  { %309 = vadd.xlane.f32.xlu0 %v308_v49 }
 0x102   :  { %v395_v56 = vsel %vm274_vm0, %v357_v50, 0.0 }
 0x103   :  { %396 = vadd.xlane.f32.xlu2 %v395_v56  ;;  %321 = vadd.xlane.f32.xlu1 %v320_v51 }
 0x109   :  { %318 = vadd.xlane.f32.xlu0 %v317_v1 }
 0x10b   :  { %405 = vadd.xlane.f32.xlu2 %v404_v2  ;;  %312 = vadd.xlane.f32.xlu1 %v311_v3 }
 0x111   :  { %408 = vadd.xlane.f32.xlu0 %v407_v8 }
 0x113   :  { %315 = vadd.xlane.f32.xlu2 %v314_v9  ;;  %402 = vadd.xlane.f32.xlu1 %v401_v10 }
 0x119   :  { %399 = vadd.xlane.f32.xlu0 %v398_v15 }
 0x11c   :  { %v277_v18 = vpop.xlane.xlu0 %276 }
 0x11d   :  { %v2136_v19 = vmul.f32 %v2133_v17, %v277_v18 }
 0x11e   :  { %v364_v21 = vpop.xlane.xlu1 %363 }
 0x11f   :  { %v426_v22 = vmul.f32 %v2136_v19, %v2136_v19  ;;  %v410_v23 = vmul.f32 %v364_v21, %v2133_v17  ;;  %v474_v11 = vsub.f32 %v2006_v20, %v2136_v19 }
 0x121   :  { %v442_v25 = vsub.f32 %v410_v23, %v426_v22 }
 0x123   :  { %v458_v28 = vmax.f32 %v442_v25, 0.0 }
 0x124   :  { %v280_v29 = vpop.xlane.xlu0 %279 }
 0x125   :  { %v490_v30 = vadd.f32 1e-05, %v458_v28  ;;  %v2145_v31 = vmul.f32 %v2133_v17, %v280_v29  ;;  %v2173_v28 = vld [vmem:[%s2874_s4] ss:$0 sm:$0xff] }
 0x126   :  { %v367_v35 = vpop.xlane.xlu1 %366 }
 0x127   :  { %1728 = vrsqrt.f32 %v490_v30  ;;  %v427_v36 = vmul.f32 %v2145_v31, %v2145_v31  ;;  %v411_v37 = vmul.f32 %v367_v35, %v2133_v17  ;;  %vm512_vm3 = vweird.f32 %v490_v30 }
 0x129   :  { %v443_v38 = vsub.f32 %v411_v37, %v427_v36 }
 0x12b   :  { %v459_v39 = vmax.f32 %v443_v38, 0.0 }
 0x12c   :  { %v283_v40 = vpop.xlane.xlu2 %282 }
 0x12d   :  { %v1729_v42 = vpop.eup %1728  ;;  %v2154_v43 = vmul.f32 %v2133_v17, %v283_v40  ;;  %v491_v47 = vadd.f32 1e-05, %v459_v39  ;;  %v2184_v40 = vld [vmem:[%s2875_s5] ss:$0 sm:$0xff] }
 0x12e   :  { %v507_v45 = vmul.f32 %v1729_v42, %v490_v30  ;;  %v370_v49 = vpop.xlane.xlu0 %369  ;;  %vm513_vm2 = vweird.f32 %v1729_v42  ;;  %v475_v30 = vsub.f32 %v2014_v27, %v2145_v31 }
 0x12f   :  { %v428_v50 = vmul.f32 %v2154_v43, %v2154_v43  ;;  %v412_v51 = vmul.f32 %v370_v49, %v2133_v17  ;;  %1730 = vrsqrt.f32 %v491_v47  ;;  %vm514_vm4 = vmor %vm512_vm3, %vm513_vm2  ;;  %vm522_vm6 = vweird.f32 %v491_v47 }
 0x130   :  { %v508_v52 = vmul.f32 %v1729_v42, %v507_v45 }
 0x131   :  { %v444_v53 = vsub.f32 %v412_v51, %v428_v50 }
 0x132   :  { %v509_v56 = vmul.f32 0.5, %v508_v52 }
 0x133   :  { %v460_v57 = vmax.f32 %v444_v53, 0.0 }
 0x134   :  { %v510_v59 = vsub.f32 1.5, %v509_v56  ;;  %v286_v60 = vpop.xlane.xlu2 %285 }
 0x135   :  { %v492_v61 = vadd.f32 1e-05, %v460_v57  ;;  %v2160_v0 = vmul.f32 %v2133_v17, %v286_v60  ;;  %v1731_v1 = vpop.eup %1730 }
 0x136   :  { %v373_v2 = vpop.xlane.xlu1 %372  ;;  %v511_v3 = vmul.f32 %v1729_v42, %v510_v59  ;;  %v517_v4 = vmul.f32 %v1731_v1, %v491_v47  ;;  %vm523_vm5 = vweird.f32 %v1731_v1 }
 0x137   :  { %1732 = vrsqrt.f32 %v492_v61  ;;  %v429_v16 = vmul.f32 %v2160_v0, %v2160_v0  ;;  %v413_v5 = vmul.f32 %v373_v2, %v2133_v17  ;;  %vm524_vm7 = vmor %vm522_vm6, %vm523_vm5  ;;  %vm532_vm9 = vweird.f32 %v492_v61 }
 0x138   :  { %v518_v7 = vmul.f32 %v1731_v1, %v517_v4  ;;  %v515_v10 = vsel %vm514_vm4, %v1729_v42, %v511_v3 }
 0x139   :  { %v445_v8 = vsub.f32 %v413_v5, %v429_v16  ;;  %v666_v26 = vmul.f32 %v515_v10, %v474_v11  ;;  %v476_v5 = vsub.f32 %v2022_v34, %v2154_v43  ;;  %v477_v43 = vsub.f32 %v2030_v41, %v2160_v0 }
 0x13a   :  { %v519_v9 = vmul.f32 0.5, %v518_v7 }
 0x13b   :  { %v461_v12 = vmax.f32 %v445_v8, 0.0  ;;  %v685_v39 = vmul.f32 %v2173_v28, %v666_v26 }
 0x13c   :  { %v289_v13 = vpop.xlane.xlu2 %288  ;;  %v520_v18 = vsub.f32 1.5, %v519_v9 }
 0x13d   :  { %v1733_v15 = vpop.eup %1732  ;;  %v2168_v21 = vmul.f32 %v2133_v17, %v289_v13  ;;  %v493_v23 = vadd.f32 1e-05, %v461_v12  ;;  %v2193_v52 = vadd.f32 %v2184_v40, %v685_v39 }
 0x13e   :  { %v527_v22 = vmul.f32 %v1733_v15, %v492_v61  ;;  %v376_v25 = vpop.xlane.xlu1 %375  ;;  %v521_v29 = vmul.f32 %v1731_v1, %v520_v18  ;;  %vm533_vm8 = vweird.f32 %v1733_v15 }
 0x13f   :  { %v430_v20 = vmul.f32 %v2168_v21, %v2168_v21  ;;  %v414_v19 = vmul.f32 %v376_v25, %v2133_v17  ;;  %1734 = vrsqrt.f32 %v493_v23  ;;  %vm534_vm10 = vmor %vm532_vm9, %vm533_vm8  ;;  %vm542_vm12 = vweird.f32 %v493_v23 }
 0x140   :  { %v528_v32 = vmul.f32 %v1733_v15, %v527_v22  ;;  %v525_v36 = vsel %vm524_vm7, %v1731_v1, %v521_v29 }
 0x141   :  { %v446_v35 = vsub.f32 %v414_v19, %v430_v20  ;;  %v667_v38 = vmul.f32 %v525_v36, %v475_v30 }
 0x142   :  { %v529_v37 = vmul.f32 0.5, %v528_v32 }
 0x143   :  { %v462_v42 = vmax.f32 %v446_v35, 0.0  ;;  %v686_v49 = vmul.f32 %v2173_v28, %v667_v38 }
 0x144   :  { %v530_v45 = vsub.f32 1.5, %v529_v37  ;;  %v292_v47 = vpop.xlane.xlu0 %291 }
 0x145   :  { %v2187_v27 = vadd.f32 1e-05, %v462_v42  ;;  %v2190_v31 = vmul.f32 %v2133_v17, %v292_v47  ;;  %v1735_v50 = vpop.eup %1734  ;;  %v2196_v53 = vadd.f32 %v2184_v40, %v686_v49 }
 0x146   :  { %v379_v51 = vpop.xlane.xlu2 %378  ;;  %v531_v56 = vmul.f32 %v1733_v15, %v530_v45  ;;  %v537_v57 = vmul.f32 %v1735_v50, %v493_v23  ;;  %vm543_vm11 = vweird.f32 %v1735_v50 }
 0x147   :  { %1736 = vrsqrt.f32 %v2187_v27  ;;  %v431_v59 = vmul.f32 %v2190_v31, %v2190_v31  ;;  %v415_v60 = vmul.f32 %v379_v51, %v2133_v17  ;;  %v720_v1 = vpack.c.bf16 %v2196_v53, %v2193_v52  ;;  %vm544_vm13 = vmor %vm542_vm12, %vm543_vm11 }
 0x148   :  { %v538_v2 = vmul.f32 %v1735_v50, %v537_v57  ;;  %v535_v16 = vsel %vm534_vm10, %v1733_v15, %v531_v56  ;;  %vm552_vm15 = vweird.f32 %v2187_v27 }
 0x149   :  { %v447_v3 = vsub.f32 %v415_v60, %v431_v59  ;;  %1646 = vmatmul.msk.bf16.vlgmr.msra.gmra.mxu1 %vm274_vm0, %v720_v1  ;;  %v668_v18 = vmul.f32 %v535_v16, %v476_v5  ;;  %v478_v1 = vsub.f32 %v2038_v48, %v2168_v21  ;;  %v479_v21 = vsub.f32 %v2046_v55, %v2190_v31 }
 0x14a   :  { %v539_v4 = vmul.f32 0.5, %v538_v2 }
 0x14b   :  { %v463_v7 = vmax.f32 %v447_v3, 0.0  ;;  %v687_v30 = vmul.f32 %v2173_v28, %v668_v18 }
 0x14c   :  { %v295_v8 = vpop.xlane.xlu0 %294  ;;  %v540_v10 = vsub.f32 1.5, %v539_v4 }
 0x14d   :  { %v1737_v9 = vpop.eup %1736  ;;  %v2208_v11 = vmul.f32 %v2133_v17, %v295_v8  ;;  %v495_v12 = vadd.f32 1e-05, %v463_v7  ;;  %v2224_v39 = vadd.f32 %v2184_v40, %v687_v30 }
 0x14e   :  { %v547_v61 = vmul.f32 %v1737_v9, %v2187_v27  ;;  %v382_v13 = vpop.xlane.xlu2 %381  ;;  %v541_v22 = vmul.f32 %v1735_v50, %v540_v10  ;;  %vm553_vm14 = vweird.f32 %v1737_v9 }
 0x14f   :  { %v432_v15 = vmul.f32 %v2208_v11, %v2208_v11  ;;  %v416_v34 = vmul.f32 %v382_v13, %v2133_v17  ;;  %1738 = vrsqrt.f32 %v495_v12  ;;  %vm554_vm1 = vmor %vm552_vm15, %vm553_vm14  ;;  %vm562_vm3 = vweird.f32 %v495_v12 }
 0x150   :  { %v548_v25 = vmul.f32 %v1737_v9, %v547_v61  ;;  %v545_v29 = vsel %vm544_vm13, %v1735_v50, %v541_v22 }
 0x151   :  { %v448_v26 = vsub.f32 %v416_v34, %v432_v15  ;;  %v669_v19 = vmul.f32 %v545_v29, %v477_v43 }
 0x152   :  { %v549_v20 = vmul.f32 0.5, %v548_v25 }
 0x153   :  { %v464_v32 = vmax.f32 %v448_v26, 0.0  ;;  %v688_v36 = vmul.f32 %v2173_v28, %v669_v19 }
 0x154   :  { %v550_v35 = vsub.f32 1.5, %v549_v20  ;;  %v298_v23 = vpop.xlane.xlu1 %297 }
 0x155   :  { %v2218_v37 = vadd.f32 1e-05, %v464_v32  ;;  %v2221_v38 = vmul.f32 %v2133_v17, %v298_v23  ;;  %v1739_v41 = vpop.eup %1738  ;;  %v2227_v42 = vadd.f32 %v2184_v40, %v688_v36 }
 0x156   :  { %v385_v0 = vpop.xlane.xlu0 %384  ;;  %v551_v45 = vmul.f32 %v1737_v9, %v550_v35  ;;  %v557_v47 = vmul.f32 %v1739_v41, %v495_v12  ;;  %vm563_vm2 = vweird.f32 %v1739_v41 }
 0x157   :  { %1740 = vrsqrt.f32 %v2218_v37  ;;  %v433_v49 = vmul.f32 %v2221_v38, %v2221_v38  ;;  %v417_v50 = vmul.f32 %v385_v0, %v2133_v17  ;;  %v721_v51 = vpack.c.bf16 %v2227_v42, %v2224_v39  ;;  %vm564_vm4 = vmor %vm562_vm3, %vm563_vm2 }
 0x158   :  { %v558_v56 = vmul.f32 %v1739_v41, %v557_v47  ;;  %v555_v60 = vsel %vm554_vm1, %v1737_v9, %v551_v45  ;;  %vm572_vm6 = vweird.f32 %v2218_v37 }
 0x159   :  { %v449_v57 = vsub.f32 %v417_v50, %v433_v49  ;;  %1647 = vmatmul.msk.bf16.gmra.mxu1 %vm274_vm0, %v721_v51  ;;  %v670_v10 = vmul.f32 %v555_v60, %v478_v1  ;;  %v480_v60 = vsub.f32 %v2054_v62, %v2208_v11  ;;  %v481_v62 = vsub.f32 %v2062_v6, %v2221_v38 }
 0x15a   :  { %v559_v59 = vmul.f32 0.5, %v558_v56 }
 0x15b   :  { %v465_v2 = vmax.f32 %v449_v57, 0.0  ;;  %v689_v43 = vmul.f32 %v2173_v28, %v670_v10 }
 0x15c   :  { %v301_v3 = vpop.xlane.xlu1 %300  ;;  %v560_v16 = vsub.f32 1.5, %v559_v59 }
 0x15d   :  { %v1741_v4 = vpop.eup %1740  ;;  %v2240_v5 = vmul.f32 %v2133_v17, %v301_v3  ;;  %v497_v7 = vadd.f32 1e-05, %v465_v2  ;;  %v2256_v30 = vadd.f32 %v2184_v40, %v689_v43 }
 0x15e   :  { %v567_v27 = vmul.f32 %v1741_v4, %v2218_v37  ;;  %v388_v8 = vpop.xlane.xlu0 %387  ;;  %v561_v61 = vmul.f32 %v1739_v41, %v560_v16  ;;  %vm573_vm5 = vweird.f32 %v1741_v4 }
 0x15f   :  { %v434_v9 = vmul.f32 %v2240_v5, %v2240_v5  ;;  %v418_v48 = vmul.f32 %v388_v8, %v2133_v17  ;;  %1742 = vrsqrt.f32 %v497_v7  ;;  %vm2269_vm7 = vmor %vm572_vm6, %vm573_vm5  ;;  %vm582_vm9 = vweird.f32 %v497_v7 }
 0x160   :  { %v568_v13 = vmul.f32 %v1741_v4, %v567_v27  ;;  %v565_v22 = vsel %vm564_vm4, %v1739_v41, %v561_v61  ;;  %v482_v49 = vsub.f32 %v2070_v14, %v2240_v5 }
 0x161   :  { %v450_v18 = vsub.f32 %v418_v48, %v434_v9  ;;  %v671_v34 = vmul.f32 %v565_v22, %v479_v21 }
 0x162   :  { %v569_v15 = vmul.f32 0.5, %v568_v13 }
 0x163   :  { %v466_v25 = vmax.f32 %v450_v18, 0.0  ;;  %v690_v29 = vmul.f32 %v2173_v28, %v671_v34 }
 0x164   :  { %v570_v26 = vsub.f32 1.5, %v569_v15  ;;  %v304_v12 = vpop.xlane.xlu2 %303 }
 0x165   :  { %v2250_v20 = vadd.f32 1e-05, %v466_v25  ;;  %v2253_v19 = vmul.f32 %v2133_v17, %v304_v12  ;;  %v1743_v55 = vpop.eup %1742  ;;  %v2259_v32 = vadd.f32 %v2184_v40, %v690_v29 }
 0x166   :  { %v391_v31 = vpop.xlane.xlu1 %390  ;;  %v577_v35 = vmul.f32 %v1743_v55, %v497_v7  ;;  %v571_v23 = vmul.f32 %v1741_v4, %v570_v26  ;;  %vm583_vm8 = vweird.f32 %v1743_v55 }
 0x167   :  { %1744 = vrsqrt.f32 %v2250_v20  ;;  %v435_v36 = vmul.f32 %v2253_v19, %v2253_v19  ;;  %v419_v41 = vmul.f32 %v391_v31, %v2133_v17  ;;  %v722_v0 = vpack.c.bf16 %v2259_v32, %v2256_v30  ;;  %vm584_vm10 = vmor %vm582_vm9, %vm583_vm8 }
 0x168   :  { %v578_v45 = vmul.f32 %v1743_v55, %v577_v35  ;;  %v575_v57 = vsel %vm2269_vm7, %v1741_v4, %v571_v23  ;;  %vm592_vm12 = vweird.f32 %v2250_v20 }
 0x169   :  { %v451_v47 = vsub.f32 %v419_v41, %v435_v36  ;;  %1648 = vmatmul.msk.bf16.gmra.mxu1 %vm274_vm0, %v722_v0  ;;  %v672_v10 = vmul.f32 %v575_v57, %v480_v60 }
 0x16a   :  { %v579_v50 = vmul.f32 0.5, %v578_v45 }
 0x16b   :  { %v467_v51 = vmax.f32 %v451_v47, 0.0  ;;  %v691_v13 = vmul.f32 %v2173_v28, %v672_v10 }
 0x16c   :  { %v307_v56 = vpop.xlane.xlu2 %306  ;;  %v580_v1 = vsub.f32 1.5, %v579_v50 }
 0x16d   :  { %v1745_v59 = vpop.eup %1744  ;;  %v2278_v37 = vmul.f32 %v2133_v17, %v307_v56  ;;  %v499_v3 = vadd.f32 1e-05, %v467_v51 }
 0x16e   :  { %v587_v2 = vmul.f32 %v1745_v59, %v2250_v20  ;;  %v394_v16 = vpop.xlane.xlu1 %393  ;;  %v581_v27 = vmul.f32 %v1743_v55, %v580_v1  ;;  %vm593_vm11 = vweird.f32 %v1745_v59 }
 0x16f   :  { %v436_v8 = vmul.f32 %v2278_v37, %v2278_v37  ;;  %v420_v4 = vmul.f32 %v394_v16, %v2133_v17  ;;  %1746 = vrsqrt.f32 %v499_v3  ;;  %vm2306_vm13 = vmor %vm592_vm12, %vm593_vm11  ;;  %vm602_vm15 = vweird.f32 %v499_v3 }
 0x170   :  { %v588_v11 = vmul.f32 %v1745_v59, %v587_v2  ;;  %v585_v9 = vsel %vm584_vm10, %v1743_v55, %v581_v27  ;;  %v2298_v55 = vadd.f32 %v2184_v40, %v691_v13 }
 0x171   :  { %v452_v61 = vsub.f32 %v420_v4, %v436_v8  ;;  %v673_v48 = vmul.f32 %v585_v9, %v481_v62  ;;  %v483_v8 = vsub.f32 %v2078_v24, %v2253_v19 }
 0x172   :  { %v589_v7 = vmul.f32 0.5, %v588_v11 }
 0x173   :  { %v468_v21 = vmax.f32 %v452_v61, 0.0  ;;  %v692_v15 = vmul.f32 %v2173_v28, %v673_v48 }
 0x174   :  { %v590_v18 = vsub.f32 1.5, %v589_v7  ;;  %v310_v22 = vpop.xlane.xlu0 %309 }
 0x175   :  { %v2288_v34 = vadd.f32 1e-05, %v468_v21  ;;  %v2291_v43 = vmul.f32 %v2133_v17, %v310_v22  ;;  %v1747_v6 = vpop.eup %1746  ;;  %v2294_v26 = vadd.f32 %v2184_v40, %v692_v15 }
 0x176   :  { %v397_v38 = vpop.xlane.xlu2 %396  ;;  %v322_v25 = vpop.xlane.xlu1 %321  ;;  %v591_v12 = vmul.f32 %v1745_v59, %v590_v18  ;;  %v597_v29 = vmul.f32 %v1747_v6, %v499_v3  ;;  %vm603_vm14 = vweird.f32 %v1747_v6 }
 0x177   :  { %1748 = vrsqrt.f32 %v2288_v34  ;;  %v437_v31 = vmul.f32 %v2291_v43, %v2291_v43  ;;  %v421_v35 = vmul.f32 %v397_v38, %v2133_v17  ;;  %v723_v36 = vpack.c.bf16 %v2294_v26, %v2298_v55  ;;  %vm604_vm1 = vmor %vm602_vm15, %vm603_vm14 }
 0x178   :  { %v598_v23 = vmul.f32 %v1747_v6, %v597_v29  ;;  %v595_v47 = vsel %vm2306_vm13, %v1745_v59, %v591_v12  ;;  %v2333_v48 = vmul.f32 %v2133_v17, %v322_v25  ;;  %vm612_vm3 = vweird.f32 %v2288_v34 }
 0x179   :  { %v453_v0 = vsub.f32 %v421_v35, %v437_v31  ;;  %1649 = vmatmul.msk.bf16.gmra.mxu1 %vm274_vm0, %v723_v36  ;;  %v674_v59 = vmul.f32 %v595_v47, %v482_v49 }
 0x17a   :  { %v599_v45 = vmul.f32 0.5, %v598_v23  ;;  %v441_v22 = vmul.f32 %v2333_v48, %v2333_v48 }
 0x17b   :  { %v469_v50 = vmax.f32 %v453_v0, 0.0  ;;  %v693_v9 = vmul.f32 %v2173_v28, %v674_v59 }
 0x17c   :  { %v319_v20 = vpop.xlane.xlu0 %318  ;;  %v600_v56 = vsub.f32 1.5, %v599_v45 }
 0x17d   :  { %v2315_v51 = vpop.eup %1748  ;;  %v2318_v57 = vmul.f32 %v2133_v17, %v319_v20  ;;  %v2322_v1 = vadd.f32 1e-05, %v469_v50  ;;  %v484_v20 = vsub.f32 %v2086_v33, %v2278_v37  ;;  %v485_v37 = vsub.f32 %v2098_v46, %v2291_v43 }
 0x17e   :  { %v607_v60 = vmul.f32 %v2315_v51, %v2288_v34  ;;  %v406_v2 = vpop.xlane.xlu2 %405  ;;  %v313_v16 = vpop.xlane.xlu1 %312  ;;  %v601_v27 = vmul.f32 %v1747_v6, %v600_v56  ;;  %vm613_vm2 = vweird.f32 %v2315_v51 }
 0x17f   :  { %v440_v14 = vmul.f32 %v2318_v57, %v2318_v57  ;;  %v424_v5 = vmul.f32 %v406_v2, %v2133_v17  ;;  %1750 = vrsqrt.f32 %v2322_v1  ;;  %v2358_v41 = vmul.f32 %v2133_v17, %v313_v16  ;;  %vm2360_vm4 = vmor %vm612_vm3, %vm613_vm2 }
 0x180   :  { %v608_v4 = vmul.f32 %v2315_v51, %v607_v60  ;;  %v605_v62 = vsel %vm604_vm1, %v1747_v6, %v601_v27  ;;  %v2342_v6 = vadd.f32 %v2184_v40, %v693_v9  ;;  %vm622_vm6 = vweird.f32 %v2322_v1 }
 0x181   :  { %v456_v10 = vsub.f32 %v424_v5, %v440_v14  ;;  %v675_v61 = vmul.f32 %v605_v62, %v483_v8  ;;  %v438_v27 = vmul.f32 %v2358_v41, %v2358_v41 }
 0x182   :  { %v609_v11 = vmul.f32 0.5, %v608_v4 }
 0x183   :  { %v472_v3 = vmax.f32 %v456_v10, 0.0  ;;  %v694_v13 = vmul.f32 %v2173_v28, %v675_v61 }
 0x184   :  { %v610_v7 = vsub.f32 1.5, %v609_v11  ;;  %v409_v21 = vpop.xlane.xlu0 %408 }
 0x185   :  { %v2336_v24 = vadd.f32 1e-05, %v472_v3  ;;  %v425_v19 = vmul.f32 %v409_v21, %v2133_v17  ;;  %v1751_v18 = vpop.eup %1750  ;;  %v2345_v38 = vadd.f32 %v2184_v40, %v694_v13 }
 0x186   :  { %v316_v15 = vpop.xlane.xlu2 %315  ;;  %v611_v25 = vmul.f32 %v2315_v51, %v610_v7  ;;  %v617_v12 = vmul.f32 %v1751_v18, %v2322_v1  ;;  %v403_v29 = vpop.xlane.xlu1 %402  ;;  %vm623_vm5 = vweird.f32 %v1751_v18 }
 0x187   :  { %1752 = vrsqrt.f32 %v2336_v24  ;;  %v457_v31 = vsub.f32 %v425_v19, %v441_v22  ;;  %v2352_v35 = vmul.f32 %v2133_v17, %v316_v15  ;;  %v724_v23 = vpack.c.bf16 %v2345_v38, %v2342_v6  ;;  %vm624_vm7 = vmor %vm622_vm6, %vm623_vm5 }
 0x188   :  { %v618_v36 = vmul.f32 %v1751_v18, %v617_v12  ;;  %v423_v49 = vmul.f32 %v403_v29, %v2133_v17  ;;  %v615_v34 = vsel %vm2360_vm4, %v2315_v51, %v611_v25  ;;  %vm652_vm9 = vweird.f32 %v2336_v24 }
 0x189   :  { %v473_v45 = vmax.f32 %v457_v31, 0.0  ;;  %v439_v47 = vmul.f32 %v2352_v35, %v2352_v35  ;;  %1650 = vmatmul.msk.bf16.gmra.mxu1 %vm274_vm0, %v724_v23  ;;  %v676_v8 = vmul.f32 %v615_v34, %v484_v20  ;;  %v488_v23 = vsub.f32 %v2107_v54, %v2318_v57 }
 0x18a   :  { %v619_v50 = vmul.f32 0.5, %v618_v36  ;;  %v489_v34 = vsub.f32 %v2095_v44, %v2333_v48  ;;  %vm1009_vm5 = vcmask 523264  }
 0x18b   :  { %v505_v56 = vadd.f32 1e-05, %v473_v45  ;;  %v455_v60 = vsub.f32 %v423_v49, %v439_v47  ;;  %v695_v7 = vmul.f32 %v2173_v28, %v676_v8 }
 0x18c   :  { %v400_v2 = vpop.xlane.xlu0 %399  ;;  %v620_v59 = vsub.f32 1.5, %v619_v50 }
 0x18d   :  { %v1753_v16 = vpop.eup %1752  ;;  %v422_v14 = vmul.f32 %v400_v2, %v2133_v17  ;;  %1754 = vrsqrt.f32 %v505_v56  ;;  %v471_v51 = vmax.f32 %v455_v60, 0.0  ;;  %v2383_v46 = vadd.f32 %v2184_v40, %v695_v7 }
 0x18e   :  { %v647_v5 = vmul.f32 %v1753_v16, %v2336_v24  ;;  %v621_v4 = vmul.f32 %v1751_v18, %v620_v59  ;;  %vm653_vm8 = vweird.f32 %v1753_v16  ;;  %vm662_vm12 = vweird.f32 %v505_v56 }
 0x18f   :  { %v454_v33 = vsub.f32 %v422_v14, %v438_v27  ;;  %v503_v62 = vadd.f32 1e-05, %v471_v51  ;;  %vm654_vm10 = vmor %vm652_vm9, %vm653_vm8  ;;  %v486_v51 = vsub.f32 %v2110_v58, %v2358_v41  ;;  %v1699_v41 = vld [vmem:[%s2878_s8 + $0x18] sm:$0xff] }
 0x190   :  { %v648_v10 = vmul.f32 %v1753_v16, %v647_v5  ;;  %v625_v61 = vsel %vm624_vm7, %v1751_v18, %v621_v4  ;;  %1038 = vmatpush.bf16.msra.mxu2 %v1699_v41  ;;  %1710 = vmatpush.bf16.msra.mxu3 %v1699_v41 }
 0x191   :  { %v470_v11 = vmax.f32 %v454_v33, 0.0  ;;  %v677_v3 = vmul.f32 %v625_v61, %v485_v37  ;;  %1756 = vrsqrt.f32 %v503_v62  ;;  %vm642_vm15 = vweird.f32 %v503_v62 }
 0x192   :  { %v649_v9 = vmul.f32 0.5, %v648_v10 }
 0x193   :  { %v502_v21 = vadd.f32 1e-05, %v470_v11  ;;  %v1755_v13 = vpop.eup %1754  ;;  %v696_v1 = vmul.f32 %v2173_v28, %v677_v3  ;;  %v1696_v3 = vld [vmem:[%s2878_s8] sm:$0xff] }
 0x194   :  { %v650_v19 = vsub.f32 1.5, %v649_v9  ;;  %v657_v22 = vmul.f32 %v1755_v13, %v505_v56  ;;  %vm663_vm11 = vweird.f32 %v1755_v13  ;;  %v487_v56 = vsub.f32 %v2117_v63, %v2352_v35  ;;  %v2434_v9 = vld [vmem:[%s2877_s7] ss:$0 sm:$0xff] }
 0x195   :  { %1758 = vrsqrt.f32 %v502_v21  ;;  %v2386_v43 = vadd.f32 %v2184_v40, %v696_v1  ;;  %vm664_vm13 = vmor %vm662_vm12, %vm663_vm11  ;;  %vm632_vm3 = vweird.f32 %v502_v21 }
 0x196   :  { %v651_v15 = vmul.f32 %v1753_v16, %v650_v19  ;;  %v658_v18 = vmul.f32 %v1755_v13, %v657_v22 }
 0x197   :  { %v725_v25 = vpack.c.bf16 %v2386_v43, %v2383_v46  ;;  %v1757_v12 = vpop.eup %1756 }
 0x198   :  { %v655_v29 = vsel %vm654_vm10, %v1753_v16, %v651_v15  ;;  %v659_v31 = vmul.f32 0.5, %v658_v18  ;;  %v637_v36 = vmul.f32 %v1757_v12, %v503_v62  ;;  %vm643_vm14 = vweird.f32 %v1757_v12 }
 0x199   :  { %1651 = vmatmul.msk.bf16.gmra.mxu1 %vm274_vm0, %v725_v25  ;;  %v680_v47 = vmul.f32 %v655_v29, %v488_v23  ;;  %vm644_vm2 = vmor %vm642_vm15, %vm643_vm14 }
 0x19a   :  { %v660_v45 = vsub.f32 1.5, %v659_v31  ;;  %v638_v49 = vmul.f32 %v1757_v12, %v637_v36 }
 0x19b   :  { %v1759_v0 = vpop.eup %1758  ;;  %v699_v59 = vmul.f32 %v2173_v28, %v680_v47 }
 0x19c   :  { %v627_v24 = vmul.f32 %v1759_v0, %v502_v21  ;;  %v661_v50 = vmul.f32 %v1755_v13, %v660_v45  ;;  %v639_v20 = vmul.f32 0.5, %v638_v49  ;;  %vm633_vm1 = vweird.f32 %v1759_v0 }
 0x19d   :  { %v2401_v48 = vadd.f32 %v2184_v40, %v699_v59  ;;  %vm634_vm4 = vmor %vm632_vm3, %vm633_vm1 }
 0x19e   :  { %v628_v60 = vmul.f32 %v1759_v0, %v627_v24  ;;  %v665_v2 = vsel %vm664_vm13, %v1755_v13, %v661_v50  ;;  %v640_v57 = vsub.f32 1.5, %v639_v20 }
 0x19f   :  { %v681_v54 = vmul.f32 %v665_v2, %v489_v34 }
 0x1a0   :  { %v629_v16 = vmul.f32 0.5, %v628_v60  ;;  %v641_v27 = vmul.f32 %v1757_v12, %v640_v57 }
 0x1a1   :  { %v700_v5 = vmul.f32 %v2173_v28, %v681_v54 }
 0x1a2   :  { %v630_v14 = vsub.f32 1.5, %v629_v16  ;;  %v645_v4 = vsel %vm644_vm2, %v1757_v12, %v641_v27 }
 0x1a3   :  { %v2404_v8 = vadd.f32 %v2184_v40, %v700_v5  ;;  %v679_v33 = vmul.f32 %v645_v4, %v487_v56 }
 0x1a4   :  { %v631_v44 = vmul.f32 %v1759_v0, %v630_v14 }
 0x1a5   :  { %v727_v37 = vpack.c.bf16 %v2404_v8, %v2401_v48  ;;  %v698_v35 = vmul.f32 %v2173_v28, %v679_v33 }
 0x1a6   :  { %v635_v10 = vsel %vm634_vm4, %v1759_v0, %v631_v44 }
 0x1a7   :  { %v678_v63 = vmul.f32 %v635_v10, %v486_v51  ;;  %1653 = vmatmul.msk.bf16.vlgmr.msrb.gmra.mxu3 %vm274_vm0, %v727_v37  ;;  %v2417_v61 = vadd.f32 %v2184_v40, %v698_v35 }
 0x1a9   :  { %v697_v62 = vmul.f32 %v2173_v28, %v678_v63  ;;  %v1698_v28 = vld [vmem:[%s2878_s8 + $0x10] sm:$0xff] }
 0x1aa   :  { %1039 = vmatpush.bf16.msra.mxu2 %v1698_v28  ;;  %1711 = vmatpush.bf16.msra.mxu3 %v1698_v28 }
 0x1ab   :  { %v2414_v11 = vadd.f32 %v2184_v40, %v697_v62  ;;  %v1697_v40 = vld [vmem:[%s2878_s8 + $0x8] sm:$0xff] }
 0x1ad   :  { %v726_v58 = vpack.c.bf16 %v2417_v61, %v2414_v11 }
 0x1ae   :  { %1040 = vmatpush.bf16.msra.mxu2 %v1697_v40  ;;  %1712 = vmatpush.bf16.msra.mxu3 %v1697_v40 }
 0x1af   :  { %1652 = vmatmul.msk.bf16.gmra.mxu1 %vm274_vm0, %v726_v58 }
 0x1b2   :  { %1041 = vmatpush.bf16.msra.mxu2 %v1696_v3  ;;  %1713 = vmatpush.bf16.msra.mxu3 %v1696_v3 }
 0x1c6   :  { %v781_v7 = vpop.f32.mrf.mxu1 }
 0x1c7   :  { %v782_v21 = vadd.f32 %v2434_v9, %v781_v7 }
 0x1c9   :  { %v837_v13 = vmul.f32 0.044715, %v782_v21  ;;  %v821_v16 = vmul.f32 0.5, %v782_v21 }
 0x1cb   :  { %v853_v19 = vmul.f32 %v837_v13, %v782_v21 }
 0x1cd   :  { %v869_v1 = vmul.f32 %v853_v19, %v782_v21 }
 0x1ce   :  { %v783_v22 = vpop.f32.mrf.mxu1 }
 0x1cf   :  { %v784_v15 = vadd.f32 %v2434_v9, %v783_v22  ;;  %v885_v18 = vadd.f32 %v869_v1, %v782_v21 }
 0x1d1   :  { %v838_v25 = vmul.f32 0.044715, %v784_v15  ;;  %v901_v29 = vmul.f32 0.7978846, %v885_v18  ;;  %v822_v59 = vmul.f32 0.5, %v784_v15 }
 0x1d3   :  { %v854_v12 = vmul.f32 %v838_v25, %v784_v15  ;;  %1760 = vtanh.f32 %v901_v29 }
 0x1d5   :  { %v870_v31 = vmul.f32 %v854_v12, %v784_v15 }
 0x1d6   :  { %v786_v23 = vpop.f32.mrf.mxu1 }
 0x1d7   :  { %v787_v36 = vadd.f32 %v2434_v9, %v786_v23  ;;  %v886_v0 = vadd.f32 %v870_v31, %v784_v15 }
 0x1d9   :  { %v839_v45 = vmul.f32 0.044715, %v787_v36  ;;  %v902_v47 = vmul.f32 0.7978846, %v886_v0  ;;  %v1761_v24 = vpop.eup %1760  ;;  %v823_v19 = vmul.f32 0.5, %v787_v36 }
 0x1da   :  { %v933_v2 = vadd.f32 1.0, %v1761_v24 }
 0x1db   :  { %v855_v49 = vmul.f32 %v839_v45, %v787_v36  ;;  %1762 = vtanh.f32 %v902_v47 }
 0x1dc   :  { %v949_v56 = vmul.f32 %v933_v2, %v821_v16 }
 0x1dd   :  { %v871_v50 = vmul.f32 %v855_v49, %v787_v36 }
 0x1de   :  { %v788_v34 = vpop.f32.mrf.mxu1 }
 0x1df   :  { %v789_v20 = vadd.f32 %v2434_v9, %v788_v34  ;;  %v887_v60 = vadd.f32 %v871_v50, %v787_v36 }
 0x1e1   :  { %v1763_v54 = vpop.eup %1762  ;;  %v840_v57 = vmul.f32 0.044715, %v789_v20  ;;  %v903_v5 = vmul.f32 0.7978846, %v887_v60  ;;  %v824_v1 = vmul.f32 0.5, %v789_v20 }
 0x1e2   :  { %v934_v27 = vadd.f32 1.0, %v1763_v54 }
 0x1e3   :  { %v856_v14 = vmul.f32 %v840_v57, %v789_v20  ;;  %1764 = vtanh.f32 %v903_v5 }
 0x1e4   :  { %v950_v44 = vmul.f32 %v934_v27, %v822_v59 }
 0x1e5   :  { %v872_v4 = vmul.f32 %v856_v14, %v789_v20 }
 0x1e6   :  { %v791_v51 = vpop.f32.mrf.mxu1  ;;  %v965_v33 = vpack.c.bf16 %v950_v44, %v949_v56 }
 0x1e7   :  { %v792_v37 = vadd.f32 %v2434_v9, %v791_v51  ;;  %v888_v10 = vadd.f32 %v872_v4, %v789_v20 }
 0x1e8   :  { %1670 = vmatmul.msk.bf16.vlgmr.msra.gmra.mxu2 %vm1009_vm5, %v965_v33 }
 0x1e9   :  { %v841_v63 = vmul.f32 0.044715, %v792_v37  ;;  %v904_v35 = vmul.f32 0.7978846, %v888_v10  ;;  %v1765_v58 = vpop.eup %1764  ;;  %v825_v16 = vmul.f32 0.5, %v792_v37 }
 0x1ea   :  { %v935_v7 = vadd.f32 1.0, %v1765_v58 }
 0x1eb   :  { %v857_v62 = vmul.f32 %v841_v63, %v792_v37  ;;  %1766 = vtanh.f32 %v904_v35 }
 0x1ec   :  { %v951_v25 = vmul.f32 %v935_v7, %v823_v19 }
 0x1ed   :  { %v873_v41 = vmul.f32 %v857_v62, %v792_v37 }
 0x1ee   :  { %v793_v28 = vpop.f32.mrf.mxu1 }
 0x1ef   :  { %v794_v40 = vadd.f32 %v2434_v9, %v793_v28  ;;  %v889_v3 = vadd.f32 %v873_v41, %v792_v37 }
 0x1f1   :  { %v1767_v21 = vpop.eup %1766  ;;  %v842_v13 = vmul.f32 0.044715, %v794_v40  ;;  %v905_v18 = vmul.f32 0.7978846, %v889_v3  ;;  %v826_v59 = vmul.f32 0.5, %v794_v40 }
 0x1f2   :  { %v936_v22 = vadd.f32 1.0, %v1767_v21 }
 0x1f3   :  { %v858_v15 = vmul.f32 %v842_v13, %v794_v40  ;;  %1768 = vtanh.f32 %v905_v18 }
 0x1f4   :  { %v952_v12 = vmul.f32 %v936_v22, %v824_v1 }
 0x1f5   :  { %v874_v29 = vmul.f32 %v858_v15, %v794_v40 }
 0x1f6   :  { %v966_v31 = vpack.c.bf16 %v952_v12, %v951_v25  ;;  %v796_v23 = vpop.f32.mrf.mxu1 }
 0x1f7   :  { %v890_v0 = vadd.f32 %v874_v29, %v794_v40  ;;  %v797_v45 = vadd.f32 %v2434_v9, %v796_v23 }
 0x1f8   :  { %1671 = vmatmul.msk.bf16.gmra.mxu2 %vm1009_vm5, %v966_v31 }
 0x1f9   :  { %v906_v47 = vmul.f32 0.7978846, %v890_v0  ;;  %v843_v49 = vmul.f32 0.044715, %v797_v45  ;;  %v1769_v36 = vpop.eup %1768  ;;  %v827_v19 = vmul.f32 0.5, %v797_v45 }
 0x1fa   :  { %v937_v60 = vadd.f32 1.0, %v1769_v36 }
 0x1fb   :  { %1770 = vtanh.f32 %v906_v47  ;;  %v859_v24 = vmul.f32 %v843_v49, %v797_v45 }
 0x1fc   :  { %v953_v5 = vmul.f32 %v937_v60, %v825_v16 }
 0x1fd   :  { %v875_v50 = vmul.f32 %v859_v24, %v797_v45 }
 0x1fe   :  { %v798_v34 = vpop.f32.mrf.mxu1 }
 0x1ff   :  { %v799_v20 = vadd.f32 %v2434_v9, %v798_v34  ;;  %v891_v2 = vadd.f32 %v875_v50, %v797_v45 }
 0x201   :  { %v1771_v54 = vpop.eup %1770  ;;  %v844_v57 = vmul.f32 0.044715, %v799_v20  ;;  %v907_v44 = vmul.f32 0.7978846, %v891_v2  ;;  %v828_v1 = vmul.f32 0.5, %v799_v20 }
 0x202   :  { %v938_v27 = vadd.f32 1.0, %v1771_v54 }
 0x203   :  { %v860_v14 = vmul.f32 %v844_v57, %v799_v20  ;;  %1772 = vtanh.f32 %v907_v44 }
 0x204   :  { %v954_v56 = vmul.f32 %v938_v27, %v826_v59 }
 0x205   :  { %v876_v51 = vmul.f32 %v860_v14, %v799_v20 }
 0x206   :  { %v967_v4 = vpack.c.bf16 %v954_v56, %v953_v5  ;;  %v801_v33 = vpop.f32.mrf.mxu1 }
 0x207   :  { %v802_v10 = vadd.f32 %v2434_v9, %v801_v33  ;;  %v892_v63 = vadd.f32 %v876_v51, %v799_v20 }
 0x208   :  { %1672 = vmatmul.msk.bf16.gmra.mxu2 %vm1009_vm5, %v967_v4 }
 0x209   :  { %v845_v35 = vmul.f32 0.044715, %v802_v10  ;;  %v908_v62 = vmul.f32 0.7978846, %v892_v63  ;;  %v1773_v37 = vpop.eup %1772  ;;  %v829_v16 = vmul.f32 0.5, %v802_v10 }
 0x20a   :  { %v939_v7 = vadd.f32 1.0, %v1773_v37 }
 0x20b   :  { %v861_v58 = vmul.f32 %v845_v35, %v802_v10  ;;  %1774 = vtanh.f32 %v908_v62 }
 0x20c   :  { %v955_v25 = vmul.f32 %v939_v7, %v827_v19 }
 0x20d   :  { %v877_v41 = vmul.f32 %v861_v58, %v802_v10 }
 0x20e   :  { %v803_v28 = vpop.f32.mrf.mxu1 }
 0x20f   :  { %v804_v40 = vadd.f32 %v2434_v9, %v803_v28  ;;  %v893_v3 = vadd.f32 %v877_v41, %v802_v10 }
 0x211   :  { %v1775_v21 = vpop.eup %1774  ;;  %v846_v13 = vmul.f32 0.044715, %v804_v40  ;;  %v909_v18 = vmul.f32 0.7978846, %v893_v3  ;;  %v830_v59 = vmul.f32 0.5, %v804_v40 }
 0x212   :  { %v940_v22 = vadd.f32 1.0, %v1775_v21 }
 0x213   :  { %v862_v15 = vmul.f32 %v846_v13, %v804_v40  ;;  %1776 = vtanh.f32 %v909_v18 }
 0x214   :  { %v956_v12 = vmul.f32 %v940_v22, %v828_v1 }
 0x215   :  { %v878_v29 = vmul.f32 %v862_v15, %v804_v40 }
 0x216   :  { %v806_v31 = vpop.f32.mrf.mxu1  ;;  %v968_v23 = vpack.c.bf16 %v956_v12, %v955_v25 }
 0x217   :  { %v807_v0 = vadd.f32 %v2434_v9, %v806_v31  ;;  %v894_v47 = vadd.f32 %v878_v29, %v804_v40 }
 0x218   :  { %1673 = vmatmul.msk.bf16.gmra.mxu2 %vm1009_vm5, %v968_v23 }
 0x219   :  { %v847_v49 = vmul.f32 0.044715, %v807_v0  ;;  %v910_v24 = vmul.f32 0.7978846, %v894_v47  ;;  %v1777_v45 = vpop.eup %1776  ;;  %v831_v1 = vmul.f32 0.5, %v807_v0 }
 0x21a   :  { %v941_v2 = vadd.f32 1.0, %v1777_v45 }
 0x21b   :  { %v863_v36 = vmul.f32 %v847_v49, %v807_v0  ;;  %1778 = vtanh.f32 %v910_v24 }
 0x21c   :  { %v957_v56 = vmul.f32 %v941_v2, %v829_v16 }
 0x21d   :  { %v879_v50 = vmul.f32 %v863_v36, %v807_v0 }
 0x21e   :  { %v808_v34 = vpop.f32.mrf.mxu1 }
 0x21f   :  { %v809_v20 = vadd.f32 %v2434_v9, %v808_v34  ;;  %v895_v60 = vadd.f32 %v879_v50, %v807_v0 }
 0x221   :  { %v1779_v54 = vpop.eup %1778  ;;  %v848_v57 = vmul.f32 0.044715, %v809_v20  ;;  %v911_v5 = vmul.f32 0.7978846, %v895_v60  ;;  %v832_v12 = vmul.f32 0.5, %v809_v20 }
 0x222   :  { %v942_v27 = vadd.f32 1.0, %v1779_v54 }
 0x223   :  { %v864_v14 = vmul.f32 %v848_v57, %v809_v20  ;;  %1780 = vtanh.f32 %v911_v5 }
 0x224   :  { %v958_v44 = vmul.f32 %v942_v27, %v830_v59 }
 0x225   :  { %v880_v4 = vmul.f32 %v864_v14, %v809_v20 }
 0x226   :  { %v969_v51 = vpack.c.bf16 %v958_v44, %v957_v56 }
 0x227   :  { %v896_v33 = vadd.f32 %v880_v4, %v809_v20 }
 0x228   :  { %1674 = vmatmul.msk.bf16.gmra.mxu2 %vm1009_vm5, %v969_v51 }
 0x229   :  { %v912_v35 = vmul.f32 0.7978846, %v896_v33  ;;  %v1781_v41 = vpop.eup %1780 }
 0x22a   :  { %v816_v63 = vpop.f32.mrf.mxu3  ;;  %v943_v21 = vadd.f32 1.0, %v1781_v41 }
 0x22b   :  { %v817_v62 = vadd.f32 %v2434_v9, %v816_v63  ;;  %1782 = vtanh.f32 %v912_v35 }
 0x22c   :  { %v811_v58 = vpop.f32.mrf.mxu1  ;;  %v959_v49 = vmul.f32 %v943_v21, %v831_v1  ;;  %v2466_v21 = vld [vmem:[%s2879_s9] ss:$0 sm:$0xff] }
 0x22d   :  { %v812_v37 = vadd.f32 %v2434_v9, %v811_v58  ;;  %v851_v10 = vmul.f32 0.044715, %v817_v62  ;;  %v835_v4 = vmul.f32 0.5, %v817_v62 }
 0x22f   :  { %v849_v28 = vmul.f32 0.044715, %v812_v37  ;;  %v867_v40 = vmul.f32 %v851_v10, %v817_v62  ;;  %v833_v63 = vmul.f32 0.5, %v812_v37 }
 0x231   :  { %v865_v3 = vmul.f32 %v849_v28, %v812_v37  ;;  %v883_v7 = vmul.f32 %v867_v40, %v817_v62  ;;  %v1783_v13 = vpop.eup %1782 }
 0x232   :  { %v818_v19 = vpop.f32.mrf.mxu3  ;;  %v944_v29 = vadd.f32 1.0, %v1783_v13 }
 0x233   :  { %v881_v22 = vmul.f32 %v865_v3, %v812_v37  ;;  %v899_v15 = vadd.f32 %v883_v7, %v817_v62  ;;  %v819_v18 = vadd.f32 %v2434_v9, %v818_v19 }
 0x234   :  { %v813_v25 = vpop.f32.mrf.mxu1  ;;  %v960_v24 = vmul.f32 %v944_v29, %v832_v12 }
 0x235   :  { %v814_v31 = vadd.f32 %v2434_v9, %v813_v25  ;;  %v897_v23 = vadd.f32 %v881_v22, %v812_v37  ;;  %v852_v47 = vmul.f32 0.044715, %v819_v18  ;;  %v915_v45 = vmul.f32 0.7978846, %v899_v15 }
 0x236   :  { %v970_v34 = vpack.c.bf16 %v960_v24, %v959_v49  ;;  %v836_v51 = vmul.f32 0.5, %v819_v18 }
 0x237   :  { %v850_v36 = vmul.f32 0.044715, %v814_v31  ;;  %v868_v50 = vmul.f32 %v852_v47, %v819_v18  ;;  %v913_v2 = vmul.f32 0.7978846, %v897_v23  ;;  %1784 = vtanh.f32 %v915_v45 }
 0x238   :  { %1675 = vmatmul.msk.bf16.gmra.mxu2 %vm1009_vm5, %v970_v34  ;;  %v834_v35 = vmul.f32 0.5, %v814_v31 }
 0x239   :  { %v866_v60 = vmul.f32 %v850_v36, %v814_v31  ;;  %v884_v0 = vmul.f32 %v868_v50, %v819_v18  ;;  %1786 = vtanh.f32 %v913_v2 }
 0x23b   :  { %v882_v54 = vmul.f32 %v866_v60, %v814_v31  ;;  %v900_v57 = vadd.f32 %v884_v0, %v819_v18 }
 0x23d   :  { %v898_v20 = vadd.f32 %v882_v54, %v814_v31  ;;  %v916_v16 = vmul.f32 0.7978846, %v900_v57  ;;  %v1785_v59 = vpop.eup %1784 }
 0x23e   :  { %v947_v14 = vadd.f32 1.0, %v1785_v59 }
 0x23f   :  { %v914_v9 = vmul.f32 0.7978846, %v898_v20  ;;  %1788 = vtanh.f32 %v916_v16  ;;  %v1787_v27 = vpop.eup %1786 }
 0x240   :  { %v945_v56 = vadd.f32 1.0, %v1787_v27  ;;  %v963_v10 = vmul.f32 %v947_v14, %v835_v4 }
 0x241   :  { %1790 = vtanh.f32 %v914_v9 }
 0x242   :  { %v961_v28 = vmul.f32 %v945_v56, %v833_v63 }
 0x245   :  { %v1789_v5 = vpop.eup %1788 }
 0x246   :  { %v948_v33 = vadd.f32 1.0, %v1789_v5 }
 0x247   :  { %v1791_v44 = vpop.eup %1790 }
 0x248   :  { %v946_v58 = vadd.f32 1.0, %v1791_v44  ;;  %v964_v41 = vmul.f32 %v948_v33, %v836_v51 }
 0x24a   :  { %v962_v40 = vmul.f32 %v946_v58, %v834_v35  ;;  %v972_v3 = vpack.c.bf16 %v964_v41, %v963_v10 }
 0x24c   :  { %v971_v7 = vpack.c.bf16 %v962_v40, %v961_v28  ;;  %1677 = vmatmul.msk.bf16.vlgmr.msra.gmra.mxu3 %vm1009_vm5, %v972_v3 }
 0x24e   :  { %1676 = vmatmul.msk.bf16.gmra.mxu2 %vm1009_vm5, %v971_v7 }
 0x26b   :  { %v1043_v62 = vpop.f32.mrf.mxu2 }
 0x26c   :  { %v1044_v37 = vadd.f32 %v2466_v21, %v1043_v62 }
 0x26e   :  { %v2470_v13 = vadd.f32 %v1044_v37, %v2193_v52 }
 0x270   :  { %v1101_v19 = vsel %vm274_vm0, %v2470_v13, 0.0  ;;  %v1165_v1 = vmul.f32 %v2470_v13, %v2470_v13 }
 0x271   :  { %1102 = vadd.xlane.f32.xlu2 %v1101_v19 }
 0x272   :  { %v1181_v22 = vsel %vm274_vm0, %v1165_v1, 0.0 }
 0x273   :  { %v1045_v15 = vpop.f32.mrf.mxu2  ;;  %1182 = vadd.xlane.f32.xlu0 %v1181_v22 }
 0x274   :  { %v1046_v18 = vadd.f32 %v2466_v21, %v1045_v15 }
 0x276   :  { %v2479_v25 = vadd.f32 %v1046_v18, %v2196_v53 }
 0x278   :  { %v1166_v52 = vmul.f32 %v2479_v25, %v2479_v25  ;;  %v1104_v29 = vsel %vm274_vm0, %v2479_v25, 0.0 }
 0x27a   :  { %v1184_v12 = vsel %vm274_vm0, %v1166_v52, 0.0 }
 0x27b   :  { %1185 = vadd.xlane.f32.xlu1 %v1184_v12  ;;  %1105 = vadd.xlane.f32.xlu0 %v1104_v29  ;;  %v1048_v31 = vpop.f32.mrf.mxu2 }
 0x27c   :  { %v1049_v23 = vadd.f32 %v2466_v21, %v1048_v31 }
 0x27e   :  { %v2488_v47 = vadd.f32 %v1049_v23, %v2224_v39 }
 0x280   :  { %v1167_v53 = vmul.f32 %v2488_v47, %v2488_v47  ;;  %v1107_v24 = vsel %vm274_vm0, %v2488_v47, 0.0 }
 0x282   :  { %v1187_v49 = vsel %vm274_vm0, %v1167_v53, 0.0 }
 0x283   :  { %v1050_v36 = vpop.f32.mrf.mxu2  ;;  %1188 = vadd.xlane.f32.xlu2 %v1187_v49  ;;  %1108 = vadd.xlane.f32.xlu1 %v1107_v24 }
 0x284   :  { %v1051_v45 = vadd.f32 %v2466_v21, %v1050_v36 }
 0x286   :  { %v2497_v50 = vadd.f32 %v1051_v45, %v2227_v42 }
 0x288   :  { %v1168_v39 = vmul.f32 %v2497_v50, %v2497_v50  ;;  %v1110_v60 = vsel %vm274_vm0, %v2497_v50, 0.0 }
 0x28a   :  { %v1190_v34 = vsel %vm274_vm0, %v1168_v39, 0.0 }
 0x28b   :  { %1191 = vadd.xlane.f32.xlu0 %v1190_v34  ;;  %1111 = vadd.xlane.f32.xlu2 %v1110_v60  ;;  %v1053_v2 = vpop.f32.mrf.mxu2 }
 0x28c   :  { %v1054_v0 = vadd.f32 %v2466_v21, %v1053_v2 }
 0x28e   :  { %v2506_v54 = vadd.f32 %v1054_v0, %v2256_v30 }
 0x290   :  { %v1113_v42 = vsel %vm274_vm0, %v2506_v54, 0.0 }
 0x293   :  { %v1055_v57 = vpop.f32.mrf.mxu2  ;;  %1114 = vadd.xlane.f32.xlu0 %v1113_v42 }
 0x294   :  { %v1056_v22 = vadd.f32 %v2466_v21, %v1055_v57 }
 0x296   :  { %v2563_v29 = vadd.f32 %v1056_v22, %v2259_v32 }
 0x298   :  { %v1116_v24 = vsel %vm274_vm0, %v2563_v29, 0.0 }
 0x29b   :  { %v1058_v20 = vpop.f32.mrf.mxu2 }
 0x29c   :  { %v1059_v16 = vadd.f32 %v2466_v21, %v1058_v20 }
 0x29e   :  { %v2512_v9 = vadd.f32 %v1059_v16, %v2298_v55 }
 0x2a0   :  { %v1171_v59 = vmul.f32 %v2512_v9, %v2512_v9  ;;  %v1119_v16 = vsel %vm274_vm0, %v2512_v9, 0.0 }
 0x2a2   :  { %v1199_v27 = vsel %vm274_vm0, %v1171_v59, 0.0 }
 0x2a3   :  { %v1060_v14 = vpop.f32.mrf.mxu2  ;;  %1200 = vadd.xlane.f32.xlu0 %v1199_v27 }
 0x2a4   :  { %v1061_v30 = vadd.f32 %v2466_v21, %v1060_v14 }
 0x2a6   :  { %v2519_v5 = vadd.f32 %v1061_v30, %v2294_v26 }
 0x2a8   :  { %v1122_v56 = vsel %vm274_vm0, %v2519_v5, 0.0  ;;  %v1172_v0 = vmul.f32 %v2519_v5, %v2519_v5 }
 0x2aa   :  { %v1202_v59 = vsel %vm274_vm0, %v1172_v0, 0.0 }
 0x2ab   :  { %1123 = vadd.xlane.f32.xlu0 %v1122_v56  ;;  %v1063_v44 = vpop.f32.mrf.mxu2 }
 0x2ac   :  { %v1064_v2 = vadd.f32 %v2466_v21, %v1063_v44 }
 0x2ae   :  { %v2588_v20 = vadd.f32 %v1064_v2, %v2342_v6 }
 0x2b0   :  { %v1173_v44 = vmul.f32 %v2588_v20, %v2588_v20 }
 0x2b3   :  { %v1065_v4 = vpop.f32.mrf.mxu2 }
 0x2b4   :  { %v1066_v55 = vadd.f32 %v2466_v21, %v1065_v4 }
 0x2b6   :  { %v2525_v51 = vadd.f32 %v1066_v55, %v2345_v38 }
 0x2b8   :  { %v1174_v33 = vmul.f32 %v2525_v51, %v2525_v51 }
 0x2ba   :  { %v1208_v63 = vsel %vm274_vm0, %v1174_v33, 0.0  ;;  %v1205_v33 = vsel %vm274_vm0, %v1173_v44, 0.0 }
 0x2bb   :  { %1209 = vadd.xlane.f32.xlu0 %v1208_v63  ;;  %v1068_v35 = vpop.f32.mrf.mxu2  ;;  %v1125_v63 = vsel %vm274_vm0, %v2588_v20, 0.0 }
 0x2bc   :  { %v1069_v26 = vadd.f32 %v2466_v21, %v1068_v35 }
 0x2be   :  { %v2532_v58 = vadd.f32 %v1069_v26, %v2383_v46 }
 0x2c0   :  { %v1131_v10 = vsel %vm274_vm0, %v2532_v58, 0.0 }
 0x2c3   :  { %1132 = vadd.xlane.f32.xlu0 %v1131_v10  ;;  %v2536_v41 = vpop.f32.mrf.mxu2 }
 0x2cf   :  { %v1078_v38 = vpop.f32.mrf.mxu3 }
 0x2d0   :  { %v1079_v28 = vadd.f32 %v2466_v21, %v1078_v38 }
 0x2d1   :  { %v1073_v40 = vpop.f32.mrf.mxu2 }
 0x2d2   :  { %v1074_v3 = vadd.f32 %v2466_v21, %v1073_v40  ;;  %v2541_v7 = vadd.f32 %v1079_v28, %v2401_v48  ;;  %v1169_v48 = vmul.f32 %v2506_v54, %v2506_v54 }
 0x2d4   :  { %v2544_v62 = vadd.f32 %v1074_v3, %v2414_v11  ;;  %v1143_v46 = vsel %vm274_vm0, %v2541_v7, 0.0  ;;  %v1193_v23 = vsel %vm274_vm0, %v1169_v48, 0.0  ;;  %v1128_v48 = vsel %vm274_vm0, %v2525_v51, 0.0 }
 0x2d5   :  { %1144 = vadd.xlane.f32.xlu1 %v1143_v46  ;;  %v1071_v46 = vadd.f32 %v2466_v21, %v2536_v41 }
 0x2d6   :  { %v1177_v37 = vmul.f32 %v2544_v62, %v2544_v62 }
 0x2d7   :  { %v1080_v19 = vpop.f32.mrf.mxu3 }
 0x2d8   :  { %v1217_v1 = vsel %vm274_vm0, %v1177_v37, 0.0  ;;  %v1081_v15 = vadd.f32 %v2466_v21, %v1080_v19  ;;  %v1175_v19 = vmul.f32 %v2532_v58, %v2532_v58 }
 0x2d9   :  { %v1075_v18 = vpop.f32.mrf.mxu2  ;;  %1218 = vadd.xlane.f32.xlu0 %v1217_v1 }
 0x2da   :  { %v1076_v11 = vadd.f32 %v2466_v21, %v1075_v18  ;;  %v2557_v52 = vadd.f32 %v1081_v15, %v2404_v8  ;;  %v1170_v8 = vmul.f32 %v2563_v29, %v2563_v29  ;;  %v1211_v21 = vsel %vm274_vm0, %v1175_v19, 0.0 }
 0x2dc   :  { %v2560_v12 = vadd.f32 %v1076_v11, %v2417_v61  ;;  %v1146_v31 = vsel %vm274_vm0, %v2557_v52, 0.0  ;;  %v1180_v61 = vmul.f32 %v2557_v52, %v2557_v52  ;;  %v1196_v32 = vsel %vm274_vm0, %v1170_v8, 0.0 }
 0x2dd   :  { %1147 = vadd.xlane.f32.xlu2 %v1146_v31  ;;  %1194 = vadd.xlane.f32.xlu1 %v1193_v23  ;;  %v2617_v11 = vadd.f32 %v1071_v46, %v2386_v43  ;;  %v2625_v43 = vld [vmem:[%s2880_s10] ss:$0 sm:$0xff]  ;;  %s1880_s10 = smov [#allocation5]  }
 0x2de   :  { %v1140_v53 = vsel %vm274_vm0, %v2560_v12, 0.0  ;;  %v1226_v60 = vsel %vm274_vm0, %v1180_v61, 0.0 }
 0x2e1   :  { %1141 = vadd.xlane.f32.xlu0 %v1140_v53 }
 0x2e4   :  { %v1103_v49 = vpop.xlane.xlu2 %1102 }
 0x2e5   :  { %v2578_v36 = vmul.f32 %v1103_v49, %v2133_v17  ;;  %1197 = vadd.xlane.f32.xlu2 %v1196_v32  ;;  %1117 = vadd.xlane.f32.xlu1 %v1116_v24 }
 0x2e6   :  { %v1183_v45 = vpop.xlane.xlu0 %1182 }
 0x2e7   :  { %v1245_v39 = vmul.f32 %v2578_v36, %v2578_v36  ;;  %v1229_v34 = vmul.f32 %v1183_v45, %v2133_v17  ;;  %v1293_v49 = vsub.f32 %v2470_v13, %v2578_v36 }
 0x2e9   :  { %1227 = vadd.xlane.f32.xlu0 %v1226_v60  ;;  %v1261_v42 = vsub.f32 %v1229_v34, %v1245_v39  ;;  %v1176_v34 = vmul.f32 %v2617_v11, %v2617_v11  ;;  %v2635_v60 = vld [vmem:[%s2881_s11] ss:$0 sm:$0xff]  ;;  %s1559_s11 = sshll.u32 %s1880_s10, 4  ;;  %s1560_s11 = int_to_ptr.vmem [resolvable:$true] %s1559_s11 }
 0x2eb   :  { %v1277_v57 = vmax.f32 %v1261_v42, 0.0 }
 0x2ed   :  { %v1309_v27 = vadd.f32 1e-05, %v1277_v57  ;;  %1120 = vadd.xlane.f32.xlu2 %v1119_v16  ;;  %1203 = vadd.xlane.f32.xlu1 %v1202_v59  ;;  %v1214_v59 = vsel %vm274_vm0, %v1176_v34, 0.0 }
 0x2ee   :  { %v1186_v14 = vpop.xlane.xlu1 %1185  ;;  %v1106_v30 = vpop.xlane.xlu0 %1105 }
 0x2ef   :  { %1792 = vrsqrt.f32 %v1309_v27  ;;  %v2594_v56 = vmul.f32 %v1106_v30, %v2133_v17  ;;  %v1230_v6 = vmul.f32 %v1186_v14, %v2133_v17  ;;  %vm1331_vm7 = vweird.f32 %v1309_v27 }
 0x2f1   :  { %v1246_v4 = vmul.f32 %v2594_v56, %v2594_v56 }
 0x2f3   :  { %v1262_v55 = vsub.f32 %v1230_v6, %v1246_v4 }
 0x2f5   :  { %v1793_v35 = vpop.eup %1792  ;;  %v1278_v26 = vmax.f32 %v1262_v55, 0.0  ;;  %1206 = vadd.xlane.f32.xlu2 %v1205_v33  ;;  %1126 = vadd.xlane.f32.xlu1 %v1125_v63  ;;  %v1178_v63 = vmul.f32 %v2560_v12, %v2560_v12 }
 0x2f6   :  { %v1326_v10 = vmul.f32 %v1793_v35, %v1309_v27  ;;  %v1189_v38 = vpop.xlane.xlu2 %1188  ;;  %v1109_v28 = vpop.xlane.xlu1 %1108  ;;  %vm1332_vm6 = vweird.f32 %v1793_v35  ;;  %v1134_v27 = vsel %vm274_vm0, %v2617_v11, 0.0 }
 0x2f7   :  { %v1310_v40 = vadd.f32 1e-05, %v1278_v26  ;;  %v2605_v3 = vmul.f32 %v1109_v28, %v2133_v17  ;;  %v1231_v1 = vmul.f32 %v1189_v38, %v2133_v17  ;;  %vm1333_vm8 = vmor %vm1331_vm7, %vm1332_vm6  ;;  %v1220_v46 = vsel %vm274_vm0, %v1178_v63, 0.0 }
 0x2f8   :  { %v1327_v37 = vmul.f32 %v1793_v35, %v1326_v10 }
 0x2f9   :  { %1794 = vrsqrt.f32 %v1310_v40  ;;  %v1247_v22 = vmul.f32 %v2605_v3, %v2605_v3  ;;  %vm1341_vm10 = vweird.f32 %v1310_v40 }
 0x2fa   :  { %v1328_v15 = vmul.f32 0.5, %v1327_v37  ;;  %v1137_v37 = vsel %vm274_vm0, %v2544_v62, 0.0 }
 0x2fb   :  { %v1263_v18 = vsub.f32 %v1231_v1, %v1247_v22 }
 0x2fc   :  { %v1329_v31 = vsub.f32 1.5, %v1328_v15  ;;  %v1179_v15 = vmul.f32 %v2541_v7, %v2541_v7 }
 0x2fd   :  { %v1279_v41 = vmax.f32 %v1263_v18, 0.0  ;;  %1129 = vadd.xlane.f32.xlu2 %v1128_v48  ;;  %1212 = vadd.xlane.f32.xlu1 %v1211_v21  ;;  %v1295_v18 = vsub.f32 %v2488_v47, %v2605_v3 }
 0x2fe   :  { %v1330_v23 = vmul.f32 %v1793_v35, %v1329_v31  ;;  %v1112_v53 = vpop.xlane.xlu2 %1111  ;;  %v1192_v8 = vpop.xlane.xlu0 %1191 }
 0x2ff   :  { %v1795_v61 = vpop.eup %1794  ;;  %v1311_v32 = vadd.f32 1e-05, %v1279_v41  ;;  %v2628_v24 = vmul.f32 %v1112_v53, %v2133_v17  ;;  %v1232_v2 = vmul.f32 %v1192_v8, %v2133_v17 }
 0x300   :  { %v1334_v45 = vsel %vm1333_vm8, %v1793_v35, %v1330_v23  ;;  %v1336_v39 = vmul.f32 %v1795_v61, %v1310_v40  ;;  %vm1342_vm9 = vweird.f32 %v1795_v61  ;;  %v1294_v35 = vsub.f32 %v2479_v25, %v2594_v56 }
 0x301   :  { %v1485_v13 = vmul.f32 %v1334_v45, %v1293_v49  ;;  %1796 = vrsqrt.f32 %v1311_v32  ;;  %v1248_v36 = vmul.f32 %v2628_v24, %v2628_v24  ;;  %vm1343_vm11 = vmor %vm1341_vm10, %vm1342_vm9  ;;  %vm1351_vm13 = vweird.f32 %v1311_v32 }
 0x302   :  { %v1337_v0 = vmul.f32 %v1795_v61, %v1336_v39  ;;  %v1223_v23 = vsel %vm274_vm0, %v1179_v15, 0.0  ;;  %v1296_v47 = vsub.f32 %v2497_v50, %v2628_v24 }
 0x303   :  { %v1504_v42 = vmul.f32 %v2625_v43, %v1485_v13  ;;  %v1264_v57 = vsub.f32 %v1232_v2, %v1248_v36 }
 0x304   :  { %v1338_v16 = vmul.f32 0.5, %v1337_v0 }
 0x305   :  { %v1523_v14 = vadd.f32 %v2635_v60, %v1504_v42  ;;  %v1280_v30 = vmax.f32 %v1264_v57, 0.0  ;;  %1215 = vadd.xlane.f32.xlu2 %v1214_v59  ;;  %1135 = vadd.xlane.f32.xlu1 %v1134_v27 }
 0x306   :  { %v1339_v44 = vsub.f32 1.5, %v1338_v16  ;;  %v1115_v34 = vpop.xlane.xlu0 %1114 }
 0x307   :  { %v1797_v6 = vpop.eup %1796  ;;  %1539 = vst.msk [vmem:[#allocation5] sm:$0xff] %vm274_vm0, %v1523_v14  ;;  %v1312_v4 = vadd.f32 1e-05, %v1280_v30  ;;  %v1153_v50 = vmul.f32 %v1115_v34, %v2133_v17 }
 0x308   :  { %v1340_v55 = vmul.f32 %v1795_v61, %v1339_v44  ;;  %v1346_v33 = vmul.f32 %v1797_v6, %v1311_v32  ;;  %vm1352_vm12 = vweird.f32 %v1797_v6 }
 0x309   :  { %1798 = vrsqrt.f32 %v1312_v4  ;;  %vm1353_vm14 = vmor %vm1351_vm13, %vm1352_vm12  ;;  %vm1361_vm1 = vweird.f32 %v1312_v4  ;;  %v1249_v59 = vmul.f32 %v1153_v50, %v1153_v50 }
 0x30a   :  { %v1344_v26 = vsel %vm1343_vm11, %v1795_v61, %v1340_v55  ;;  %v1347_v10 = vmul.f32 %v1797_v6, %v1346_v33 }
 0x30b   :  { %v1486_v38 = vmul.f32 %v1344_v26, %v1294_v35 }
 0x30c   :  { %v1348_v28 = vmul.f32 0.5, %v1347_v10 }
 0x30d   :  { %v1505_v40 = vmul.f32 %v2625_v43, %v1486_v38  ;;  %1221 = vadd.xlane.f32.xlu1 %v1220_v46  ;;  %1138 = vadd.xlane.f32.xlu2 %v1137_v37 }
 0x30e   :  { %v1349_v19 = vsub.f32 1.5, %v1348_v28 }
 0x30f   :  { %v1799_v1 = vpop.eup %1798  ;;  %v1524_v25 = vadd.f32 %v2635_v60, %v1505_v40 }
 0x310   :  { %v1350_v56 = vmul.f32 %v1797_v6, %v1349_v19  ;;  %v1356_v22 = vmul.f32 %v1799_v1, %v1312_v4  ;;  %vm1362_vm15 = vweird.f32 %v1799_v1 }
 0x311   :  { %1540 = vst.msk [vmem:[#allocation5 + $0x8] sm:$0xff] %vm274_vm0, %v1524_v25  ;;  %vm1363_vm2 = vmor %vm1361_vm1, %vm1362_vm15 }
 0x312   :  { %v1354_v48 = vsel %vm1353_vm14, %v1797_v6, %v1350_v56  ;;  %v1357_v31 = vmul.f32 %v1799_v1, %v1356_v22 }
 0x313   :  { %v1487_v21 = vmul.f32 %v1354_v48, %v1295_v18 }
 0x314   :  { %v1358_v41 = vmul.f32 0.5, %v1357_v31 }
 0x315   :  { %v1506_v53 = vmul.f32 %v2625_v43, %v1487_v21  ;;  %1224 = vadd.xlane.f32.xlu2 %v1223_v23 }
 0x316   :  { %v1359_v8 = vsub.f32 1.5, %v1358_v41  ;;  %v1201_v13 = vpop.xlane.xlu0 %1200 }
 0x317   :  { %v1525_v61 = vadd.f32 %v2635_v60, %v1506_v53  ;;  %v1235_v53 = vmul.f32 %v1201_v13, %v2133_v17 }
 0x318   :  { %v1360_v49 = vmul.f32 %v1799_v1, %v1359_v8 }
 0x319   :  { %1541 = vst.msk [vmem:[#allocation5 + $0x10] sm:$0xff] %vm274_vm0, %v1525_v61 }
 0x31a   :  { %v1364_v3 = vsel %vm1363_vm2, %v1799_v1, %v1360_v49 }
 0x31b   :  { %v1488_v32 = vmul.f32 %v1364_v3, %v1296_v47 }
 0x31d   :  { %v1507_v45 = vmul.f32 %v2625_v43, %v1488_v32 }
 0x31e   :  { %v1124_v36 = vpop.xlane.xlu0 %1123 }
 0x31f   :  { %v1526_v39 = vadd.f32 %v2635_v60, %v1507_v45  ;;  %v2692_v37 = vmul.f32 %v1124_v36, %v2133_v17 }
 0x321   :  { %1542 = vst.msk [vmem:[#allocation5 + $0x18] sm:$0xff] %vm274_vm0, %v1526_v39  ;;  %v1252_v21 = vmul.f32 %v2692_v37, %v2692_v37 }
 0x32e   :  { %v2669_v2 = vpop.xlane.xlu0 %1209 }
 0x336   :  { %v1133_v0 = vpop.xlane.xlu0 %1132 }
 0x348   :  { %v2671_v42 = vpop.xlane.xlu1 %1144 }
 0x34c   :  { %v2673_v57 = vpop.xlane.xlu0 %1218 }
 0x350   :  { %v1148_v24 = vpop.xlane.xlu2 %1147  ;;  %v1195_v16 = vpop.xlane.xlu1 %1194 }
 0x351   :  { %v1233_v27 = vmul.f32 %v1195_v16, %v2133_v17  ;;  %v2680_v4 = vmul.f32 %v1148_v24, %v2133_v17  ;;  %v1297_v16 = vsub.f32 %v2506_v54, %v1153_v50 }
 0x353   :  { %v1265_v14 = vsub.f32 %v1233_v27, %v1249_v59  ;;  %v1260_v38 = vmul.f32 %v2680_v4, %v2680_v4 }
 0x354   :  { %v2677_v30 = vpop.xlane.xlu0 %1141 }
 0x355   :  { %v1281_v44 = vmax.f32 %v1265_v14, 0.0 }
 0x357   :  { %v1313_v6 = vadd.f32 1e-05, %v1281_v44 }
 0x358   :  { %v1198_v55 = vpop.xlane.xlu2 %1197  ;;  %v1118_v33 = vpop.xlane.xlu1 %1117 }
 0x359   :  { %1800 = vrsqrt.f32 %v1313_v6  ;;  %v2683_v63 = vmul.f32 %v1118_v33, %v2133_v17  ;;  %v1234_v35 = vmul.f32 %v1198_v55, %v2133_v17  ;;  %vm1371_vm4 = vweird.f32 %v1313_v6 }
 0x35b   :  { %v1250_v26 = vmul.f32 %v2683_v63, %v2683_v63 }
 0x35c   :  { %v1228_v10 = vpop.xlane.xlu0 %1227 }
 0x35d   :  { %v1244_v28 = vmul.f32 %v1228_v10, %v2133_v17  ;;  %v1266_v46 = vsub.f32 %v1234_v35, %v1250_v26 }
 0x35f   :  { %v1276_v40 = vsub.f32 %v1244_v28, %v1260_v38  ;;  %v1801_v19 = vpop.eup %1800  ;;  %v1282_v1 = vmax.f32 %v1266_v46, 0.0  ;;  %v1300_v28 = vsub.f32 %v2519_v5, %v2692_v37 }
 0x360   :  { %v1366_v25 = vmul.f32 %v1801_v19, %v1313_v6  ;;  %v1121_v22 = vpop.xlane.xlu2 %1120  ;;  %v1204_v15 = vpop.xlane.xlu1 %1203  ;;  %vm1372_vm3 = vweird.f32 %v1801_v19  ;;  %v2720_v6 = vmul.f32 %v1133_v0, %v2133_v17 }
 0x361   :  { %v1292_v56 = vmax.f32 %v1276_v40, 0.0  ;;  %v2694_v18 = vadd.f32 1e-05, %v1282_v1  ;;  %v2697_v48 = vmul.f32 %v1121_v22, %v2133_v17  ;;  %v1236_v31 = vmul.f32 %v1204_v15, %v2133_v17  ;;  %vm1373_vm5 = vmor %vm1371_vm4, %vm1372_vm3 }
 0x362   :  { %v1367_v41 = vmul.f32 %v1801_v19, %v1366_v25  ;;  %v1238_v40 = vmul.f32 %v2669_v2, %v2133_v17  ;;  %v1298_v22 = vsub.f32 %v2563_v29, %v2683_v63 }
 0x363   :  { %v2702_v23 = vadd.f32 1e-05, %v1292_v56  ;;  %1802 = vrsqrt.f32 %v2694_v18  ;;  %v1251_v8 = vmul.f32 %v2697_v48, %v2697_v48  ;;  %v1268_v49 = vsub.f32 %v1236_v31, %v1252_v21 }
 0x364   :  { %v1368_v61 = vmul.f32 0.5, %v1367_v41  ;;  %vm1381_vm8 = vweird.f32 %v2694_v18 }
 0x365   :  { %1804 = vrsqrt.f32 %v2702_v23  ;;  %v1267_v47 = vsub.f32 %v1235_v53, %v1251_v8  ;;  %v1284_v32 = vmax.f32 %v1268_v49, 0.0  ;;  %vm1481_vm10 = vweird.f32 %v2702_v23 }
 0x366   :  { %v1369_v3 = vsub.f32 1.5, %v1368_v61 }
 0x367   :  { %v1283_v45 = vmax.f32 %v1267_v47, 0.0  ;;  %v2709_v34 = vadd.f32 1e-05, %v1284_v32 }
 0x368   :  { %v1370_v39 = vmul.f32 %v1801_v19, %v1369_v3  ;;  %v1207_v36 = vpop.xlane.xlu2 %1206  ;;  %v1127_v13 = vpop.xlane.xlu1 %1126 }
 0x369   :  { %v1803_v24 = vpop.eup %1802  ;;  %v2712_v59 = vadd.f32 1e-05, %v1283_v45  ;;  %v2715_v27 = vmul.f32 %v1127_v13, %v2133_v17  ;;  %1806 = vrsqrt.f32 %v2709_v34  ;;  %v1237_v50 = vmul.f32 %v1207_v36, %v2133_v17 }
 0x36a   :  { %v1374_v44 = vsel %vm1373_vm5, %v1801_v19, %v1370_v39  ;;  %v1376_v55 = vmul.f32 %v1803_v24, %v2694_v18  ;;  %v1255_v19 = vmul.f32 %v2720_v6, %v2720_v6  ;;  %vm1382_vm6 = vweird.f32 %v1803_v24 }
 0x36b   :  { %v1805_v14 = vpop.eup %1804  ;;  %v1489_v33 = vmul.f32 %v1374_v44, %v1297_v16  ;;  %1808 = vrsqrt.f32 %v2712_v59  ;;  %v1253_v26 = vmul.f32 %v2715_v27, %v2715_v27  ;;  %vm1383_vm9 = vmor %vm1381_vm8, %vm1382_vm6  ;;  %v1308_v45 = vsub.f32 %v2557_v52, %v2680_v4 }
 0x36c   :  { %v1476_v35 = vmul.f32 %v1805_v14, %v2702_v23  ;;  %v1377_v54 = vmul.f32 %v1803_v24, %v1376_v55  ;;  %vm1482_vm7 = vweird.f32 %v1805_v14  ;;  %vm1391_vm12 = vweird.f32 %v2712_v59 }
 0x36d   :  { %v1508_v10 = vmul.f32 %v2625_v43, %v1489_v33  ;;  %v1269_v0 = vsub.f32 %v1237_v50, %v1253_v26  ;;  %vm1483_vm11 = vmor %vm1481_vm10, %vm1482_vm7  ;;  %vm1401_vm15 = vweird.f32 %v2709_v34 }
 0x36e   :  { %v1477_v38 = vmul.f32 %v1805_v14, %v1476_v35  ;;  %v1378_v46 = vmul.f32 0.5, %v1377_v54 }
 0x36f   :  { %v1527_v1 = vadd.f32 %v2635_v60, %v1508_v10  ;;  %v2735_v56 = vpop.eup %1806  ;;  %v1285_v31 = vmax.f32 %v1269_v0, 0.0 }
 0x370   :  { %v1478_v25 = vmul.f32 0.5, %v1477_v38  ;;  %v1379_v15 = vsub.f32 1.5, %v1378_v46  ;;  %v1130_v21 = vpop.xlane.xlu2 %1129  ;;  %v1213_v41 = vpop.xlane.xlu1 %1212  ;;  %v1396_v8 = vmul.f32 %v2735_v56, %v2709_v34  ;;  %vm1402_vm13 = vweird.f32 %v2735_v56 }
 0x371   :  { %v1809_v53 = vpop.eup %1808  ;;  %1543 = vst.msk [vmem:[#allocation5 + $0x20] sm:$0xff] %vm274_vm0, %v1527_v1  ;;  %v2743_v61 = vmul.f32 %v1130_v21, %v2133_v17  ;;  %v2747_v63 = vadd.f32 1e-05, %v1285_v31  ;;  %v1239_v23 = vmul.f32 %v1213_v41, %v2133_v17  ;;  %vm1403_vm1 = vmor %vm1401_vm15, %vm1402_vm13  ;;  %v2783_v31 = vmul.f32 %v2677_v30, %v2133_v17 }
 0x372   :  { %v1479_v2 = vsub.f32 1.5, %v1478_v25  ;;  %v1380_v49 = vmul.f32 %v1803_v24, %v1379_v15  ;;  %v1386_v29 = vmul.f32 %v1809_v53, %v2712_v59  ;;  %v1397_v3 = vmul.f32 %v2735_v56, %v1396_v8 }
 0x373   :  { %v1254_v32 = vmul.f32 %v2743_v61, %v2743_v61  ;;  %1810 = vrsqrt.f32 %v2747_v63  ;;  %vm1392_vm14 = vweird.f32 %v1809_v53  ;;  %v1271_v50 = vsub.f32 %v1239_v23, %v1255_v19 }
 0x374   :  { %v1480_v47 = vmul.f32 %v1805_v14, %v1479_v2  ;;  %v1384_v39 = vsel %vm1383_vm9, %v1803_v24, %v1380_v49  ;;  %v1387_v36 = vmul.f32 %v1809_v53, %v1386_v29  ;;  %v1398_v16 = vmul.f32 0.5, %v1397_v3  ;;  %vm1393_vm2 = vmor %vm1391_vm12, %vm1392_vm14 }
 0x375   :  { %v1490_v18 = vmul.f32 %v1384_v39, %v1298_v22  ;;  %v1270_v44 = vsub.f32 %v1238_v40, %v1254_v32  ;;  %v1287_v25 = vmax.f32 %v1271_v50, 0.0  ;;  %v1299_v22 = vsub.f32 %v2512_v9, %v2697_v48 }
 0x376   :  { %v1484_v13 = vsel %vm1483_vm11, %v1805_v14, %v1480_v47  ;;  %v1388_v33 = vmul.f32 0.5, %v1387_v36  ;;  %v1399_v54 = vsub.f32 1.5, %v1398_v16  ;;  %v1258_v5 = vmul.f32 %v2783_v31, %v2783_v31 }
 0x377   :  { %v1500_v55 = vmul.f32 %v1484_v13, %v1308_v45  ;;  %v1509_v35 = vmul.f32 %v2625_v43, %v1490_v18  ;;  %v1286_v52 = vmax.f32 %v1270_v44, 0.0  ;;  %v2789_v48 = vadd.f32 1e-05, %v1287_v25 }
 0x378   :  { %v1389_v24 = vsub.f32 1.5, %v1388_v33  ;;  %v1216_v14 = vpop.xlane.xlu2 %1215  ;;  %v1136_v26 = vpop.xlane.xlu1 %1135  ;;  %v1400_v38 = vmul.f32 %v2735_v56, %v1399_v54  ;;  %v2804_v36 = vmul.f32 %v2671_v42, %v2133_v17  ;;  %vm1411_vm4 = vweird.f32 %v2747_v63 }
 0x379   :  { %v1519_v4 = vmul.f32 %v2625_v43, %v1500_v55  ;;  %v1528_v10 = vadd.f32 %v2635_v60, %v1509_v35  ;;  %v2764_v46 = vadd.f32 1e-05, %v1286_v52  ;;  %v1811_v0 = vpop.eup %1810  ;;  %v2770_v19 = vmul.f32 %v1136_v26, %v2133_v17 }
 0x37a   :  { %v1390_v1 = vmul.f32 %v1809_v53, %v1389_v24  ;;  %v1404_v34 = vsel %vm1403_vm1, %v2735_v56, %v1400_v38  ;;  %v1406_v15 = vmul.f32 %v1811_v0, %v2747_v63  ;;  %v1240_v56 = vmul.f32 %v1216_v14, %v2133_v17 }
 0x37b   :  { %v1538_v40 = vadd.f32 %v2635_v60, %v1519_v4  ;;  %1544 = vst.msk [vmem:[#allocation5 + $0x28] sm:$0xff] %vm274_vm0, %v1528_v10  ;;  %1812 = vrsqrt.f32 %v2764_v46  ;;  %v1492_v9 = vmul.f32 %v1404_v34, %v1300_v28  ;;  %v1256_v2 = vmul.f32 %v2770_v19, %v2770_v19 }
 0x37c   :  { %v1394_v21 = vsel %vm1393_vm2, %v1809_v53, %v1390_v1  ;;  %v1407_v41 = vmul.f32 %v1811_v0, %v1406_v15  ;;  %1814 = vrsqrt.f32 %v2789_v48  ;;  %vm1412_vm3 = vweird.f32 %v1811_v0 }
 0x37d   :  { %1554 = vst.msk [vmem:[#allocation5 + $0x78] sm:$0xff] %vm274_vm0, %v1538_v40  ;;  %v1491_v59 = vmul.f32 %v1394_v21, %v1299_v22  ;;  %v1511_v8 = vmul.f32 %v2625_v43, %v1492_v9  ;;  %v1272_v49 = vsub.f32 %v1240_v56, %v1256_v2  ;;  %v1301_v42 = vsub.f32 %v2588_v20, %v2715_v27  ;;  %vm1413_vm5 = vmor %vm1411_vm4, %vm1412_vm3 }
 0x37e   :  { %v1408_v53 = vmul.f32 0.5, %v1407_v41  ;;  %v1241_v54 = vmul.f32 %v2673_v57, %v2133_v17  ;;  %v1259_v20 = vmul.f32 %v2804_v36, %v2804_v36  ;;  %v1302_v57 = vsub.f32 %v2525_v51, %v2743_v61 }
 0x37f   :  { %v1510_v30 = vmul.f32 %v2625_v43, %v1491_v59  ;;  %v1530_v37 = vadd.f32 %v2635_v60, %v1511_v8  ;;  %v1288_v45 = vmax.f32 %v1272_v49, 0.0  ;;  %vm1421_vm7 = vweird.f32 %v2764_v46 }
 0x380   :  { %v1222_v28 = vpop.xlane.xlu1 %1221  ;;  %v1139_v29 = vpop.xlane.xlu2 %1138  ;;  %v1409_v32 = vsub.f32 1.5, %v1408_v53  ;;  %vm1431_vm10 = vweird.f32 %v2789_v48 }
 0x381   :  { %v1813_v47 = vpop.eup %1812  ;;  %v1529_v3 = vadd.f32 %v2635_v60, %v1510_v30  ;;  %v1242_v39 = vmul.f32 %v1222_v28, %v2133_v17  ;;  %1546 = vst.msk [vmem:[#allocation5 + $0x38] sm:$0xff] %vm274_vm0, %v1530_v37  ;;  %v2809_v13 = vmul.f32 %v1139_v29, %v2133_v17  ;;  %v2813_v44 = vadd.f32 1e-05, %v1288_v45 }
 0x382   :  { %v1416_v18 = vmul.f32 %v1813_v47, %v2764_v46  ;;  %v1410_v16 = vmul.f32 %v1811_v0, %v1409_v32  ;;  %v1815_v33 = vpop.eup %1814  ;;  %vm1422_vm6 = vweird.f32 %v1813_v47 }
 0x383   :  { %1545 = vst.msk [vmem:[#allocation5 + $0x30] sm:$0xff] %vm274_vm0, %v1529_v3  ;;  %v1274_v55 = vsub.f32 %v1242_v39, %v1258_v5  ;;  %v1257_v35 = vmul.f32 %v2809_v13, %v2809_v13  ;;  %v1426_v4 = vmul.f32 %v1815_v33, %v2789_v48  ;;  %1816 = vrsqrt.f32 %v2813_v44  ;;  %vm1423_vm8 = vmor %vm1421_vm7, %vm1422_vm6 }
 0x384   :  { %v1417_v23 = vmul.f32 %v1813_v47, %v1416_v18  ;;  %v1414_v52 = vsel %vm1413_vm5, %v1811_v0, %v1410_v16  ;;  %vm1432_vm9 = vweird.f32 %v1815_v33  ;;  %vm1441_vm13 = vweird.f32 %v2813_v44 }
 0x385   :  { %v1493_v63 = vmul.f32 %v1414_v52, %v1301_v42  ;;  %v1290_v50 = vmax.f32 %v1274_v55, 0.0  ;;  %v1427_v27 = vmul.f32 %v1815_v33, %v1426_v4  ;;  %v1273_v14 = vsub.f32 %v1241_v54, %v1257_v35  ;;  %vm1433_vm11 = vmor %vm1431_vm10, %vm1432_vm9 }
 0x386   :  { %v1418_v24 = vmul.f32 0.5, %v1417_v23  ;;  %v1304_v39 = vsub.f32 %v2617_v11, %v2770_v19  ;;  %v1306_v4 = vsub.f32 %v2560_v12, %v2783_v31 }
 0x387   :  { %v1512_v26 = vmul.f32 %v2625_v43, %v1493_v63  ;;  %v1322_v38 = vadd.f32 1e-05, %v1290_v50  ;;  %v1428_v0 = vmul.f32 0.5, %v1427_v27  ;;  %v1289_v1 = vmax.f32 %v1273_v14, 0.0 }
 0x388   :  { %v1419_v10 = vsub.f32 1.5, %v1418_v24  ;;  %v1225_v40 = vpop.xlane.xlu2 %1224  ;;  %v1305_v27 = vsub.f32 %v2544_v62, %v2809_v13 }
 0x389   :  { %v1243_v25 = vmul.f32 %v1225_v40, %v2133_v17  ;;  %v1531_v22 = vadd.f32 %v2635_v60, %v1512_v26  ;;  %1818 = vrsqrt.f32 %v1322_v38  ;;  %v1817_v15 = vpop.eup %1816  ;;  %v1429_v21 = vsub.f32 1.5, %v1428_v0 }
 0x38a   :  { %v1420_v34 = vmul.f32 %v1813_v47, %v1419_v10  ;;  %v1321_v9 = vadd.f32 1e-05, %v1289_v1  ;;  %v1436_v51 = vmul.f32 %v1817_v15, %v2813_v44  ;;  %v1303_v17 = vsub.f32 %v2532_v58, %v2720_v6 }
 0x38b   :  { %v1275_v59 = vsub.f32 %v1243_v25, %v1259_v20  ;;  %1547 = vst.msk [vmem:[#allocation5 + $0x40] sm:$0xff] %vm274_vm0, %v1531_v22  ;;  %v1430_v56 = vmul.f32 %v1815_v33, %v1429_v21  ;;  %vm1442_vm12 = vweird.f32 %v1817_v15  ;;  %vm1461_vm1 = vweird.f32 %v1322_v38 }
 0x38c   :  { %v1424_v41 = vsel %vm1423_vm8, %v1813_v47, %v1420_v34  ;;  %1820 = vrsqrt.f32 %v1321_v9  ;;  %v1437_v46 = vmul.f32 %v1817_v15, %v1436_v51  ;;  %vm1443_vm14 = vmor %vm1441_vm13, %vm1442_vm12  ;;  %vm1451_vm4 = vweird.f32 %v1321_v9 }
 0x38d   :  { %v1494_v61 = vmul.f32 %v1424_v41, %v1302_v57  ;;  %v1291_v2 = vmax.f32 %v1275_v59, 0.0  ;;  %v1434_v30 = vsel %vm1433_vm11, %v1815_v33, %v1430_v56  ;;  %v1307_v0 = vsub.f32 %v2541_v7, %v2804_v36 }
 0x38e   :  { %v1495_v49 = vmul.f32 %v1434_v30, %v1303_v17  ;;  %v1438_v5 = vmul.f32 0.5, %v1437_v46 }
 0x38f   :  { %v1513_v8 = vmul.f32 %v2625_v43, %v1494_v61  ;;  %v1819_v53 = vpop.eup %1818  ;;  %v1323_v37 = vadd.f32 1e-05, %v1291_v2 }
 0x390   :  { %v1456_v29 = vmul.f32 %v1819_v53, %v1322_v38  ;;  %v1514_v47 = vmul.f32 %v2625_v43, %v1495_v49  ;;  %v1439_v48 = vsub.f32 1.5, %v1438_v5  ;;  %vm1462_vm15 = vweird.f32 %v1819_v53 }
 0x391   :  { %v1532_v28 = vadd.f32 %v2635_v60, %v1513_v8  ;;  %1822 = vrsqrt.f32 %v1323_v37  ;;  %vm1463_vm2 = vmor %vm1461_vm1, %vm1462_vm15  ;;  %vm1471_vm7 = vweird.f32 %v1323_v37 }
 0x392   :  { %v1821_v3 = vpop.eup %1820  ;;  %v1457_v58 = vmul.f32 %v1819_v53, %v1456_v29  ;;  %v1533_v6 = vadd.f32 %v2635_v60, %v1514_v47  ;;  %v1440_v32 = vmul.f32 %v1817_v15, %v1439_v48 }
 0x393   :  { %1548 = vst.msk [vmem:[#allocation5 + $0x48] sm:$0xff] %vm274_vm0, %v1532_v28  ;;  %v1446_v45 = vmul.f32 %v1821_v3, %v1321_v9  ;;  %vm1452_vm3 = vweird.f32 %v1821_v3 }
 0x394   :  { %v1458_v18 = vmul.f32 0.5, %v1457_v58  ;;  %1549 = vst.msk [vmem:[#allocation5 + $0x50] sm:$0xff] %vm274_vm0, %v1533_v6  ;;  %v1444_v16 = vsel %vm1443_vm14, %v1817_v15, %v1440_v32  ;;  %vm1453_vm5 = vmor %vm1451_vm4, %vm1452_vm3 }
 0x395   :  { %v1447_v55 = vmul.f32 %v1821_v3, %v1446_v45  ;;  %v1496_v33 = vmul.f32 %v1444_v16, %v1304_v39 }
 0x396   :  { %v1459_v42 = vsub.f32 1.5, %v1458_v18 }
 0x397   :  { %v1823_v23 = vpop.eup %1822  ;;  %v1448_v35 = vmul.f32 0.5, %v1447_v55  ;;  %v1515_v54 = vmul.f32 %v2625_v43, %v1496_v33 }
 0x398   :  { %v1460_v52 = vmul.f32 %v1819_v53, %v1459_v42  ;;  %v1466_v44 = vmul.f32 %v1823_v23, %v1323_v37  ;;  %vm1472_vm6 = vweird.f32 %v1823_v23 }
 0x399   :  { %v1449_v11 = vsub.f32 1.5, %v1448_v35  ;;  %v1534_v19 = vadd.f32 %v2635_v60, %v1515_v54  ;;  %vm1473_vm8 = vmor %vm1471_vm7, %vm1472_vm6 }
 0x39a   :  { %v1464_v63 = vsel %vm1463_vm2, %v1819_v53, %v1460_v52  ;;  %v1467_v24 = vmul.f32 %v1823_v23, %v1466_v44 }
 0x39b   :  { %v1498_v50 = vmul.f32 %v1464_v63, %v1306_v4  ;;  %v1450_v20 = vmul.f32 %v1821_v3, %v1449_v11  ;;  %1550 = vst.msk [vmem:[#allocation5 + $0x58] sm:$0xff] %vm274_vm0, %v1534_v19 }
 0x39c   :  { %v1468_v14 = vmul.f32 0.5, %v1467_v24 }
 0x39d   :  { %v1517_v26 = vmul.f32 %v2625_v43, %v1498_v50  ;;  %v1454_v12 = vsel %vm1453_vm5, %v1821_v3, %v1450_v20 }
 0x39e   :  { %v1497_v31 = vmul.f32 %v1454_v12, %v1305_v27  ;;  %v1469_v10 = vsub.f32 1.5, %v1468_v14 }
 0x39f   :  { %v1536_v38 = vadd.f32 %v2635_v60, %v1517_v26 }
 0x3a0   :  { %v1516_v40 = vmul.f32 %v2625_v43, %v1497_v31  ;;  %v1470_v57 = vmul.f32 %v1823_v23, %v1469_v10 }
 0x3a1   :  { %1552 = vst.msk [vmem:[#allocation5 + $0x68] sm:$0xff] %vm274_vm0, %v1536_v38 }
 0x3a2   :  { %v1535_v62 = vadd.f32 %v2635_v60, %v1516_v40  ;;  %v1474_v13 = vsel %vm1473_vm8, %v1823_v23, %v1470_v57 }
 0x3a3   :  { %v1499_v1 = vmul.f32 %v1474_v13, %v1307_v0 }
 0x3a4   :  { %1551 = vst.msk [vmem:[#allocation5 + $0x60] sm:$0xff] %vm274_vm0, %v1535_v62 }
 0x3a5   :  { %v1518_v25 = vmul.f32 %v2625_v43, %v1499_v1 }
 0x3a7   :  { %v1537_v22 = vadd.f32 %v2635_v60, %v1518_v25 }
 0x3a9   :  { %1553 = vst.msk [vmem:[#allocation5 + $0x70] sm:$0xff] %vm274_vm0, %v1537_v22 }
 0x3aa   :  { %1567 = dma.vmem_to_hbm [thread:$0]  %s1560_s11, 2048, %s1562_s0, [#allocation4], %s1877_s26, %s1877_s26, %s1878_s27  }
 0x3ab   :  { %1874 = dma.done.wait [#allocation4], 2048  }
 0x3ac   :  { %1875 = vsyncadd [#allocation4], 4294965248 }
 0x3ad   :  { %1572 = vsyncpa [#allocation3], 1 }
 0x3ae   :  { %1573 = vsyncpa [#allocation4], 1 }

</bundles_post_ra>
